<compile_context>
chip_gen: v7x
topology: tpu7x:2x2x1
jax: 0.10.0
libtpu: 0.0.40
codegen_flags: <defaults>
</compile_context>

<pallas_src>
import functools
import math

import jax
import jax.numpy as jnp
import numpy as np
from jax.experimental import pallas as pl
from jax.experimental.pallas import tpu as pltpu

K_AUG = 8  # augmented point rows: [x, y, z, 1, 0, 0, 0, 0] (8-sublane aligned)


def _detect_fast_path():
    """bf16-native VPU / big MXU path only on v6e / v7x; conservative elsewhere."""
    try:
        kind = jax.devices()[0].device_kind.lower()
    except Exception:
        return False
    return ("v6" in kind) or ("v7" in kind) or ("7x" in kind) or ("trillium" in kind)


_FAST_PATH = _detect_fast_path()


# ----------------------------------------------------------------------------
# Generator kernel: feature-on-sublane / N-on-lane (lane-dense outputs).
#   fast_path (v6e/v7x): layer 1 = bf16 MXU matmul with bias folded in as an
#     augmented column; activations in packed bf16.
#   conservative (v5e & others): layer 1 = f32 VPU outer products; f32 activations.
#   Layers 2/3 are standard-orientation MXU matmuls (bf16 in, f32 accumulate).
# ----------------------------------------------------------------------------
def generator_kernel(pts_ref, w1aug_ref, w2_ref, b2_ref, w3_ref, b3_ref,
                     gt_ref, gmax_ref, *, fast_path):
    w1aug = w1aug_ref[0]                                  # (H1, K_AUG)
    if fast_path:
        # layer 1 on the MXU; bias rides as the augmented column (ones row in pts)
        pts = pts_ref[0].astype(jnp.bfloat16)             # (K_AUG, bn)
        h = jnp.dot(w1aug, pts, preferred_element_type=jnp.float32)   # (H1, bn)
        h = h.astype(jnp.bfloat16)
        h = jnp.maximum(h, h * 0.01)                      # leaky_relu(0.01), bf16
    else:
        # v5e path: K=3 contraction on the VPU in f32 (no bf16 VALU on v5e)
        pts = pts_ref[0]                                  # (K_AUG, bn) f32
        h = (w1aug[:, 0:1] * pts[0:1, :]
             + w1aug[:, 1:2] * pts[1:2, :]
             + w1aug[:, 2:3] * pts[2:3, :]
             + w1aug[:, 3:4])                             # bias column (ones row == 1)
        h = jnp.maximum(h, h * 0.01)                      # f32
        h = h.astype(jnp.bfloat16)

    # ---- layer 2: 256x1024 MXU matmul, bf16 in / f32 acc
    h2 = jnp.dot(w2_ref[...], h, preferred_element_type=jnp.float32) + b2_ref[...]
    if fast_path:
        h2 = h2.astype(jnp.bfloat16)
        h2 = jnp.maximum(h2, h2 * 0.01)                   # bf16
    else:
        h2 = jnp.maximum(h2, h2 * 0.01)                   # f32
        h2 = h2.astype(jnp.bfloat16)

    # ---- layer 3 + sigmoid (f32) + max over split axis; lane-dense stores
    g = jax.nn.sigmoid(
        jnp.dot(w3_ref[...], h2, preferred_element_type=jnp.float32) + b3_ref[...])
    gt_ref[0] = g                                         # (S, bn)
    gmax_ref[0] = jnp.max(g, axis=0, keepdims=True)       # (1, bn)


def generator_forward(pts_aug, w1aug, gen_params, *, fast_path, block_n=1024):
    """pts_aug: (B, K_AUG, N) f32; w1aug: (B, H1, K_AUG).
    Returns (G_t (B,S,N), G_t_max (B,1,N)) lane-dense in N."""
    w2, b2, w3, b3 = gen_params["w2"], gen_params["b2"], gen_params["w3"], gen_params["b3"]
    B, _, N = pts_aug.shape
    H1 = w1aug.shape[1]
    H2 = w2.shape[0]
    S = w3.shape[0]

    # Pad N to a multiple of 128 / block_n (never collapse to one giant tile).
    n_pad = ((N + 127) // 128) * 128
    block_n = min(block_n, n_pad)
    n_pad = ((n_pad + block_n - 1) // block_n) * block_n
    if n_pad != N:
        pts_aug = jnp.pad(pts_aug, ((0, 0), (0, 0), (0, n_pad - N)))

    grid = (B, n_pad // block_n)
    kernel = functools.partial(generator_kernel, fast_path=fast_path)

    gt, gmax = pl.pallas_call(
        kernel,
        out_shape=(
            jax.ShapeDtypeStruct((B, S, n_pad), jnp.float32),
            jax.ShapeDtypeStruct((B, 1, n_pad), jnp.float32),
        ),
        grid_spec=pltpu.PrefetchScalarGridSpec(
            num_scalar_prefetch=0,
            grid=grid,
            in_specs=[
                pl.BlockSpec((1, K_AUG, block_n), lambda bi, ni: (bi, 0, ni)),
                pl.BlockSpec((1, H1, K_AUG), lambda bi, ni: (bi, 0, 0)),
                pl.BlockSpec((H2, H1), lambda bi, ni: (0, 0)),
                pl.BlockSpec((H2, 1), lambda bi, ni: (0, 0)),
                pl.BlockSpec((S, H2), lambda bi, ni: (0, 0)),
                pl.BlockSpec((S, 1), lambda bi, ni: (0, 0)),
            ],
            out_specs=[
                pl.BlockSpec((1, S, block_n), lambda bi, ni: (bi, 0, ni)),
                pl.BlockSpec((1, 1, block_n), lambda bi, ni: (bi, 0, ni)),
            ],
        ),
        # Batch axis parallel (sharded across TCs where supported), N axis parallel.
        # (CORE_PARALLEL could be forced on v7x's leading axis; kept portable here.)
        compiler_params=pltpu.CompilerParams(
            dimension_semantics=("parallel", "parallel")),
    )(pts_aug, w1aug, w2, b2, w3, b3)

    if n_pad != N:
        gt = gt[:, :, :N]
        gmax = gmax[:, :, :N]
    return gt, gmax


# ----------------------------------------------------------------------------
# Parameter init (xavier uniform for generator Linears, PyTorch default for conv0)
# ----------------------------------------------------------------------------
def xavier_uniform(key, fan_in, fan_out):
    limit = math.sqrt(6.0 / (fan_in + fan_out))
    # stored as (in, out) so the math is x @ W (PyTorch Linear is x @ W.T)
    return jax.random.uniform(key, (fan_in, fan_out), jnp.float32, -limit, limit)


def init_params(key):
    z_dim, gf_dim, gf_split, c_enc = 512, 256, 8, 16
    h1_out = 4 * gf_dim
    ks = jax.random.split(key, 5)

    # generator.h1 : Linear(z_dim + 3, 1024), split into point / latent parts
    w1 = xavier_uniform(ks[0], 3 + z_dim, h1_out)            # (515, 1024)
    w1p, w1z = w1[:3, :], w1[3:, :]                          # (3,1024), (512,1024)
    b1 = jnp.zeros((h1_out,), jnp.float32)
    w2 = xavier_uniform(ks[1], h1_out, gf_dim)               # (1024, 256)
    b2 = jnp.zeros((gf_dim,), jnp.float32)
    w3 = xavier_uniform(ks[2], gf_dim, gf_split)             # (256, 8)
    b3 = jnp.zeros((gf_split,), jnp.float32)

    # encoder.conv0 : Conv1d(16, 1, 1), default U(-1/sqrt(16), 1/sqrt(16))
    lim = 1.0 / math.sqrt(c_enc)
    w0 = jax.random.uniform(ks[3], (c_enc,), jnp.float32, -lim, lim)
    b0 = jax.random.uniform(ks[4], (), jnp.float32, -lim, lim)

    ref_params = dict(w0=w0, b0=b0, w1p=w1p, w1z=w1z, b1=b1, w2=w2, b2=b2, w3=w3, b3=b3)

    kernel_params = {
        "enc": dict(w0=w0, b0=b0, w1z=w1z, b1=b1,
                    w1p_t=jnp.transpose(w1p)),               # (1024, 3) f32
        "gen": dict(
            w2=jnp.transpose(w2).astype(jnp.bfloat16),       # (256, 1024) bf16 (host-cast)
            b2=b2.reshape(gf_dim, 1),                        # (256, 1)    f32
            w3=jnp.transpose(w3).astype(jnp.bfloat16),       # (8, 256)    bf16 (host-cast)
            b3=b3.reshape(gf_split, 1),                      # (8, 1)      f32
        ),
    }
    return kernel_params, ref_params


# ----------------------------------------------------------------------------
# Full BAE_deform forward (backbone + deformer stubbed; see TODOs at top)
# ----------------------------------------------------------------------------
def _bae_deform_forward(fps_point, point_coord, l4_features, params, *, fast_path):
    del fps_point  # eval-mode identity rotation; SA backbone stubbed (l4_features given)
    enc, gen = params["enc"], params["gen"]
    B, N, _ = point_coord.shape
    H1 = enc["w1p_t"].shape[0]
    hp = jax.lax.Precision.HIGHEST

    # conv0 (Conv1d 16->1, k=1) + z @ W1z + b1 folded into a per-batch effective
    # layer-1 bias.  M=1 / K=16 / K=512 work -> plain XLA (no extra pallas_call).
    E = jnp.einsum("bcl,c->bl", l4_features, enc["w0"], precision=hp) + enc["b0"]  # (B,512)
    b1_eff = jnp.dot(E, enc["w1z"], precision=hp) + enc["b1"]                       # (B,H1)

    # Augmented per-batch layer-1 weight [W1p^T | b1_eff | 0...] so the bias rides
    # the layer-1 matmul (ones row appended to the points below).
    cdt = jnp.bfloat16 if fast_path else jnp.float32
    w1aug = jnp.concatenate(
        [jnp.broadcast_to(enc["w1p_t"][None], (B, H1, 3)),
         b1_eff[:, :, None],
         jnp.zeros((B, H1, K_AUG - 4), jnp.float32)], axis=2).astype(cdt)  # (B,H1,K_AUG)

    # TODO(synk): deformer definition not provided; deformation = 0.
    deformation = jnp.zeros_like(point_coord)
    query = point_coord + deformation                          # (B, N, 3)

    pts_t = jnp.transpose(query, (0, 2, 1))                    # (B, 3, N) lane-dense in N
    pts_aug = jnp.concatenate(
        [pts_t,
         jnp.ones((B, 1, N), pts_t.dtype),
         jnp.zeros((B, K_AUG - 4, N), pts_t.dtype)], axis=1)   # (B, K_AUG, N)

    gt, gmax = generator_forward(pts_aug, w1aug, gen, fast_path=fast_path)
    G_ = jnp.transpose(gt, (0, 2, 1))                          # (B, N, 8)
    G = jnp.transpose(gmax, (0, 2, 1))                         # (B, N, 1)
    return {"G_": G_, "G": G}


bae_deform_forward = jax.jit(functools.partial(_bae_deform_forward, fast_path=_FAST_PATH))


# ----------------------------------------------------------------------------
# Pure-JAX f32 reference for the Pallas-covered compute path
# ----------------------------------------------------------------------------
def reference(point_coord, l4_features, rp):
    hp = jax.lax.Precision.HIGHEST
    E = jnp.einsum("bcl,c->bl", l4_features, rp["w0"], precision=hp) + rp["b0"]
    z = E[:, None, :]                                          # (B, 1, 512)
    h = (jnp.dot(point_coord, rp["w1p"], precision=hp)
         + jnp.dot(z, rp["w1z"], precision=hp) + rp["b1"])
    h = jnp.where(h > 0, h, 0.01 * h)
    h = jnp.dot(h, rp["w2"], precision=hp) + rp["b2"]
    h = jnp.where(h > 0, h, 0.01 * h)
    g = jax.nn.sigmoid(jnp.dot(h, rp["w3"], precision=hp) + rp["b3"])
    return g, jnp.max(g, axis=-1, keepdims=True)


if __name__ == "__main__":
    key = jax.random.PRNGKey(0)
    k_fps, k_pts, k_feat, k_param = jax.random.split(key, 4)

    # N_pts deliberately NOT a multiple of 128 to exercise the pad-and-slice path.
    B, N_fps, N_pts = 2, 256, 200
    fps_point = jax.random.normal(k_fps, (B, N_fps, 3), jnp.float32)
    point_coord = jax.random.uniform(k_pts, (B, N_pts, 3), jnp.float32, -0.5, 0.5)
    l4_features = jax.random.normal(k_feat, (B, 16, 512), jnp.float32)

    kernel_params, ref_params = init_params(k_param)

    out = bae_deform_forward(fps_point, point_coord, l4_features, kernel_params)
    jax.block_until_ready(out)

    ref_G_, ref_G = reference(point_coord, l4_features, ref_params)

    # generator uses bf16 matmul inputs / bf16 epilogues with f32 accumulation
    # -> relaxed tolerance against the pure-f32 reference.
    np.testing.assert_allclose(np.asarray(out["G_"]), np.asarray(ref_G_),
                               rtol=2e-2, atol=2e-2)
    np.testing.assert_allclose(np.asarray(out["G"]), np.asarray(ref_G),
                               rtol=2e-2, atol=2e-2)

    assert out["G_"].shape == (B, N_pts, 8)
    assert out["G"].shape == (B, N_pts, 1)
    print("KERNEL_OK")
</pallas_src>

<mosaic_0001>
module attributes {stable_mosaic.version = 11 : i64} {
  func.func @generator_kernel(%arg0: i32, %arg1: i32, %arg2: memref<1x8x256xf32, #tpu.memory_space<vmem>>, %arg3: memref<1x1024x8xf32, #tpu.memory_space<vmem>>, %arg4: memref<256x1024xbf16, #tpu.memory_space<vmem>>, %arg5: memref<256x1xf32, #tpu.memory_space<vmem>>, %arg6: memref<8x256xbf16, #tpu.memory_space<vmem>>, %arg7: memref<8x1xf32, #tpu.memory_space<vmem>>, %arg8: memref<1x8x256xf32, #tpu.memory_space<vmem>>, %arg9: memref<1x1x256xf32, #tpu.memory_space<vmem>>) attributes {dimension_semantics = [#tpu.dimension_semantics<parallel>, #tpu.dimension_semantics<parallel>], iteration_bounds = array<i64: 2, 1>, scalar_prefetch = 0 : i64, scratch_operands = 0 : i64, tpu.core_type = #tpu.core_type<tc>, window_params = [{transform_indices = @transform_0, window_bounds = array<i64: 1, 8, 256>}, {transform_indices = @transform_1, window_bounds = array<i64: 1, 1024, 8>}, {pipeline_mode = #tpu.pipeline_mode<synchronous>, transform_indices = @transform_2, window_bounds = array<i64: 256, 1024>}, {pipeline_mode = #tpu.pipeline_mode<synchronous>, transform_indices = @transform_3, window_bounds = array<i64: 256, 1>}, {pipeline_mode = #tpu.pipeline_mode<synchronous>, transform_indices = @transform_4, window_bounds = array<i64: 8, 256>}, {pipeline_mode = #tpu.pipeline_mode<synchronous>, transform_indices = @transform_5, window_bounds = array<i64: 8, 1>}, {transform_indices = @transform_6, window_bounds = array<i64: 1, 8, 256>}, {transform_indices = @transform_7, window_bounds = array<i64: 1, 1, 256>}]} {
    %c0 = arith.constant 0 : index
    %c0_0 = arith.constant 0 : index
    %c0_1 = arith.constant 0 : index
    %0 = vector.load %arg3[%c0, %c0_0, %c0_1] : memref<1x1024x8xf32, #tpu.memory_space<vmem>>, vector<1x1024x8xf32>
    %1 = vector.shape_cast %0 : vector<1x1024x8xf32> to vector<1024x8xf32>
    %c0_2 = arith.constant 0 : index
    %c0_3 = arith.constant 0 : index
    %c0_4 = arith.constant 0 : index
    %2 = vector.load %arg2[%c0_2, %c0_3, %c0_4] : memref<1x8x256xf32, #tpu.memory_space<vmem>>, vector<1x8x256xf32>
    %3 = vector.shape_cast %2 : vector<1x8x256xf32> to vector<8x256xf32>
    %4 = vector.extract_strided_slice %1 {offsets = [0, 0], sizes = [1024, 1], strides = [1, 1]} : vector<1024x8xf32> to vector<1024x1xf32>
    %5 = vector.extract_strided_slice %3 {offsets = [0, 0], sizes = [1, 256], strides = [1, 1]} : vector<8x256xf32> to vector<1x256xf32>
    %6 = vector.broadcast %4 : vector<1024x1xf32> to vector<1024x256xf32>
    %7 = vector.broadcast %5 : vector<1x256xf32> to vector<1024x256xf32>
    %8 = arith.mulf %6, %7 : vector<1024x256xf32>
    %9 = vector.extract_strided_slice %1 {offsets = [0, 1], sizes = [1024, 1], strides = [1, 1]} : vector<1024x8xf32> to vector<1024x1xf32>
    %10 = vector.extract_strided_slice %3 {offsets = [1, 0], sizes = [1, 256], strides = [1, 1]} : vector<8x256xf32> to vector<1x256xf32>
    %11 = vector.broadcast %9 : vector<1024x1xf32> to vector<1024x256xf32>
    %12 = vector.broadcast %10 : vector<1x256xf32> to vector<1024x256xf32>
    %13 = arith.mulf %11, %12 : vector<1024x256xf32>
    %14 = arith.addf %8, %13 : vector<1024x256xf32>
    %15 = vector.extract_strided_slice %1 {offsets = [0, 2], sizes = [1024, 1], strides = [1, 1]} : vector<1024x8xf32> to vector<1024x1xf32>
    %16 = vector.extract_strided_slice %3 {offsets = [2, 0], sizes = [1, 256], strides = [1, 1]} : vector<8x256xf32> to vector<1x256xf32>
    %17 = vector.broadcast %15 : vector<1024x1xf32> to vector<1024x256xf32>
    %18 = vector.broadcast %16 : vector<1x256xf32> to vector<1024x256xf32>
    %19 = arith.mulf %17, %18 : vector<1024x256xf32>
    %20 = arith.addf %14, %19 : vector<1024x256xf32>
    %21 = vector.extract_strided_slice %1 {offsets = [0, 3], sizes = [1024, 1], strides = [1, 1]} : vector<1024x8xf32> to vector<1024x1xf32>
    %22 = vector.broadcast %21 : vector<1024x1xf32> to vector<1024x256xf32>
    %23 = arith.addf %20, %22 : vector<1024x256xf32>
    %cst = arith.constant 0.00999999977 : f32
    %24 = vector.broadcast %cst : f32 to vector<1024x256xf32>
    %25 = arith.mulf %23, %24 : vector<1024x256xf32>
    %26 = arith.maximumf %23, %25 : vector<1024x256xf32>
    %27 = arith.truncf %26 : vector<1024x256xf32> to vector<1024x256xbf16>
    %c0_5 = arith.constant 0 : index
    %c0_6 = arith.constant 0 : index
    %28 = vector.load %arg4[%c0_5, %c0_6] : memref<256x1024xbf16, #tpu.memory_space<vmem>>, vector<256x1024xbf16>
    %cst_7 = arith.constant dense<0.000000e+00> : vector<256x256xf32>
    %29 = tpu.matmul %28, %27, %cst_7 {dimension_numbers = #tpu.dot_dimension_numbers<[1], [0], [0], [1], [0, 0, 1, 1], [], []>} : vector<256x1024xbf16>, vector<1024x256xbf16>, vector<256x256xf32> -> vector<256x256xf32>
    %c0_8 = arith.constant 0 : index
    %c0_9 = arith.constant 0 : index
    %30 = vector.load %arg5[%c0_8, %c0_9] : memref<256x1xf32, #tpu.memory_space<vmem>>, vector<256x1xf32>
    %31 = vector.broadcast %30 : vector<256x1xf32> to vector<256x256xf32>
    %32 = arith.addf %29, %31 : vector<256x256xf32>
    %cst_10 = arith.constant 0.00999999977 : f32
    %33 = vector.broadcast %cst_10 : f32 to vector<256x256xf32>
    %34 = arith.mulf %32, %33 : vector<256x256xf32>
    %35 = arith.maximumf %32, %34 : vector<256x256xf32>
    %36 = arith.truncf %35 : vector<256x256xf32> to vector<256x256xbf16>
    %c0_11 = arith.constant 0 : index
    %c0_12 = arith.constant 0 : index
    %37 = vector.load %arg6[%c0_11, %c0_12] : memref<8x256xbf16, #tpu.memory_space<vmem>>, vector<8x256xbf16>
    %cst_13 = arith.constant dense<0.000000e+00> : vector<8x256xf32>
    %38 = tpu.matmul %37, %36, %cst_13 {dimension_numbers = #tpu.dot_dimension_numbers<[1], [0], [0], [1], [0, 0, 1, 1], [], []>} : vector<8x256xbf16>, vector<256x256xbf16>, vector<8x256xf32> -> vector<8x256xf32>
    %c0_14 = arith.constant 0 : index
    %c0_15 = arith.constant 0 : index
    %39 = vector.load %arg7[%c0_14, %c0_15] : memref<8x1xf32, #tpu.memory_space<vmem>>, vector<8x1xf32>
    %40 = vector.broadcast %39 : vector<8x1xf32> to vector<8x256xf32>
    %41 = arith.addf %38, %40 : vector<8x256xf32>
    %42 = arith.negf %41 : vector<8x256xf32>
    %43 = math.exp %42 : vector<8x256xf32>
    %cst_16 = arith.constant 1.000000e+00 : f32
    %44 = vector.broadcast %cst_16 : f32 to vector<8x256xf32>
    %45 = arith.addf %44, %43 : vector<8x256xf32>
    %46 = arith.divf %44, %45 : vector<8x256xf32>
    %c0_17 = arith.constant 0 : index
    %c0_18 = arith.constant 0 : index
    %c0_19 = arith.constant 0 : index
    %47 = vector.load %arg8[%c0_17, %c0_18, %c0_19] : memref<1x8x256xf32, #tpu.memory_space<vmem>>, vector<1x8x256xf32>
    %48 = vector.shape_cast %47 : vector<1x8x256xf32> to vector<8x256xf32>
    %49 = vector.shape_cast %46 : vector<8x256xf32> to vector<1x8x256xf32>
    tpu.vector_store %arg8[%c0_17, %c0_18, %c0_19], %49 {strides = array<i32>} : memref<1x8x256xf32, #tpu.memory_space<vmem>>, vector<1x8x256xf32>,
    %cst_20 = arith.constant dense<0xFF800000> : vector<256xf32>
    %50 = vector.multi_reduction <maximumf>, %46, %cst_20 [0] : vector<8x256xf32> to vector<256xf32>
    %51 = vector.shape_cast %50 : vector<256xf32> to vector<1x256xf32>
    %c0_21 = arith.constant 0 : index
    %c0_22 = arith.constant 0 : index
    %c0_23 = arith.constant 0 : index
    %52 = vector.load %arg9[%c0_21, %c0_22, %c0_23] : memref<1x1x256xf32, #tpu.memory_space<vmem>>, vector<1x1x256xf32>
    %53 = vector.shape_cast %52 : vector<1x1x256xf32> to vector<1x256xf32>
    %54 = vector.shape_cast %51 : vector<1x256xf32> to vector<1x1x256xf32>
    tpu.vector_store %arg9[%c0_21, %c0_22, %c0_23], %54 {strides = array<i32>} : memref<1x1x256xf32, #tpu.memory_space<vmem>>, vector<1x1x256xf32>,
    return
  }
  func.func @transform_0(%arg0: i32, %arg1: i32) -> (i32, i32, i32) {
    %c0_i32 = arith.constant 0 : i32
    %c0_i32_0 = arith.constant 0 : i32
    return %arg0, %c0_i32, %arg1 : i32, i32, i32
  }
  func.func @transform_1(%arg0: i32, %arg1: i32) -> (i32, i32, i32) {
    %c0_i32 = arith.constant 0 : i32
    %c0_i32_0 = arith.constant 0 : i32
    %c0_i32_1 = arith.constant 0 : i32
    return %arg0, %c0_i32, %c0_i32_0 : i32, i32, i32
  }
  func.func @transform_2(%arg0: i32, %arg1: i32) -> (i32, i32) {
    %c0_i32 = arith.constant 0 : i32
    %c0_i32_0 = arith.constant 0 : i32
    %c0_i32_1 = arith.constant 0 : i32
    return %c0_i32, %c0_i32_0 : i32, i32
  }
  func.func @transform_3(%arg0: i32, %arg1: i32) -> (i32, i32) {
    %c0_i32 = arith.constant 0 : i32
    %c0_i32_0 = arith.constant 0 : i32
    %c0_i32_1 = arith.constant 0 : i32
    return %c0_i32, %c0_i32_0 : i32, i32
  }
  func.func @transform_4(%arg0: i32, %arg1: i32) -> (i32, i32) {
    %c0_i32 = arith.constant 0 : i32
    %c0_i32_0 = arith.constant 0 : i32
    %c0_i32_1 = arith.constant 0 : i32
    return %c0_i32, %c0_i32_0 : i32, i32
  }
  func.func @transform_5(%arg0: i32, %arg1: i32) -> (i32, i32) {
    %c0_i32 = arith.constant 0 : i32
    %c0_i32_0 = arith.constant 0 : i32
    %c0_i32_1 = arith.constant 0 : i32
    return %c0_i32, %c0_i32_0 : i32, i32
  }
  func.func @transform_6(%arg0: i32, %arg1: i32) -> (i32, i32, i32) {
    %c0_i32 = arith.constant 0 : i32
    %c0_i32_0 = arith.constant 0 : i32
    return %arg0, %c0_i32, %arg1 : i32, i32, i32
  }
  func.func @transform_7(%arg0: i32, %arg1: i32) -> (i32, i32, i32) {
    %c0_i32 = arith.constant 0 : i32
    %c0_i32_0 = arith.constant 0 : i32
    return %arg0, %c0_i32, %arg1 : i32, i32, i32
  }
}

</mosaic_0001>

<bundles_post_ra>
// kernel: _bae_deform_forward.1
= control target key start
LH: loop header
LB: loop body
LE: loop exit
PB: predicated region body
PF: predicated region fallthrough
CT: control target
= control target key end

     0   :  { %s7769_s24 = smov 0   ;;  %s7771_s25 = smov 0   ;;  %s12992_s0 = inlined_call_operand.vmem [shape: f32[2,8,256], index: 0, kind: input, shape index: {}]   ;;  %s12993_s1 = inlined_call_operand.vmem [shape: f32[2,1024,8], index: 1, kind: input, shape index: {}]   ;;  %s12994_s2 = inlined_call_operand.vmem [shape: bf16[256,1024], index: 2, kind: input, shape index: {}]   ;;  %s12995_s3 = inlined_call_operand.vmem [shape: f32[256,1], index: 3, kind: input, shape index: {}]   ;;  %s12996_s4 = inlined_call_operand.vmem [shape: bf16[8,256], index: 4, kind: input, shape index: {}]   ;;  %s12997_s5 = inlined_call_operand.vmem [shape: f32[8,1], index: 5, kind: input, shape index: {}]   ;;  %s12998_s6 = inlined_call_operand.vmem [shape: f32[2,8,256], index: 6, kind: output, shape index: {0}]   ;;  %s12999_s7 = inlined_call_operand.vmem [shape: f32[2,1,256], index: 7, kind: output, shape index: {1}]  }
   0x1   :  { %s7773_s26 = smov 0  }
   0x2 LB: > { %s30_s27 = sadd.s32 1, %s7718_s25  ;;  %p7009_p0 = scmp.ge.s32.totalorder %s7722_s26, 1  ;;  %s7722_s26 = sphi %s7773_s26, %s18_s26   ;;  %s7718_s25 = sphi %s7771_s25, %s14500_s25   ;;  %s7714_s24 = sphi %s7769_s24, %s14499_s24  }
   0x3   : > { %p32_p1 = scmp.ge.s32.totalorder %s30_s27, 2  ;;  %p273_p2 = scmp.lt.s32.totalorder %s7722_s26, 3 }
   0x5   : > { %s14502_s27 = smov (%p32_p1, %s30_s27), 0  ;;  %p274_p3 = pnand %p7009_p0, %p273_p2 }
   0x7   : > { %277 = sbr.rel (%p274_p3) target bundleno = 1990 (0x7c6), region = 44 }
   0xe   : > { %p327_p4 = scmp.lt.s32.totalorder %s7714_s24, 1  ;;  %v13000_v0 = vmov 0  }
   0xf   : > { %7440 = vset.pattern.permute.xlu1 %v13000_v0  ;;  %7439 = vset.pattern.permute.xlu0 %v13000_v0 }
  0x10   : > { %s14504_s24 = smov (!%p327_p4, %s7714_s24), 1 }
  0x11   : > { %s7152_s28 = sshll.u32 %s14504_s24, 10  ;;  %s7151_s9 = sshll.u32 %s14504_s24, 4 }
  0x12   : > { %s7795_s8 = scalar_lea.vmem %s12993_s1, %s7152_s28  ;;  %s334_s12 = scalar_lea.vmem %s12992_s0, %s7151_s9 }
  0x13   : > { %v7798_v1 = vld [vmem:[%s7795_s8 + $0x10] sm:$0xff]  ;;  %v7802_v2 = vld [vmem:[%s7795_s8] sm:$0xff]  ;;  %v7806_v3 = vld [vmem:[%s7795_s8 + $0x18] sm:$0xff]  ;;  %s349_s21 = scalar_lea.vmem %s12998_s6, %s7151_s9  ;;  %s7016_s9 = sshll.u32 %s14504_s24, 1 }
  0x14   : > { %502 = vperm.xlu1 %7440, %v7798_v1   ;;  %492 = vperm.xlu0 %7439, %v7802_v2   ;;  %v7809_v4 = vld [vmem:[%s7795_s8 + $0x8] sm:$0xff]  ;;  %v7817_v6 = vld [vmem:[%s7795_s8 + $0x20] sm:$0xff]  ;;  %v7822_v7 = vld [vmem:[%s7795_s8 + $0x38] sm:$0xff]  ;;  %s358_s28 = scalar_lea.vmem %s12999_s7, %s7016_s9 }
  0x15   : > { %v7814_v5 = vld [vmem:[%s7795_s8 + $0x28] sm:$0xff]  ;;  %v7825_v8 = vld [vmem:[%s7795_s8 + $0x30] sm:$0xff]  ;;  %v7833_v10 = vld [vmem:[%s7795_s8 + $0x40] sm:$0xff] }
  0x16   : > { %v7830_v9 = vld [vmem:[%s7795_s8 + $0x48] sm:$0xff]  ;;  %v7838_v11 = vld [vmem:[%s7795_s8 + $0x58] sm:$0xff]  ;;  %v7841_v12 = vld [vmem:[%s7795_s8 + $0x50] sm:$0xff] }
  0x17   : > { %v7846_v13 = vld [vmem:[%s7795_s8 + $0x68] sm:$0xff]  ;;  %v7849_v14 = vld [vmem:[%s7795_s8 + $0x60] sm:$0xff]  ;;  %v7854_v15 = vld [vmem:[%s7795_s8 + $0x78] sm:$0xff] }
  0x18   : > { %507 = vperm.xlu1 %7440, %v7806_v3   ;;  %497 = vperm.xlu0 %7439, %v7809_v4   ;;  %v7857_v16 = vld [vmem:[%s7795_s8 + $0x70] sm:$0xff]  ;;  %v7862_v17 = vld [vmem:[%s7795_s8 + $0x88] sm:$0xff]  ;;  %v7865_v18 = vld [vmem:[%s7795_s8 + $0x80] sm:$0xff] }
  0x19   : > { %v7870_v19 = vld [vmem:[%s7795_s8 + $0x98] sm:$0xff]  ;;  %v7873_v20 = vld [vmem:[%s7795_s8 + $0x90] sm:$0xff]  ;;  %v7878_v21 = vld [vmem:[%s7795_s8 + $0xa8] sm:$0xff] }
  0x1a   : > { %v7881_v22 = vld [vmem:[%s7795_s8 + $0xa0] sm:$0xff]  ;;  %v7886_v23 = vld [vmem:[%s7795_s8 + $0xb8] sm:$0xff]  ;;  %v7889_v24 = vld [vmem:[%s7795_s8 + $0xb0] sm:$0xff] }
  0x1b   : > { %v7894_v25 = vld [vmem:[%s7795_s8 + $0xc8] sm:$0xff]  ;;  %v7897_v26 = vld [vmem:[%s7795_s8 + $0xc0] sm:$0xff]  ;;  %v7902_v27 = vld [vmem:[%s7795_s8 + $0xd8] sm:$0xff] }
  0x1c   : > { %517 = vperm.xlu1 %7440, %v7814_v5   ;;  %512 = vperm.xlu0 %7439, %v7817_v6   ;;  %v7905_v28 = vld [vmem:[%s7795_s8 + $0xd0] sm:$0xff]  ;;  %v7910_v29 = vld [vmem:[%s7795_s8 + $0xe8] sm:$0xff]  ;;  %v7913_v30 = vld [vmem:[%s7795_s8 + $0xe0] sm:$0xff] }
  0x1d   : > { %v7918_v31 = vld [vmem:[%s7795_s8 + $0xf8] sm:$0xff]  ;;  %v7921_v32 = vld [vmem:[%s7795_s8 + $0xf0] sm:$0xff]  ;;  %v7926_v33 = vld [vmem:[%s7795_s8 + $0x108] sm:$0xff] }
  0x1e   : > { %v7929_v34 = vld [vmem:[%s7795_s8 + $0x100] sm:$0xff]  ;;  %v7934_v35 = vld [vmem:[%s7795_s8 + $0x118] sm:$0xff]  ;;  %v7937_v36 = vld [vmem:[%s7795_s8 + $0x110] sm:$0xff] }
  0x1f   : > { %v7942_v37 = vld [vmem:[%s7795_s8 + $0x128] sm:$0xff]  ;;  %v7945_v38 = vld [vmem:[%s7795_s8 + $0x120] sm:$0xff]  ;;  %v7950_v39 = vld [vmem:[%s7795_s8 + $0x138] sm:$0xff] }
  0x20   : > { %527 = vperm.xlu1 %7440, %v7822_v7   ;;  %522 = vperm.xlu0 %7439, %v7825_v8   ;;  %v7953_v40 = vld [vmem:[%s7795_s8 + $0x130] sm:$0xff]  ;;  %v7958_v41 = vld [vmem:[%s7795_s8 + $0x148] sm:$0xff]  ;;  %v7961_v42 = vld [vmem:[%s7795_s8 + $0x140] sm:$0xff] }
  0x21   : > { %v7966_v43 = vld [vmem:[%s7795_s8 + $0x158] sm:$0xff]  ;;  %v7969_v44 = vld [vmem:[%s7795_s8 + $0x150] sm:$0xff]  ;;  %v7974_v45 = vld [vmem:[%s7795_s8 + $0x168] sm:$0xff] }
  0x22   : > { %v7977_v46 = vld [vmem:[%s7795_s8 + $0x160] sm:$0xff]  ;;  %v7982_v47 = vld [vmem:[%s7795_s8 + $0x178] sm:$0xff]  ;;  %v7985_v48 = vld [vmem:[%s7795_s8 + $0x170] sm:$0xff] }
  0x23   : > { %v7990_v49 = vld [vmem:[%s7795_s8 + $0x188] sm:$0xff]  ;;  %v7993_v50 = vld [vmem:[%s7795_s8 + $0x180] sm:$0xff]  ;;  %v7998_v51 = vld [vmem:[%s7795_s8 + $0x198] sm:$0xff] }
  0x24   : > { %537 = vperm.xlu1 %7440, %v7830_v9   ;;  %532 = vperm.xlu0 %7439, %v7833_v10   ;;  %v8001_v52 = vld [vmem:[%s7795_s8 + $0x190] sm:$0xff]  ;;  %v8006_v53 = vld [vmem:[%s7795_s8 + $0x1a8] sm:$0xff]  ;;  %v8009_v54 = vld [vmem:[%s7795_s8 + $0x1a0] sm:$0xff] }
  0x25   : > { %v8014_v55 = vld [vmem:[%s7795_s8 + $0x1b8] sm:$0xff]  ;;  %v8017_v56 = vld [vmem:[%s7795_s8 + $0x1b0] sm:$0xff]  ;;  %v8022_v57 = vld [vmem:[%s7795_s8 + $0x1c8] sm:$0xff] }
  0x26   : > { %13426 = vst [vmem:[#allocation2_spill] sm:$0xff] %v8014_v55  ;;  %13427 = vst [vmem:[#allocation3_spill] sm:$0xff] %v8022_v57  ;;  %v8025_v58 = vld [vmem:[%s7795_s8 + $0x1c0] sm:$0xff]  ;;  %v8030_v59 = vld [vmem:[%s7795_s8 + $0x1d8] sm:$0xff] }
  0x27   : > { %13428 = vst [vmem:[#allocation4_spill] sm:$0xff] %v8025_v58  ;;  %13429 = vst [vmem:[#allocation5_spill] sm:$0xff] %v8030_v59  ;;  %v8033_v60 = vld [vmem:[%s7795_s8 + $0x1d0] sm:$0xff]  ;;  %v8038_v61 = vld [vmem:[%s7795_s8 + $0x1e8] sm:$0xff] }
  0x28   : > { %547 = vperm.xlu1 %7440, %v7838_v11   ;;  %542 = vperm.xlu0 %7439, %v7841_v12   ;;  %13430 = vst [vmem:[#allocation6_spill] sm:$0xff] %v8033_v60  ;;  %13431 = vst [vmem:[#allocation7_spill] sm:$0xff] %v8038_v61  ;;  %v8041_v62 = vld [vmem:[%s7795_s8 + $0x1e0] sm:$0xff]  ;;  %v8046_v63 = vld [vmem:[%s7795_s8 + $0x1f8] sm:$0xff] }
  0x29   : > { %13432 = vst [vmem:[#allocation8_spill] sm:$0xff] %v8041_v62  ;;  %13433 = vst [vmem:[#allocation9_spill] sm:$0xff] %v8046_v63  ;;  %v8049_v0 = vld [vmem:[%s7795_s8 + $0x1f0] sm:$0xff] }
  0x2a   : > { %13434 = vst [vmem:[#allocation10_spill] sm:$0xff] %v8049_v0 }
  0x2c   : > { %557 = vperm.xlu1 %7440, %v7846_v13   ;;  %552 = vperm.xlu0 %7439, %v7849_v14  }
  0x30   : > { %567 = vperm.xlu1 %7440, %v7854_v15   ;;  %562 = vperm.xlu0 %7439, %v7857_v16  }
  0x34   : > { %577 = vperm.xlu1 %7440, %v7862_v17   ;;  %572 = vperm.xlu0 %7439, %v7865_v18  }
  0x38   : > { %587 = vperm.xlu1 %7440, %v7870_v19   ;;  %582 = vperm.xlu0 %7439, %v7873_v20  }
  0x3c   : > { %597 = vperm.xlu1 %7440, %v7878_v21   ;;  %592 = vperm.xlu0 %7439, %v7881_v22  }
  0x40   : > { %607 = vperm.xlu1 %7440, %v7886_v23   ;;  %602 = vperm.xlu0 %7439, %v7889_v24  }
  0x44   : > { %617 = vperm.xlu1 %7440, %v7894_v25   ;;  %612 = vperm.xlu0 %7439, %v7897_v26  }
  0x48   : > { %627 = vperm.xlu1 %7440, %v7902_v27   ;;  %622 = vperm.xlu0 %7439, %v7905_v28  }
  0x4c   : > { %637 = vperm.xlu1 %7440, %v7910_v29   ;;  %632 = vperm.xlu0 %7439, %v7913_v30  }
  0x50   : > { %647 = vperm.xlu1 %7440, %v7918_v31   ;;  %642 = vperm.xlu0 %7439, %v7921_v32  }
  0x54   : > { %657 = vperm.xlu1 %7440, %v7926_v33   ;;  %652 = vperm.xlu0 %7439, %v7929_v34  }
  0x58   : > { %667 = vperm.xlu1 %7440, %v7934_v35   ;;  %662 = vperm.xlu0 %7439, %v7937_v36  }
  0x5c   : > { %677 = vperm.xlu1 %7440, %v7942_v37   ;;  %672 = vperm.xlu0 %7439, %v7945_v38  }
  0x60   : > { %687 = vperm.xlu1 %7440, %v7950_v39   ;;  %682 = vperm.xlu0 %7439, %v7953_v40  }
  0x64   : > { %697 = vperm.xlu1 %7440, %v7958_v41   ;;  %692 = vperm.xlu0 %7439, %v7961_v42  }
  0x68   : > { %707 = vperm.xlu1 %7440, %v7966_v43   ;;  %702 = vperm.xlu0 %7439, %v7969_v44  }
  0x6c   : > { %717 = vperm.xlu1 %7440, %v7974_v45   ;;  %712 = vperm.xlu0 %7439, %v7977_v46  }
  0x70   : > { %727 = vperm.xlu1 %7440, %v7982_v47   ;;  %722 = vperm.xlu0 %7439, %v7985_v48  }
  0x74   : > { %737 = vperm.xlu1 %7440, %v7990_v49   ;;  %732 = vperm.xlu0 %7439, %v7993_v50  }
  0x78   : > { %747 = vperm.xlu1 %7440, %v7998_v51   ;;  %742 = vperm.xlu0 %7439, %v8001_v52  }
  0x7c   : > { %757 = vperm.xlu1 %7440, %v8006_v53   ;;  %752 = vperm.xlu0 %7439, %v8009_v54  }
  0x80   : > { %767 = vperm.xlu1 %7440, %v8014_v55   ;;  %762 = vperm.xlu0 %7439, %v8017_v56  }
  0x84   : > { %777 = vperm.xlu1 %7440, %v8022_v57   ;;  %772 = vperm.xlu0 %7439, %v8025_v58   ;;  %v8069_v58 = vld [vmem:[%s7795_s8 + $0x210] sm:$0xff] }
  0x85   : > { %13440 = vst [vmem:[#allocation16_spill] sm:$0xff] %v8069_v58 }
  0x88   : > { %787 = vperm.xlu1 %7440, %v8030_v59   ;;  %782 = vperm.xlu0 %7439, %v8033_v60   ;;  %v8054_v59 = vld [vmem:[%s7795_s8 + $0x208] sm:$0xff]  ;;  %v8057_v60 = vld [vmem:[%s7795_s8 + $0x200] sm:$0xff] }
  0x89   : > { %13435 = vst [vmem:[#allocation11_spill] sm:$0xff] %v8054_v59  ;;  %13436 = vst [vmem:[#allocation12_spill] sm:$0xff] %v8057_v60 }
  0x8c   : > { %797 = vperm.xlu1 %7440, %v8038_v61   ;;  %792 = vperm.xlu0 %7439, %v8041_v62   ;;  %v8066_v62 = vld [vmem:[%s7795_s8 + $0x218] sm:$0xff] }
  0x8d   : > { %13439 = vst [vmem:[#allocation15_spill] sm:$0xff] %v8066_v62 }
  0x90   : > { %807 = vperm.xlu1 %7440, %v8046_v63   ;;  %802 = vperm.xlu0 %7439, %v8049_v0  }
  0x93   : > { %v8059_v57 = vpop.permute.xlu1 %502  ;;  %v8061_v61 = vpop.permute.xlu0 %492 }
  0x94   : > { %13437 = vst [vmem:[#allocation13_spill] sm:$0xff] %v8059_v57  ;;  %13438 = vst [vmem:[#allocation14_spill] sm:$0xff] %v8061_v61  ;;  %817 = vperm.xlu1 %7440, %v8054_v59   ;;  %812 = vperm.xlu0 %7439, %v8057_v60   ;;  %v8078_v61 = vld [vmem:[%s7795_s8 + $0x228] sm:$0xff]  ;;  %v8081_v57 = vld [vmem:[%s7795_s8 + $0x220] sm:$0xff] }
  0x95   : > { %13443 = vst [vmem:[#allocation19_spill] sm:$0xff] %v8078_v61  ;;  %13444 = vst [vmem:[#allocation20_spill] sm:$0xff] %v8081_v57 }
  0x97   : > { %v8071_v63 = vpop.permute.xlu1 %507  ;;  %v8073_v0 = vpop.permute.xlu0 %497 }
  0x98   : > { %13441 = vst [vmem:[#allocation17_spill] sm:$0xff] %v8071_v63  ;;  %13442 = vst [vmem:[#allocation18_spill] sm:$0xff] %v8073_v0  ;;  %827 = vperm.xlu1 %7440, %v8066_v62   ;;  %822 = vperm.xlu0 %7439, %v8069_v58   ;;  %v8090_v0 = vld [vmem:[%s7795_s8 + $0x238] sm:$0xff]  ;;  %v8093_v63 = vld [vmem:[%s7795_s8 + $0x230] sm:$0xff] }
  0x99   : > { %13447 = vst [vmem:[#allocation23_spill] sm:$0xff] %v8090_v0  ;;  %13448 = vst [vmem:[#allocation24_spill] sm:$0xff] %v8093_v63 }
  0x9b   : > { %v8083_v59 = vpop.permute.xlu1 %517  ;;  %v8085_v60 = vpop.permute.xlu0 %512 }
  0x9c   : > { %13445 = vst [vmem:[#allocation21_spill] sm:$0xff] %v8083_v59  ;;  %13446 = vst [vmem:[#allocation22_spill] sm:$0xff] %v8085_v60  ;;  %837 = vperm.xlu1 %7440, %v8078_v61   ;;  %832 = vperm.xlu0 %7439, %v8081_v57   ;;  %v8102_v60 = vld [vmem:[%s7795_s8 + $0x248] sm:$0xff]  ;;  %v8105_v59 = vld [vmem:[%s7795_s8 + $0x240] sm:$0xff] }
  0x9d   : > { %13451 = vst [vmem:[#allocation27_spill] sm:$0xff] %v8102_v60  ;;  %13452 = vst [vmem:[#allocation28_spill] sm:$0xff] %v8105_v59 }
  0x9f   : > { %v8095_v62 = vpop.permute.xlu1 %527  ;;  %v8097_v58 = vpop.permute.xlu0 %522 }
  0xa0   : > { %13449 = vst [vmem:[#allocation25_spill] sm:$0xff] %v8095_v62  ;;  %13450 = vst [vmem:[#allocation26_spill] sm:$0xff] %v8097_v58  ;;  %847 = vperm.xlu1 %7440, %v8090_v0   ;;  %842 = vperm.xlu0 %7439, %v8093_v63   ;;  %v8114_v58 = vld [vmem:[%s7795_s8 + $0x258] sm:$0xff]  ;;  %v8117_v62 = vld [vmem:[%s7795_s8 + $0x250] sm:$0xff] }
  0xa1   : > { %13455 = vst [vmem:[#allocation31_spill] sm:$0xff] %v8114_v58  ;;  %13456 = vst [vmem:[#allocation32_spill] sm:$0xff] %v8117_v62 }
  0xa3   : > { %v8107_v61 = vpop.permute.xlu1 %537  ;;  %v8109_v57 = vpop.permute.xlu0 %532 }
  0xa4   : > { %13453 = vst [vmem:[#allocation29_spill] sm:$0xff] %v8107_v61  ;;  %13454 = vst [vmem:[#allocation30_spill] sm:$0xff] %v8109_v57  ;;  %857 = vperm.xlu1 %7440, %v8102_v60   ;;  %852 = vperm.xlu0 %7439, %v8105_v59   ;;  %v8126_v57 = vld [vmem:[%s7795_s8 + $0x268] sm:$0xff]  ;;  %v8129_v61 = vld [vmem:[%s7795_s8 + $0x260] sm:$0xff] }
  0xa5   : > { %13459 = vst [vmem:[#allocation35_spill] sm:$0xff] %v8126_v57  ;;  %13460 = vst [vmem:[#allocation36_spill] sm:$0xff] %v8129_v61 }
  0xa7   : > { %v8119_v0 = vpop.permute.xlu1 %547  ;;  %v8121_v63 = vpop.permute.xlu0 %542 }
  0xa8   : > { %13457 = vst [vmem:[#allocation33_spill] sm:$0xff] %v8119_v0  ;;  %13458 = vst [vmem:[#allocation34_spill] sm:$0xff] %v8121_v63  ;;  %867 = vperm.xlu1 %7440, %v8114_v58   ;;  %862 = vperm.xlu0 %7439, %v8117_v62   ;;  %v8138_v63 = vld [vmem:[%s7795_s8 + $0x278] sm:$0xff]  ;;  %v8141_v0 = vld [vmem:[%s7795_s8 + $0x270] sm:$0xff] }
  0xa9   : > { %13463 = vst [vmem:[#allocation39_spill] sm:$0xff] %v8138_v63  ;;  %13464 = vst [vmem:[#allocation40_spill] sm:$0xff] %v8141_v0 }
  0xab   : > { %v8131_v60 = vpop.permute.xlu1 %557  ;;  %v8133_v59 = vpop.permute.xlu0 %552 }
  0xac   : > { %13461 = vst [vmem:[#allocation37_spill] sm:$0xff] %v8131_v60  ;;  %13462 = vst [vmem:[#allocation38_spill] sm:$0xff] %v8133_v59  ;;  %877 = vperm.xlu1 %7440, %v8126_v57   ;;  %872 = vperm.xlu0 %7439, %v8129_v61   ;;  %v8150_v59 = vld [vmem:[%s7795_s8 + $0x288] sm:$0xff]  ;;  %v8153_v60 = vld [vmem:[%s7795_s8 + $0x280] sm:$0xff] }
  0xad   : > { %13467 = vst [vmem:[#allocation43_spill] sm:$0xff] %v8150_v59  ;;  %13468 = vst [vmem:[#allocation44_spill] sm:$0xff] %v8153_v60 }
  0xaf   : > { %v8143_v58 = vpop.permute.xlu1 %567  ;;  %v8145_v62 = vpop.permute.xlu0 %562 }
  0xb0   : > { %13465 = vst [vmem:[#allocation41_spill] sm:$0xff] %v8143_v58  ;;  %13466 = vst [vmem:[#allocation42_spill] sm:$0xff] %v8145_v62  ;;  %887 = vperm.xlu1 %7440, %v8138_v63   ;;  %882 = vperm.xlu0 %7439, %v8141_v0   ;;  %v8162_v62 = vld [vmem:[%s7795_s8 + $0x298] sm:$0xff]  ;;  %v8165_v58 = vld [vmem:[%s7795_s8 + $0x290] sm:$0xff] }
  0xb1   : > { %13471 = vst [vmem:[#allocation47_spill] sm:$0xff] %v8162_v62  ;;  %13472 = vst [vmem:[#allocation48_spill] sm:$0xff] %v8165_v58 }
  0xb3   : > { %v8155_v57 = vpop.permute.xlu1 %577  ;;  %v8157_v61 = vpop.permute.xlu0 %572 }
  0xb4   : > { %13469 = vst [vmem:[#allocation45_spill] sm:$0xff] %v8155_v57  ;;  %13470 = vst [vmem:[#allocation46_spill] sm:$0xff] %v8157_v61  ;;  %897 = vperm.xlu1 %7440, %v8150_v59   ;;  %892 = vperm.xlu0 %7439, %v8153_v60   ;;  %v8174_v61 = vld [vmem:[%s7795_s8 + $0x2a8] sm:$0xff]  ;;  %v8177_v57 = vld [vmem:[%s7795_s8 + $0x2a0] sm:$0xff] }
  0xb5   : > { %13475 = vst [vmem:[#allocation51_spill] sm:$0xff] %v8174_v61  ;;  %13476 = vst [vmem:[#allocation52_spill] sm:$0xff] %v8177_v57 }
  0xb7   : > { %v8167_v63 = vpop.permute.xlu1 %587  ;;  %v8169_v0 = vpop.permute.xlu0 %582 }
  0xb8   : > { %13473 = vst [vmem:[#allocation49_spill] sm:$0xff] %v8167_v63  ;;  %13474 = vst [vmem:[#allocation50_spill] sm:$0xff] %v8169_v0  ;;  %907 = vperm.xlu1 %7440, %v8162_v62   ;;  %902 = vperm.xlu0 %7439, %v8165_v58   ;;  %v8186_v0 = vld [vmem:[%s7795_s8 + $0x2b8] sm:$0xff]  ;;  %v8189_v63 = vld [vmem:[%s7795_s8 + $0x2b0] sm:$0xff] }
  0xb9   : > { %13479 = vst [vmem:[#allocation55_spill] sm:$0xff] %v8186_v0  ;;  %13480 = vst [vmem:[#allocation56_spill] sm:$0xff] %v8189_v63 }
  0xbb   : > { %v8179_v59 = vpop.permute.xlu1 %597  ;;  %v8181_v60 = vpop.permute.xlu0 %592 }
  0xbc   : > { %13477 = vst [vmem:[#allocation53_spill] sm:$0xff] %v8179_v59  ;;  %13478 = vst [vmem:[#allocation54_spill] sm:$0xff] %v8181_v60  ;;  %917 = vperm.xlu1 %7440, %v8174_v61   ;;  %912 = vperm.xlu0 %7439, %v8177_v57   ;;  %v8198_v60 = vld [vmem:[%s7795_s8 + $0x2c8] sm:$0xff]  ;;  %v8201_v59 = vld [vmem:[%s7795_s8 + $0x2c0] sm:$0xff] }
  0xbd   : > { %13483 = vst [vmem:[#allocation59_spill] sm:$0xff] %v8198_v60  ;;  %13484 = vst [vmem:[#allocation60_spill] sm:$0xff] %v8201_v59 }
  0xbf   : > { %v8191_v62 = vpop.permute.xlu1 %607  ;;  %v8193_v58 = vpop.permute.xlu0 %602 }
  0xc0   : > { %13481 = vst [vmem:[#allocation57_spill] sm:$0xff] %v8191_v62  ;;  %13482 = vst [vmem:[#allocation58_spill] sm:$0xff] %v8193_v58  ;;  %927 = vperm.xlu1 %7440, %v8186_v0   ;;  %922 = vperm.xlu0 %7439, %v8189_v63   ;;  %v8210_v58 = vld [vmem:[%s7795_s8 + $0x2d8] sm:$0xff]  ;;  %v8213_v62 = vld [vmem:[%s7795_s8 + $0x2d0] sm:$0xff] }
  0xc1   : > { %13487 = vst [vmem:[#allocation63_spill] sm:$0xff] %v8210_v58  ;;  %13488 = vst [vmem:[#allocation64_spill] sm:$0xff] %v8213_v62 }
  0xc3   : > { %v8203_v61 = vpop.permute.xlu1 %617  ;;  %v8205_v57 = vpop.permute.xlu0 %612 }
  0xc4   : > { %13485 = vst [vmem:[#allocation61_spill] sm:$0xff] %v8203_v61  ;;  %13486 = vst [vmem:[#allocation62_spill] sm:$0xff] %v8205_v57  ;;  %937 = vperm.xlu1 %7440, %v8198_v60   ;;  %932 = vperm.xlu0 %7439, %v8201_v59   ;;  %v8222_v57 = vld [vmem:[%s7795_s8 + $0x2e8] sm:$0xff]  ;;  %v8225_v61 = vld [vmem:[%s7795_s8 + $0x2e0] sm:$0xff] }
  0xc5   : > { %13491 = vst [vmem:[#allocation67_spill] sm:$0xff] %v8222_v57  ;;  %13492 = vst [vmem:[#allocation68_spill] sm:$0xff] %v8225_v61 }
  0xc7   : > { %v8215_v0 = vpop.permute.xlu1 %627  ;;  %v8217_v63 = vpop.permute.xlu0 %622 }
  0xc8   : > { %13489 = vst [vmem:[#allocation65_spill] sm:$0xff] %v8215_v0  ;;  %13490 = vst [vmem:[#allocation66_spill] sm:$0xff] %v8217_v63  ;;  %947 = vperm.xlu1 %7440, %v8210_v58   ;;  %942 = vperm.xlu0 %7439, %v8213_v62   ;;  %v8234_v63 = vld [vmem:[%s7795_s8 + $0x2f8] sm:$0xff]  ;;  %v8237_v0 = vld [vmem:[%s7795_s8 + $0x2f0] sm:$0xff] }
  0xc9   : > { %13495 = vst [vmem:[#allocation71_spill] sm:$0xff] %v8234_v63  ;;  %13496 = vst [vmem:[#allocation72_spill] sm:$0xff] %v8237_v0 }
  0xcb   : > { %v8227_v60 = vpop.permute.xlu1 %637  ;;  %v8229_v59 = vpop.permute.xlu0 %632 }
  0xcc   : > { %13493 = vst [vmem:[#allocation69_spill] sm:$0xff] %v8227_v60  ;;  %13494 = vst [vmem:[#allocation70_spill] sm:$0xff] %v8229_v59  ;;  %957 = vperm.xlu1 %7440, %v8222_v57   ;;  %952 = vperm.xlu0 %7439, %v8225_v61   ;;  %v8246_v59 = vld [vmem:[%s7795_s8 + $0x308] sm:$0xff]  ;;  %v8249_v60 = vld [vmem:[%s7795_s8 + $0x300] sm:$0xff] }
  0xcd   : > { %13499 = vst [vmem:[#allocation75_spill] sm:$0xff] %v8246_v59  ;;  %13500 = vst [vmem:[#allocation76_spill] sm:$0xff] %v8249_v60 }
  0xcf   : > { %v8239_v58 = vpop.permute.xlu1 %647  ;;  %v8241_v62 = vpop.permute.xlu0 %642 }
  0xd0   : > { %13497 = vst [vmem:[#allocation73_spill] sm:$0xff] %v8239_v58  ;;  %13498 = vst [vmem:[#allocation74_spill] sm:$0xff] %v8241_v62  ;;  %967 = vperm.xlu1 %7440, %v8234_v63   ;;  %962 = vperm.xlu0 %7439, %v8237_v0   ;;  %v8258_v62 = vld [vmem:[%s7795_s8 + $0x318] sm:$0xff]  ;;  %v8261_v58 = vld [vmem:[%s7795_s8 + $0x310] sm:$0xff] }
  0xd1   : > { %13503 = vst [vmem:[#allocation79_spill] sm:$0xff] %v8258_v62  ;;  %13504 = vst [vmem:[#allocation80_spill] sm:$0xff] %v8261_v58 }
  0xd3   : > { %v8251_v57 = vpop.permute.xlu1 %657  ;;  %v8253_v61 = vpop.permute.xlu0 %652 }
  0xd4   : > { %13501 = vst [vmem:[#allocation77_spill] sm:$0xff] %v8251_v57  ;;  %13502 = vst [vmem:[#allocation78_spill] sm:$0xff] %v8253_v61  ;;  %977 = vperm.xlu1 %7440, %v8246_v59   ;;  %972 = vperm.xlu0 %7439, %v8249_v60   ;;  %v8270_v61 = vld [vmem:[%s7795_s8 + $0x328] sm:$0xff]  ;;  %v8273_v57 = vld [vmem:[%s7795_s8 + $0x320] sm:$0xff] }
  0xd5   : > { %13507 = vst [vmem:[#allocation83_spill] sm:$0xff] %v8270_v61  ;;  %13508 = vst [vmem:[#allocation84_spill] sm:$0xff] %v8273_v57 }
  0xd7   : > { %v8263_v63 = vpop.permute.xlu1 %667  ;;  %v8265_v0 = vpop.permute.xlu0 %662 }
  0xd8   : > { %13505 = vst [vmem:[#allocation81_spill] sm:$0xff] %v8263_v63  ;;  %13506 = vst [vmem:[#allocation82_spill] sm:$0xff] %v8265_v0  ;;  %987 = vperm.xlu1 %7440, %v8258_v62   ;;  %982 = vperm.xlu0 %7439, %v8261_v58   ;;  %v8282_v0 = vld [vmem:[%s7795_s8 + $0x338] sm:$0xff]  ;;  %v8285_v63 = vld [vmem:[%s7795_s8 + $0x330] sm:$0xff] }
  0xd9   : > { %13511 = vst [vmem:[#allocation87_spill] sm:$0xff] %v8282_v0  ;;  %13512 = vst [vmem:[#allocation88_spill] sm:$0xff] %v8285_v63 }
  0xdb   : > { %v8275_v59 = vpop.permute.xlu1 %677  ;;  %v8277_v60 = vpop.permute.xlu0 %672 }
  0xdc   : > { %13509 = vst [vmem:[#allocation85_spill] sm:$0xff] %v8275_v59  ;;  %13510 = vst [vmem:[#allocation86_spill] sm:$0xff] %v8277_v60  ;;  %997 = vperm.xlu1 %7440, %v8270_v61   ;;  %992 = vperm.xlu0 %7439, %v8273_v57   ;;  %v8294_v60 = vld [vmem:[%s7795_s8 + $0x348] sm:$0xff]  ;;  %v8297_v59 = vld [vmem:[%s7795_s8 + $0x340] sm:$0xff] }
  0xdd   : > { %13515 = vst [vmem:[#allocation91_spill] sm:$0xff] %v8294_v60  ;;  %13516 = vst [vmem:[#allocation92_spill] sm:$0xff] %v8297_v59 }
  0xdf   : > { %v8287_v62 = vpop.permute.xlu1 %687  ;;  %v8289_v58 = vpop.permute.xlu0 %682 }
  0xe0   : > { %13513 = vst [vmem:[#allocation89_spill] sm:$0xff] %v8287_v62  ;;  %13514 = vst [vmem:[#allocation90_spill] sm:$0xff] %v8289_v58  ;;  %1007 = vperm.xlu1 %7440, %v8282_v0   ;;  %1002 = vperm.xlu0 %7439, %v8285_v63   ;;  %v8306_v58 = vld [vmem:[%s7795_s8 + $0x358] sm:$0xff]  ;;  %v8309_v62 = vld [vmem:[%s7795_s8 + $0x350] sm:$0xff] }
  0xe1   : > { %13519 = vst [vmem:[#allocation95_spill] sm:$0xff] %v8306_v58  ;;  %13520 = vst [vmem:[#allocation96_spill] sm:$0xff] %v8309_v62 }
  0xe3   : > { %v8299_v61 = vpop.permute.xlu1 %697  ;;  %v8301_v57 = vpop.permute.xlu0 %692 }
  0xe4   : > { %13517 = vst [vmem:[#allocation93_spill] sm:$0xff] %v8299_v61  ;;  %13518 = vst [vmem:[#allocation94_spill] sm:$0xff] %v8301_v57  ;;  %1017 = vperm.xlu1 %7440, %v8294_v60   ;;  %1012 = vperm.xlu0 %7439, %v8297_v59   ;;  %v8318_v57 = vld [vmem:[%s7795_s8 + $0x368] sm:$0xff]  ;;  %v8321_v61 = vld [vmem:[%s7795_s8 + $0x360] sm:$0xff] }
  0xe5   : > { %13523 = vst [vmem:[#allocation99_spill] sm:$0xff] %v8318_v57  ;;  %13524 = vst [vmem:[#allocation100_spill] sm:$0xff] %v8321_v61 }
  0xe7   : > { %v8311_v0 = vpop.permute.xlu1 %707  ;;  %v8313_v63 = vpop.permute.xlu0 %702 }
  0xe8   : > { %13521 = vst [vmem:[#allocation97_spill] sm:$0xff] %v8311_v0  ;;  %13522 = vst [vmem:[#allocation98_spill] sm:$0xff] %v8313_v63  ;;  %1027 = vperm.xlu1 %7440, %v8306_v58   ;;  %1022 = vperm.xlu0 %7439, %v8309_v62   ;;  %v8330_v63 = vld [vmem:[%s7795_s8 + $0x378] sm:$0xff]  ;;  %v8333_v0 = vld [vmem:[%s7795_s8 + $0x370] sm:$0xff] }
  0xe9   : > { %13527 = vst [vmem:[#allocation103_spill] sm:$0xff] %v8330_v63  ;;  %13528 = vst [vmem:[#allocation104_spill] sm:$0xff] %v8333_v0 }
  0xeb   : > { %v8323_v60 = vpop.permute.xlu1 %717  ;;  %v8325_v59 = vpop.permute.xlu0 %712 }
  0xec   : > { %13525 = vst [vmem:[#allocation101_spill] sm:$0xff] %v8323_v60  ;;  %13526 = vst [vmem:[#allocation102_spill] sm:$0xff] %v8325_v59  ;;  %1037 = vperm.xlu1 %7440, %v8318_v57   ;;  %1032 = vperm.xlu0 %7439, %v8321_v61   ;;  %v8342_v59 = vld [vmem:[%s7795_s8 + $0x388] sm:$0xff]  ;;  %v8345_v60 = vld [vmem:[%s7795_s8 + $0x380] sm:$0xff] }
  0xed   : > { %13531 = vst [vmem:[#allocation107_spill] sm:$0xff] %v8342_v59  ;;  %13532 = vst [vmem:[#allocation108_spill] sm:$0xff] %v8345_v60 }
  0xef   : > { %v8335_v58 = vpop.permute.xlu1 %727  ;;  %v8337_v62 = vpop.permute.xlu0 %722 }
  0xf0   : > { %13529 = vst [vmem:[#allocation105_spill] sm:$0xff] %v8335_v58  ;;  %13530 = vst [vmem:[#allocation106_spill] sm:$0xff] %v8337_v62  ;;  %1047 = vperm.xlu1 %7440, %v8330_v63   ;;  %1042 = vperm.xlu0 %7439, %v8333_v0   ;;  %v8354_v62 = vld [vmem:[%s7795_s8 + $0x398] sm:$0xff]  ;;  %v8357_v58 = vld [vmem:[%s7795_s8 + $0x390] sm:$0xff] }
  0xf1   : > { %13535 = vst [vmem:[#allocation111_spill] sm:$0xff] %v8354_v62  ;;  %13536 = vst [vmem:[#allocation112_spill] sm:$0xff] %v8357_v58 }
  0xf3   : > { %v8347_v57 = vpop.permute.xlu1 %737  ;;  %v8349_v61 = vpop.permute.xlu0 %732 }
  0xf4   : > { %13533 = vst [vmem:[#allocation109_spill] sm:$0xff] %v8347_v57  ;;  %13534 = vst [vmem:[#allocation110_spill] sm:$0xff] %v8349_v61  ;;  %1057 = vperm.xlu1 %7440, %v8342_v59   ;;  %1052 = vperm.xlu0 %7439, %v8345_v60   ;;  %v8366_v61 = vld [vmem:[%s7795_s8 + $0x3a8] sm:$0xff]  ;;  %v8369_v57 = vld [vmem:[%s7795_s8 + $0x3a0] sm:$0xff] }
  0xf5   : > { %13539 = vst [vmem:[#allocation115_spill] sm:$0xff] %v8366_v61  ;;  %13540 = vst [vmem:[#allocation116_spill] sm:$0xff] %v8369_v57 }
  0xf7   : > { %v8359_v63 = vpop.permute.xlu1 %747  ;;  %v8361_v0 = vpop.permute.xlu0 %742 }
  0xf8   : > { %13537 = vst [vmem:[#allocation113_spill] sm:$0xff] %v8359_v63  ;;  %13538 = vst [vmem:[#allocation114_spill] sm:$0xff] %v8361_v0  ;;  %1067 = vperm.xlu1 %7440, %v8354_v62   ;;  %1062 = vperm.xlu0 %7439, %v8357_v58   ;;  %v8378_v0 = vld [vmem:[%s7795_s8 + $0x3b8] sm:$0xff]  ;;  %v8381_v63 = vld [vmem:[%s7795_s8 + $0x3b0] sm:$0xff] }
  0xf9   : > { %13543 = vst [vmem:[#allocation119_spill] sm:$0xff] %v8378_v0  ;;  %13544 = vst [vmem:[#allocation120_spill] sm:$0xff] %v8381_v63 }
  0xfb   : > { %v8371_v59 = vpop.permute.xlu1 %757  ;;  %v8373_v60 = vpop.permute.xlu0 %752 }
  0xfc   : > { %13541 = vst [vmem:[#allocation117_spill] sm:$0xff] %v8371_v59  ;;  %13542 = vst [vmem:[#allocation118_spill] sm:$0xff] %v8373_v60  ;;  %1077 = vperm.xlu1 %7440, %v8366_v61   ;;  %1072 = vperm.xlu0 %7439, %v8369_v57   ;;  %v8390_v60 = vld [vmem:[%s7795_s8 + $0x3c8] sm:$0xff]  ;;  %v8393_v59 = vld [vmem:[%s7795_s8 + $0x3c0] sm:$0xff] }
  0xfd   : > { %13547 = vst [vmem:[#allocation123_spill] sm:$0xff] %v8390_v60  ;;  %13548 = vst [vmem:[#allocation124_spill] sm:$0xff] %v8393_v59 }
  0xff   : > { %v8383_v62 = vpop.permute.xlu1 %767  ;;  %v8385_v58 = vpop.permute.xlu0 %762 }
 0x100   : > { %13545 = vst [vmem:[#allocation121_spill] sm:$0xff] %v8383_v62  ;;  %13546 = vst [vmem:[#allocation122_spill] sm:$0xff] %v8385_v58  ;;  %1087 = vperm.xlu1 %7440, %v8378_v0   ;;  %1082 = vperm.xlu0 %7439, %v8381_v63   ;;  %v8402_v58 = vld [vmem:[%s7795_s8 + $0x3d8] sm:$0xff]  ;;  %v8405_v62 = vld [vmem:[%s7795_s8 + $0x3d0] sm:$0xff] }
 0x101   : > { %13551 = vst [vmem:[#allocation127_spill] sm:$0xff] %v8402_v58  ;;  %13552 = vst [vmem:[#allocation128_spill] sm:$0xff] %v8405_v62 }
 0x103   : > { %v8395_v61 = vpop.permute.xlu1 %777  ;;  %v8397_v57 = vpop.permute.xlu0 %772 }
 0x104   : > { %13549 = vst [vmem:[#allocation125_spill] sm:$0xff] %v8395_v61  ;;  %13550 = vst [vmem:[#allocation126_spill] sm:$0xff] %v8397_v57  ;;  %1097 = vperm.xlu1 %7440, %v8390_v60   ;;  %1092 = vperm.xlu0 %7439, %v8393_v59   ;;  %v8414_v61 = vld [vmem:[%s7795_s8 + $0x3e8] sm:$0xff]  ;;  %v8417_v57 = vld [vmem:[%s7795_s8 + $0x3e0] sm:$0xff] }
 0x105   : > { %13555 = vst [vmem:[#allocation131_spill] sm:$0xff] %v8414_v61  ;;  %v8426_v59 = vld [vmem:[%s7795_s8 + $0x3f8] sm:$0xff] }
 0x107   : > { %v8407_v0 = vpop.permute.xlu1 %787  ;;  %v8409_v63 = vpop.permute.xlu0 %782 }
 0x108   : > { %13553 = vst [vmem:[#allocation129_spill] sm:$0xff] %v8407_v0  ;;  %13554 = vst [vmem:[#allocation130_spill] sm:$0xff] %v8409_v63  ;;  %1107 = vperm.xlu1 %7440, %v8402_v58   ;;  %1102 = vperm.xlu0 %7439, %v8405_v62   ;;  %v8429_v0 = vld [vmem:[%s7795_s8 + $0x3f0] sm:$0xff] }
 0x10b   : > { %v8419_v55 = vpop.permute.xlu1 %797  ;;  %v8421_v60 = vpop.permute.xlu0 %792 }
 0x10c   : > { %13556 = vst [vmem:[#allocation132_spill] sm:$0xff] %v8419_v55  ;;  %13557 = vst [vmem:[#allocation133_spill] sm:$0xff] %v8421_v60  ;;  %1117 = vperm.xlu1 %7440, %v8414_v61   ;;  %1112 = vperm.xlu0 %7439, %v8417_v57   ;;  %v7725_v60 = vmov 1  }
 0x10f   : > { %v8431_v63 = vpop.permute.xlu1 %807  ;;  %v8433_v58 = vpop.permute.xlu0 %802 }
 0x110   : > { %13558 = vst [vmem:[#allocation134_spill] sm:$0xff] %v8431_v63  ;;  %13559 = vst [vmem:[#allocation135_spill] sm:$0xff] %v8433_v58  ;;  %1127 = vperm.xlu1 %7440, %v8426_v59   ;;  %1122 = vperm.xlu0 %7439, %v8429_v0  }
 0x113   : > { %v8437_v62 = vpop.permute.xlu1 %817  ;;  %v8439_v55 = vpop.permute.xlu0 %812 }
 0x114   : > { %13560 = vst [vmem:[#allocation136_spill] sm:$0xff] %v8437_v62  ;;  %7442 = vset.pattern.permute.xlu1 %v7725_v60  ;;  %7441 = vset.pattern.permute.xlu0 %v7725_v60 }
 0x115   : > { %1399 = vperm.xlu1 %7442, %v7809_v4   ;;  %1395 = vperm.xlu0 %7441, %v7802_v2  }
 0x117   : > { %v8443_v61 = vpop.permute.xlu1 %827  ;;  %v8445_v63 = vpop.permute.xlu0 %822 }
 0x119   : > { %1403 = vperm.xlu1 %7442, %v7798_v1   ;;  %1407 = vperm.xlu0 %7441, %v7806_v3  }
 0x11b   : > { %v8449_v58 = vpop.permute.xlu1 %837  ;;  %v8451_v62 = vpop.permute.xlu0 %832 }
 0x11d   : > { %1411 = vperm.xlu1 %7442, %v7817_v6   ;;  %1415 = vperm.xlu0 %7441, %v7814_v5  }
 0x11f   : > { %v8455_v60 = vpop.permute.xlu1 %847  ;;  %v8457_v4 = vpop.permute.xlu0 %842 }
 0x121   : > { %1419 = vperm.xlu1 %7442, %v7825_v8   ;;  %1423 = vperm.xlu0 %7441, %v7822_v7  }
 0x123   : > { %v8461_v2 = vpop.permute.xlu1 %857  ;;  %v8463_v1 = vpop.permute.xlu0 %852 }
 0x125   : > { %1427 = vperm.xlu1 %7442, %v7833_v10   ;;  %1431 = vperm.xlu0 %7441, %v7830_v9  }
 0x127   : > { %v8467_v3 = vpop.permute.xlu1 %867  ;;  %v8469_v6 = vpop.permute.xlu0 %862 }
 0x129   : > { %1435 = vperm.xlu1 %7442, %v7841_v12   ;;  %1439 = vperm.xlu0 %7441, %v7838_v11  }
 0x12b   : > { %v8473_v5 = vpop.permute.xlu1 %877  ;;  %v8475_v8 = vpop.permute.xlu0 %872 }
 0x12c   : > { %13561 = vst [vmem:[#allocation137_spill] sm:$0xff] %v8475_v8 }
 0x12d   : > { %1443 = vperm.xlu1 %7442, %v7849_v14   ;;  %1447 = vperm.xlu0 %7441, %v7846_v13  }
 0x12f   : > { %v8479_v7 = vpop.permute.xlu1 %887  ;;  %v8481_v10 = vpop.permute.xlu0 %882 }
 0x130   : > { %13562 = vst [vmem:[#allocation138_spill] sm:$0xff] %v8479_v7  ;;  %13563 = vst [vmem:[#allocation139_spill] sm:$0xff] %v8481_v10  ;;  %v8926_v7 = vld [vmem:[%s7795_s8 + $0x88] sm:$0xff] }
 0x131   : > { %1451 = vperm.xlu1 %7442, %v7857_v16   ;;  %1455 = vperm.xlu0 %7441, %v7854_v15  }
 0x133   : > { %v8485_v9 = vpop.permute.xlu1 %897  ;;  %v8487_v12 = vpop.permute.xlu0 %892 }
 0x134   : > { %13564 = vst [vmem:[#allocation140_spill] sm:$0xff] %v8485_v9  ;;  %13565 = vst [vmem:[#allocation141_spill] sm:$0xff] %v8487_v12  ;;  %v8906_v12 = vld [vmem:[%s7795_s8 + $0x60] sm:$0xff] }
 0x135   : > { %1459 = vperm.xlu1 %7442, %v7865_v18   ;;  %1463 = vperm.xlu0 %7441, %v7862_v17  }
 0x137   : > { %v8491_v11 = vpop.permute.xlu1 %907  ;;  %v8493_v14 = vpop.permute.xlu0 %902 }
 0x138   : > { %13566 = vst [vmem:[#allocation142_spill] sm:$0xff] %v8491_v11  ;;  %13567 = vst [vmem:[#allocation143_spill] sm:$0xff] %v8493_v14  ;;  %v8890_v14 = vld [vmem:[%s7795_s8 + $0x58] sm:$0xff] }
 0x139   : > { %1467 = vperm.xlu1 %7442, %v7873_v20   ;;  %1471 = vperm.xlu0 %7441, %v7870_v19  }
 0x13b   : > { %v8497_v13 = vpop.permute.xlu1 %917  ;;  %v8499_v16 = vpop.permute.xlu0 %912 }
 0x13c   : > { %13568 = vst [vmem:[#allocation144_spill] sm:$0xff] %v8497_v13  ;;  %13569 = vst [vmem:[#allocation145_spill] sm:$0xff] %v8499_v16  ;;  %v8882_v16 = vld [vmem:[%s7795_s8 + $0x40] sm:$0xff] }
 0x13d   : > { %1475 = vperm.xlu1 %7442, %v7881_v22   ;;  %1479 = vperm.xlu0 %7441, %v7878_v21  }
 0x13f   : > { %v8503_v15 = vpop.permute.xlu1 %927  ;;  %v8505_v18 = vpop.permute.xlu0 %922 }
 0x140   : > { %13570 = vst [vmem:[#allocation146_spill] sm:$0xff] %v8503_v15  ;;  %13571 = vst [vmem:[#allocation147_spill] sm:$0xff] %v8505_v18  ;;  %v8870_v18 = vld [vmem:[%s7795_s8 + $0x30] sm:$0xff] }
 0x141   : > { %1483 = vperm.xlu1 %7442, %v7889_v24   ;;  %1487 = vperm.xlu0 %7441, %v7886_v23  }
 0x143   : > { %v8509_v17 = vpop.permute.xlu1 %937  ;;  %v8511_v20 = vpop.permute.xlu0 %932 }
 0x144   : > { %13572 = vst [vmem:[#allocation148_spill] sm:$0xff] %v8509_v17  ;;  %13573 = vst [vmem:[#allocation149_spill] sm:$0xff] %v8511_v20  ;;  %v13685_v20 = vld [vmem:[#allocation84_spill] sm:$0xff] }
 0x145   : > { %1491 = vperm.xlu1 %7442, %v7897_v26   ;;  %1495 = vperm.xlu0 %7441, %v7894_v25  }
 0x147   : > { %v8515_v19 = vpop.permute.xlu1 %947  ;;  %v8517_v22 = vpop.permute.xlu0 %942 }
 0x148   : > { %13574 = vst [vmem:[#allocation150_spill] sm:$0xff] %v8515_v19  ;;  %13575 = vst [vmem:[#allocation151_spill] sm:$0xff] %v8517_v22  ;;  %v13666_v22 = vld [vmem:[#allocation63_spill] sm:$0xff] }
 0x149   : > { %1499 = vperm.xlu1 %7442, %v7905_v28   ;;  %1503 = vperm.xlu0 %7441, %v7902_v27  }
 0x14b   : > { %v8521_v21 = vpop.permute.xlu1 %957  ;;  %v8523_v24 = vpop.permute.xlu0 %952 }
 0x14c   : > { %13576 = vst [vmem:[#allocation152_spill] sm:$0xff] %v8521_v21  ;;  %13577 = vst [vmem:[#allocation153_spill] sm:$0xff] %v8523_v24  ;;  %v13662_v24 = vld [vmem:[#allocation59_spill] sm:$0xff] }
 0x14d   : > { %1507 = vperm.xlu1 %7442, %v7913_v30   ;;  %1511 = vperm.xlu0 %7441, %v7910_v29  }
 0x14f   : > { %v8527_v23 = vpop.permute.xlu1 %967  ;;  %v8529_v26 = vpop.permute.xlu0 %962 }
 0x150   : > { %13578 = vst [vmem:[#allocation154_spill] sm:$0xff] %v8527_v23  ;;  %13579 = vst [vmem:[#allocation155_spill] sm:$0xff] %v8529_v26  ;;  %v13658_v26 = vld [vmem:[#allocation55_spill] sm:$0xff] }
 0x151   : > { %1515 = vperm.xlu1 %7442, %v7921_v32   ;;  %1519 = vperm.xlu0 %7441, %v7918_v31  }
 0x153   : > { %v8533_v25 = vpop.permute.xlu1 %977  ;;  %v8535_v28 = vpop.permute.xlu0 %972 }
 0x154   : > { %13580 = vst [vmem:[#allocation156_spill] sm:$0xff] %v8533_v25  ;;  %13581 = vst [vmem:[#allocation157_spill] sm:$0xff] %v8535_v28  ;;  %v13654_v28 = vld [vmem:[#allocation51_spill] sm:$0xff] }
 0x155   : > { %1523 = vperm.xlu1 %7442, %v7929_v34   ;;  %1527 = vperm.xlu0 %7441, %v7926_v33  }
 0x157   : > { %v8539_v27 = vpop.permute.xlu1 %987  ;;  %v8541_v30 = vpop.permute.xlu0 %982 }
 0x158   : > { %13582 = vst [vmem:[#allocation158_spill] sm:$0xff] %v8539_v27  ;;  %13583 = vst [vmem:[#allocation159_spill] sm:$0xff] %v8541_v30  ;;  %v13650_v30 = vld [vmem:[#allocation47_spill] sm:$0xff] }
 0x159   : > { %1531 = vperm.xlu1 %7442, %v7937_v36   ;;  %1535 = vperm.xlu0 %7441, %v7934_v35  }
 0x15b   : > { %v8545_v29 = vpop.permute.xlu1 %997  ;;  %v8547_v32 = vpop.permute.xlu0 %992 }
 0x15c   : > { %13584 = vst [vmem:[#allocation160_spill] sm:$0xff] %v8545_v29  ;;  %13585 = vst [vmem:[#allocation161_spill] sm:$0xff] %v8547_v32  ;;  %v13646_v32 = vld [vmem:[#allocation43_spill] sm:$0xff] }
 0x15d   : > { %1539 = vperm.xlu1 %7442, %v7945_v38   ;;  %1543 = vperm.xlu0 %7441, %v7942_v37  }
 0x15f   : > { %v8551_v31 = vpop.permute.xlu1 %1007  ;;  %v8553_v34 = vpop.permute.xlu0 %1002 }
 0x160   : > { %13586 = vst [vmem:[#allocation162_spill] sm:$0xff] %v8551_v31  ;;  %13587 = vst [vmem:[#allocation163_spill] sm:$0xff] %v8553_v34  ;;  %v13642_v34 = vld [vmem:[#allocation39_spill] sm:$0xff] }
 0x161   : > { %1547 = vperm.xlu1 %7442, %v7953_v40   ;;  %1551 = vperm.xlu0 %7441, %v7950_v39  }
 0x163   : > { %v8557_v33 = vpop.permute.xlu1 %1017  ;;  %v8559_v36 = vpop.permute.xlu0 %1012 }
 0x164   : > { %13588 = vst [vmem:[#allocation164_spill] sm:$0xff] %v8557_v33  ;;  %13589 = vst [vmem:[#allocation165_spill] sm:$0xff] %v8559_v36  ;;  %v13638_v36 = vld [vmem:[#allocation35_spill] sm:$0xff] }
 0x165   : > { %1555 = vperm.xlu1 %7442, %v7961_v42   ;;  %1559 = vperm.xlu0 %7441, %v7958_v41  }
 0x167   : > { %v8563_v35 = vpop.permute.xlu1 %1027  ;;  %v8565_v38 = vpop.permute.xlu0 %1022 }
 0x168   : > { %13590 = vst [vmem:[#allocation166_spill] sm:$0xff] %v8563_v35  ;;  %13591 = vst [vmem:[#allocation167_spill] sm:$0xff] %v8565_v38  ;;  %v13634_v38 = vld [vmem:[#allocation31_spill] sm:$0xff] }
 0x169   : > { %1563 = vperm.xlu1 %7442, %v7969_v44   ;;  %1567 = vperm.xlu0 %7441, %v7966_v43  }
 0x16b   : > { %v8569_v37 = vpop.permute.xlu1 %1037  ;;  %v8571_v40 = vpop.permute.xlu0 %1032 }
 0x16c   : > { %13592 = vst [vmem:[#allocation168_spill] sm:$0xff] %v8569_v37  ;;  %13593 = vst [vmem:[#allocation169_spill] sm:$0xff] %v8571_v40  ;;  %v13630_v40 = vld [vmem:[#allocation27_spill] sm:$0xff] }
 0x16d   : > { %1571 = vperm.xlu1 %7442, %v7977_v46   ;;  %1575 = vperm.xlu0 %7441, %v7974_v45  }
 0x16f   : > { %v8575_v39 = vpop.permute.xlu1 %1047  ;;  %v8577_v42 = vpop.permute.xlu0 %1042 }
 0x170   : > { %13594 = vst [vmem:[#allocation170_spill] sm:$0xff] %v8575_v39  ;;  %13595 = vst [vmem:[#allocation171_spill] sm:$0xff] %v8577_v42 }
 0x171   : > { %1579 = vperm.xlu1 %7442, %v7985_v48   ;;  %1583 = vperm.xlu0 %7441, %v7982_v47  }
 0x173   : > { %v8581_v41 = vpop.permute.xlu1 %1057  ;;  %v8583_v44 = vpop.permute.xlu0 %1052 }
 0x174   : > { %13596 = vst [vmem:[#allocation172_spill] sm:$0xff] %v8581_v41  ;;  %13597 = vst [vmem:[#allocation173_spill] sm:$0xff] %v8583_v44  ;;  %v13628_v41 = vld [vmem:[#allocation23_spill] sm:$0xff] }
 0x175   : > { %1587 = vperm.xlu1 %7442, %v7993_v50   ;;  %1591 = vperm.xlu0 %7441, %v7990_v49   ;;  %v13604_v49 = vld [vmem:[#allocation2_spill] sm:$0xff] }
 0x177   : > { %v8587_v43 = vpop.permute.xlu1 %1067  ;;  %v8589_v46 = vpop.permute.xlu0 %1062 }
 0x178   : > { %13598 = vst [vmem:[#allocation174_spill] sm:$0xff] %v8587_v43  ;;  %13599 = vst [vmem:[#allocation175_spill] sm:$0xff] %v8589_v46  ;;  %v13626_v46 = vld [vmem:[#allocation19_spill] sm:$0xff] }
 0x179   : > { %1595 = vperm.xlu1 %7442, %v8001_v52   ;;  %1599 = vperm.xlu0 %7441, %v7998_v51   ;;  %v13607_v51 = vld [vmem:[#allocation4_spill] sm:$0xff] }
 0x17b   : > { %v8593_v45 = vpop.permute.xlu1 %1077  ;;  %v8595_v48 = vpop.permute.xlu0 %1072 }
 0x17c   : > { %13600 = vst [vmem:[#allocation176_spill] sm:$0xff] %v8593_v45  ;;  %13601 = vst [vmem:[#allocation177_spill] sm:$0xff] %v8595_v48  ;;  %v13608_v45 = vld [vmem:[#allocation3_spill] sm:$0xff] }
 0x17d   : > { %1603 = vperm.xlu1 %7442, %v8009_v54   ;;  %1607 = vperm.xlu0 %7441, %v8006_v53   ;;  %v13611_v53 = vld [vmem:[#allocation6_spill] sm:$0xff] }
 0x17f   : > { %v8599_v47 = vpop.permute.xlu1 %1087  ;;  %v8601_v50 = vpop.permute.xlu0 %1082 }
 0x180   : > { %13602 = vst [vmem:[#allocation178_spill] sm:$0xff] %v8599_v47  ;;  %13603 = vst [vmem:[#allocation179_spill] sm:$0xff] %v8601_v50  ;;  %v13612_v47 = vld [vmem:[#allocation5_spill] sm:$0xff] }
 0x181   : > { %1611 = vperm.xlu1 %7442, %v8017_v56   ;;  %1615 = vperm.xlu0 %7441, %v13604_v49   ;;  %v13615_v49 = vld [vmem:[#allocation8_spill] sm:$0xff] }
 0x183   : > { %v8605_v43 = vpop.permute.xlu1 %1097  ;;  %v8607_v52 = vpop.permute.xlu0 %1092 }
 0x184   : > { %13605 = vst [vmem:[#allocation2_spill] sm:$0xff] %v8605_v43  ;;  %13606 = vst [vmem:[#allocation180_spill] sm:$0xff] %v8607_v52  ;;  %v13616_v43 = vld [vmem:[#allocation7_spill] sm:$0xff] }
 0x185   : > { %1619 = vperm.xlu1 %7442, %v13607_v51   ;;  %1623 = vperm.xlu0 %7441, %v13608_v45   ;;  %v13619_v45 = vld [vmem:[#allocation10_spill] sm:$0xff] }
 0x187   : > { %v8611_v48 = vpop.permute.xlu1 %1107  ;;  %v8613_v54 = vpop.permute.xlu0 %1102 }
 0x188   : > { %13609 = vst [vmem:[#allocation4_spill] sm:$0xff] %v8611_v48  ;;  %13610 = vst [vmem:[#allocation3_spill] sm:$0xff] %v8613_v54  ;;  %v13620_v48 = vld [vmem:[#allocation9_spill] sm:$0xff] }
 0x189   : > { %1627 = vperm.xlu1 %7442, %v13611_v53   ;;  %1631 = vperm.xlu0 %7441, %v13612_v47   ;;  %v13621_v47 = vld [vmem:[#allocation12_spill] sm:$0xff] }
 0x18b   : > { %v8617_v50 = vpop.permute.xlu1 %1117  ;;  %v8619_v56 = vpop.permute.xlu0 %1112 }
 0x18c   : > { %13613 = vst [vmem:[#allocation6_spill] sm:$0xff] %v8617_v50  ;;  %13614 = vst [vmem:[#allocation5_spill] sm:$0xff] %v8619_v56  ;;  %v13622_v50 = vld [vmem:[#allocation11_spill] sm:$0xff] }
 0x18d   : > { %1635 = vperm.xlu1 %7442, %v13615_v49   ;;  %1639 = vperm.xlu0 %7441, %v13616_v43   ;;  %v13623_v43 = vld [vmem:[#allocation16_spill] sm:$0xff] }
 0x18f   : > { %v8623_v52 = vpop.permute.xlu1 %1127  ;;  %v8625_v51 = vpop.permute.xlu0 %1122 }
 0x190   : > { %13617 = vst [vmem:[#allocation8_spill] sm:$0xff] %v8623_v52  ;;  %13618 = vst [vmem:[#allocation7_spill] sm:$0xff] %v8625_v51  ;;  %v13624_v52 = vld [vmem:[#allocation15_spill] sm:$0xff] }
 0x191   : > { %1643 = vperm.xlu1 %7442, %v13619_v45   ;;  %1647 = vperm.xlu0 %7441, %v13620_v48   ;;  %v13625_v48 = vld [vmem:[#allocation20_spill] sm:$0xff] }
 0x194   : > { %v8629_v54 = vpop.permute.xlu1 %1399  ;;  %v8631_v53 = vpop.permute.xlu0 %1395 }
 0x195   : > { %1651 = vperm.xlu1 %7442, %v13621_v47   ;;  %1655 = vperm.xlu0 %7441, %v13622_v50   ;;  %v13627_v50 = vld [vmem:[#allocation24_spill] sm:$0xff] }
 0x198   : > { %v8635_v56 = vpop.permute.xlu1 %1403  ;;  %v8637_v49 = vpop.permute.xlu0 %1407 }
 0x199   : > { %1659 = vperm.xlu1 %7442, %v13623_v43   ;;  %1663 = vperm.xlu0 %7441, %v13624_v52   ;;  %v13629_v52 = vld [vmem:[#allocation28_spill] sm:$0xff] }
 0x19c   : > { %v8641_v51 = vpop.permute.xlu1 %1411  ;;  %v8643_v45 = vpop.permute.xlu0 %1415 }
 0x19d   : > { %1667 = vperm.xlu1 %7442, %v13625_v48   ;;  %1671 = vperm.xlu0 %7441, %v13626_v46   ;;  %v13633_v46 = vld [vmem:[#allocation32_spill] sm:$0xff] }
 0x1a0   : > { %v8647_v44 = vpop.permute.xlu1 %1419  ;;  %v8649_v47 = vpop.permute.xlu0 %1423 }
 0x1a1   : > { %1675 = vperm.xlu1 %7442, %v13627_v50   ;;  %1679 = vperm.xlu0 %7441, %v13628_v41   ;;  %v13637_v41 = vld [vmem:[#allocation36_spill] sm:$0xff] }
 0x1a4   : > { %v8653_v42 = vpop.permute.xlu1 %1427  ;;  %v8655_v39 = vpop.permute.xlu0 %1431 }
 0x1a5   : > { %1683 = vperm.xlu1 %7442, %v13629_v52   ;;  %1687 = vperm.xlu0 %7441, %v13630_v40   ;;  %v13641_v40 = vld [vmem:[#allocation40_spill] sm:$0xff] }
 0x1a8   : > { %v8659_v37 = vpop.permute.xlu1 %1435  ;;  %v8661_v48 = vpop.permute.xlu0 %1439 }
 0x1a9   : > { %13631 = vst [vmem:[#allocation10_spill] sm:$0xff] %v8659_v37  ;;  %13632 = vst [vmem:[#allocation9_spill] sm:$0xff] %v8661_v48  ;;  %1691 = vperm.xlu1 %7442, %v13633_v46   ;;  %1695 = vperm.xlu0 %7441, %v13634_v38   ;;  %v13645_v38 = vld [vmem:[#allocation44_spill] sm:$0xff]  ;;  %v9360_v48 = vld [vmem:[%s7795_s8 + $0x298] sm:$0xff] }
 0x1ac   : > { %v8665_v35 = vpop.permute.xlu1 %1443  ;;  %v8667_v50 = vpop.permute.xlu0 %1447 }
 0x1ad   : > { %13635 = vst [vmem:[#allocation12_spill] sm:$0xff] %v8665_v35  ;;  %13636 = vst [vmem:[#allocation11_spill] sm:$0xff] %v8667_v50  ;;  %1699 = vperm.xlu1 %7442, %v13637_v41   ;;  %1703 = vperm.xlu0 %7441, %v13638_v36   ;;  %v13649_v36 = vld [vmem:[#allocation48_spill] sm:$0xff]  ;;  %v13868_v35 = vld [vmem:[#allocation26_spill] sm:$0xff] }
 0x1b0   : > { %v8671_v33 = vpop.permute.xlu1 %1451  ;;  %v8673_v52 = vpop.permute.xlu0 %1455 }
 0x1b1   : > { %13639 = vst [vmem:[#allocation16_spill] sm:$0xff] %v8671_v33  ;;  %13640 = vst [vmem:[#allocation15_spill] sm:$0xff] %v8673_v52  ;;  %1707 = vperm.xlu1 %7442, %v13641_v40   ;;  %1711 = vperm.xlu0 %7441, %v13642_v34   ;;  %v13653_v34 = vld [vmem:[#allocation52_spill] sm:$0xff]  ;;  %v7536_v33 = vld [vmem:[%s7795_s8 + $0xa8] sm:$0xff] }
 0x1b4   : > { %v8677_v31 = vpop.permute.xlu1 %1459  ;;  %v8679_v46 = vpop.permute.xlu0 %1463 }
 0x1b5   : > { %13643 = vst [vmem:[#allocation20_spill] sm:$0xff] %v8677_v31  ;;  %13644 = vst [vmem:[#allocation19_spill] sm:$0xff] %v8679_v46  ;;  %1715 = vperm.xlu1 %7442, %v13645_v38   ;;  %1719 = vperm.xlu0 %7441, %v13646_v32   ;;  %v13657_v32 = vld [vmem:[#allocation56_spill] sm:$0xff]  ;;  %v8914_v31 = vld [vmem:[%s7795_s8 + $0x78] sm:$0xff] }
 0x1b8   : > { %v8683_v29 = vpop.permute.xlu1 %1467  ;;  %v8685_v41 = vpop.permute.xlu0 %1471 }
 0x1b9   : > { %13647 = vst [vmem:[#allocation24_spill] sm:$0xff] %v8683_v29  ;;  %13648 = vst [vmem:[#allocation23_spill] sm:$0xff] %v8685_v41  ;;  %1723 = vperm.xlu1 %7442, %v13649_v36   ;;  %1727 = vperm.xlu0 %7441, %v13650_v30   ;;  %v13661_v30 = vld [vmem:[#allocation60_spill] sm:$0xff]  ;;  %v8902_v29 = vld [vmem:[%s7795_s8 + $0x68] sm:$0xff] }
 0x1bc   : > { %v8689_v27 = vpop.permute.xlu1 %1475  ;;  %v8691_v40 = vpop.permute.xlu0 %1479 }
 0x1bd   : > { %13651 = vst [vmem:[#allocation28_spill] sm:$0xff] %v8689_v27  ;;  %13652 = vst [vmem:[#allocation27_spill] sm:$0xff] %v8691_v40  ;;  %1731 = vperm.xlu1 %7442, %v13653_v34   ;;  %1735 = vperm.xlu0 %7441, %v13654_v28   ;;  %v13665_v28 = vld [vmem:[#allocation64_spill] sm:$0xff] }
 0x1be   : > { %v8894_v27 = vld [vmem:[%s7795_s8 + $0x50] sm:$0xff] }
 0x1c0   : > { %v8695_v25 = vpop.permute.xlu1 %1483  ;;  %v8697_v38 = vpop.permute.xlu0 %1487 }
 0x1c1   : > { %13655 = vst [vmem:[#allocation32_spill] sm:$0xff] %v8695_v25  ;;  %13656 = vst [vmem:[#allocation31_spill] sm:$0xff] %v8697_v38  ;;  %1739 = vperm.xlu1 %7442, %v13657_v32   ;;  %1743 = vperm.xlu0 %7441, %v13658_v26   ;;  %v13669_v26 = vld [vmem:[#allocation68_spill] sm:$0xff]  ;;  %v8878_v25 = vld [vmem:[%s7795_s8 + $0x48] sm:$0xff] }
 0x1c4   : > { %v8701_v23 = vpop.permute.xlu1 %1491  ;;  %v8703_v36 = vpop.permute.xlu0 %1495 }
 0x1c5   : > { %13659 = vst [vmem:[#allocation36_spill] sm:$0xff] %v8701_v23  ;;  %13660 = vst [vmem:[#allocation35_spill] sm:$0xff] %v8703_v36  ;;  %1747 = vperm.xlu1 %7442, %v13661_v30   ;;  %1751 = vperm.xlu0 %7441, %v13662_v24   ;;  %v13670_v23 = vld [vmem:[#allocation67_spill] sm:$0xff]  ;;  %v13673_v24 = vld [vmem:[#allocation72_spill] sm:$0xff] }
 0x1c8   : > { %v8707_v21 = vpop.permute.xlu1 %1499  ;;  %v8709_v34 = vpop.permute.xlu0 %1503 }
 0x1c9   : > { %13663 = vst [vmem:[#allocation40_spill] sm:$0xff] %v8707_v21  ;;  %13664 = vst [vmem:[#allocation39_spill] sm:$0xff] %v8709_v34  ;;  %1755 = vperm.xlu1 %7442, %v13665_v28   ;;  %1759 = vperm.xlu0 %7441, %v13666_v22   ;;  %v13674_v21 = vld [vmem:[#allocation71_spill] sm:$0xff]  ;;  %v13677_v22 = vld [vmem:[#allocation76_spill] sm:$0xff] }
 0x1cc   : > { %v8713_v19 = vpop.permute.xlu1 %1507  ;;  %v8715_v32 = vpop.permute.xlu0 %1511 }
 0x1cd   : > { %13667 = vst [vmem:[#allocation44_spill] sm:$0xff] %v8713_v19  ;;  %13668 = vst [vmem:[#allocation43_spill] sm:$0xff] %v8715_v32  ;;  %1763 = vperm.xlu1 %7442, %v13669_v26   ;;  %1767 = vperm.xlu0 %7441, %v13670_v23   ;;  %v13678_v19 = vld [vmem:[#allocation75_spill] sm:$0xff]  ;;  %v13681_v23 = vld [vmem:[#allocation80_spill] sm:$0xff] }
 0x1d0   : > { %v8719_v36 = vpop.permute.xlu1 %1515  ;;  %v8721_v30 = vpop.permute.xlu0 %1519 }
 0x1d1   : > { %13671 = vst [vmem:[#allocation48_spill] sm:$0xff] %v8719_v36  ;;  %13672 = vst [vmem:[#allocation47_spill] sm:$0xff] %v8721_v30  ;;  %1771 = vperm.xlu1 %7442, %v13673_v24   ;;  %1775 = vperm.xlu0 %7441, %v13674_v21   ;;  %v13682_v36 = vld [vmem:[#allocation79_spill] sm:$0xff] }
 0x1d4   : > { %v8725_v34 = vpop.permute.xlu1 %1523  ;;  %v8727_v28 = vpop.permute.xlu0 %1527 }
 0x1d5   : > { %13675 = vst [vmem:[#allocation52_spill] sm:$0xff] %v8725_v34  ;;  %13676 = vst [vmem:[#allocation51_spill] sm:$0xff] %v8727_v28  ;;  %1779 = vperm.xlu1 %7442, %v13677_v22   ;;  %1783 = vperm.xlu0 %7441, %v13678_v19   ;;  %v13686_v34 = vld [vmem:[#allocation83_spill] sm:$0xff]  ;;  %v13689_v19 = vld [vmem:[#allocation88_spill] sm:$0xff] }
 0x1d8   : > { %v8731_v32 = vpop.permute.xlu1 %1531  ;;  %v8733_v26 = vpop.permute.xlu0 %1535 }
 0x1d9   : > { %13679 = vst [vmem:[#allocation56_spill] sm:$0xff] %v8731_v32  ;;  %13680 = vst [vmem:[#allocation55_spill] sm:$0xff] %v8733_v26  ;;  %1787 = vperm.xlu1 %7442, %v13681_v23   ;;  %1791 = vperm.xlu0 %7441, %v13682_v36   ;;  %v13690_v32 = vld [vmem:[#allocation87_spill] sm:$0xff]  ;;  %v13693_v36 = vld [vmem:[#allocation92_spill] sm:$0xff] }
 0x1dc   : > { %v8737_v30 = vpop.permute.xlu1 %1539  ;;  %v8739_v24 = vpop.permute.xlu0 %1543 }
 0x1dd   : > { %13683 = vst [vmem:[#allocation60_spill] sm:$0xff] %v8737_v30  ;;  %13684 = vst [vmem:[#allocation59_spill] sm:$0xff] %v8739_v24  ;;  %1795 = vperm.xlu1 %7442, %v13685_v20   ;;  %1799 = vperm.xlu0 %7441, %v13686_v34   ;;  %v13694_v30 = vld [vmem:[#allocation91_spill] sm:$0xff]  ;;  %v13697_v34 = vld [vmem:[#allocation96_spill] sm:$0xff] }
 0x1e0   : > { %v8743_v28 = vpop.permute.xlu1 %1547  ;;  %v8745_v22 = vpop.permute.xlu0 %1551 }
 0x1e1   : > { %13687 = vst [vmem:[#allocation64_spill] sm:$0xff] %v8743_v28  ;;  %13688 = vst [vmem:[#allocation63_spill] sm:$0xff] %v8745_v22  ;;  %1803 = vperm.xlu1 %7442, %v13689_v19   ;;  %1807 = vperm.xlu0 %7441, %v13690_v32   ;;  %v13698_v28 = vld [vmem:[#allocation95_spill] sm:$0xff]  ;;  %v13701_v32 = vld [vmem:[#allocation100_spill] sm:$0xff] }
 0x1e4   : > { %v8749_v26 = vpop.permute.xlu1 %1555  ;;  %v8751_v23 = vpop.permute.xlu0 %1559 }
 0x1e5   : > { %13691 = vst [vmem:[#allocation68_spill] sm:$0xff] %v8749_v26  ;;  %13692 = vst [vmem:[#allocation67_spill] sm:$0xff] %v8751_v23  ;;  %1811 = vperm.xlu1 %7442, %v13693_v36   ;;  %1815 = vperm.xlu0 %7441, %v13694_v30   ;;  %v13702_v26 = vld [vmem:[#allocation99_spill] sm:$0xff]  ;;  %v13705_v30 = vld [vmem:[#allocation104_spill] sm:$0xff] }
 0x1e8   : > { %v8755_v24 = vpop.permute.xlu1 %1563  ;;  %v8757_v20 = vpop.permute.xlu0 %1567 }
 0x1e9   : > { %13695 = vst [vmem:[#allocation72_spill] sm:$0xff] %v8755_v24  ;;  %13696 = vst [vmem:[#allocation71_spill] sm:$0xff] %v8757_v20  ;;  %1819 = vperm.xlu1 %7442, %v13697_v34   ;;  %1823 = vperm.xlu0 %7441, %v13698_v28   ;;  %v13706_v24 = vld [vmem:[#allocation103_spill] sm:$0xff]  ;;  %v13709_v28 = vld [vmem:[#allocation108_spill] sm:$0xff] }
 0x1ec   : > { %v8761_v22 = vpop.permute.xlu1 %1571  ;;  %v8763_v19 = vpop.permute.xlu0 %1575 }
 0x1ed   : > { %13699 = vst [vmem:[#allocation76_spill] sm:$0xff] %v8761_v22  ;;  %13700 = vst [vmem:[#allocation75_spill] sm:$0xff] %v8763_v19  ;;  %1827 = vperm.xlu1 %7442, %v13701_v32   ;;  %1831 = vperm.xlu0 %7441, %v13702_v26   ;;  %v13710_v22 = vld [vmem:[#allocation107_spill] sm:$0xff]  ;;  %v13713_v26 = vld [vmem:[#allocation112_spill] sm:$0xff] }
 0x1f0   : > { %v8767_v23 = vpop.permute.xlu1 %1579  ;;  %v8769_v36 = vpop.permute.xlu0 %1583 }
 0x1f1   : > { %13703 = vst [vmem:[#allocation80_spill] sm:$0xff] %v8767_v23  ;;  %13704 = vst [vmem:[#allocation79_spill] sm:$0xff] %v8769_v36  ;;  %1835 = vperm.xlu1 %7442, %v13705_v30   ;;  %1839 = vperm.xlu0 %7441, %v13706_v24   ;;  %v13714_v23 = vld [vmem:[#allocation111_spill] sm:$0xff]  ;;  %v13717_v24 = vld [vmem:[#allocation116_spill] sm:$0xff] }
 0x1f4   : > { %v8773_v20 = vpop.permute.xlu1 %1587  ;;  %v8775_v34 = vpop.permute.xlu0 %1591 }
 0x1f5   : > { %13707 = vst [vmem:[#allocation84_spill] sm:$0xff] %v8773_v20  ;;  %13708 = vst [vmem:[#allocation83_spill] sm:$0xff] %v8775_v34  ;;  %1843 = vperm.xlu1 %7442, %v13709_v28   ;;  %1847 = vperm.xlu0 %7441, %v13710_v22   ;;  %v13718_v20 = vld [vmem:[#allocation115_spill] sm:$0xff]  ;;  %v13721_v22 = vld [vmem:[#allocation120_spill] sm:$0xff] }
 0x1f8   : > { %v8779_v19 = vpop.permute.xlu1 %1595  ;;  %v8781_v32 = vpop.permute.xlu0 %1599 }
 0x1f9   : > { %13711 = vst [vmem:[#allocation88_spill] sm:$0xff] %v8779_v19  ;;  %13712 = vst [vmem:[#allocation87_spill] sm:$0xff] %v8781_v32  ;;  %1851 = vperm.xlu1 %7442, %v13713_v26   ;;  %1855 = vperm.xlu0 %7441, %v13714_v23   ;;  %v13722_v19 = vld [vmem:[#allocation119_spill] sm:$0xff]  ;;  %v13725_v23 = vld [vmem:[#allocation124_spill] sm:$0xff] }
 0x1fc   : > { %v8785_v36 = vpop.permute.xlu1 %1603  ;;  %v8787_v30 = vpop.permute.xlu0 %1607 }
 0x1fd   : > { %13715 = vst [vmem:[#allocation92_spill] sm:$0xff] %v8785_v36  ;;  %13716 = vst [vmem:[#allocation91_spill] sm:$0xff] %v8787_v30  ;;  %1859 = vperm.xlu1 %7442, %v13717_v24   ;;  %1863 = vperm.xlu0 %7441, %v13718_v20   ;;  %v13726_v36 = vld [vmem:[#allocation123_spill] sm:$0xff]  ;;  %v13729_v20 = vld [vmem:[#allocation128_spill] sm:$0xff] }
 0x200   : > { %v8791_v34 = vpop.permute.xlu1 %1611  ;;  %v8793_v28 = vpop.permute.xlu0 %1615 }
 0x201   : > { %13719 = vst [vmem:[#allocation96_spill] sm:$0xff] %v8791_v34  ;;  %13720 = vst [vmem:[#allocation95_spill] sm:$0xff] %v8793_v28  ;;  %1867 = vperm.xlu1 %7442, %v13721_v22   ;;  %1871 = vperm.xlu0 %7441, %v13722_v19   ;;  %v13730_v34 = vld [vmem:[#allocation127_spill] sm:$0xff] }
 0x204   : > { %v8797_v32 = vpop.permute.xlu1 %1619  ;;  %v8799_v26 = vpop.permute.xlu0 %1623 }
 0x205   : > { %13723 = vst [vmem:[#allocation100_spill] sm:$0xff] %v8797_v32  ;;  %13724 = vst [vmem:[#allocation99_spill] sm:$0xff] %v8799_v26  ;;  %1875 = vperm.xlu1 %7442, %v13725_v23   ;;  %1879 = vperm.xlu0 %7441, %v13726_v36   ;;  %v13733_v26 = vld [vmem:[#allocation131_spill] sm:$0xff] }
 0x206   : > { %v8854_v32 = vld [vmem:[%s7795_s8 + $0x28] sm:$0xff] }
 0x208   : > { %v8803_v30 = vpop.permute.xlu1 %1627  ;;  %v8805_v24 = vpop.permute.xlu0 %1631 }
 0x209   : > { %13727 = vst [vmem:[#allocation104_spill] sm:$0xff] %v8803_v30  ;;  %13728 = vst [vmem:[#allocation103_spill] sm:$0xff] %v8805_v24  ;;  %1883 = vperm.xlu1 %7442, %v13729_v20   ;;  %1887 = vperm.xlu0 %7441, %v13730_v34  }
 0x20c   : > { %v8809_v22 = vpop.permute.xlu1 %1635  ;;  %v8811_v19 = vpop.permute.xlu0 %1639 }
 0x20d   : > { %13731 = vst [vmem:[#allocation108_spill] sm:$0xff] %v8809_v22  ;;  %13732 = vst [vmem:[#allocation107_spill] sm:$0xff] %v8811_v19  ;;  %1891 = vperm.xlu1 %7442, %v8417_v57   ;;  %1895 = vperm.xlu0 %7441, %v13733_v26   ;;  %v13215_v22 = vmov 2   ;;  %v13213_v57 = vmov 3   ;;  %v8828_v26 = vld [vmem:[%s7795_s8] sm:$0xff]  ;;  %v8845_v19 = vld [vmem:[%s7795_s8 + $0x18] sm:$0xff] }
 0x210   : > { %v8815_v23 = vpop.permute.xlu1 %1643  ;;  %v8817_v36 = vpop.permute.xlu0 %1647 }
 0x211   : > { %13734 = vst [vmem:[#allocation112_spill] sm:$0xff] %v8815_v23  ;;  %13735 = vst [vmem:[#allocation111_spill] sm:$0xff] %v8817_v36  ;;  %1899 = vperm.xlu1 %7442, %v8429_v0   ;;  %1903 = vperm.xlu0 %7441, %v8426_v59   ;;  %v8832_v36 = vld [vmem:[%s7795_s8 + $0x8] sm:$0xff]  ;;  %v7518_v23 = vld [vmem:[%s7795_s8 + $0x10] sm:$0xff] }
 0x214   : > { %v8821_v20 = vpop.permute.xlu1 %1651  ;;  %v8823_v34 = vpop.permute.xlu0 %1655 }
 0x215   : > { %13736 = vst [vmem:[#allocation116_spill] sm:$0xff] %v8821_v20  ;;  %13737 = vst [vmem:[#allocation115_spill] sm:$0xff] %v8823_v34  ;;  %7443 = vset.pattern.permute.xlu1 %v13215_v22  ;;  %7445 = vset.pattern.permute.xlu0 %v13213_v57 }
 0x216   : > { %2427 = vperm.xlu1 %7443, %v8828_v26   ;;  %3463 = vperm.xlu0 %7445, %v8832_v36  }
 0x218   : > { %v8835_v0 = vpop.permute.xlu1 %1659  ;;  %v8837_v59 = vpop.permute.xlu0 %1663 }
 0x219   : > { %13738 = vst [vmem:[#allocation120_spill] sm:$0xff] %v8835_v0  ;;  %13739 = vst [vmem:[#allocation119_spill] sm:$0xff] %v8837_v59 }
 0x21a   : > { %2435 = vperm.xlu1 %7443, %v7518_v23   ;;  %3467 = vperm.xlu0 %7445, %v7518_v23   ;;  %v8858_v23 = vld [vmem:[%s7795_s8 + $0x20] sm:$0xff] }
 0x21c   : > { %v8840_v57 = vpop.permute.xlu1 %1667  ;;  %v8842_v22 = vpop.permute.xlu0 %1671 }
 0x21d   : > { %13740 = vst [vmem:[#allocation124_spill] sm:$0xff] %v8840_v57  ;;  %13741 = vst [vmem:[#allocation123_spill] sm:$0xff] %v8842_v22 }
 0x21e   : > { %2439 = vperm.xlu1 %7443, %v8845_v19   ;;  %3723 = vperm.xlu0 %7445, %v13623_v43   ;;  %v8866_v43 = vld [vmem:[%s7795_s8 + $0x38] sm:$0xff] }
 0x220   : > { %v8849_v24 = vpop.permute.xlu1 %1675  ;;  %v8851_v30 = vpop.permute.xlu0 %1679 }
 0x221   : > { %13742 = vst [vmem:[#allocation128_spill] sm:$0xff] %v8849_v24  ;;  %13743 = vst [vmem:[#allocation127_spill] sm:$0xff] %v8851_v30  ;;  %v8987_v30 = vld [vmem:[%s7795_s8 + $0xe0] sm:$0xff]  ;;  %v8996_v24 = vld [vmem:[%s7795_s8 + $0xf0] sm:$0xff] }
 0x222   : > { %2447 = vperm.xlu1 %7443, %v8854_v32   ;;  %3475 = vperm.xlu0 %7445, %v8858_v23  }
 0x224   : > { %v8861_v28 = vpop.permute.xlu1 %1683  ;;  %v8863_v17 = vpop.permute.xlu0 %1687 }
 0x225   : > { %13744 = vst [vmem:[#allocation131_spill] sm:$0xff] %v8861_v28  ;;  %13745 = vst [vmem:[#allocation181_spill] sm:$0xff] %v8863_v17  ;;  %v8969_v17 = vld [vmem:[%s7795_s8 + $0xc0] sm:$0xff]  ;;  %v8978_v28 = vld [vmem:[%s7795_s8 + $0xd0] sm:$0xff] }
 0x226   : > { %2455 = vperm.xlu1 %7443, %v8866_v43   ;;  %3483 = vperm.xlu0 %7445, %v8870_v18  }
 0x228   : > { %v8873_v15 = vpop.permute.xlu1 %1691  ;;  %v8875_v38 = vpop.permute.xlu0 %1695 }
 0x229   : > { %13746 = vst [vmem:[#allocation182_spill] sm:$0xff] %v8873_v15  ;;  %13747 = vst [vmem:[#allocation183_spill] sm:$0xff] %v8875_v38  ;;  %v7538_v38 = vld [vmem:[%s7795_s8 + $0xb8] sm:$0xff]  ;;  %v8960_v15 = vld [vmem:[%s7795_s8 + $0xb0] sm:$0xff] }
 0x22a   : > { %2463 = vperm.xlu1 %7443, %v8878_v25   ;;  %3491 = vperm.xlu0 %7445, %v8882_v16  }
 0x22c   : > { %v8885_v13 = vpop.permute.xlu1 %1699  ;;  %v8887_v40 = vpop.permute.xlu0 %1703 }
 0x22d   : > { %13748 = vst [vmem:[#allocation184_spill] sm:$0xff] %v8885_v13  ;;  %13749 = vst [vmem:[#allocation185_spill] sm:$0xff] %v8887_v40  ;;  %v8938_v40 = vld [vmem:[%s7795_s8 + $0x98] sm:$0xff] }
 0x22e   : > { %2471 = vperm.xlu1 %7443, %v8890_v14   ;;  %3499 = vperm.xlu0 %7445, %v8894_v27   ;;  %13758 = vst [vmem:[#allocation194_spill] sm:$0xff] %v8938_v40 }
 0x230   : > { %v8897_v11 = vpop.permute.xlu1 %1707  ;;  %v8899_v41 = vpop.permute.xlu0 %1711 }
 0x231   : > { %13750 = vst [vmem:[#allocation186_spill] sm:$0xff] %v8897_v11  ;;  %13751 = vst [vmem:[#allocation187_spill] sm:$0xff] %v8899_v41  ;;  %v8918_v11 = vld [vmem:[%s7795_s8 + $0x70] sm:$0xff] }
 0x232   : > { %2479 = vperm.xlu1 %7443, %v8902_v29   ;;  %3507 = vperm.xlu0 %7445, %v8906_v12  }
 0x234   : > { %v8909_v9 = vpop.permute.xlu1 %1715  ;;  %v8911_v46 = vpop.permute.xlu0 %1719 }
 0x235   : > { %13752 = vst [vmem:[#allocation188_spill] sm:$0xff] %v8909_v9  ;;  %13753 = vst [vmem:[#allocation189_spill] sm:$0xff] %v8911_v46  ;;  %v8930_v9 = vld [vmem:[%s7795_s8 + $0x80] sm:$0xff] }
 0x236   : > { %2487 = vperm.xlu1 %7443, %v8914_v31   ;;  %3515 = vperm.xlu0 %7445, %v8918_v11  }
 0x238   : > { %v8921_v41 = vpop.permute.xlu1 %1723  ;;  %v8923_v10 = vpop.permute.xlu0 %1727 }
 0x239   : > { %13754 = vst [vmem:[#allocation190_spill] sm:$0xff] %v8921_v41  ;;  %13755 = vst [vmem:[#allocation191_spill] sm:$0xff] %v8923_v10  ;;  %v8942_v41 = vld [vmem:[%s7795_s8 + $0x90] sm:$0xff] }
 0x23a   : > { %2495 = vperm.xlu1 %7443, %v8926_v7   ;;  %3523 = vperm.xlu0 %7445, %v8930_v9  }
 0x23c   : > { %v8933_v46 = vpop.permute.xlu1 %1731  ;;  %v8935_v52 = vpop.permute.xlu0 %1735 }
 0x23d   : > { %13756 = vst [vmem:[#allocation192_spill] sm:$0xff] %v8933_v46  ;;  %13757 = vst [vmem:[#allocation193_spill] sm:$0xff] %v8935_v52  ;;  %v8951_v46 = vld [vmem:[%s7795_s8 + $0xa0] sm:$0xff] }
 0x23e   : > { %2503 = vperm.xlu1 %7443, %v8938_v40   ;;  %3531 = vperm.xlu0 %7445, %v8942_v41   ;;  %v13866_v40 = vld [vmem:[#allocation25_spill] sm:$0xff] }
 0x240   : > { %v8945_v10 = vpop.permute.xlu1 %1739  ;;  %v8947_v13 = vpop.permute.xlu0 %1743 }
 0x241   : > { %13759 = vst [vmem:[#allocation195_spill] sm:$0xff] %v8945_v10  ;;  %13760 = vst [vmem:[#allocation196_spill] sm:$0xff] %v8947_v13  ;;  %v7540_v10 = vld [vmem:[%s7795_s8 + $0xc8] sm:$0xff] }
 0x242   : > { %2511 = vperm.xlu1 %7443, %v7536_v33   ;;  %3539 = vperm.xlu0 %7445, %v8951_v46  }
 0x244   : > { %v8954_v52 = vpop.permute.xlu1 %1747  ;;  %v8956_v8 = vpop.permute.xlu0 %1751 }
 0x245   : > { %13761 = vst [vmem:[#allocation197_spill] sm:$0xff] %v8954_v52  ;;  %13762 = vst [vmem:[#allocation198_spill] sm:$0xff] %v8956_v8  ;;  %v7542_v52 = vld [vmem:[%s7795_s8 + $0xd8] sm:$0xff] }
 0x246   : > { %2519 = vperm.xlu1 %7443, %v7538_v38   ;;  %3547 = vperm.xlu0 %7445, %v8960_v15  }
 0x248   : > { %v8963_v13 = vpop.permute.xlu1 %1755  ;;  %v8965_v33 = vpop.permute.xlu0 %1759 }
 0x249   : > { %13763 = vst [vmem:[#allocation199_spill] sm:$0xff] %v8963_v13  ;;  %13764 = vst [vmem:[#allocation200_spill] sm:$0xff] %v8965_v33  ;;  %v7544_v13 = vld [vmem:[%s7795_s8 + $0xe8] sm:$0xff] }
 0x24a   : > { %2527 = vperm.xlu1 %7443, %v7540_v10   ;;  %3555 = vperm.xlu0 %7445, %v8969_v17  }
 0x24c   : > { %v8972_v8 = vpop.permute.xlu1 %1763  ;;  %v8974_v38 = vpop.permute.xlu0 %1767 }
 0x24d   : > { %13765 = vst [vmem:[#allocation201_spill] sm:$0xff] %v8972_v8  ;;  %13766 = vst [vmem:[#allocation202_spill] sm:$0xff] %v8974_v38 }
 0x24e   : > { %2535 = vperm.xlu1 %7443, %v7542_v52   ;;  %3563 = vperm.xlu0 %7445, %v8978_v28   ;;  %v7546_v52 = vld [vmem:[%s7795_s8 + $0xf8] sm:$0xff] }
 0x250   : > { %v8981_v33 = vpop.permute.xlu1 %1771  ;;  %v8983_v10 = vpop.permute.xlu0 %1775 }
 0x251   : > { %13767 = vst [vmem:[#allocation203_spill] sm:$0xff] %v8981_v33  ;;  %13768 = vst [vmem:[#allocation204_spill] sm:$0xff] %v8983_v10 }
 0x252   : > { %2543 = vperm.xlu1 %7443, %v7544_v13   ;;  %3571 = vperm.xlu0 %7445, %v8987_v30   ;;  %v7548_v13 = vld [vmem:[%s7795_s8 + $0x108] sm:$0xff] }
 0x254   : > { %v8990_v8 = vpop.permute.xlu1 %1779  ;;  %v8992_v38 = vpop.permute.xlu0 %1783 }
 0x255   : > { %13769 = vst [vmem:[#allocation205_spill] sm:$0xff] %v8990_v8  ;;  %13770 = vst [vmem:[#allocation206_spill] sm:$0xff] %v8992_v38  ;;  %v7549_v38 = vld [vmem:[%s7795_s8 + $0x118] sm:$0xff] }
 0x256   : > { %2551 = vperm.xlu1 %7443, %v7546_v52   ;;  %3579 = vperm.xlu0 %7445, %v8996_v24   ;;  %v13775_v52 = vmov 2  }
 0x258   : > { %v8999_v33 = vpop.permute.xlu1 %1787  ;;  %v9001_v10 = vpop.permute.xlu0 %1791 }
 0x259   : > { %13771 = vst [vmem:[#allocation207_spill] sm:$0xff] %v8999_v33  ;;  %13772 = vst [vmem:[#allocation208_spill] sm:$0xff] %v9001_v10  ;;  %v7550_v10 = vld [vmem:[%s7795_s8 + $0x128] sm:$0xff] }
 0x25a   : > { %2559 = vperm.xlu1 %7443, %v7548_v13   ;;  %3839 = vperm.xlu0 %7445, %v13674_v21  }
 0x25c   : > { %v9005_v22 = vpop.permute.xlu1 %1795  ;;  %v9007_v8 = vpop.permute.xlu0 %1799 }
 0x25d   : > { %13773 = vst [vmem:[#allocation209_spill] sm:$0xff] %v9005_v22  ;;  %13774 = vst [vmem:[#allocation210_spill] sm:$0xff] %v9007_v8  ;;  %v7551_v8 = vld [vmem:[%s7795_s8 + $0x138] sm:$0xff]  ;;  %v7574_v22 = vld [vmem:[%s7795_s8 + $0x160] sm:$0xff] }
 0x25e   : > { %2567 = vperm.xlu1 %7443, %v7549_v38   ;;  %7470 = vset.pattern.permute.xlu0 %v13775_v52 }
 0x25f   : > { %2431 = vperm.xlu0 %7470, %v8832_v36  }
 0x260   : > { %v9012_v57 = vpop.permute.xlu1 %1803  ;;  %v9014_v33 = vpop.permute.xlu0 %1807 }
 0x261   : > { %13776 = vst [vmem:[#allocation211_spill] sm:$0xff] %v9012_v57  ;;  %13777 = vst [vmem:[#allocation212_spill] sm:$0xff] %v9014_v33  ;;  %v7552_v33 = vld [vmem:[%s7795_s8 + $0x148] sm:$0xff] }
 0x262   : > { %2575 = vperm.xlu1 %7443, %v7550_v10  }
 0x263   : > { %2443 = vperm.xlu0 %7470, %v8858_v23  }
 0x264   : > { %v9018_v21 = vpop.permute.xlu1 %1811  ;;  %v9020_v13 = vpop.permute.xlu0 %1815 }
 0x265   : > { %13778 = vst [vmem:[#allocation213_spill] sm:$0xff] %v9018_v21  ;;  %13779 = vst [vmem:[#allocation214_spill] sm:$0xff] %v9020_v13  ;;  %v7553_v13 = vld [vmem:[%s7795_s8 + $0x158] sm:$0xff] }
 0x266   : > { %2583 = vperm.xlu1 %7443, %v7551_v8  }
 0x267   : > { %2451 = vperm.xlu0 %7470, %v8870_v18  }
 0x268   : > { %v9024_v38 = vpop.permute.xlu1 %1819  ;;  %v9026_v36 = vpop.permute.xlu0 %1823 }
 0x269   : > { %13780 = vst [vmem:[#allocation215_spill] sm:$0xff] %v9024_v38  ;;  %13781 = vst [vmem:[#allocation216_spill] sm:$0xff] %v9026_v36  ;;  %v7554_v36 = vld [vmem:[%s7795_s8 + $0x168] sm:$0xff] }
 0x26a   : > { %2591 = vperm.xlu1 %7443, %v7552_v33  }
 0x26b   : > { %2459 = vperm.xlu0 %7470, %v8882_v16  }
 0x26c   : > { %v9030_v10 = vpop.permute.xlu1 %1827  ;;  %v9032_v23 = vpop.permute.xlu0 %1831 }
 0x26d   : > { %13782 = vst [vmem:[#allocation217_spill] sm:$0xff] %v9030_v10  ;;  %13783 = vst [vmem:[#allocation218_spill] sm:$0xff] %v9032_v23  ;;  %v7555_v23 = vld [vmem:[%s7795_s8 + $0x178] sm:$0xff]  ;;  %v9126_v10 = vld [vmem:[%s7795_s8 + $0x200] sm:$0xff] }
 0x26e   : > { %2599 = vperm.xlu1 %7443, %v7553_v13  }
 0x26f   : > { %2467 = vperm.xlu0 %7470, %v8894_v27  }
 0x270   : > { %v9036_v8 = vpop.permute.xlu1 %1835  ;;  %v9038_v18 = vpop.permute.xlu0 %1839 }
 0x271   : > { %13784 = vst [vmem:[#allocation219_spill] sm:$0xff] %v9036_v8  ;;  %13785 = vst [vmem:[#allocation220_spill] sm:$0xff] %v9038_v18  ;;  %v7556_v18 = vld [vmem:[%s7795_s8 + $0x188] sm:$0xff] }
 0x272   : > { %2607 = vperm.xlu1 %7443, %v7554_v36  }
 0x273   : > { %2475 = vperm.xlu0 %7470, %v8906_v12  }
 0x274   : > { %v9042_v33 = vpop.permute.xlu1 %1843  ;;  %v9044_v16 = vpop.permute.xlu0 %1847 }
 0x275   : > { %13786 = vst [vmem:[#allocation221_spill] sm:$0xff] %v9042_v33  ;;  %13787 = vst [vmem:[#allocation222_spill] sm:$0xff] %v9044_v16  ;;  %v7557_v16 = vld [vmem:[%s7795_s8 + $0x198] sm:$0xff]  ;;  %v7570_v33 = vld [vmem:[%s7795_s8 + $0x130] sm:$0xff] }
 0x276   : > { %2615 = vperm.xlu1 %7443, %v7555_v23  }
 0x277   : > { %2483 = vperm.xlu0 %7470, %v8918_v11  }
 0x278   : > { %v9048_v13 = vpop.permute.xlu1 %1851  ;;  %v9050_v27 = vpop.permute.xlu0 %1855 }
 0x279   : > { %13788 = vst [vmem:[#allocation223_spill] sm:$0xff] %v9048_v13  ;;  %13789 = vst [vmem:[#allocation224_spill] sm:$0xff] %v9050_v27  ;;  %v7558_v27 = vld [vmem:[%s7795_s8 + $0x1a8] sm:$0xff] }
 0x27a   : > { %2623 = vperm.xlu1 %7443, %v7556_v18  }
 0x27b   : > { %2491 = vperm.xlu0 %7470, %v8930_v9  }
 0x27c   : > { %v9054_v36 = vpop.permute.xlu1 %1859  ;;  %v9056_v12 = vpop.permute.xlu0 %1863 }
 0x27d   : > { %13790 = vst [vmem:[#allocation225_spill] sm:$0xff] %v9054_v36  ;;  %13791 = vst [vmem:[#allocation226_spill] sm:$0xff] %v9056_v12  ;;  %v7559_v12 = vld [vmem:[%s7795_s8 + $0x1b8] sm:$0xff]  ;;  %v13808_v36 = vmov 3  }
 0x27e   : > { %2631 = vperm.xlu1 %7443, %v7557_v16  }
 0x27f   : > { %2499 = vperm.xlu0 %7470, %v8942_v41  }
 0x280   : > { %v9060_v23 = vpop.permute.xlu1 %1867  ;;  %v9062_v11 = vpop.permute.xlu0 %1871 }
 0x281   : > { %13792 = vst [vmem:[#allocation227_spill] sm:$0xff] %v9060_v23  ;;  %13793 = vst [vmem:[#allocation228_spill] sm:$0xff] %v9062_v11  ;;  %v7560_v11 = vld [vmem:[%s7795_s8 + $0x1c8] sm:$0xff]  ;;  %v7569_v23 = vld [vmem:[%s7795_s8 + $0x120] sm:$0xff] }
 0x282   : > { %2639 = vperm.xlu1 %7443, %v7558_v27  }
 0x283   : > { %2507 = vperm.xlu0 %7470, %v8951_v46  }
 0x284   : > { %v9066_v18 = vpop.permute.xlu1 %1875  ;;  %v9068_v9 = vpop.permute.xlu0 %1879 }
 0x285   : > { %13794 = vst [vmem:[#allocation229_spill] sm:$0xff] %v9066_v18  ;;  %13795 = vst [vmem:[#allocation230_spill] sm:$0xff] %v9068_v9  ;;  %v7561_v9 = vld [vmem:[%s7795_s8 + $0x1d8] sm:$0xff] }
 0x286   : > { %2647 = vperm.xlu1 %7443, %v7559_v12  }
 0x287   : > { %2515 = vperm.xlu0 %7470, %v8960_v15  }
 0x288   : > { %v9072_v16 = vpop.permute.xlu1 %1883  ;;  %v9074_v41 = vpop.permute.xlu0 %1887 }
 0x289   : > { %13796 = vst [vmem:[#allocation231_spill] sm:$0xff] %v9072_v16  ;;  %13797 = vst [vmem:[#allocation232_spill] sm:$0xff] %v9074_v41  ;;  %v7562_v41 = vld [vmem:[%s7795_s8 + $0x1e8] sm:$0xff] }
 0x28a   : > { %2655 = vperm.xlu1 %7443, %v7560_v11   ;;  %v7563_v11 = vld [vmem:[%s7795_s8 + $0x1f8] sm:$0xff]  ;;  %v7568_v16 = vld [vmem:[%s7795_s8 + $0x228] sm:$0xff] }
 0x28b   : > { %2523 = vperm.xlu0 %7470, %v8969_v17  }
 0x28c   : > { %v9078_v27 = vpop.permute.xlu1 %1891  ;;  %v9080_v46 = vpop.permute.xlu0 %1895 }
 0x28d   : > { %13798 = vst [vmem:[#allocation233_spill] sm:$0xff] %v9078_v27  ;;  %13799 = vst [vmem:[#allocation234_spill] sm:$0xff] %v9080_v46  ;;  %v7567_v27 = vld [vmem:[%s7795_s8 + $0x110] sm:$0xff] }
 0x28e   : > { %2663 = vperm.xlu1 %7443, %v7561_v9   ;;  %v7564_v9 = vld [vmem:[%s7795_s8 + $0x208] sm:$0xff] }
 0x28f   : > { %2531 = vperm.xlu0 %7470, %v8978_v28  }
 0x290   : > { %v9084_v15 = vpop.permute.xlu1 %1899  ;;  %v9086_v12 = vpop.permute.xlu0 %1903 }
 0x291   : > { %13800 = vst [vmem:[#allocation235_spill] sm:$0xff] %v9084_v15  ;;  %13801 = vst [vmem:[#allocation236_spill] sm:$0xff] %v9086_v12  ;;  %v7566_v15 = vld [vmem:[%s7795_s8 + $0x218] sm:$0xff] }
 0x292   : > { %2671 = vperm.xlu1 %7443, %v7562_v41   ;;  %v7565_v41 = vld [vmem:[%s7795_s8 + $0x100] sm:$0xff] }
 0x293   : > { %2539 = vperm.xlu0 %7470, %v8987_v30  }
 0x295   : > { %v9090_v17 = vpop.permute.xlu1 %2427  ;;  %v9093_v46 = vpop.permute.xlu0 %3463 }
 0x296   : > { %2679 = vperm.xlu1 %7443, %v7563_v11  }
 0x297   : > { %2547 = vperm.xlu0 %7470, %v8996_v24  }
 0x299   : > { %v9096_v28 = vpop.permute.xlu1 %2435  ;;  %v9099_v12 = vpop.permute.xlu0 %3467 }
 0x29a   : > { %2687 = vperm.xlu1 %7443, %v7564_v9   ;;  %13802 = vst [vmem:[#allocation237_spill] sm:$0xff] %v9099_v12 }
 0x29b   : > { %2555 = vperm.xlu0 %7470, %v7565_v41  }
 0x29d   : > { %v9102_v30 = vpop.permute.xlu1 %2439  ;;  %v9105_v11 = vpop.permute.xlu0 %3723 }
 0x29e   : > { %13803 = vst [vmem:[#allocation238_spill] sm:$0xff] %v9102_v30  ;;  %2695 = vperm.xlu1 %7443, %v7566_v15   ;;  %13804 = vst [vmem:[#allocation239_spill] sm:$0xff] %v9105_v11  ;;  %v13877_v30 = vld [vmem:[#allocation33_spill] sm:$0xff] }
 0x29f   : > { %2563 = vperm.xlu0 %7470, %v7567_v27  }
 0x2a1   : > { %v9108_v24 = vpop.permute.xlu1 %2447  ;;  %v9111_v18 = vpop.permute.xlu0 %3475 }
 0x2a2   : > { %13805 = vst [vmem:[#allocation240_spill] sm:$0xff] %v9108_v24  ;;  %2703 = vperm.xlu1 %7443, %v7568_v16   ;;  %13806 = vst [vmem:[#allocation241_spill] sm:$0xff] %v9111_v18 }
 0x2a3   : > { %2571 = vperm.xlu0 %7470, %v7569_v23   ;;  %v7572_v23 = vld [vmem:[%s7795_s8 + $0x140] sm:$0xff] }
 0x2a5   : > { %v9114_v41 = vpop.permute.xlu1 %2455  ;;  %v9117_v13 = vpop.permute.xlu0 %3483 }
 0x2a6   : > { %13807 = vst [vmem:[#allocation242_spill] sm:$0xff] %v9114_v41  ;;  %7444 = vset.pattern.permute.xlu1 %v13808_v36  ;;  %13809 = vst [vmem:[#allocation243_spill] sm:$0xff] %v9117_v13  ;;  %v9283_v13 = vld [vmem:[%s7795_s8 + $0x288] sm:$0xff] }
 0x2a7   : > { %3459 = vperm.xlu1 %7444, %v8828_v26   ;;  %2579 = vperm.xlu0 %7470, %v7570_v33   ;;  %v7573_v26 = vld [vmem:[%s7795_s8 + $0x150] sm:$0xff]  ;;  %13857 = vst [vmem:[#allocation291_spill] sm:$0xff] %v9283_v13 }
 0x2a9   : > { %v9121_v27 = vpop.permute.xlu1 %2463  ;;  %v9123_v8 = vpop.permute.xlu0 %3491 }
 0x2aa   : > { %13810 = vst [vmem:[#allocation244_spill] sm:$0xff] %v9121_v27  ;;  %13811 = vst [vmem:[#allocation245_spill] sm:$0xff] %v9123_v8  ;;  %v9262_v8 = vld [vmem:[%s7795_s8 + $0x278] sm:$0xff] }
 0x2ab   : > { %3715 = vperm.xlu1 %7444, %v9126_v10   ;;  %2587 = vperm.xlu0 %7470, %v7572_v23  }
 0x2ad   : > { %v9130_v38 = vpop.permute.xlu1 %2471  ;;  %v9132_v21 = vpop.permute.xlu0 %3499 }
 0x2ae   : > { %13812 = vst [vmem:[#allocation246_spill] sm:$0xff] %v9130_v38  ;;  %13813 = vst [vmem:[#allocation247_spill] sm:$0xff] %v9132_v21  ;;  %v7575_v21 = vld [vmem:[%s7795_s8 + $0x170] sm:$0xff] }
 0x2af   : > { %3719 = vperm.xlu1 %7444, %v7564_v9   ;;  %2595 = vperm.xlu0 %7470, %v7573_v26  }
 0x2b1   : > { %v9135_v33 = vpop.permute.xlu1 %2479  ;;  %v9137_v57 = vpop.permute.xlu0 %3507 }
 0x2b2   : > { %13814 = vst [vmem:[#allocation248_spill] sm:$0xff] %v9135_v33  ;;  %13815 = vst [vmem:[#allocation249_spill] sm:$0xff] %v9137_v57  ;;  %v7576_v57 = vld [vmem:[%s7795_s8 + $0x180] sm:$0xff] }
 0x2b3   : > { %3471 = vperm.xlu1 %7444, %v8845_v19   ;;  %2603 = vperm.xlu0 %7470, %v7574_v22   ;;  %v488_v33 = vld [vmem:[%s334_s12] sm:$0xff] }
 0x2b5   : > { %v9141_v11 = vpop.permute.xlu1 %2487  ;;  %v9143_v23 = vpop.permute.xlu0 %3515 }
 0x2b6   : > { %13816 = vst [vmem:[#allocation250_spill] sm:$0xff] %v9141_v11  ;;  %13817 = vst [vmem:[#allocation251_spill] sm:$0xff] %v9143_v23  ;;  %v7577_v11 = vld [vmem:[%s7795_s8 + $0x220] sm:$0xff] }
 0x2b7   : > { %3727 = vperm.xlu1 %7444, %v7566_v15   ;;  %2611 = vperm.xlu0 %7470, %v7575_v21   ;;  %v7578_v15 = vld [vmem:[%s7795_s8 + $0x190] sm:$0xff] }
 0x2b9   : > { %v9146_v9 = vpop.permute.xlu1 %2495  ;;  %v9148_v26 = vpop.permute.xlu0 %3523 }
 0x2ba   : > { %13818 = vst [vmem:[#allocation252_spill] sm:$0xff] %v9146_v9  ;;  %13819 = vst [vmem:[#allocation253_spill] sm:$0xff] %v9148_v26  ;;  %v7579_v26 = vld [vmem:[%s7795_s8 + $0x1a0] sm:$0xff] }
 0x2bb   : > { %3479 = vperm.xlu1 %7444, %v8854_v32   ;;  %2619 = vperm.xlu0 %7470, %v7576_v57  }
 0x2bd   : > { %v9152_v19 = vpop.permute.xlu1 %2503  ;;  %v9154_v22 = vpop.permute.xlu0 %3531 }
 0x2be   : > { %13820 = vst [vmem:[#allocation254_spill] sm:$0xff] %v9152_v19  ;;  %13821 = vst [vmem:[#allocation255_spill] sm:$0xff] %v9154_v22  ;;  %v7580_v22 = vld [vmem:[%s7795_s8 + $0x1b0] sm:$0xff] }
 0x2bf   : > { %3731 = vperm.xlu1 %7444, %v7577_v11   ;;  %2627 = vperm.xlu0 %7470, %v7578_v15  }
 0x2c1   : > { %v9158_v21 = vpop.permute.xlu1 %2511  ;;  %v9160_v9 = vpop.permute.xlu0 %3539 }
 0x2c2   : > { %13822 = vst [vmem:[#allocation256_spill] sm:$0xff] %v9158_v21  ;;  %13823 = vst [vmem:[#allocation257_spill] sm:$0xff] %v9160_v9  ;;  %v7585_v21 = vld [vmem:[%s7795_s8 + $0x1e0] sm:$0xff] }
 0x2c3   : > { %3735 = vperm.xlu1 %7444, %v7568_v16   ;;  %2635 = vperm.xlu0 %7470, %v7579_v26   ;;  %v7581_v16 = vld [vmem:[%s7795_s8 + $0x1c0] sm:$0xff] }
 0x2c4   : > { %v7582_v26 = vld [vmem:[%s7795_s8 + $0x240] sm:$0xff] }
 0x2c5   : > { %v9163_v32 = vpop.permute.xlu1 %2519  ;;  %v9165_v57 = vpop.permute.xlu0 %3547 }
 0x2c6   : > { %13824 = vst [vmem:[#allocation258_spill] sm:$0xff] %v9163_v32  ;;  %13825 = vst [vmem:[#allocation259_spill] sm:$0xff] %v9165_v57 }
 0x2c7   : > { %3487 = vperm.xlu1 %7444, %v8866_v43   ;;  %2643 = vperm.xlu0 %7470, %v7580_v22   ;;  %v7583_v43 = vld [vmem:[%s7795_s8 + $0x1d0] sm:$0xff] }
 0x2c8   : > { %v7584_v22 = vld [vmem:[%s7795_s8 + $0x230] sm:$0xff] }
 0x2c9   : > { %v9169_v19 = vpop.permute.xlu1 %2527  ;;  %v9171_v15 = vpop.permute.xlu0 %3555 }
 0x2ca   : > { %13826 = vst [vmem:[#allocation260_spill] sm:$0xff] %v9169_v19  ;;  %13827 = vst [vmem:[#allocation261_spill] sm:$0xff] %v9171_v15 }
 0x2cb   : > { %7446 = vset.pattern.permute.xlu1 %v13775_v52  ;;  %2651 = vperm.xlu0 %7470, %v7581_v16   ;;  %v7586_v16 = vld [vmem:[%s7795_s8 + $0x238] sm:$0xff] }
 0x2cc   : > { %2715 = vperm.xlu1 %7446, %v7582_v26  }
 0x2cd   : > { %v9176_v32 = vpop.permute.xlu1 %2535  ;;  %v9178_v57 = vpop.permute.xlu0 %3563 }
 0x2ce   : > { %13828 = vst [vmem:[#allocation262_spill] sm:$0xff] %v9176_v32  ;;  %13829 = vst [vmem:[#allocation263_spill] sm:$0xff] %v9178_v57  ;;  %v7587_v57 = vld [vmem:[%s7795_s8 + $0x1f0] sm:$0xff] }
 0x2cf   : > { %2659 = vperm.xlu0 %7470, %v7583_v43  }
 0x2d0   : > { %7447 = vset.pattern.permute.xlu1 %v13808_v36 }
 0x2d1   : > { %3739 = vperm.xlu1 %7447, %v7584_v22   ;;  %v9183_v19 = vpop.permute.xlu1 %2543  ;;  %v9185_v15 = vpop.permute.xlu0 %3571 }
 0x2d2   : > { %13830 = vst [vmem:[#allocation264_spill] sm:$0xff] %v9183_v19  ;;  %13831 = vst [vmem:[#allocation265_spill] sm:$0xff] %v9185_v15  ;;  %v7588_v15 = vld [vmem:[%s7795_s8 + $0x250] sm:$0xff] }
 0x2d3   : > { %2667 = vperm.xlu0 %7470, %v7585_v21  }
 0x2d5   : > { %3743 = vperm.xlu1 %7447, %v7586_v16   ;;  %v9189_v9 = vpop.permute.xlu1 %2551  ;;  %v9191_v32 = vpop.permute.xlu0 %3579 }
 0x2d6   : > { %13832 = vst [vmem:[#allocation266_spill] sm:$0xff] %v9189_v9  ;;  %13833 = vst [vmem:[#allocation267_spill] sm:$0xff] %v9191_v32  ;;  %v7589_v32 = vld [vmem:[%s7795_s8 + $0x210] sm:$0xff] }
 0x2d7   : > { %2675 = vperm.xlu0 %7470, %v7587_v57  }
 0x2d9   : > { %3495 = vperm.xlu1 %7447, %v8878_v25   ;;  %v9195_v43 = vpop.permute.xlu1 %2559  ;;  %v9197_v23 = vpop.permute.xlu0 %3839 }
 0x2da   : > { %13834 = vst [vmem:[#allocation268_spill] sm:$0xff] %v9195_v43  ;;  %13835 = vst [vmem:[#allocation269_spill] sm:$0xff] %v9197_v23 }
 0x2db   : > { %2683 = vperm.xlu0 %7470, %v9126_v10  }
 0x2dd   : > { %7448 = vset.pattern.permute.xlu1 %v13775_v52  ;;  %v9201_v21 = vpop.permute.xlu1 %2567 }
 0x2de   : > { %13836 = vst [vmem:[#allocation270_spill] sm:$0xff] %v9201_v21  ;;  %2723 = vperm.xlu1 %7448, %v7588_v15   ;;  %v9204_v9 = vpop.permute.xlu0 %2431  ;;  %v7590_v21 = vld [vmem:[%s7795_s8 + $0x248] sm:$0xff] }
 0x2df   : > { %2691 = vperm.xlu0 %7470, %v7589_v32  }
 0x2e1   : > { %v9207_v57 = vpop.permute.xlu1 %2575 }
 0x2e2   : > { %13837 = vst [vmem:[#allocation271_spill] sm:$0xff] %v9207_v57  ;;  %7449 = vset.pattern.permute.xlu1 %v13808_v36  ;;  %v9210_v25 = vpop.permute.xlu0 %2443 }
 0x2e3   : > { %13838 = vst [vmem:[#allocation272_spill] sm:$0xff] %v9210_v25  ;;  %3747 = vperm.xlu1 %7449, %v7582_v26   ;;  %2699 = vperm.xlu0 %7470, %v7577_v11   ;;  %v13332_v26 = vlaneseq }
 0x2e5   : > { %v9212_v10 = vpop.permute.xlu1 %2583 }
 0x2e6   : > { %13839 = vst [vmem:[#allocation273_spill] sm:$0xff] %v9212_v10  ;;  %v9214_v43 = vpop.permute.xlu0 %2451  ;;  %v9228_v10 = vld [vmem:[%s7795_s8 + $0x260] sm:$0xff] }
 0x2e7   : > { %13840 = vst [vmem:[#allocation274_spill] sm:$0xff] %v9214_v43  ;;  %3751 = vperm.xlu1 %7449, %v7590_v21   ;;  %2707 = vperm.xlu0 %7470, %v7584_v22  }
 0x2e9   : > { %v9217_v23 = vpop.permute.xlu1 %2591 }
 0x2ea   : > { %13841 = vst [vmem:[#allocation275_spill] sm:$0xff] %v9217_v23  ;;  %v9219_v32 = vpop.permute.xlu0 %2459 }
 0x2eb   : > { %13842 = vst [vmem:[#allocation276_spill] sm:$0xff] %v9219_v32  ;;  %3503 = vperm.xlu1 %7449, %v8890_v14   ;;  %2711 = vperm.xlu0 %7470, %v7586_v16   ;;  %v7592_v14 = vld [vmem:[%s7795_s8 + $0x258] sm:$0xff]  ;;  %v9238_v16 = vshrl.u32 %v13332_v26, 7 }
 0x2ed   : > { %v9222_v57 = vpop.permute.xlu1 %2599  ;;  %13847 = vst [vmem:[#allocation281_spill] sm:$0xff] %v9238_v16  ;;  %v1132_v26 = vsub.s32 0, %v9238_v16  ;;  %v2940_v38 = vsub.s32 2, %v9238_v16 }
 0x2ee   : > { %13843 = vst [vmem:[#allocation277_spill] sm:$0xff] %v9222_v57  ;;  %v9224_v11 = vpop.permute.xlu0 %2467 }
 0x2ef   : > { %13844 = vst [vmem:[#allocation278_spill] sm:$0xff] %v9224_v11  ;;  %7450 = vset.pattern.permute.xlu1 %v13775_v52  ;;  %2719 = vperm.xlu0 %7470, %v7590_v21   ;;  %v9278_v32 = vrot.slane %v488_v33, %v2940_v38 }
 0x2f0   : > { %2731 = vperm.xlu1 %7450, %v9228_v10  }
 0x2f1   : > { %v9231_v22 = vpop.permute.xlu1 %2607 }
 0x2f2   : > { %13845 = vst [vmem:[#allocation279_spill] sm:$0xff] %v9231_v22  ;;  %v9233_v23 = vpop.permute.xlu0 %2475  ;;  %v9251_v22 = vld [vmem:[%s7795_s8 + $0x268] sm:$0xff] }
 0x2f3   : > { %13846 = vst [vmem:[#allocation280_spill] sm:$0xff] %v9233_v23  ;;  %2727 = vperm.xlu0 %7470, %v7592_v14   ;;  %v489_v23 = vld [vmem:[%s334_s12 + $0x8] sm:$0xff] }
 0x2f4   : > { %7451 = vset.pattern.permute.xlu1 %v13808_v36  ;;  %v9267_v27 = vrot.slane %v489_v23, %v1132_v26 }
 0x2f5   : > { %v9241_v57 = vpop.permute.xlu1 %2615  ;;  %3755 = vperm.xlu1 %7451, %v7588_v15  }
 0x2f6   : > { %13848 = vst [vmem:[#allocation282_spill] sm:$0xff] %v9241_v57  ;;  %v9248_v21 = vpop.permute.xlu0 %2483  ;;  %v1908_v57 = vsub.s32 1, %v9238_v16  ;;  %13853 = vst [vmem:[#allocation287_spill] sm:$0xff] %v9267_v27  ;;  %v9280_v16 = vrot.slane %v489_v23, %v2940_v38 }
 0x2f7   : > { %13849 = vst [vmem:[#allocation283_spill] sm:$0xff] %v9248_v21  ;;  %2735 = vperm.xlu0 %7470, %v9251_v22   ;;  %v9265_v21 = vrot.slane %v488_v33, %v1132_v26  ;;  %v13858_v26 = vld [vmem:[#allocation13_spill] sm:$0xff] }
 0x2f9   : > { %v9255_v19 = vpop.permute.xlu1 %2623  ;;  %3759 = vperm.xlu1 %7451, %v7592_v14   ;;  %13852 = vst [vmem:[#allocation286_spill] sm:$0xff] %v9265_v21  ;;  %v9274_v14 = vrot.slane %v488_v33, %v1908_v57  ;;  %v9345_v24 = vmul.f32 %v9265_v21, %v13866_v40 }
 0x2fa   : > { %13850 = vst [vmem:[#allocation284_spill] sm:$0xff] %v9255_v19  ;;  %v9257_v15 = vpop.permute.xlu0 %2491 }
 0x2fb   : > { %13851 = vst [vmem:[#allocation285_spill] sm:$0xff] %v9257_v15  ;;  %2743 = vperm.xlu0 %7470, %v9262_v8   ;;  %v9276_v15 = vrot.slane %v489_v23, %v1908_v57  ;;  %v13861_v23 = vld [vmem:[#allocation17_spill] sm:$0xff] }
 0x2fc   : > { %v9306_v41 = vmul.f32 %v9265_v21, %v13861_v23  ;;  %v9310_v59 = vmul.f32 %v9267_v27, %v13861_v23  ;;  %v13864_v23 = vld [vmem:[#allocation22_spill] sm:$0xff] }
 0x2fd   : > { %v9269_v11 = vpop.permute.xlu1 %2631  ;;  %3511 = vperm.xlu1 %7451, %v8902_v29   ;;  %13856 = vst [vmem:[#allocation290_spill] sm:$0xff] %v9276_v15  ;;  %v9292_v29 = vmul.f32 %v9267_v27, %v13858_v26  ;;  %v9331_v20 = vmul.f32 %v9265_v21, %v13864_v23  ;;  %v9335_v18 = vmul.f32 %v9267_v27, %v13864_v23 }
 0x2fe   : > { %13854 = vst [vmem:[#allocation288_spill] sm:$0xff] %v9269_v11  ;;  %v9272_v19 = vpop.permute.xlu0 %2499  ;;  %v9288_v11 = vmul.f32 %v9265_v21, %v13858_v26  ;;  %v13862_v26 = vld [vmem:[#allocation18_spill] sm:$0xff]  ;;  %v9357_v23 = vmul.f32 %v9267_v27, %v13868_v35 }
 0x2ff   : > { %13855 = vst [vmem:[#allocation289_spill] sm:$0xff] %v9272_v19  ;;  %2751 = vperm.xlu0 %7470, %v9283_v13   ;;  %v13859_v19 = vld [vmem:[#allocation14_spill] sm:$0xff]  ;;  %v9314_v0 = vmul.f32 %v9265_v21, %v13862_v26  ;;  %v9318_v34 = vmul.f32 %v9267_v27, %v13862_v26  ;;  %v9338_v26 = vld [vmem:[%s7795_s8 + $0x270] sm:$0xff]  ;;  %v9353_v13 = vmul.f32 %v9265_v21, %v13868_v35  ;;  %13869 = vst [vmem:[#allocation18_spill] sm:$0xff] %v9360_v48 }
 0x300   : > { %v9296_v57 = vmul.f32 %v9265_v21, %v13859_v19  ;;  %v9300_v38 = vmul.f32 %v9267_v27, %v13859_v19  ;;  %v13863_v19 = vld [vmem:[#allocation21_spill] sm:$0xff] }
 0x301   : > { %v9302_v33 = vpop.permute.xlu1 %2639  ;;  %7452 = vset.pattern.permute.xlu1 %v13775_v52  ;;  %v9327_v43 = vmul.f32 %v9267_v27, %v13863_v19 }
 0x302   : > { %13860 = vst [vmem:[#allocation13_spill] sm:$0xff] %v9302_v33  ;;  %v9323_v33 = vmul.f32 %v9265_v21, %v13863_v19  ;;  %2739 = vperm.xlu1 %7452, %v9338_v26   ;;  %v9341_v50 = vpop.permute.xlu0 %2507  ;;  %v9349_v19 = vmul.f32 %v9267_v27, %v13866_v40 }
 0x303   : > { %13865 = vst [vmem:[#allocation14_spill] sm:$0xff] %v9341_v50  ;;  %2759 = vperm.xlu0 %7470, %v9360_v48   ;;  %v13870_v50 = vld [vmem:[#allocation29_spill] sm:$0xff]  ;;  %v9383_v48 = vmul.f32 %v9265_v21, %v13877_v30 }
 0x304   : > { %13867 = vst [vmem:[#allocation17_spill] sm:$0xff] %v9349_v19  ;;  %v9365_v25 = vmul.f32 %v9265_v21, %v13870_v50  ;;  %v9369_v40 = vmul.f32 %v9267_v27, %v13870_v50  ;;  %v13873_v19 = vld [vmem:[#allocation30_spill] sm:$0xff] }
 0x305   : > { %v9373_v12 = vmul.f32 %v9265_v21, %v13873_v19  ;;  %v9377_v35 = vmul.f32 %v9267_v27, %v13873_v19  ;;  %v9379_v37 = vpop.permute.xlu1 %2647  ;;  %13878 = vst [vmem:[#allocation30_spill] sm:$0xff] %v9383_v48  ;;  %v13880_v50 = vld [vmem:[#allocation34_spill] sm:$0xff]  ;;  %v13883_v19 = vld [vmem:[#allocation37_spill] sm:$0xff] }
 0x306   : > { %13871 = vst [vmem:[#allocation21_spill] sm:$0xff] %v9365_v25  ;;  %13872 = vst [vmem:[#allocation22_spill] sm:$0xff] %v9369_v40  ;;  %v9387_v25 = vmul.f32 %v9267_v27, %v13877_v30  ;;  %v9391_v40 = vmul.f32 %v9265_v21, %v13880_v50  ;;  %v9403_v48 = vmul.f32 %v9267_v27, %v13883_v19  ;;  %7453 = vset.pattern.permute.xlu1 %v13808_v36 }
 0x307   : > { %13874 = vst [vmem:[#allocation25_spill] sm:$0xff] %v9373_v12  ;;  %13875 = vst [vmem:[#allocation26_spill] sm:$0xff] %v9377_v35  ;;  %v9395_v12 = vmul.f32 %v9267_v27, %v13880_v50  ;;  %v13886_v35 = vld [vmem:[#allocation38_spill] sm:$0xff]  ;;  %v9414_v50 = vpop.permute.xlu0 %2515  ;;  %3763 = vperm.xlu1 %7453, %v9228_v10  }
 0x308   : > { %13876 = vst [vmem:[#allocation29_spill] sm:$0xff] %v9379_v37  ;;  %13879 = vst [vmem:[#allocation33_spill] sm:$0xff] %v9387_v25  ;;  %v9399_v37 = vmul.f32 %v9265_v21, %v13883_v19  ;;  %v9407_v30 = vmul.f32 %v9265_v21, %v13886_v35  ;;  %v9411_v25 = vmul.f32 %v9267_v27, %v13886_v35 }
 0x309   : > { %13881 = vst [vmem:[#allocation34_spill] sm:$0xff] %v9391_v40  ;;  %13882 = vst [vmem:[#allocation292_spill] sm:$0xff] %v9395_v12  ;;  %v13889_v12 = vld [vmem:[#allocation41_spill] sm:$0xff]  ;;  %v9453_v10 = vpop.permute.xlu1 %2655 }
 0x30a   : > { %13884 = vst [vmem:[#allocation37_spill] sm:$0xff] %v9399_v37  ;;  %13885 = vst [vmem:[#allocation293_spill] sm:$0xff] %v9403_v48  ;;  %v9418_v40 = vmul.f32 %v9265_v21, %v13889_v12  ;;  %v9422_v19 = vmul.f32 %v9267_v27, %v13889_v12  ;;  %v13892_v48 = vld [vmem:[#allocation42_spill] sm:$0xff] }
 0x30b   : > { %13887 = vst [vmem:[#allocation38_spill] sm:$0xff] %v9411_v25  ;;  %13888 = vst [vmem:[#allocation294_spill] sm:$0xff] %v9414_v50  ;;  %v9426_v37 = vmul.f32 %v9265_v21, %v13892_v48  ;;  %v9430_v35 = vmul.f32 %v9267_v27, %v13892_v48  ;;  %v13895_v25 = vld [vmem:[#allocation45_spill] sm:$0xff]  ;;  %v13898_v12 = vld [vmem:[#allocation46_spill] sm:$0xff]  ;;  %3767 = vperm.xlu1 %7453, %v9251_v22  }
 0x30c   : > { %13890 = vst [vmem:[#allocation41_spill] sm:$0xff] %v9418_v40  ;;  %13891 = vst [vmem:[#allocation295_spill] sm:$0xff] %v9422_v19  ;;  %v9435_v50 = vmul.f32 %v9265_v21, %v13895_v25  ;;  %v9439_v40 = vmul.f32 %v9267_v27, %v13895_v25  ;;  %v9443_v19 = vmul.f32 %v9265_v21, %v13898_v12  ;;  %v9450_v48 = vld [vmem:[%s7795_s8 + $0x2a8] sm:$0xff] }
 0x30d   : > { %13893 = vst [vmem:[#allocation42_spill] sm:$0xff] %v9426_v37  ;;  %13894 = vst [vmem:[#allocation296_spill] sm:$0xff] %v9430_v35  ;;  %v9447_v37 = vmul.f32 %v9267_v27, %v13898_v12  ;;  %2767 = vperm.xlu0 %7470, %v9450_v48   ;;  %v13903_v35 = vld [vmem:[#allocation49_spill] sm:$0xff]  ;;  %v9526_v22 = vpop.permute.xlu1 %2663 }
 0x30e   : > { %13896 = vst [vmem:[#allocation45_spill] sm:$0xff] %v9435_v50  ;;  %13897 = vst [vmem:[#allocation297_spill] sm:$0xff] %v9439_v40  ;;  %v9457_v50 = vmul.f32 %v9265_v21, %v13903_v35  ;;  %v9461_v25 = vmul.f32 %v9267_v27, %v13903_v35  ;;  %v13906_v40 = vld [vmem:[#allocation50_spill] sm:$0xff] }
 0x30f   : > { %13899 = vst [vmem:[#allocation46_spill] sm:$0xff] %v9443_v19  ;;  %13900 = vst [vmem:[#allocation298_spill] sm:$0xff] %v9447_v37  ;;  %v9465_v19 = vmul.f32 %v9265_v21, %v13906_v40  ;;  %v9469_v12 = vmul.f32 %v9267_v27, %v13906_v40  ;;  %v13909_v37 = vld [vmem:[#allocation53_spill] sm:$0xff]  ;;  %3519 = vperm.xlu1 %7453, %v8914_v31  }
 0x310   : > { %13901 = vst [vmem:[#allocation299_spill] sm:$0xff] %v9450_v48  ;;  %13902 = vst [vmem:[#allocation300_spill] sm:$0xff] %v9453_v10  ;;  %v9473_v10 = vmul.f32 %v9265_v21, %v13909_v37  ;;  %v13912_v48 = vld [vmem:[#allocation54_spill] sm:$0xff]  ;;  %v13916_v40 = vld [vmem:[#allocation57_spill] sm:$0xff] }
 0x311   : > { %13904 = vst [vmem:[#allocation49_spill] sm:$0xff] %v9457_v50  ;;  %13905 = vst [vmem:[#allocation301_spill] sm:$0xff] %v9461_v25  ;;  %v9477_v50 = vmul.f32 %v9267_v27, %v13909_v37  ;;  %v9481_v35 = vmul.f32 %v9265_v21, %v13912_v48  ;;  %v9485_v25 = vmul.f32 %v9267_v27, %v13912_v48  ;;  %v13919_v37 = vld [vmem:[#allocation58_spill] sm:$0xff]  ;;  %v13922_v48 = vld [vmem:[#allocation61_spill] sm:$0xff] }
 0x312   : > { %13907 = vst [vmem:[#allocation50_spill] sm:$0xff] %v9465_v19  ;;  %13908 = vst [vmem:[#allocation302_spill] sm:$0xff] %v9469_v12  ;;  %v9487_v19 = vpop.permute.xlu0 %2523  ;;  %v9491_v12 = vmul.f32 %v9265_v21, %v13916_v40  ;;  %v13956_v31 = vld [vmem:[#allocation81_spill] sm:$0xff] }
 0x313   : > { %13910 = vst [vmem:[#allocation53_spill] sm:$0xff] %v9473_v10  ;;  %13911 = vst [vmem:[#allocation303_spill] sm:$0xff] %v9477_v50  ;;  %v9495_v10 = vmul.f32 %v9267_v27, %v13916_v40  ;;  %v9499_v50 = vmul.f32 %v9265_v21, %v13919_v37  ;;  %v13925_v40 = vld [vmem:[#allocation62_spill] sm:$0xff]  ;;  %7454 = vset.pattern.permute.xlu1 %v13775_v52 }
 0x314   : > { %13913 = vst [vmem:[#allocation54_spill] sm:$0xff] %v9481_v35  ;;  %13914 = vst [vmem:[#allocation304_spill] sm:$0xff] %v9485_v25  ;;  %v9503_v35 = vmul.f32 %v9267_v27, %v13919_v37  ;;  %v9523_v37 = vld [vmem:[%s7795_s8 + $0x2b8] sm:$0xff]  ;;  %v13939_v25 = vld [vmem:[#allocation70_spill] sm:$0xff] }
 0x315   : > { %13915 = vst [vmem:[#allocation305_spill] sm:$0xff] %v9487_v19  ;;  %13917 = vst [vmem:[#allocation57_spill] sm:$0xff] %v9491_v12  ;;  %v9508_v19 = vmul.f32 %v9265_v21, %v13922_v48  ;;  %v9512_v12 = vmul.f32 %v9267_v27, %v13922_v48  ;;  %2775 = vperm.xlu0 %7470, %v9523_v37  }
 0x316   : > { %13918 = vst [vmem:[#allocation306_spill] sm:$0xff] %v9495_v10  ;;  %13920 = vst [vmem:[#allocation58_spill] sm:$0xff] %v9499_v50  ;;  %v9516_v10 = vmul.f32 %v9265_v21, %v13925_v40  ;;  %v9520_v50 = vmul.f32 %v9267_v27, %v13925_v40 }
 0x317   : > { %13921 = vst [vmem:[#allocation307_spill] sm:$0xff] %v9503_v35  ;;  %13923 = vst [vmem:[#allocation61_spill] sm:$0xff] %v9508_v19  ;;  %v13930_v35 = vld [vmem:[#allocation65_spill] sm:$0xff] }
 0x318   : > { %13924 = vst [vmem:[#allocation308_spill] sm:$0xff] %v9512_v12  ;;  %13926 = vst [vmem:[#allocation62_spill] sm:$0xff] %v9516_v10  ;;  %v9530_v19 = vmul.f32 %v9265_v21, %v13930_v35  ;;  %v9534_v48 = vmul.f32 %v9267_v27, %v13930_v35  ;;  %v13933_v12 = vld [vmem:[#allocation66_spill] sm:$0xff]  ;;  %v9554_v35 = vmul.f32 %v9265_v21, %v13939_v25 }
 0x319   : > { %13927 = vst [vmem:[#allocation309_spill] sm:$0xff] %v9520_v50  ;;  %13928 = vst [vmem:[#allocation310_spill] sm:$0xff] %v9523_v37  ;;  %v9538_v10 = vmul.f32 %v9265_v21, %v13933_v12  ;;  %v9542_v40 = vmul.f32 %v9267_v27, %v13933_v12  ;;  %v13936_v50 = vld [vmem:[#allocation69_spill] sm:$0xff]  ;;  %v9732_v37 = vmul.f32 %v9265_v21, %v8445_v63 }
 0x31a   : > { %13929 = vst [vmem:[#allocation311_spill] sm:$0xff] %v9526_v22  ;;  %13931 = vst [vmem:[#allocation65_spill] sm:$0xff] %v9530_v19  ;;  %v9546_v22 = vmul.f32 %v9265_v21, %v13936_v50  ;;  %v9550_v19 = vmul.f32 %v9267_v27, %v13936_v50  ;;  %v13943_v12 = vld [vmem:[#allocation73_spill] sm:$0xff]  ;;  %v13946_v50 = vld [vmem:[#allocation74_spill] sm:$0xff] }
 0x31b   : > { %13932 = vst [vmem:[#allocation312_spill] sm:$0xff] %v9534_v48  ;;  %13934 = vst [vmem:[#allocation66_spill] sm:$0xff] %v9538_v10  ;;  %v9558_v48 = vmul.f32 %v9267_v27, %v13939_v25  ;;  %v9560_v10 = vpop.permute.xlu0 %2531  ;;  %v13949_v25 = vld [vmem:[#allocation77_spill] sm:$0xff] }
 0x31c   : > { %13935 = vst [vmem:[#allocation313_spill] sm:$0xff] %v9542_v40  ;;  %13937 = vst [vmem:[#allocation69_spill] sm:$0xff] %v9546_v22  ;;  %v9564_v40 = vmul.f32 %v9265_v21, %v13943_v12  ;;  %v9568_v22 = vmul.f32 %v9267_v27, %v13943_v12  ;;  %v13952_v12 = vld [vmem:[#allocation78_spill] sm:$0xff] }
 0x31d   : > { %13938 = vst [vmem:[#allocation314_spill] sm:$0xff] %v9550_v19  ;;  %13940 = vst [vmem:[#allocation70_spill] sm:$0xff] %v9554_v35  ;;  %v9572_v19 = vmul.f32 %v9265_v21, %v13946_v50  ;;  %v9576_v35 = vmul.f32 %v9267_v27, %v13946_v50  ;;  %v7600_v50 = vld [vmem:[%s7795_s8 + $0x2c8] sm:$0xff] }
 0x31e   : > { %13941 = vst [vmem:[#allocation315_spill] sm:$0xff] %v9558_v48  ;;  %13942 = vst [vmem:[#allocation316_spill] sm:$0xff] %v9560_v10  ;;  %v9581_v48 = vmul.f32 %v9265_v21, %v13949_v25  ;;  %2783 = vperm.xlu0 %7470, %v7600_v50   ;;  %v9600_v10 = vmul.f32 %v9265_v21, %v13956_v31  ;;  %v13962_v50 = vld [vmem:[#allocation85_spill] sm:$0xff] }
 0x31f   : > { %13944 = vst [vmem:[#allocation73_spill] sm:$0xff] %v9564_v40  ;;  %13945 = vst [vmem:[#allocation317_spill] sm:$0xff] %v9568_v22  ;;  %v9585_v40 = vmul.f32 %v9267_v27, %v13949_v25  ;;  %v9589_v22 = vmul.f32 %v9265_v21, %v13952_v12  ;;  %v9604_v25 = vmul.f32 %v9267_v27, %v13956_v31  ;;  %v13965_v31 = vld [vmem:[#allocation86_spill] sm:$0xff] }
 0x320   : > { %13947 = vst [vmem:[#allocation74_spill] sm:$0xff] %v9572_v19  ;;  %13948 = vst [vmem:[#allocation318_spill] sm:$0xff] %v9576_v35  ;;  %v9593_v19 = vmul.f32 %v9267_v27, %v13952_v12  ;;  %v9596_v35 = vpop.permute.xlu1 %2671 }
 0x321   : > { %13950 = vst [vmem:[#allocation77_spill] sm:$0xff] %v9581_v48  ;;  %13951 = vst [vmem:[#allocation319_spill] sm:$0xff] %v9585_v40  ;;  %v13959_v40 = vld [vmem:[#allocation82_spill] sm:$0xff] }
 0x322   : > { %13953 = vst [vmem:[#allocation78_spill] sm:$0xff] %v9589_v22  ;;  %13954 = vst [vmem:[#allocation320_spill] sm:$0xff] %v9593_v19  ;;  %v9608_v48 = vmul.f32 %v9265_v21, %v13959_v40  ;;  %v9612_v12 = vmul.f32 %v9267_v27, %v13959_v40  ;;  %v9630_v19 = vpop.permute.xlu0 %2539  ;;  %v13969_v40 = vld [vmem:[#allocation89_spill] sm:$0xff] }
 0x323   : > { %13955 = vst [vmem:[#allocation321_spill] sm:$0xff] %v9596_v35  ;;  %13957 = vst [vmem:[#allocation81_spill] sm:$0xff] %v9600_v10  ;;  %v9616_v35 = vmul.f32 %v9265_v21, %v13962_v50  ;;  %v9620_v10 = vmul.f32 %v9267_v27, %v13962_v50  ;;  %v13972_v50 = vld [vmem:[#allocation90_spill] sm:$0xff]  ;;  %v7601_v22 = vld [vmem:[%s7795_s8 + $0x2d8] sm:$0xff] }
 0x324   : > { %13958 = vst [vmem:[#allocation322_spill] sm:$0xff] %v9604_v25  ;;  %13960 = vst [vmem:[#allocation82_spill] sm:$0xff] %v9608_v48  ;;  %v9624_v25 = vmul.f32 %v9265_v21, %v13965_v31  ;;  %v9628_v48 = vmul.f32 %v9267_v27, %v13965_v31  ;;  %v13975_v31 = vld [vmem:[#allocation93_spill] sm:$0xff]  ;;  %2791 = vperm.xlu0 %7470, %v7601_v22   ;;  %v13985_v22 = vld [vmem:[#allocation98_spill] sm:$0xff] }
 0x325   : > { %13961 = vst [vmem:[#allocation323_spill] sm:$0xff] %v9612_v12  ;;  %13963 = vst [vmem:[#allocation85_spill] sm:$0xff] %v9616_v35  ;;  %v9634_v12 = vmul.f32 %v9265_v21, %v13969_v40  ;;  %v9638_v35 = vmul.f32 %v9267_v27, %v13969_v40  ;;  %v13978_v40 = vld [vmem:[#allocation94_spill] sm:$0xff] }
 0x326   : > { %13964 = vst [vmem:[#allocation324_spill] sm:$0xff] %v9620_v10  ;;  %13966 = vst [vmem:[#allocation86_spill] sm:$0xff] %v9624_v25  ;;  %v9642_v10 = vmul.f32 %v9265_v21, %v13972_v50  ;;  %v9646_v25 = vmul.f32 %v9267_v27, %v13972_v50  ;;  %v9666_v50 = vpop.permute.xlu1 %2679 }
 0x327   : > { %13967 = vst [vmem:[#allocation325_spill] sm:$0xff] %v9628_v48  ;;  %13968 = vst [vmem:[#allocation326_spill] sm:$0xff] %v9630_v19  ;;  %v9651_v48 = vmul.f32 %v9265_v21, %v13975_v31  ;;  %v13988_v19 = vld [vmem:[#allocation101_spill] sm:$0xff] }
 0x328   : > { %13970 = vst [vmem:[#allocation89_spill] sm:$0xff] %v9634_v12  ;;  %13971 = vst [vmem:[#allocation327_spill] sm:$0xff] %v9638_v35  ;;  %v9655_v12 = vmul.f32 %v9267_v27, %v13975_v31  ;;  %v9659_v35 = vmul.f32 %v9265_v21, %v13978_v40 }
 0x329   : > { %13973 = vst [vmem:[#allocation90_spill] sm:$0xff] %v9642_v10  ;;  %13974 = vst [vmem:[#allocation328_spill] sm:$0xff] %v9646_v25  ;;  %v9663_v10 = vld [vmem:[%s7795_s8 + $0x280] sm:$0xff]  ;;  %v9670_v25 = vmul.f32 %v9267_v27, %v13978_v40  ;;  %v9690_v40 = vmul.f32 %v9265_v21, %v13988_v19 }
 0x32a   : > { %13976 = vst [vmem:[#allocation93_spill] sm:$0xff] %v9651_v48  ;;  %13977 = vst [vmem:[#allocation329_spill] sm:$0xff] %v9655_v12  ;;  %2747 = vperm.xlu1 %7454, %v9663_v10   ;;  %v13982_v48 = vld [vmem:[#allocation97_spill] sm:$0xff] }
 0x32b   : > { %13979 = vst [vmem:[#allocation94_spill] sm:$0xff] %v9659_v35  ;;  %13980 = vst [vmem:[#allocation330_spill] sm:$0xff] %v9666_v50  ;;  %v9674_v31 = vmul.f32 %v9265_v21, %v13982_v48  ;;  %v9678_v12 = vmul.f32 %v9267_v27, %v13982_v48  ;;  %v9682_v35 = vmul.f32 %v9265_v21, %v13985_v22 }
 0x32c   : > { %13981 = vst [vmem:[#allocation331_spill] sm:$0xff] %v9670_v25  ;;  %v9686_v50 = vmul.f32 %v9267_v27, %v13985_v22  ;;  %13989 = vst [vmem:[#allocation101_spill] sm:$0xff] %v9690_v40  ;;  %v9694_v25 = vmul.f32 %v9267_v27, %v13988_v19  ;;  %v9708_v22 = vmul.f32 %v9265_v21, %v8439_v55 }
 0x32d   : > { %13983 = vst [vmem:[#allocation97_spill] sm:$0xff] %v9674_v31  ;;  %13984 = vst [vmem:[#allocation332_spill] sm:$0xff] %v9678_v12  ;;  %v13991_v31 = vld [vmem:[#allocation136_spill] sm:$0xff]  ;;  %v9700_v12 = vpop.permute.xlu0 %2547  ;;  %v9712_v40 = vmul.f32 %v9267_v27, %v8439_v55  ;;  %v9716_v19 = vmul.f32 %v9265_v21, %v8443_v61  ;;  %v9728_v55 = vpop.permute.xlu1 %2687 }
 0x32e   : > { %13986 = vst [vmem:[#allocation98_spill] sm:$0xff] %v9682_v35  ;;  %13987 = vst [vmem:[#allocation333_spill] sm:$0xff] %v9686_v50  ;;  %v9698_v48 = vmul.f32 %v9265_v21, %v13991_v31  ;;  %v9704_v35 = vmul.f32 %v9267_v27, %v13991_v31  ;;  %v1916_v31 = vmul.f32 %v9274_v14, %v8629_v54  ;;  %7455 = vset.pattern.permute.xlu1 %v13808_v36 }
 0x32f   : > { %13990 = vst [vmem:[#allocation334_spill] sm:$0xff] %v9694_v25  ;;  %13992 = vst [vmem:[#allocation136_spill] sm:$0xff] %v9700_v12  ;;  %v9720_v25 = vmul.f32 %v9267_v27, %v8443_v61  ;;  %v1917_v50 = vmul.f32 %v9276_v15, %v8629_v54  ;;  %v7603_v12 = vld [vmem:[%s7795_s8 + $0x2e8] sm:$0xff]  ;;  %v9736_v61 = vmul.f32 %v9267_v27, %v8445_v63  ;;  %3771 = vperm.xlu1 %7455, %v9338_v26  }
 0x330   : > { %13993 = vst [vmem:[#allocation335_spill] sm:$0xff] %v9716_v19  ;;  %2799 = vperm.xlu0 %7470, %v7603_v12   ;;  %13995 = vst [vmem:[#allocation337_spill] sm:$0xff] %v9728_v55  ;;  %v9744_v54 = vmul.f32 %v9267_v27, %v8449_v58  ;;  %v9749_v12 = vmul.f32 %v9265_v21, %v8451_v62  ;;  %v9753_v55 = vmul.f32 %v9267_v27, %v8451_v62 }
 0x331   : > { %13994 = vst [vmem:[#allocation336_spill] sm:$0xff] %v9720_v25  ;;  %v9740_v25 = vmul.f32 %v9265_v21, %v8449_v58  ;;  %v2948_v63 = vmul.f32 %v9278_v32, %v9204_v9  ;;  %v9759_v19 = vpop.permute.xlu0 %2555  ;;  %v9763_v58 = vmul.f32 %v9265_v21, %v8455_v60  ;;  %v9767_v26 = vmul.f32 %v9267_v27, %v8455_v60 }
 0x332   : > { %13997 = vst [vmem:[#allocation339_spill] sm:$0xff] %v9744_v54  ;;  %13998 = vst [vmem:[#allocation340_spill] sm:$0xff] %v9753_v55  ;;  %v9771_v62 = vmul.f32 %v9265_v21, %v8457_v4  ;;  %v9775_v54 = vmul.f32 %v9267_v27, %v8457_v4  ;;  %v2173_v60 = vadd.f32 %v1917_v50, %v9318_v34  ;;  %v9788_v55 = vpop.permute.xlu1 %2695 }
 0x333   : > { %13996 = vst [vmem:[#allocation338_spill] sm:$0xff] %v9740_v25  ;;  %v2949_v25 = vmul.f32 %v9280_v16, %v9204_v9  ;;  %13999 = vst [vmem:[#allocation341_spill] sm:$0xff] %v9759_v19  ;;  %v9779_v9 = vmul.f32 %v9265_v21, %v8461_v2  ;;  %v9783_v19 = vmul.f32 %v9267_v27, %v8461_v2  ;;  %3775 = vperm.xlu1 %7455, %v9262_v8  }
 0x334   : > { %14000 = vst [vmem:[#allocation342_spill] sm:$0xff] %v9763_v58  ;;  %14001 = vst [vmem:[#allocation343_spill] sm:$0xff] %v9767_v26  ;;  %v2172_v58 = vadd.f32 %v1916_v31, %v9314_v0  ;;  %v7604_v26 = vld [vmem:[%s7795_s8 + $0x2f8] sm:$0xff]  ;;  %v9792_v4 = vmul.f32 %v9265_v21, %v8463_v1  ;;  %v9800_v2 = vmul.f32 %v9265_v21, %v8467_v3 }
 0x335   : > { %14002 = vst [vmem:[#allocation344_spill] sm:$0xff] %v9775_v54  ;;  %2807 = vperm.xlu0 %7470, %v7604_v26   ;;  %14003 = vst [vmem:[#allocation345_spill] sm:$0xff] %v9788_v55  ;;  %v9796_v54 = vmul.f32 %v9267_v27, %v8463_v1  ;;  %v1914_v34 = vmul.f32 %v9274_v14, %v8631_v53  ;;  %v1915_v0 = vmul.f32 %v9276_v15, %v8631_v53  ;;  %v9809_v1 = vpop.permute.xlu0 %2563 }
 0x336   : > { %14004 = vst [vmem:[#allocation346_spill] sm:$0xff] %v9800_v2  ;;  %v1918_v50 = vmul.f32 %v9274_v14, %v8635_v56  ;;  %v3204_v31 = vadd.f32 %v2948_v63, %v2172_v58  ;;  %v3205_v26 = vadd.f32 %v2949_v25, %v2173_v60  ;;  %14005 = vst [vmem:[#allocation347_spill] sm:$0xff] %v9809_v1  ;;  %v7605_v60 = vld [vmem:[%s7795_s8 + $0x308] sm:$0xff]  ;;  %v9834_v1 = vpop.permute.xlu1 %2703 }
 0x337   : > { %v9813_v55 = vmul.f32 %v9267_v27, %v8467_v3  ;;  %v9817_v2 = vmul.f32 %v9265_v21, %v8469_v6  ;;  %v1919_v8 = vmul.f32 %v9276_v15, %v8635_v56  ;;  %v1920_v53 = vmul.f32 %v9274_v14, %v8637_v49  ;;  %14007 = vst [vmem:[#allocation349_spill] sm:$0xff] %v9834_v1 }
 0x338   : > { %v9825_v63 = vmul.f32 %v9267_v27, %v8469_v6  ;;  %v1921_v25 = vmul.f32 %v9276_v15, %v8637_v49  ;;  %v2946_v3 = vmul.f32 %v9278_v32, %v9090_v17  ;;  %v2947_v58 = vmul.f32 %v9280_v16, %v9090_v17  ;;  %3527 = vperm.xlu1 %7455, %v8926_v7  }
 0x339   : > { %14006 = vst [vmem:[#allocation348_spill] sm:$0xff] %v9813_v55  ;;  %2815 = vperm.xlu0 %7470, %v7605_v60   ;;  %v9838_v56 = vmul.f32 %v9265_v21, %v8473_v5  ;;  %v9842_v6 = vmul.f32 %v9267_v27, %v8473_v5  ;;  %v2170_v49 = vadd.f32 %v1914_v34, %v9296_v57  ;;  %v9850_v1 = vpop.permute.xlu0 %2571 }
 0x33a   : > { %v1922_v55 = vmul.f32 %v9274_v14, %v8641_v51  ;;  %v2171_v17 = vadd.f32 %v1915_v0, %v9300_v38  ;;  %v2174_v60 = vadd.f32 %v1918_v50, %v9288_v11  ;;  %14010 = vst [vmem:[#allocation352_spill] sm:$0xff] %v9850_v1  ;;  %v3972_v21 = vadd.f32 %v9093_v46, %v3204_v31  ;;  %v7606_v0 = vld [vmem:[%s7795_s8 + $0x310] sm:$0xff] }
 0x33b   : > { %14008 = vst [vmem:[#allocation350_spill] sm:$0xff] %v9838_v56  ;;  %14009 = vst [vmem:[#allocation351_spill] sm:$0xff] %v9842_v6  ;;  %v3973_v56 = vadd.f32 %v9093_v46, %v3205_v26  ;;  %v2175_v5 = vadd.f32 %v1919_v8, %v9292_v29  ;;  %v9856_v57 = vadd.f32 %v1920_v53, %v9306_v41  ;;  %v9879_v31 = vld [vmem:[%s7795_s8 + $0x290] sm:$0xff]  ;;  %v14033_v6 = vld [vmem:[#allocation194_spill] sm:$0xff] }
 0x33c   : > { %v1923_v34 = vmul.f32 %v9276_v15, %v8641_v51  ;;  %v1924_v7 = vmul.f32 %v9274_v14, %v8643_v45  ;;  %v9863_v11 = vadd.f32 %v1921_v25, %v9310_v59  ;;  %v1925_v38 = vmul.f32 %v9276_v15, %v8643_v45  ;;  %7456 = vset.pattern.permute.xlu1 %v13775_v52  ;;  %v3460_v45 = vpop.permute.xlu1 %3459 }
 0x33d   : > { %2819 = vperm.xlu0 %7470, %v7606_v0   ;;  %v3202_v46 = vadd.f32 %v2946_v3, %v2170_v49  ;;  %v3203_v29 = vadd.f32 %v2947_v58, %v2171_v17  ;;  %v9869_v50 = vadd.f32 %v1922_v55, %v9331_v20  ;;  %v1926_v41 = vmul.f32 %v9274_v14, %v8647_v44  ;;  %v9882_v55 = vpop.permute.xlu0 %2579  ;;  %v7608_v0 = vld [vmem:[%s7795_s8 + $0x328] sm:$0xff] }
 0x33e   : > { %v2950_v51 = vmul.f32 %v9278_v32, %v9096_v28  ;;  %v2951_v59 = vmul.f32 %v9280_v16, %v9096_v28  ;;  %2755 = vperm.xlu1 %7456, %v9879_v31   ;;  %14011 = vst [vmem:[#allocation353_spill] sm:$0xff] %v9882_v55  ;;  %v4229_v8 = vmul.f32 0.01, %v3973_v56  ;;  %v4228_v53 = vmul.f32 0.01, %v3972_v21 }
 0x33f   : > { %v3970_v26 = vadd.f32 %v3460_v45, %v3202_v46  ;;  %v3971_v20 = vadd.f32 %v3460_v45, %v3203_v29  ;;  %v2179_v25 = vadd.f32 %v1923_v34, %v9335_v18  ;;  %v9886_v3 = vadd.f32 %v1924_v7, %v9323_v33 }
 0x340   : > { %v1927_v28 = vmul.f32 %v9276_v15, %v8647_v44  ;;  %v1928_v58 = vmul.f32 %v9274_v14, %v8649_v47  ;;  %v9893_v49 = vadd.f32 %v1925_v38, %v9327_v43  ;;  %v1929_v17 = vmul.f32 %v9276_v15, %v8649_v47  ;;  %v9903_v7 = vpop.permute.xlu1 %3715 }
 0x341   : > { %2831 = vperm.xlu0 %7470, %v7608_v0   ;;  %v4227_v46 = vmul.f32 0.01, %v3971_v20  ;;  %v4226_v29 = vmul.f32 0.01, %v3970_v26  ;;  %v9899_v18 = vadd.f32 %v1926_v41, %v9353_v13  ;;  %v1930_v33 = vmul.f32 %v9274_v14, %v8653_v42  ;;  %14012 = vst [vmem:[#allocation354_spill] sm:$0xff] %v9903_v7  ;;  %v9906_v43 = vpop.permute.xlu0 %2587  ;;  %v14014_v41 = vld [vmem:[#allocation238_spill] sm:$0xff] }
 0x342   : > { %v3206_v44 = vadd.f32 %v2950_v51, %v2174_v60  ;;  %v3207_v34 = vadd.f32 %v2951_v59, %v2175_v5  ;;  %7457 = vset.pattern.permute.xlu1 %v13808_v36  ;;  %14013 = vst [vmem:[#allocation355_spill] sm:$0xff] %v9906_v43  ;;  %v4485_v38 = vmax.f32 %v3973_v56, %v4229_v8  ;;  %v7609_v56 = vld [vmem:[%s7795_s8 + $0x338] sm:$0xff] }
 0x343   : > { %v4483_v47 = vmax.f32 %v3971_v20, %v4227_v46  ;;  %v4482_v45 = vmax.f32 %v3970_v26, %v4226_v29  ;;  %v4484_v0 = vmax.f32 %v3972_v21, %v4228_v53  ;;  %v9909_v55 = vadd.f32 %v1927_v28, %v9357_v23  ;;  %3779 = vperm.xlu1 %7457, %v9663_v10   ;;  %v14015_v26 = vld [vmem:[#allocation10_spill] sm:$0xff]  ;;  %v14016_v20 = vld [vmem:[#allocation237_spill] sm:$0xff] }
 0x344   : > { %v9912_v13 = vadd.f32 %v1928_v58, %v9345_v24  ;;  %v1931_v60 = vmul.f32 %v9276_v15, %v8653_v42  ;;  %v1932_v5 = vmul.f32 %v9274_v14, %v8655_v39  ;;  %v2952_v51 = vmul.f32 %v9278_v32, %v14014_v41  ;;  %v9932_v53 = vpop.permute.xlu1 %3719  ;;  %v14018_v28 = vld [vmem:[#allocation17_spill] sm:$0xff] }
 0x345   : > { %v2953_v21 = vmul.f32 %v9280_v16, %v14014_v41  ;;  %2839 = vperm.xlu0 %7470, %v7609_v56   ;;  %v4739_v23 = vpack.c.bf16 %v4485_v38, %v4483_v47  ;;  %v4738_v59 = vpack.c.bf16 %v4484_v0, %v4482_v45  ;;  %v1933_v24 = vmul.f32 %v9276_v15, %v8655_v39  ;;  %v14019_v46 = vld [vmem:[#allocation25_spill] sm:$0xff]  ;;  %v14020_v47 = vld [vmem:[#allocation272_spill] sm:$0xff]  ;;  %v9944_v45 = vpop.permute.xlu0 %2595 }
 0x346   : > { %v1934_v42 = vmul.f32 %v9274_v14, %v14015_v26  ;;  %v9929_v8 = vadd.f32 %v14016_v20, %v3206_v44  ;;  %v3975_v10 = vadd.f32 %v14016_v20, %v3207_v34  ;;  %14017 = vst [vmem:[#allocation238_spill] sm:$0xff] %v9932_v53  ;;  %v9935_v58 = vadd.f32 %v1929_v17, %v14018_v28  ;;  %v14022_v44 = vld [vmem:[#allocation26_spill] sm:$0xff]  ;;  %v14023_v17 = vld [vmem:[#allocation9_spill] sm:$0xff]  ;;  %v14039_v53 = vld [vmem:[#allocation116_spill] sm:$0xff] }
 0x347   : > { %v9938_v29 = vadd.f32 %v1930_v33, %v14019_v46  ;;  %v2954_v39 = vmul.f32 %v9278_v32, %v14020_v47  ;;  %v2955_v38 = vmul.f32 %v9280_v16, %v14020_v47  ;;  %14021 = vst [vmem:[#allocation10_spill] sm:$0xff] %v9944_v45  ;;  %5826 = vmatprep.subr.bf16.mxu1 %v4739_v23  ;;  %v14024_v33 = vld [vmem:[#allocation291_spill] sm:$0xff]  ;;  %v14025_v56 = vld [vmem:[#allocation21_spill] sm:$0xff]  ;;  %v14026_v47 = vld [vmem:[#allocation22_spill] sm:$0xff] }
 0x348   : > { %v9947_v0 = vadd.f32 %v1931_v60, %v14022_v44  ;;  %v1935_v34 = vmul.f32 %v9276_v15, %v14015_v26  ;;  %v1936_v41 = vmul.f32 %v9274_v14, %v14023_v17  ;;  %3783 = vperm.xlu1 %7457, %v14024_v33   ;;  %5827 = vmatpush1.bf16.msra.mxu1 %v4738_v59  ;;  %v7610_v46 = vld [vmem:[%s7795_s8 + $0x348] sm:$0xff]  ;;  %v14027_v44 = vld [vmem:[#allocation34_spill] sm:$0xff]  ;;  %v4230_v59 = vmul.f32 0.01, %v9929_v8 }
 0x349   : > { %v9955_v20 = vadd.f32 %v1932_v5, %v14025_v56  ;;  %v1937_v28 = vmul.f32 %v9276_v15, %v14023_v17  ;;  %2847 = vperm.xlu0 %7470, %v7610_v46   ;;  %v3208_v60 = vadd.f32 %v2952_v51, %v9856_v57  ;;  %v3209_v23 = vadd.f32 %v2953_v21, %v9863_v11  ;;  %v3472_v5 = vpop.permute.xlu1 %3471  ;;  %v9970_v1 = vpop.permute.xlu0 %2603  ;;  %v14029_v57 = vld [vmem:[#allocation292_spill] sm:$0xff]  ;;  %v14030_v51 = vld [vmem:[#allocation30_spill] sm:$0xff] }
 0x34a   : > { %v9963_v26 = vadd.f32 %v1933_v24, %v14026_v47  ;;  %v9966_v45 = vadd.f32 %v1934_v42, %v14027_v44  ;;  %v4231_v33 = vmul.f32 0.01, %v3975_v10  ;;  %v3210_v56 = vadd.f32 %v2954_v39, %v9869_v50  ;;  %14028 = vst [vmem:[#allocation237_spill] sm:$0xff] %v9970_v1  ;;  %v14031_v24 = vld [vmem:[#allocation12_spill] sm:$0xff]  ;;  %v14034_v50 = vld [vmem:[#allocation33_spill] sm:$0xff] }
 0x34b   : > { %v3211_v17 = vadd.f32 %v2955_v38, %v2179_v25  ;;  %v3976_v43 = vadd.f32 %v3472_v5, %v3208_v60  ;;  %v3977_v46 = vadd.f32 %v3472_v5, %v3209_v23  ;;  %v9973_v11 = vadd.f32 %v1935_v34, %v14029_v57  ;;  %v14032_v47 = vld [vmem:[#allocation240_spill] sm:$0xff]  ;;  %v7611_v60 = vld [vmem:[%s7795_s8 + $0x358] sm:$0xff]  ;;  %v14035_v23 = vld [vmem:[#allocation11_spill] sm:$0xff] }
 0x34c   : > { %v9976_v21 = vadd.f32 %v1936_v41, %v14030_v51  ;;  %v1938_v42 = vmul.f32 %v9274_v14, %v14031_v24  ;;  %v2956_v44 = vmul.f32 %v9278_v32, %v14032_v47  ;;  %3535 = vperm.xlu1 %7457, %v14033_v6   ;;  %v9984_v25 = vadd.f32 %v1937_v28, %v14034_v50  ;;  %v14036_v51 = vld [vmem:[#allocation241_spill] sm:$0xff] }
 0x34d   : > { %v2957_v39 = vmul.f32 %v9280_v16, %v14032_v47  ;;  %v4232_v38 = vmul.f32 0.01, %v3976_v43  ;;  %v4233_v34 = vmul.f32 0.01, %v3977_v46  ;;  %2855 = vperm.xlu0 %7470, %v7611_v60   ;;  %v1939_v41 = vmul.f32 %v9276_v15, %v14031_v24  ;;  %v9994_v28 = vpop.permute.xlu1 %3727  ;;  %v9998_v60 = vpop.permute.xlu0 %2611 }
 0x34e   : > { %v1940_v5 = vmul.f32 %v9274_v14, %v14035_v23  ;;  %v4486_v6 = vmax.f32 %v9929_v8, %v4230_v59  ;;  %v4487_v57 = vmax.f32 %v3975_v10, %v4231_v33  ;;  %v3978_v50 = vadd.f32 %v14036_v51, %v3210_v56  ;;  %14037 = vst [vmem:[#allocation17_spill] sm:$0xff] %v9998_v60  ;;  %v7612_v59 = vld [vmem:[%s7795_s8 + $0x368] sm:$0xff] }
 0x34f   : > { %v3979_v47 = vadd.f32 %v14036_v51, %v3211_v17  ;;  %v4488_v1 = vmax.f32 %v3976_v43, %v4232_v38  ;;  %v4489_v27 = vmax.f32 %v3977_v46, %v4233_v34  ;;  %v10001_v7 = vadd.f32 %v1938_v42, %v9407_v30  ;;  %v10013_v43 = vld [vmem:[%s7795_s8 + $0x2a0] sm:$0xff]  ;;  %v14041_v42 = vld [vmem:[#allocation37_spill] sm:$0xff] }
 0x350   : > { %v10005_v24 = vmul.f32 %v9276_v15, %v14035_v23  ;;  %v2042_v8 = vmul.f32 %v9274_v14, %v14039_v53  ;;  %7458 = vset.pattern.permute.xlu1 %v13775_v52  ;;  %v3212_v10 = vadd.f32 %v2956_v44, %v9886_v3  ;;  %v3213_v30 = vadd.f32 %v2957_v39, %v9893_v49  ;;  %v14040_v17 = vld [vmem:[#allocation38_spill] sm:$0xff] }
 0x351   : > { %2863 = vperm.xlu0 %7470, %v7612_v59   ;;  %2763 = vperm.xlu1 %7458, %v10013_v43   ;;  %v4741_v33 = vpack.c.bf16 %v4489_v27, %v4487_v57  ;;  %v4740_v56 = vpack.c.bf16 %v4488_v1, %v4486_v6  ;;  %v10018_v46 = vadd.f32 %v1939_v41, %v14040_v17  ;;  %v14043_v34 = vld [vmem:[#allocation274_spill] sm:$0xff]  ;;  %v3480_v44 = vpop.permute.xlu1 %3479  ;;  %v10027_v60 = vpop.permute.xlu0 %2619  ;;  %v4235_v27 = vmul.f32 0.01, %v3979_v47  ;;  %v14046_v41 = vld [vmem:[#allocation115_spill] sm:$0xff]  ;;  %v14047_v57 = vld [vmem:[#allocation120_spill] sm:$0xff] }
 0x352   : > { %14038 = vst [vmem:[#allocation25_spill] sm:$0xff] %v10005_v24  ;;  %v10021_v38 = vadd.f32 %v1940_v5, %v14041_v42  ;;  %v2958_v23 = vmul.f32 %v9278_v32, %v14043_v34  ;;  %v2959_v3 = vmul.f32 %v9280_v16, %v14043_v34  ;;  %v3980_v51 = vadd.f32 %v3480_v44, %v3212_v10  ;;  %v7614_v42 = vld [vmem:[%s7795_s8 + $0x378] sm:$0xff] }
 0x353   : > { %v3981_v59 = vadd.f32 %v3480_v44, %v3213_v30  ;;  %14044 = vst [vmem:[#allocation26_spill] sm:$0xff] %v10027_v60  ;;  %5828 = vmatprep.subr.bf16.mxu1 %v4741_v33  ;;  %v4234_v1 = vmul.f32 0.01, %v3978_v50  ;;  %v2043_v49 = vmul.f32 %v9276_v15, %v14039_v53  ;;  %v10032_v39 = vadd.f32 %v2042_v8, %v9708_v22  ;;  %v14048_v22 = vld [vmem:[#allocation119_spill] sm:$0xff] }
 0x354   : > { %14042 = vst [vmem:[#allocation272_spill] sm:$0xff] %v10021_v38  ;;  %v2044_v5 = vmul.f32 %v9274_v14, %v14046_v41  ;;  %v2045_v6 = vmul.f32 %v9276_v15, %v14046_v41  ;;  %5829 = vmatpush1.bf16.msra.mxu1 %v4740_v56  ;;  %v2046_v10 = vmul.f32 %v9274_v14, %v14047_v57  ;;  %v4236_v33 = vmul.f32 0.01, %v3980_v51 }
 0x355   : > { %14045 = vst [vmem:[#allocation9_spill] sm:$0xff] %v10032_v39  ;;  %v2047_v30 = vmul.f32 %v9276_v15, %v14047_v57  ;;  %v4237_v17 = vmul.f32 0.01, %v3981_v59  ;;  %2871 = vperm.xlu0 %7470, %v7614_v42   ;;  %7459 = vset.pattern.permute.xlu1 %v13808_v36  ;;  %v2048_v53 = vmul.f32 %v9274_v14, %v14048_v22  ;;  %v10051_v44 = vpop.permute.xlu1 %3731  ;;  %v10053_v42 = vpop.permute.xlu0 %2627  ;;  %v14050_v39 = vld [vmem:[#allocation124_spill] sm:$0xff] }
 0x356   : > { %v2049_v8 = vmul.f32 %v9276_v15, %v14048_v22  ;;  %v3214_v56 = vadd.f32 %v2958_v23, %v9899_v18  ;;  %v3215_v34 = vadd.f32 %v2959_v3, %v9909_v55  ;;  %3787 = vperm.xlu1 %7459, %v9879_v31   ;;  %v4492_v41 = vmax.f32 %v3980_v51, %v4236_v33  ;;  %v14051_v55 = vld [vmem:[#allocation242_spill] sm:$0xff]  ;;  %v14058_v33 = vld [vmem:[#allocation340_spill] sm:$0xff] }
 0x357   : > { %v4493_v57 = vmax.f32 %v3981_v59, %v4237_v17  ;;  %14049 = vst [vmem:[#allocation291_spill] sm:$0xff] %v10053_v42  ;;  %v4491_v60 = vmax.f32 %v3979_v47, %v4235_v27  ;;  %v4490_v38 = vmax.f32 %v3978_v50, %v4234_v1  ;;  %v10056_v24 = vadd.f32 %v2043_v49, %v9712_v40  ;;  %v7615_v47 = vld [vmem:[%s7795_s8 + $0x388] sm:$0xff]  ;;  %v14053_v49 = vld [vmem:[#allocation18_spill] sm:$0xff] }
 0x358   : > { %v10059_v22 = vadd.f32 %v2044_v5, %v9698_v48  ;;  %v2050_v18 = vmul.f32 %v9274_v14, %v14050_v39  ;;  %v2051_v31 = vmul.f32 %v9276_v15, %v14050_v39  ;;  %v2960_v23 = vmul.f32 %v9278_v32, %v14051_v55  ;;  %v14052_v27 = vld [vmem:[#allocation123_spill] sm:$0xff] }
 0x359   : > { %v2961_v3 = vmul.f32 %v9280_v16, %v14051_v55  ;;  %2879 = vperm.xlu0 %7470, %v7615_v47   ;;  %v4743_v50 = vpack.c.bf16 %v4493_v57, %v4491_v60  ;;  %v4742_v40 = vpack.c.bf16 %v4492_v41, %v4490_v38  ;;  %v10071_v51 = vadd.f32 %v2045_v6, %v9704_v35  ;;  %v10082_v39 = vpop.permute.xlu1 %3735  ;;  %v14054_v5 = vld [vmem:[#allocation335_spill] sm:$0xff]  ;;  %v14055_v38 = vld [vmem:[#allocation336_spill] sm:$0xff]  ;;  %v7616_v55 = vld [vmem:[%s7795_s8 + $0x398] sm:$0xff] }
 0x35a   : > { %v10074_v48 = vadd.f32 %v2046_v10, %v9732_v37  ;;  %v10077_v59 = vadd.f32 %v2047_v30, %v9736_v61  ;;  %v2052_v1 = vmul.f32 %v9274_v14, %v14052_v27  ;;  %3791 = vperm.xlu1 %7459, %v14053_v49   ;;  %v10085_v60 = vadd.f32 %v2048_v53, %v14054_v5  ;;  %v14056_v6 = vld [vmem:[#allocation243_spill] sm:$0xff]  ;;  %v10092_v61 = vpop.permute.xlu0 %2635  ;;  %v14059_v41 = vld [vmem:[#allocation128_spill] sm:$0xff] }
 0x35b   : > { %v10088_v35 = vadd.f32 %v2049_v8, %v14055_v38  ;;  %v3982_v37 = vadd.f32 %v14056_v6, %v3214_v56  ;;  %v3983_v10 = vadd.f32 %v14056_v6, %v3215_v34  ;;  %14057 = vst [vmem:[#allocation21_spill] sm:$0xff] %v10092_v61  ;;  %5830 = vmatprep.subr.bf16.mxu1 %v4743_v50  ;;  %v14060_v34 = vld [vmem:[#allocation127_spill] sm:$0xff] }
 0x35c   : > { %v10095_v30 = vadd.f32 %v2050_v18, %v9749_v12  ;;  %v10098_v17 = vadd.f32 %v2051_v31, %v14058_v33  ;;  %v2053_v53 = vmul.f32 %v9276_v15, %v14052_v27  ;;  %v2054_v8 = vmul.f32 %v9274_v14, %v14059_v41  ;;  %5831 = vmatpush1.bf16.msra.mxu1 %v4742_v40  ;;  %v14061_v31 = vld [vmem:[#allocation338_spill] sm:$0xff]  ;;  %v14062_v27 = vld [vmem:[#allocation276_spill] sm:$0xff]  ;;  %v7617_v5 = vld [vmem:[%s7795_s8 + $0xa8] sm:$0xff] }
 0x35d   : > { %v2055_v56 = vmul.f32 %v9276_v15, %v14059_v41  ;;  %v2056_v57 = vmul.f32 %v9274_v14, %v14060_v34  ;;  %2887 = vperm.xlu0 %7470, %v7616_v55   ;;  %v3216_v12 = vadd.f32 %v2960_v23, %v9912_v13  ;;  %v3217_v18 = vadd.f32 %v2961_v3, %v9935_v58  ;;  %v3488_v38 = vpop.permute.xlu1 %3487 }
 0x35e   : > { %v10112_v47 = vadd.f32 %v2052_v1, %v14061_v31  ;;  %v2057_v50 = vmul.f32 %v9276_v15, %v14060_v34  ;;  %v2962_v40 = vmul.f32 %v9278_v32, %v14062_v27  ;;  %v2963_v49 = vmul.f32 %v9280_v16, %v14062_v27  ;;  %3543 = vperm.xlu1 %7459, %v7617_v5   ;;  %v10121_v23 = vpop.permute.xlu0 %2643  ;;  %v14064_v1 = vld [vmem:[#allocation339_spill] sm:$0xff]  ;;  %v14066_v27 = vld [vmem:[#allocation344_spill] sm:$0xff] }
 0x35f   : > { %v3984_v6 = vadd.f32 %v3488_v38, %v3216_v12  ;;  %v3985_v13 = vadd.f32 %v3488_v38, %v3217_v18  ;;  %14063 = vst [vmem:[#allocation22_spill] sm:$0xff] %v10121_v23  ;;  %v4239_v58 = vmul.f32 0.01, %v3983_v10  ;;  %v4238_v3 = vmul.f32 0.01, %v3982_v37  ;;  %v14065_v34 = vld [vmem:[#allocation131_spill] sm:$0xff] }
 0x360   : > { %v10124_v33 = vadd.f32 %v2053_v53, %v14064_v1  ;;  %v10127_v41 = vadd.f32 %v2054_v8, %v9771_v62  ;;  %v2058_v55 = vmul.f32 %v9274_v14, %v14065_v34  ;;  %v2059_v31 = vmul.f32 %v9276_v15, %v14065_v34  ;;  %v14067_v18 = vld [vmem:[#allocation342_spill] sm:$0xff]  ;;  %v7618_v53 = vld [vmem:[%s7795_s8 + $0x3a8] sm:$0xff]  ;;  %v14070_v8 = vld [vmem:[#allocation181_spill] sm:$0xff] }
 0x361   : > { %v10134_v12 = vadd.f32 %v2055_v56, %v14066_v27  ;;  %v10137_v5 = vadd.f32 %v2056_v57, %v14067_v18  ;;  %v4240_v38 = vmul.f32 0.01, %v3984_v6  ;;  %v4241_v23 = vmul.f32 0.01, %v3985_v13  ;;  %2895 = vperm.xlu0 %7470, %v7618_v53   ;;  %v14068_v1 = vld [vmem:[#allocation343_spill] sm:$0xff]  ;;  %v10149_v27 = vld [vmem:[%s7795_s8 + $0x2b0] sm:$0xff] }
 0x362   : > { %v10141_v62 = vadd.f32 %v2057_v50, %v14068_v1  ;;  %v2060_v61 = vmul.f32 %v9274_v14, %v14070_v8  ;;  %v3218_v42 = vadd.f32 %v2962_v40, %v9938_v29  ;;  %v3219_v34 = vadd.f32 %v2963_v49, %v9947_v0  ;;  %7460 = vset.pattern.permute.xlu1 %v13775_v52  ;;  %v10152_v18 = vpop.permute.xlu0 %2651  ;;  %v10154_v50 = vpop.permute.xlu1 %2715  ;;  %v14072_v40 = vld [vmem:[#allocation182_spill] sm:$0xff] }
 0x363   : > { %v4496_v56 = vmax.f32 %v3984_v6, %v4240_v38  ;;  %v4497_v57 = vmax.f32 %v3985_v13, %v4241_v23  ;;  %2771 = vperm.xlu1 %7460, %v10149_v27   ;;  %14071 = vst [vmem:[#allocation292_spill] sm:$0xff] %v10152_v18  ;;  %v4495_v53 = vmax.f32 %v3983_v10, %v4239_v58  ;;  %v14073_v13 = vld [vmem:[#allocation278_spill] sm:$0xff]  ;;  %v7620_v10 = vld [vmem:[%s7795_s8 + $0x3b8] sm:$0xff]  ;;  %v14075_v38 = vld [vmem:[#allocation244_spill] sm:$0xff] }
 0x364   : > { %14069 = vst [vmem:[#allocation34_spill] sm:$0xff] %v10141_v62  ;;  %v4494_v1 = vmax.f32 %v3982_v37, %v4238_v3  ;;  %v10157_v62 = vadd.f32 %v2058_v55, %v9792_v4  ;;  %v10160_v29 = vadd.f32 %v2059_v31, %v9796_v54  ;;  %v2061_v0 = vmul.f32 %v9276_v15, %v14070_v8  ;;  %v14074_v54 = vld [vmem:[#allocation183_spill] sm:$0xff] }
 0x365   : > { %v2062_v49 = vmul.f32 %v9274_v14, %v14072_v40  ;;  %v2063_v6 = vmul.f32 %v9276_v15, %v14072_v40  ;;  %v2966_v23 = vmul.f32 %v9278_v32, %v14073_v13  ;;  %2903 = vperm.xlu0 %7470, %v7620_v10   ;;  %v4745_v37 = vpack.c.bf16 %v4497_v57, %v4495_v53  ;;  %v14076_v40 = vld [vmem:[#allocation245_spill] sm:$0xff] }
 0x366   : > { %v4744_v4 = vpack.c.bf16 %v4496_v56, %v4494_v1  ;;  %v10172_v58 = vadd.f32 %v2060_v61, %v9779_v9  ;;  %v2064_v3 = vmul.f32 %v9274_v14, %v14074_v54  ;;  %v2065_v55 = vmul.f32 %v9276_v15, %v14074_v54  ;;  %v10189_v9 = vpop.permute.xlu0 %2659  ;;  %v14078_v1 = vld [vmem:[#allocation246_spill] sm:$0xff]  ;;  %v14087_v15 = vld [vmem:[#allocation349_spill] sm:$0xff] }
 0x367   : > { %v2967_v31 = vmul.f32 %v9280_v16, %v14073_v13  ;;  %v2964_v8 = vmul.f32 %v9278_v32, %v14075_v38  ;;  %v10183_v10 = vadd.f32 %v14076_v40, %v3218_v42  ;;  %v10186_v56 = vadd.f32 %v14076_v40, %v3219_v34  ;;  %7461 = vset.pattern.permute.xlu1 %v13808_v36  ;;  %v10200_v42 = vpop.permute.xlu1 %3739 }
 0x368   : > { %14077 = vst [vmem:[#allocation30_spill] sm:$0xff] %v10189_v9  ;;  %5832 = vmatprep.subr.bf16.mxu1 %v4745_v37  ;;  %v10192_v61 = vadd.f32 %v2061_v0, %v9783_v19  ;;  %v10195_v57 = vadd.f32 %v2062_v49, %v9817_v2  ;;  %v2965_v53 = vmul.f32 %v9280_v16, %v14075_v38  ;;  %v7621_v0 = vld [vmem:[%s7795_s8 + $0x3c8] sm:$0xff]  ;;  %v14079_v49 = vld [vmem:[#allocation346_spill] sm:$0xff]  ;;  %v7622_v9 = vld [vmem:[%s7795_s8 + $0x3d8] sm:$0xff] }
 0x369   : > { %3795 = vperm.xlu1 %7461, %v10013_v43   ;;  %5833 = vmatpush1.bf16.msra.mxu1 %v4744_v4  ;;  %v10203_v34 = vadd.f32 %v2063_v6, %v9825_v63  ;;  %v2968_v13 = vmul.f32 %v9278_v32, %v14078_v1  ;;  %v2969_v19 = vmul.f32 %v9280_v16, %v14078_v1  ;;  %v14080_v43 = vld [vmem:[#allocation348_spill] sm:$0xff]  ;;  %v14081_v6 = vld [vmem:[#allocation337_spill] sm:$0xff] }
 0x36a   : > { %v3222_v2 = vadd.f32 %v2966_v23, %v9966_v45  ;;  %2911 = vperm.xlu0 %7470, %v7621_v0   ;;  %v10212_v37 = vadd.f32 %v2064_v3, %v14079_v49  ;;  %v10215_v54 = vadd.f32 %v2065_v55, %v14080_v43  ;;  %v3223_v63 = vadd.f32 %v2967_v31, %v9973_v11  ;;  %v10222_v40 = vpop.permute.xlu0 %2667  ;;  %v14083_v55 = vld [vmem:[#allocation280_spill] sm:$0xff]  ;;  %v14084_v31 = vld [vmem:[#allocation345_spill] sm:$0xff]  ;;  %v14085_v49 = vld [vmem:[#allocation299_spill] sm:$0xff] }
 0x36b   : > { %v3077_v4 = vmul.f32 %v9280_v16, %v14081_v6  ;;  %v3076_v38 = vmul.f32 %v9278_v32, %v14081_v6  ;;  %14082 = vst [vmem:[#allocation12_spill] sm:$0xff] %v10222_v40  ;;  %v3220_v45 = vadd.f32 %v2964_v8, %v9955_v20  ;;  %v10226_v23 = vmul.f32 0.01, %v10186_v56  ;;  %v10238_v43 = vpop.permute.xlu1 %3743  ;;  %v14086_v8 = vld [vmem:[#allocation247_spill] sm:$0xff] }
 0x36c   : > { %v10229_v3 = vmul.f32 0.01, %v10183_v10  ;;  %v2970_v1 = vmul.f32 %v9278_v32, %v14083_v55  ;;  %v2971_v11 = vmul.f32 %v9280_v16, %v14083_v55  ;;  %v3080_v0 = vmul.f32 %v9278_v32, %v14084_v31 }
 0x36d   : > { %3799 = vperm.xlu1 %7461, %v14085_v49   ;;  %v3221_v20 = vadd.f32 %v2965_v53, %v9963_v26  ;;  %v10242_v6 = vadd.f32 %v14086_v8, %v3222_v2  ;;  %v3081_v40 = vmul.f32 %v9280_v16, %v14084_v31  ;;  %v10248_v55 = vadd.f32 %v2968_v13, %v9976_v21 }
 0x36e   : > { %2919 = vperm.xlu0 %7470, %v7622_v9   ;;  %v10251_v18 = vadd.f32 %v2969_v19, %v9984_v25  ;;  %v10254_v49 = vadd.f32 %v14086_v8, %v3223_v63  ;;  %v3084_v26 = vmul.f32 %v9278_v32, %v14087_v15  ;;  %v3085_v53 = vmul.f32 %v9280_v16, %v14087_v15  ;;  %v14088_v9 = vld [vmem:[#allocation248_spill] sm:$0xff]  ;;  %v10266_v25 = vpop.permute.xlu0 %2675 }
 0x36f   : > { %v3333_v2 = vadd.f32 %v3077_v4, %v10071_v51  ;;  %v10263_v31 = vmul.f32 %v9278_v32, %v14088_v9  ;;  %v3332_v21 = vadd.f32 %v3076_v38, %v10059_v22  ;;  %14089 = vst [vmem:[#allocation240_spill] sm:$0xff] %v10266_v25  ;;  %v4499_v13 = vmax.f32 %v10186_v56, %v10226_v23  ;;  %v14090_v51 = vld [vmem:[#allocation238_spill] sm:$0xff]  ;;  %v7623_v22 = vld [vmem:[%s7795_s8 + $0xb8] sm:$0xff]  ;;  %v3496_v38 = vpop.permute.xlu1 %3495 }
 0x370   : > { %v4498_v19 = vmax.f32 %v10183_v10, %v10229_v3  ;;  %v10273_v63 = vadd.f32 %v2970_v1, %v10001_v7  ;;  %v10276_v15 = vadd.f32 %v2971_v11, %v10018_v46  ;;  %v3336_v8 = vadd.f32 %v3080_v0, %v10085_v60  ;;  %v7624_v10 = vld [vmem:[%s7795_s8 + $0x3e8] sm:$0xff] }
 0x371   : > { %v10279_v4 = vadd.f32 %v14090_v51, %v3333_v2  ;;  %3551 = vperm.xlu1 %7461, %v7623_v22   ;;  %v10284_v25 = vadd.f32 %v14090_v51, %v3332_v21  ;;  %v3337_v56 = vadd.f32 %v3081_v40, %v10088_v35  ;;  %v3988_v7 = vadd.f32 %v3496_v38, %v3220_v45  ;;  %v10315_v21 = vld [vmem:[%s7795_s8 + $0x3f8] sm:$0xff]  ;;  %v10319_v51 = vld [vmem:[%s7795_s8 + $0x2c0] sm:$0xff] }
 0x372   : > { %2927 = vperm.xlu0 %7470, %v7624_v10   ;;  %v3989_v23 = vadd.f32 %v3496_v38, %v3221_v20  ;;  %v3340_v46 = vadd.f32 %v3084_v26, %v10112_v47  ;;  %v3341_v3 = vadd.f32 %v3085_v53, %v10124_v33  ;;  %v10291_v1 = vmul.f32 0.01, %v10254_v49  ;;  %v2684_v0 = vpop.permute.xlu0 %2683  ;;  %14091 = vst [vmem:[#allocation194_spill] sm:$0xff] %v10315_v21  ;;  %v14092_v38 = vld [vmem:[#allocation9_spill] sm:$0xff] }
 0x373   : > { %v10294_v60 = vmul.f32 0.01, %v10242_v6  ;;  %v10297_v11 = vadd.f32 %v9994_v28, %v3336_v8  ;;  %v10300_v35 = vadd.f32 %v9994_v28, %v3337_v56  ;;  %v4244_v40 = vmul.f32 0.01, %v3988_v7  ;;  %v2724_v8 = vpop.permute.xlu1 %2723 }
 0x374   : > { %v4245_v45 = vmul.f32 0.01, %v3989_v23  ;;  %v10303_v47 = vadd.f32 %v10082_v39, %v3340_v46  ;;  %v3074_v33 = vmul.f32 %v9278_v32, %v2684_v0  ;;  %v3075_v20 = vmul.f32 %v9280_v16, %v2684_v0 }
 0x375   : > { %7462 = vset.pattern.permute.xlu1 %v13775_v52  ;;  %v10309_v26 = vmul.f32 0.01, %v10279_v4  ;;  %v10312_v53 = vadd.f32 %v10082_v39, %v3341_v3  ;;  %v4500_v28 = vmax.f32 %v3988_v7, %v4244_v40  ;;  %v4356_v22 = vmul.f32 0.01, %v10284_v25 }
 0x376   : > { %v4501_v2 = vmax.f32 %v3989_v23, %v4245_v45  ;;  %2935 = vperm.xlu0 %7470, %v10315_v21   ;;  %2779 = vperm.xlu1 %7462, %v10319_v51   ;;  %v3330_v56 = vadd.f32 %v3074_v33, %v14092_v38  ;;  %v3331_v10 = vadd.f32 %v3075_v20, %v10056_v24  ;;  %v10330_v23 = vmul.f32 0.01, %v10297_v11  ;;  %v2692_v3 = vpop.permute.xlu0 %2691  ;;  %v14093_v33 = vld [vmem:[#allocation354_spill] sm:$0xff] }
 0x377   : > { %v10333_v46 = vmul.f32 0.01, %v10300_v35  ;;  %v4746_v45 = vpack.c.bf16 %v4500_v28, %v4498_v19  ;;  %v3078_v0 = vmul.f32 %v9278_v32, %v2692_v3  ;;  %v3079_v24 = vmul.f32 %v9280_v16, %v2692_v3 }
 0x378   : > { %v4747_v40 = vpack.c.bf16 %v4501_v2, %v4499_v13  ;;  %v4099_v20 = vadd.f32 %v14093_v33, %v3331_v10  ;;  %v4098_v38 = vadd.f32 %v14093_v33, %v3330_v56  ;;  %v10340_v7 = vmul.f32 0.01, %v10303_v47  ;;  %v10353_v56 = vld [vmem:[%s7795_s8 + $0x300] sm:$0xff]  ;;  %v10357_v10 = vpop.permute.xlu1 %3747 }
 0x379   : > { %v10343_v39 = vmul.f32 0.01, %v10312_v53  ;;  %v4613_v13 = vmax.f32 %v10279_v4, %v10309_v26  ;;  %v4612_v19 = vmax.f32 %v10284_v25, %v4356_v22  ;;  %v3334_v28 = vadd.f32 %v3078_v0, %v10074_v48  ;;  %14094 = vst [vmem:[#allocation33_spill] sm:$0xff] %v10353_v56 }
 0x37a   : > { %7502 = vset.pattern.permute.xlu0 %v13808_v36  ;;  %7463 = vset.pattern.permute.xlu1 %v13808_v36  ;;  %v3335_v2 = vadd.f32 %v3079_v24, %v10077_v59  ;;  %v4355_v3 = vmul.f32 0.01, %v4099_v20  ;;  %v4354_v33 = vmul.f32 0.01, %v4098_v38  ;;  %v4616_v21 = vmax.f32 %v10297_v11, %v10330_v23  ;;  %v2700_v4 = vpop.permute.xlu0 %2699 }
 0x37b   : > { %3843 = vperm.xlu0 %7502, %v10353_v56   ;;  %3803 = vperm.xlu1 %7463, %v10149_v27   ;;  %v4617_v25 = vmax.f32 %v10300_v35, %v10333_v46  ;;  %v3090_v48 = vmul.f32 %v9278_v32, %v10154_v50  ;;  %v3091_v59 = vmul.f32 %v9280_v16, %v10154_v50  ;;  %v14095_v27 = vld [vmem:[#allocation239_spill] sm:$0xff] }
 0x37c   : > { %5834 = vmatprep.subr.bf16.mxu1 %v4747_v40  ;;  %v4102_v26 = vadd.f32 %v14095_v27, %v3334_v28  ;;  %v4103_v22 = vadd.f32 %v14095_v27, %v3335_v2  ;;  %v3082_v0 = vmul.f32 %v9278_v32, %v2700_v4  ;;  %v3083_v11 = vmul.f32 %v9280_v16, %v2700_v4  ;;  %v7628_v28 = vld [vmem:[%s7795_s8 + $0x118] sm:$0xff]  ;;  %v14096_v2 = vld [vmem:[#allocation310_spill] sm:$0xff]  ;;  %v10379_v27 = vpop.permute.xlu1 %3751 }
 0x37d   : > { %5835 = vmatpush1.bf16.msra.mxu1 %v4746_v45  ;;  %v4620_v35 = vmax.f32 %v10303_v47, %v10340_v7  ;;  %v4621_v23 = vmax.f32 %v10312_v53, %v10343_v39  ;;  %v4611_v46 = vmax.f32 %v4099_v20, %v4355_v3  ;;  %v4610_v24 = vmax.f32 %v4098_v38, %v4354_v33 }
 0x37e   : > { %v3338_v50 = vadd.f32 %v3082_v0, %v10095_v30  ;;  %v3339_v40 = vadd.f32 %v3083_v11, %v10098_v17  ;;  %v4359_v4 = vmul.f32 0.01, %v4103_v22  ;;  %v4358_v45 = vmul.f32 0.01, %v4102_v26  ;;  %v2708_v53 = vpop.permute.xlu0 %2707  ;;  %v7630_v11 = vld [vmem:[%s7795_s8 + $0xc8] sm:$0xff] }
 0x37f   : > { %3599 = vperm.xlu0 %7502, %v7628_v28   ;;  %3807 = vperm.xlu1 %7463, %v14096_v2   ;;  %v3346_v56 = vadd.f32 %v3090_v48, %v10157_v62  ;;  %v3347_v47 = vadd.f32 %v3091_v59, %v10160_v29  ;;  %v4803_v39 = vpack.c.bf16 %v4613_v13, %v4611_v46  ;;  %v7629_v48 = vld [vmem:[%s7795_s8 + $0x120] sm:$0xff] }
 0x380   : > { %v4802_v7 = vpack.c.bf16 %v4612_v19, %v4610_v24  ;;  %v4106_v30 = vadd.f32 %v10051_v44, %v3338_v50  ;;  %v4107_v17 = vadd.f32 %v10051_v44, %v3339_v40  ;;  %v3086_v20 = vmul.f32 %v9278_v32, %v2708_v53  ;;  %v3504_v44 = vpop.permute.xlu1 %3503 }
 0x381   : > { %v3087_v38 = vmul.f32 %v9280_v16, %v2708_v53  ;;  %v3094_v3 = vmul.f32 %v9278_v32, %v2724_v8  ;;  %v10389_v33 = vmul.f32 %v9280_v16, %v2724_v8  ;;  %6212 = vmatprep.subr.bf16.mxu0 %v4803_v39  ;;  %v4615_v62 = vmax.f32 %v4103_v22, %v4359_v4  ;;  %v7631_v53 = vld [vmem:[%s7795_s8 + $0x130] sm:$0xff] }
 0x382   : > { %v4614_v29 = vmax.f32 %v4102_v26, %v4358_v45  ;;  %v3342_v13 = vadd.f32 %v3086_v20, %v10127_v41  ;;  %6213 = vmatpush1.bf16.msra.mxu0 %v4802_v7  ;;  %v4363_v59 = vmul.f32 0.01, %v4107_v17  ;;  %v4362_v0 = vmul.f32 0.01, %v4106_v30  ;;  %v2712_v24 = vpop.permute.xlu0 %2711 }
 0x383   : > { %v3343_v19 = vadd.f32 %v3087_v38, %v10134_v12  ;;  %3603 = vperm.xlu0 %7502, %v7629_v48   ;;  %3559 = vperm.xlu1 %7463, %v7630_v11   ;;  %v3992_v46 = vadd.f32 %v3504_v44, %v10248_v55  ;;  %v3993_v8 = vadd.f32 %v3504_v44, %v10251_v18  ;;  %v7633_v11 = vld [vmem:[%s7795_s8 + $0x140] sm:$0xff] }
 0x384   : > { %v4805_v22 = vpack.c.bf16 %v4617_v25, %v4615_v62  ;;  %v4804_v26 = vpack.c.bf16 %v4616_v21, %v4614_v29  ;;  %v10398_v41 = vadd.f32 %v10200_v42, %v3342_v13  ;;  %v3088_v50 = vmul.f32 %v9278_v32, %v2712_v24  ;;  %v14097_v25 = vld [vmem:[#allocation34_spill] sm:$0xff]  ;;  %v10421_v13 = vpop.permute.xlu1 %2731 }
 0x385   : > { %v10401_v12 = vadd.f32 %v10200_v42, %v3343_v19  ;;  %v3089_v40 = vmul.f32 %v9280_v16, %v2712_v24  ;;  %v4248_v28 = vmul.f32 0.01, %v3992_v46  ;;  %v4249_v2 = vmul.f32 0.01, %v3993_v8 }
 0x386   : > { %6214 = vmatprep.subr.bf16.mxu0 %v4805_v22  ;;  %v4619_v55 = vmax.f32 %v4107_v17, %v4363_v59  ;;  %v4618_v4 = vmax.f32 %v4106_v30, %v4362_v0  ;;  %v10406_v18 = vadd.f32 %v10357_v10, %v3346_v56  ;;  %v3344_v21 = vadd.f32 %v3088_v50, %v10137_v5  ;;  %v2720_v20 = vpop.permute.xlu0 %2719  ;;  %v10416_v5 = vld [vmem:[%s7795_s8 + $0x2d0] sm:$0xff] }
 0x387   : > { %v3345_v45 = vadd.f32 %v3089_v40, %v14097_v25  ;;  %3611 = vperm.xlu0 %7502, %v7631_v53   ;;  %6215 = vmatpush1.bf16.msra.mxu0 %v4804_v26  ;;  %v4367_v42 = vmul.f32 0.01, %v10401_v12  ;;  %v4504_v39 = vmax.f32 %v3992_v46, %v4248_v28  ;;  %v4505_v7 = vmax.f32 %v3993_v8, %v4249_v2  ;;  %v7634_v28 = vld [vmem:[%s7795_s8 + $0x150] sm:$0xff] }
 0x388   : > { %7464 = vset.pattern.permute.xlu1 %v13775_v52  ;;  %v4807_v17 = vpack.c.bf16 %v4621_v23, %v4619_v55  ;;  %v4806_v30 = vpack.c.bf16 %v4620_v35, %v4618_v4  ;;  %v4112_v56 = vadd.f32 %v10238_v43, %v3344_v21  ;;  %v3092_v62 = vmul.f32 %v9278_v32, %v2720_v20  ;;  %v3756_v24 = vpop.permute.xlu1 %3755 }
 0x389   : > { %v4113_v38 = vadd.f32 %v10238_v43, %v3345_v45  ;;  %2787 = vperm.xlu1 %7464, %v10416_v5   ;;  %v3093_v29 = vmul.f32 %v9280_v16, %v2720_v20  ;;  %v4115_v19 = vadd.f32 %v10357_v10, %v3347_v47  ;;  %v14098_v35 = vmax.f32 %v10254_v49, %v10291_v1  ;;  %v7635_v45 = vld [vmem:[%s7795_s8 + $0x2c8] sm:$0xff]  ;;  %v14102_v20 = vld [vmem:[#allocation25_spill] sm:$0xff] }
 0x38a   : > { %6216 = vmatprep.subr.bf16.mxu0 %v4807_v17  ;;  %v14099_v43 = vmax.f32 %v10242_v6, %v10294_v60  ;;  %v4366_v44 = vmul.f32 0.01, %v10398_v41  ;;  %v3348_v59 = vadd.f32 %v3092_v62, %v10172_v58  ;;  %v3350_v10 = vadd.f32 %v3094_v3, %v10195_v57  ;;  %v2728_v49 = vpop.permute.xlu0 %2727 }
 0x38b   : > { %v4749_v23 = vpack.c.bf16 %v4505_v7, %v14098_v35  ;;  %v3349_v0 = vadd.f32 %v3093_v29, %v10192_v61  ;;  %3619 = vperm.xlu0 %7502, %v7633_v11   ;;  %6217 = vmatpush1.bf16.msra.mxu0 %v4806_v30  ;;  %v4369_v47 = vmul.f32 0.01, %v4113_v38  ;;  %v4370_v46 = vmul.f32 0.01, %v10406_v18  ;;  %v14101_v7 = vld [vmem:[#allocation293_spill] sm:$0xff] }
 0x38c   : > { %v4748_v48 = vpack.c.bf16 %v4504_v39, %v14099_v43  ;;  %v3351_v6 = vadd.f32 %v10389_v33, %v10203_v34  ;;  %v4623_v1 = vmax.f32 %v10401_v12, %v4367_v42  ;;  %v4368_v60 = vmul.f32 0.01, %v4112_v56  ;;  %v3760_v53 = vpop.permute.xlu1 %3759 }
 0x38d   : > { %5836 = vmatprep.subr.bf16.mxu1 %v4749_v23  ;;  %v4116_v58 = vadd.f32 %v10379_v27, %v3348_v59  ;;  %v4117_v61 = vadd.f32 %v10379_v27, %v3349_v0  ;;  %7465 = vset.pattern.permute.xlu1 %v13808_v36  ;;  %v3096_v57 = vmul.f32 %v9278_v32, %v2728_v49  ;;  %v4371_v8 = vmul.f32 0.01, %v4115_v19  ;;  %v14100_v27 = vld [vmem:[#allocation249_spill] sm:$0xff]  ;;  %v14106_v0 = vld [vmem:[#allocation287_spill] sm:$0xff] }
 0x38e   : > { %v3097_v3 = vmul.f32 %v9280_v16, %v2728_v49  ;;  %3811 = vperm.xlu1 %7465, %v10319_v51   ;;  %5837 = vmatpush1.bf16.msra.mxu1 %v4748_v48  ;;  %v4625_v34 = vmax.f32 %v4113_v38, %v4369_v47  ;;  %v4622_v33 = vmax.f32 %v10398_v41, %v4366_v44  ;;  %v14104_v48 = vld [vmem:[#allocation137_spill] sm:$0xff]  ;;  %v14105_v44 = vld [vmem:[#allocation286_spill] sm:$0xff] }
 0x38f   : > { %v4624_v22 = vmax.f32 %v4112_v56, %v4368_v60  ;;  %v2973_v26 = vmul.f32 %v9280_v16, %v14088_v9  ;;  %v10450_v12 = vadd.f32 %v14100_v27, %v10273_v63  ;;  %v4118_v50 = vadd.f32 %v3756_v24, %v3350_v10  ;;  %3627 = vperm.xlu0 %7502, %v7634_v28   ;;  %v14107_v10 = vld [vmem:[#allocation16_spill] sm:$0xff]  ;;  %v7637_v47 = vld [vmem:[%s7795_s8 + $0xd8] sm:$0xff] }
 0x390   : > { %v4119_v40 = vadd.f32 %v3756_v24, %v3351_v6  ;;  %v4809_v2 = vpack.c.bf16 %v4625_v34, %v4623_v1  ;;  %v4373_v55 = vmul.f32 0.01, %v4117_v61  ;;  %v4372_v4 = vmul.f32 0.01, %v4116_v58 }
 0x391   : > { %v4808_v51 = vpack.c.bf16 %v4624_v22, %v4622_v33  ;;  %v10455_v41 = vadd.f32 %v14100_v27, %v10276_v15  ;;  %v4626_v21 = vmax.f32 %v10406_v18, %v4370_v46  ;;  %v3352_v9 = vadd.f32 %v3096_v57, %v10212_v37  ;;  %v7636_v15 = vld [vmem:[%s7795_s8 + $0x160] sm:$0xff]  ;;  %v14103_v18 = vld [vmem:[#allocation272_spill] sm:$0xff]  ;;  %v3512_v46 = vpop.permute.xlu1 %3511 }
 0x392   : > { %v3353_v63 = vadd.f32 %v3097_v3, %v10215_v54  ;;  %v4627_v25 = vmax.f32 %v4115_v19, %v4371_v8  ;;  %3815 = vperm.xlu1 %7465, %v7635_v45   ;;  %6218 = vmatprep.subr.bf16.mxu0 %v4809_v2  ;;  %v4629_v42 = vmax.f32 %v4117_v61, %v4373_v55  ;;  %v4374_v38 = vmul.f32 0.01, %v4118_v50  ;;  %v7638_v61 = vld [vmem:[%s7795_s8 + $0x170] sm:$0xff]  ;;  %v14108_v57 = vld [vmem:[#allocation290_spill] sm:$0xff]  ;;  %v14110_v45 = vld [vmem:[#allocation185_spill] sm:$0xff] }
 0x393   : > { %v4628_v39 = vmax.f32 %v4116_v58, %v4372_v4  ;;  %v2197_v17 = vadd.f32 %v14102_v20, %v14101_v7  ;;  %v4120_v30 = vadd.f32 %v3760_v53, %v3352_v9  ;;  %3635 = vperm.xlu0 %7502, %v7636_v15   ;;  %v3228_v37 = vadd.f32 %v10263_v31, %v14103_v18  ;;  %v14109_v8 = vld [vmem:[#allocation184_spill] sm:$0xff]  ;;  %v10490_v9 = vld [vmem:[%s7795_s8 + $0x2e0] sm:$0xff] }
 0x394   : > { %v4121_v56 = vadd.f32 %v3760_v53, %v3353_v63  ;;  %v4375_v54 = vmul.f32 0.01, %v4119_v40  ;;  %6219 = vmatpush1.bf16.msra.mxu0 %v4808_v51  ;;  %v4811_v62 = vpack.c.bf16 %v4629_v42, %v4627_v25  ;;  %v4251_v43 = vmul.f32 0.01, %v10455_v41  ;;  %v7640_v63 = vld [vmem:[%s7795_s8 + $0x180] sm:$0xff]  ;;  %v14111_v42 = vld [vmem:[#allocation283_spill] sm:$0xff] }
 0x395   : > { %v4810_v29 = vpack.c.bf16 %v4628_v39, %v4626_v21  ;;  %v4376_v19 = vmul.f32 0.01, %v4120_v30  ;;  %v3229_v23 = vadd.f32 %v2973_v26, %v2197_v17  ;;  %v1290_v59 = vmul.f32 %v14105_v44, %v14104_v48  ;;  %v2736_v39 = vpop.permute.xlu0 %2735  ;;  %v14113_v18 = vld [vmem:[#allocation296_spill] sm:$0xff] }
 0x396   : > { %v4377_v35 = vmul.f32 0.01, %v4121_v56  ;;  %v1291_v11 = vmul.f32 %v14106_v0, %v14104_v48  ;;  %v1942_v31 = vmul.f32 %v9274_v14, %v14107_v10  ;;  %3567 = vperm.xlu1 %7465, %v7637_v47   ;;  %6220 = vmatprep.subr.bf16.mxu0 %v4811_v62  ;;  %v4250_v49 = vmul.f32 0.01, %v10450_v12  ;;  %v14116_v47 = vld [vmem:[#allocation351_spill] sm:$0xff] }
 0x397   : > { %v4632_v6 = vmax.f32 %v4120_v30, %v4376_v19  ;;  %v3996_v60 = vadd.f32 %v3512_v46, %v3228_v37  ;;  %v3997_v58 = vadd.f32 %v3512_v46, %v3229_v23  ;;  %3643 = vperm.xlu0 %7502, %v7638_v61   ;;  %v1943_v3 = vmul.f32 %v14108_v57, %v14107_v10  ;;  %v14115_v10 = vld [vmem:[#allocation350_spill] sm:$0xff]  ;;  %v14120_v61 = vld [vmem:[#allocation105_spill] sm:$0xff] }
 0x398   : > { %v4633_v1 = vmax.f32 %v4121_v56, %v4377_v35  ;;  %v2066_v24 = vmul.f32 %v9274_v14, %v14109_v8  ;;  %v4630_v34 = vmax.f32 %v4118_v50, %v4374_v38  ;;  %v4631_v33 = vmax.f32 %v4119_v40, %v4375_v54  ;;  %6221 = vmatpush1.bf16.msra.mxu0 %v4810_v29  ;;  %v14112_v56 = vld [vmem:[#allocation42_spill] sm:$0xff]  ;;  %v14114_v38 = vld [vmem:[#allocation15_spill] sm:$0xff]  ;;  %v7641_v35 = vld [vmem:[%s7795_s8 + $0x190] sm:$0xff] }
 0x399   : > { %v2067_v22 = vmul.f32 %v14108_v57, %v14109_v8  ;;  %v4252_v26 = vmul.f32 0.01, %v3996_v60  ;;  %v4253_v27 = vmul.f32 0.01, %v3997_v58  ;;  %v4507_v28 = vmax.f32 %v10455_v41, %v4251_v43  ;;  %v10494_v41 = vpop.permute.xlu1 %2739  ;;  %v14123_v8 = vld [vmem:[#allocation250_spill] sm:$0xff] }
 0x39a   : > { %v3098_v2 = vmul.f32 %v9278_v32, %v10421_v13  ;;  %7466 = vset.pattern.permute.xlu1 %v13775_v52  ;;  %v4813_v51 = vpack.c.bf16 %v4633_v1, %v4631_v33  ;;  %v4812_v55 = vpack.c.bf16 %v4632_v6, %v4630_v34  ;;  %v4506_v4 = vmax.f32 %v10450_v12, %v4250_v49  ;;  %v14117_v1 = vld [vmem:[#allocation102_spill] sm:$0xff] }
 0x39b   : > { %v3099_v50 = vmul.f32 %v9280_v16, %v10421_v13  ;;  %v4508_v40 = vmax.f32 %v3996_v60, %v4252_v26  ;;  %v4509_v21 = vmax.f32 %v3997_v58, %v4253_v27  ;;  %2795 = vperm.xlu1 %7466, %v10490_v9   ;;  %3651 = vperm.xlu0 %7502, %v7640_v63   ;;  %v7642_v33 = vld [vmem:[%s7795_s8 + $0x1a0] sm:$0xff]  ;;  %v14124_v27 = vld [vmem:[#allocation251_spill] sm:$0xff] }
 0x39c   : > { %v2322_v25 = vadd.f32 %v2066_v24, %v1290_v59  ;;  %v2068_v53 = vmul.f32 %v9274_v14, %v14110_v45  ;;  %v2974_v12 = vmul.f32 %v9278_v32, %v14111_v42  ;;  %v2975_v13 = vmul.f32 %v9280_v16, %v14111_v42  ;;  %6222 = vmatprep.subr.bf16.mxu0 %v4813_v51  ;;  %v14126_v63 = vld [vmem:[#allocation295_spill] sm:$0xff]  ;;  %v14127_v42 = vld [vmem:[#allocation106_spill] sm:$0xff] }
 0x39d   : > { %v2323_v7 = vadd.f32 %v2067_v22, %v1291_v11  ;;  %v2069_v20 = vmul.f32 %v14108_v57, %v14110_v45  ;;  %6223 = vmatpush1.bf16.msra.mxu0 %v4812_v55  ;;  %v4751_v17 = vpack.c.bf16 %v4509_v21, %v4507_v28  ;;  %v4750_v30 = vpack.c.bf16 %v4508_v40, %v4506_v4  ;;  %v3764_v11 = vpop.permute.xlu1 %3763  ;;  %v7643_v4 = vld [vmem:[%s7795_s8 + $0x2d8] sm:$0xff] }
 0x39e   : > { %v2198_v15 = vadd.f32 %v1942_v31, %v14112_v56  ;;  %v2199_v37 = vadd.f32 %v1943_v3, %v14113_v18  ;;  %v1944_v54 = vmul.f32 %v9274_v14, %v14114_v38  ;;  %v3354_v62 = vadd.f32 %v3098_v2, %v2322_v25  ;;  %v14125_v40 = vld [vmem:[#allocation41_spill] sm:$0xff] }
 0x39f   : > { %v3100_v29 = vmul.f32 %v9278_v32, %v2736_v39  ;;  %v3101_v19 = vmul.f32 %v9280_v16, %v2736_v39  ;;  %7467 = vset.pattern.permute.xlu1 %v13808_v36  ;;  %3659 = vperm.xlu0 %7502, %v7641_v35   ;;  %v3355_v23 = vadd.f32 %v3099_v50, %v2323_v7 }
 0x3a0   : > { %v1945_v43 = vmul.f32 %v14108_v57, %v14114_v38  ;;  %v3230_v48 = vadd.f32 %v2974_v12, %v2198_v15  ;;  %v3231_v59 = vadd.f32 %v2975_v13, %v2199_v37  ;;  %3819 = vperm.xlu1 %7467, %v10416_v5   ;;  %5838 = vmatprep.subr.bf16.mxu1 %v4751_v17  ;;  %v14129_v13 = vld [vmem:[#allocation138_spill] sm:$0xff]  ;;  %v7644_v15 = vld [vmem:[%s7795_s8 + $0x1b0] sm:$0xff] }
 0x3a1   : > { %v2324_v31 = vadd.f32 %v2068_v53, %v14115_v10  ;;  %v2325_v46 = vadd.f32 %v2069_v20, %v14116_v47  ;;  %v4122_v49 = vadd.f32 %v3764_v11, %v3354_v62  ;;  %v4123_v6 = vadd.f32 %v3764_v11, %v3355_v23  ;;  %5839 = vmatpush1.bf16.msra.mxu1 %v4750_v30  ;;  %v3768_v50 = vpop.permute.xlu1 %3767  ;;  %v14130_v20 = vld [vmem:[#allocation139_spill] sm:$0xff]  ;;  %v14131_v10 = vld [vmem:[#allocation20_spill] sm:$0xff]  ;;  %v14132_v47 = vld [vmem:[#allocation186_spill] sm:$0xff] }
 0x3a2   : > { %v10519_v60 = vmul.f32 %v14105_v44, %v14117_v1  ;;  %v10523_v58 = vmul.f32 %v14106_v0, %v14117_v1  ;;  %v10527_v5 = vmul.f32 %v14105_v44, %v14120_v61  ;;  %v10531_v3 = vmul.f32 %v14106_v0, %v14120_v61  ;;  %v7645_v62 = vld [vmem:[%s7795_s8 + $0xe8] sm:$0xff]  ;;  %v7646_v61 = vld [vmem:[%s7795_s8 + $0x1c0] sm:$0xff] }
 0x3a3   : > { %v2976_v24 = vmul.f32 %v9278_v32, %v14123_v8  ;;  %v2977_v34 = vmul.f32 %v9280_v16, %v14123_v8  ;;  %3667 = vperm.xlu0 %7502, %v7642_v33   ;;  %v3356_v22 = vadd.f32 %v3100_v29, %v2324_v31  ;;  %v3357_v26 = vadd.f32 %v3101_v19, %v2325_v46 }
 0x3a4   : > { %14118 = vst [vmem:[#allocation11_spill] sm:$0xff] %v10519_v60  ;;  %14119 = vst [vmem:[#allocation241_spill] sm:$0xff] %v10523_v58  ;;  %v10539_v28 = vadd.f32 %v14124_v27, %v3230_v48  ;;  %v10542_v2 = vadd.f32 %v14124_v27, %v3231_v59  ;;  %v4378_v51 = vmul.f32 0.01, %v4122_v49  ;;  %v4379_v55 = vmul.f32 0.01, %v4123_v6  ;;  %3823 = vperm.xlu1 %7467, %v7643_v4   ;;  %v2744_v27 = vpop.permute.xlu0 %2743 }
 0x3a5   : > { %14121 = vst [vmem:[#allocation116_spill] sm:$0xff] %v10527_v5  ;;  %14122 = vst [vmem:[#allocation38_spill] sm:$0xff] %v10531_v3  ;;  %v2200_v21 = vadd.f32 %v1944_v54, %v14125_v40  ;;  %v2201_v25 = vadd.f32 %v1945_v43, %v14126_v63  ;;  %v4124_v45 = vadd.f32 %v3768_v50, %v3356_v22  ;;  %v3520_v29 = vpop.permute.xlu1 %3519  ;;  %v14223_v3 = vld [vmem:[#allocation61_spill] sm:$0xff]  ;;  %v14225_v60 = vld [vmem:[#allocation155_spill] sm:$0xff] }
 0x3a6   : > { %v4125_v53 = vadd.f32 %v3768_v50, %v3357_v26  ;;  %v10549_v12 = vmul.f32 %v14105_v44, %v14127_v42  ;;  %v10553_v39 = vmul.f32 %v14105_v44, %v14129_v13  ;;  %v10557_v7 = vmul.f32 %v14106_v0, %v14129_v13  ;;  %v10584_v50 = vld [vmem:[%s7795_s8 + $0x2f0] sm:$0xff] }
 0x3a7   : > { %v1294_v17 = vmul.f32 %v14105_v44, %v14130_v20  ;;  %v4380_v30 = vmul.f32 0.01, %v4124_v45  ;;  %3675 = vperm.xlu0 %7502, %v7644_v15   ;;  %v3232_v18 = vadd.f32 %v2976_v24, %v2200_v21  ;;  %v3233_v37 = vadd.f32 %v2977_v34, %v2201_v25  ;;  %v14133_v21 = vld [vmem:[#allocation187_spill] sm:$0xff]  ;;  %v7648_v13 = vld [vmem:[%s7795_s8 + $0x1d0] sm:$0xff] }
 0x3a8   : > { %14128 = vst [vmem:[#allocation37_spill] sm:$0xff] %v10549_v12  ;;  %v4381_v56 = vmul.f32 0.01, %v4125_v53  ;;  %v4634_v38 = vmax.f32 %v4122_v49, %v4378_v51  ;;  %v4635_v54 = vmax.f32 %v4123_v6, %v4379_v55  ;;  %3575 = vperm.xlu1 %7467, %v7645_v62   ;;  %v4255_v19 = vmul.f32 0.01, %v10542_v2 }
 0x3a9   : > { %v4254_v35 = vmul.f32 0.01, %v10539_v28  ;;  %v4636_v23 = vmax.f32 %v4124_v45, %v4380_v30  ;;  %v4000_v48 = vadd.f32 %v3520_v29, %v3232_v18  ;;  %v4001_v59 = vadd.f32 %v3520_v29, %v3233_v37  ;;  %v10587_v40 = vpop.permute.xlu1 %2747  ;;  %v14136_v18 = vld [vmem:[#allocation298_spill] sm:$0xff] }
 0x3aa   : > { %v4637_v43 = vmax.f32 %v4125_v53, %v4381_v56  ;;  %v1295_v11 = vmul.f32 %v14106_v0, %v14130_v20  ;;  %v1946_v31 = vmul.f32 %v9274_v14, %v14131_v10  ;;  %v2070_v46 = vmul.f32 %v9274_v14, %v14132_v47  ;;  %v14135_v56 = vld [vmem:[#allocation46_spill] sm:$0xff] }
 0x3ab   : > { %v2071_v49 = vmul.f32 %v14108_v57, %v14132_v47  ;;  %v4256_v6 = vmul.f32 0.01, %v4000_v48  ;;  %v4257_v1 = vmul.f32 0.01, %v4001_v59  ;;  %3683 = vperm.xlu0 %7502, %v7646_v61   ;;  %v4814_v24 = vpack.c.bf16 %v4636_v23, %v4634_v38  ;;  %v14137_v38 = vld [vmem:[#allocation19_spill] sm:$0xff]  ;;  %v7649_v47 = vld [vmem:[%s7795_s8 + $0x1e0] sm:$0xff] }
 0x3ac   : > { %v4815_v8 = vpack.c.bf16 %v4637_v43, %v4635_v54  ;;  %v1947_v34 = vmul.f32 %v14108_v57, %v14131_v10  ;;  %v3102_v33 = vmul.f32 %v9278_v32, %v10494_v41  ;;  %7468 = vset.pattern.permute.xlu1 %v13775_v52  ;;  %v4511_v22 = vmax.f32 %v10542_v2, %v4255_v19  ;;  %v14134_v2 = vld [vmem:[#allocation285_spill] sm:$0xff] }
 0x3ad   : > { %v4510_v26 = vmax.f32 %v10539_v28, %v4254_v35  ;;  %v3103_v51 = vmul.f32 %v9280_v16, %v10494_v41  ;;  %v4512_v55 = vmax.f32 %v4000_v48, %v4256_v6  ;;  %v4513_v4 = vmax.f32 %v4001_v59, %v4257_v1  ;;  %2803 = vperm.xlu1 %7468, %v10584_v50   ;;  %v14144_v1 = vld [vmem:[#allocation252_spill] sm:$0xff] }
 0x3ae   : > { %6224 = vmatprep.subr.bf16.mxu0 %v4815_v8  ;;  %v2072_v63 = vmul.f32 %v9274_v14, %v14133_v21  ;;  %v2073_v28 = vmul.f32 %v14108_v57, %v14133_v21  ;;  %v2978_v25 = vmul.f32 %v9278_v32, %v14134_v2  ;;  %v2979_v41 = vmul.f32 %v9280_v16, %v14134_v2  ;;  %v3772_v48 = vpop.permute.xlu1 %3771 }
 0x3af   : > { %6225 = vmatpush1.bf16.msra.mxu0 %v4814_v24  ;;  %v2326_v45 = vadd.f32 %v2070_v46, %v1294_v17  ;;  %v2327_v53 = vadd.f32 %v2071_v49, %v1295_v11  ;;  %3691 = vperm.xlu0 %7502, %v7648_v13   ;;  %v4753_v20 = vpack.c.bf16 %v4513_v4, %v4511_v22  ;;  %v14139_v49 = vld [vmem:[#allocation109_spill] sm:$0xff] }
 0x3b0   : > { %v4752_v30 = vpack.c.bf16 %v4512_v55, %v4510_v26  ;;  %v2202_v15 = vadd.f32 %v1946_v31, %v14135_v56  ;;  %v2203_v37 = vadd.f32 %v1947_v34, %v14136_v18  ;;  %v1948_v54 = vmul.f32 %v9274_v14, %v14137_v38  ;;  %v14145_v34 = vld [vmem:[#allocation253_spill] sm:$0xff] }
 0x3b1   : > { %v3104_v62 = vmul.f32 %v9278_v32, %v2744_v27  ;;  %v3105_v29 = vmul.f32 %v9280_v16, %v2744_v27  ;;  %7469 = vset.pattern.permute.xlu1 %v13808_v36  ;;  %5840 = vmatprep.subr.bf16.mxu1 %v4753_v20  ;;  %v3358_v17 = vadd.f32 %v3102_v33, %v2326_v45  ;;  %v14146_v4 = vld [vmem:[#allocation45_spill] sm:$0xff]  ;;  %v14151_v20 = vld [vmem:[#allocation140_spill] sm:$0xff] }
 0x3b2   : > { %v3359_v19 = vadd.f32 %v3103_v51, %v2327_v53  ;;  %v1949_v35 = vmul.f32 %v14108_v57, %v14137_v38  ;;  %v3234_v23 = vadd.f32 %v2978_v25, %v2202_v15  ;;  %v3235_v43 = vadd.f32 %v2979_v41, %v2203_v37  ;;  %3827 = vperm.xlu1 %7469, %v10490_v9   ;;  %v7650_v51 = vld [vmem:[%s7795_s8 + $0x2e8] sm:$0xff]  ;;  %v3776_v55 = vpop.permute.xlu1 %3775  ;;  %v7651_v41 = vld [vmem:[%s7795_s8 + $0x1f0] sm:$0xff]  ;;  %v14149_v53 = vld [vmem:[#allocation113_spill] sm:$0xff] }
 0x3b3   : > { %5841 = vmatpush1.bf16.msra.mxu1 %v4752_v30  ;;  %v2328_v59 = vadd.f32 %v2072_v63, %v10553_v39  ;;  %v2329_v11 = vadd.f32 %v2073_v28, %v10557_v7  ;;  %v4126_v10 = vadd.f32 %v3772_v48, %v3358_v17  ;;  %3699 = vperm.xlu0 %7502, %v7649_v47   ;;  %v14142_v39 = vld [vmem:[#allocation110_spill] sm:$0xff]  ;;  %v14147_v63 = vld [vmem:[#allocation297_spill] sm:$0xff] }
 0x3b4   : > { %v4127_v31 = vadd.f32 %v3772_v48, %v3359_v19  ;;  %v10613_v46 = vmul.f32 %v14106_v0, %v14127_v42  ;;  %v10617_v6 = vmul.f32 %v14105_v44, %v14139_v49  ;;  %v10621_v9 = vmul.f32 %v14106_v0, %v14139_v49  ;;  %v14152_v56 = vld [vmem:[#allocation141_spill] sm:$0xff]  ;;  %v14153_v47 = vld [vmem:[#allocation194_spill] sm:$0xff] }
 0x3b5   : > { %v10625_v7 = vmul.f32 %v14105_v44, %v14142_v39  ;;  %v2980_v61 = vmul.f32 %v9278_v32, %v14144_v1  ;;  %v2981_v42 = vmul.f32 %v9280_v16, %v14144_v1  ;;  %v3360_v8 = vadd.f32 %v3104_v62, %v2328_v59  ;;  %v7652_v17 = vld [vmem:[%s7795_s8 + $0xf8] sm:$0xff] }
 0x3b6   : > { %14138 = vst [vmem:[#allocation274_spill] sm:$0xff] %v10613_v46  ;;  %14140 = vst [vmem:[#allocation115_spill] sm:$0xff] %v10617_v6  ;;  %v3361_v24 = vadd.f32 %v3105_v29, %v2329_v11  ;;  %v4002_v33 = vadd.f32 %v14145_v34, %v3234_v23  ;;  %v4003_v22 = vadd.f32 %v14145_v34, %v3235_v43  ;;  %v4382_v26 = vmul.f32 0.01, %v4126_v10  ;;  %v14224_v46 = vld [vmem:[#allocation308_spill] sm:$0xff] }
 0x3b7   : > { %14141 = vst [vmem:[#allocation120_spill] sm:$0xff] %v10621_v9  ;;  %14143 = vst [vmem:[#allocation119_spill] sm:$0xff] %v10625_v7  ;;  %v4383_v27 = vmul.f32 0.01, %v4127_v31  ;;  %3831 = vperm.xlu1 %7469, %v7650_v51   ;;  %v2204_v21 = vadd.f32 %v1948_v54, %v14146_v4  ;;  %v2205_v28 = vadd.f32 %v1949_v35, %v14147_v63  ;;  %3707 = vperm.xlu0 %7502, %v7651_v41   ;;  %v3528_v19 = vpop.permute.xlu1 %3527  ;;  %v14157_v41 = vld [vmem:[#allocation189_spill] sm:$0xff]  ;;  %v14206_v9 = vld [vmem:[#allocation150_spill] sm:$0xff] }
 0x3b8   : > { %v4128_v2 = vadd.f32 %v3776_v55, %v3360_v8  ;;  %v4129_v25 = vadd.f32 %v3776_v55, %v3361_v24  ;;  %v10639_v45 = vmul.f32 %v14106_v0, %v14142_v39  ;;  %v10643_v13 = vmul.f32 %v14105_v44, %v14149_v53  ;;  %v14154_v39 = vld [vmem:[#allocation24_spill] sm:$0xff] }
 0x3b9   : > { %v10647_v30 = vmul.f32 %v14105_v44, %v14151_v20  ;;  %v1298_v15 = vmul.f32 %v14105_v44, %v14152_v56  ;;  %v3236_v38 = vadd.f32 %v2980_v61, %v2204_v21  ;;  %v3237_v54 = vadd.f32 %v2981_v42, %v2205_v28  ;;  %v14155_v61 = vld [vmem:[#allocation188_spill] sm:$0xff]  ;;  %v2752_v42 = vpop.permute.xlu0 %2751 }
 0x3ba   : > { %14148 = vst [vmem:[#allocation124_spill] sm:$0xff] %v10639_v45  ;;  %14150 = vst [vmem:[#allocation242_spill] sm:$0xff] %v10643_v13  ;;  %v4384_v18 = vmul.f32 0.01, %v4128_v2  ;;  %v4385_v37 = vmul.f32 0.01, %v4129_v25  ;;  %v4638_v62 = vmax.f32 %v4126_v10, %v4382_v26  ;;  %v4639_v29 = vmax.f32 %v4127_v31, %v4383_v27 }
 0x3bb   : > { %3583 = vperm.xlu1 %7469, %v7652_v17   ;;  %v4259_v35 = vmul.f32 0.01, %v4003_v22  ;;  %v4258_v23 = vmul.f32 0.01, %v4002_v33  ;;  %v4004_v59 = vadd.f32 %v3528_v19, %v3236_v38  ;;  %v4005_v11 = vadd.f32 %v3528_v19, %v3237_v54  ;;  %3967 = vperm.xlu0 %7502, %v14153_v47   ;;  %v14160_v19 = vld [vmem:[#allocation302_spill] sm:$0xff]  ;;  %v14162_v47 = vld [vmem:[#allocation23_spill] sm:$0xff] }
 0x3bc   : > { %v4640_v43 = vmax.f32 %v4128_v2, %v4384_v18  ;;  %v4641_v48 = vmax.f32 %v4129_v25, %v4385_v37  ;;  %v1299_v49 = vmul.f32 %v14106_v0, %v14152_v56  ;;  %v1950_v1 = vmul.f32 %v9274_v14, %v14154_v39  ;;  %v14158_v37 = vld [vmem:[#allocation289_spill] sm:$0xff] }
 0x3bd   : > { %v2074_v10 = vmul.f32 %v9274_v14, %v14155_v61  ;;  %v2075_v31 = vmul.f32 %v14108_v57, %v14155_v61  ;;  %v4260_v8 = vmul.f32 0.01, %v4004_v59  ;;  %v4261_v24 = vmul.f32 0.01, %v4005_v11  ;;  %v10668_v2 = vpop.permute.xlu1 %2755 }
 0x3be   : > { %v4817_v34 = vpack.c.bf16 %v4641_v48, %v4639_v29  ;;  %v4816_v26 = vpack.c.bf16 %v4640_v43, %v4638_v62  ;;  %v1951_v27 = vmul.f32 %v14108_v57, %v14154_v39  ;;  %v3106_v51 = vmul.f32 %v9278_v32, %v10587_v40  ;;  %v14159_v29 = vld [vmem:[#allocation50_spill] sm:$0xff]  ;;  %v10684_v43 = vpop.permute.xlu0 %2759 }
 0x3bf   : > { %3835 = vperm.xlu1 %7469, %v10584_v50   ;;  %v4515_v55 = vmax.f32 %v4003_v22, %v4259_v35  ;;  %v4514_v4 = vmax.f32 %v4002_v33, %v4258_v23  ;;  %v3107_v21 = vmul.f32 %v9280_v16, %v10587_v40  ;;  %v4516_v63 = vmax.f32 %v4004_v59, %v4260_v8  ;;  %v14161_v59 = vld [vmem:[#allocation33_spill] sm:$0xff] }
 0x3c0   : > { %v4517_v28 = vmax.f32 %v4005_v11, %v4261_v24  ;;  %6226 = vmatprep.subr.bf16.mxu0 %v4817_v34  ;;  %v14156_v25 = vmov 0   ;;  %v2076_v56 = vmul.f32 %v9274_v14, %v14157_v41  ;;  %v2077_v18 = vmul.f32 %v14108_v57, %v14157_v41  ;;  %v14164_v34 = vld [vmem:[#allocation114_spill] sm:$0xff]  ;;  %v14169_v41 = vld [vmem:[#allocation255_spill] sm:$0xff] }
 0x3c1   : > { %7505 = vset.pattern.permute.xlu0 %v14156_v25  ;;  %v2982_v50 = vmul.f32 %v9278_v32, %v14158_v37  ;;  %v2983_v33 = vmul.f32 %v9280_v16, %v14158_v37  ;;  %6227 = vmatpush1.bf16.msra.mxu0 %v4816_v26  ;;  %v2330_v40 = vadd.f32 %v2074_v10, %v1298_v15 }
 0x3c2   : > { %v2331_v22 = vadd.f32 %v2075_v31, %v1299_v49  ;;  %v4755_v38 = vpack.c.bf16 %v4517_v28, %v4515_v55  ;;  %v4754_v54 = vpack.c.bf16 %v4516_v63, %v4514_v4  ;;  %v1301_v62 = vmul.f32 %v14106_v0, %v14151_v20  ;;  %v3780_v61 = vpop.permute.xlu1 %3779  ;;  %v14167_v55 = vld [vmem:[#allocation28_spill] sm:$0xff]  ;;  %v10715_v37 = vpop.permute.xlu0 %2767 }
 0x3c3   : > { %v2206_v17 = vadd.f32 %v1950_v1, %v14159_v29  ;;  %v2207_v35 = vadd.f32 %v1951_v27, %v14160_v19  ;;  %v3108_v23 = vmul.f32 %v9278_v32, %v2752_v42  ;;  %7471 = vset.pattern.permute.xlu1 %v13775_v52  ;;  %v3109_v48 = vmul.f32 %v9280_v16, %v2752_v42  ;;  %v14166_v27 = vld [vmem:[#allocation142_spill] sm:$0xff] }
 0x3c4   : > { %2811 = vperm.xlu1 %7471, %v14161_v59   ;;  %5842 = vmatprep.subr.bf16.mxu1 %v4755_v38  ;;  %v3362_v15 = vadd.f32 %v3106_v51, %v2330_v40  ;;  %v3363_v11 = vadd.f32 %v3107_v21, %v2331_v22  ;;  %v1952_v20 = vmul.f32 %v9274_v14, %v14162_v47  ;;  %v7653_v40 = vld [vmem:[%s7795_s8 + $0x100] sm:$0xff]  ;;  %v14170_v38 = vld [vmem:[#allocation49_spill] sm:$0xff] }
 0x3c5   : > { %v1953_v49 = vmul.f32 %v14108_v57, %v14162_v47  ;;  %v3238_v39 = vadd.f32 %v2982_v50, %v2206_v17  ;;  %v3239_v1 = vadd.f32 %v2983_v33, %v2207_v35  ;;  %5843 = vmatpush1.bf16.msra.mxu1 %v4754_v54  ;;  %v2332_v10 = vadd.f32 %v2076_v56, %v10647_v30  ;;  %v14168_v30 = vld [vmem:[#allocation254_spill] sm:$0xff]  ;;  %v14172_v35 = vld [vmem:[#allocation143_spill] sm:$0xff] }
 0x3c6   : > { %v2333_v31 = vadd.f32 %v2077_v18, %v1301_v62  ;;  %v4130_v8 = vadd.f32 %v3780_v61, %v3362_v15  ;;  %v4131_v42 = vadd.f32 %v3780_v61, %v3363_v11  ;;  %v10696_v24 = vmul.f32 %v14106_v0, %v14149_v53  ;;  %v14171_v62 = vld [vmem:[#allocation301_spill] sm:$0xff]  ;;  %v14173_v15 = vld [vmem:[#allocation54_spill] sm:$0xff] }
 0x3c7   : > { %v10700_v26 = vmul.f32 %v14105_v44, %v14164_v34  ;;  %v10704_v51 = vmul.f32 %v14105_v44, %v14166_v27  ;;  %v1954_v4 = vmul.f32 %v9274_v14, %v14167_v55  ;;  %v2984_v21 = vmul.f32 %v9278_v32, %v14168_v30  ;;  %v3784_v22 = vpop.permute.xlu1 %3783 }
 0x3c8   : > { %14163 = vst [vmem:[#allocation123_spill] sm:$0xff] %v10696_v24  ;;  %v2985_v63 = vmul.f32 %v9280_v16, %v14168_v30  ;;  %7472 = vset.pattern.permute.xlu1 %v13808_v36  ;;  %v3364_v53 = vadd.f32 %v3108_v23, %v2332_v10  ;;  %v3365_v28 = vadd.f32 %v3109_v48, %v2333_v31  ;;  %v4386_v50 = vmul.f32 0.01, %v4130_v8 }
 0x3c9   : > { %14165 = vst [vmem:[#allocation18_spill] sm:$0xff] %v10700_v26  ;;  %v4006_v56 = vadd.f32 %v14169_v41, %v3238_v39  ;;  %v4007_v18 = vadd.f32 %v14169_v41, %v3239_v1  ;;  %v4387_v33 = vmul.f32 0.01, %v4131_v42  ;;  %3587 = vperm.xlu1 %7472, %v7653_v40   ;;  %v2208_v54 = vadd.f32 %v1952_v20, %v14170_v38  ;;  %v14174_v38 = vld [vmem:[#allocation304_spill] sm:$0xff] }
 0x3ca   : > { %v2209_v29 = vadd.f32 %v1953_v49, %v14171_v62  ;;  %v4132_v17 = vadd.f32 %v3784_v22, %v3364_v53  ;;  %v4133_v19 = vadd.f32 %v3784_v22, %v3365_v28  ;;  %v1302_v23 = vmul.f32 %v14105_v44, %v14172_v35  ;;  %v7654_v49 = vld [vmem:[%s7795_s8 + $0x108] sm:$0xff] }
 0x3cb   : > { %v1303_v48 = vmul.f32 %v14106_v0, %v14172_v35  ;;  %v1955_v59 = vmul.f32 %v14108_v57, %v14167_v55  ;;  %v2210_v11 = vadd.f32 %v1954_v4, %v14173_v15  ;;  %v3240_v1 = vadd.f32 %v2984_v21, %v2208_v54  ;;  %v3536_v31 = vpop.permute.xlu1 %3535  ;;  %v14175_v55 = vld [vmem:[#allocation190_spill] sm:$0xff] }
 0x3cc   : > { %v4388_v47 = vmul.f32 0.01, %v4132_v17  ;;  %v4389_v39 = vmul.f32 0.01, %v4133_v19  ;;  %v3241_v61 = vadd.f32 %v2985_v63, %v2209_v29  ;;  %v4642_v20 = vmax.f32 %v4130_v8, %v4386_v50  ;;  %v14176_v8 = vld [vmem:[#allocation14_spill] sm:$0xff]  ;;  %v10735_v63 = vpop.permute.xlu0 %2775 }
 0x3cd   : > { %v4643_v10 = vmax.f32 %v4131_v42, %v4387_v33  ;;  %3591 = vperm.xlu1 %7472, %v7654_v49   ;;  %v4263_v30 = vmul.f32 0.01, %v4007_v18  ;;  %v4262_v53 = vmul.f32 0.01, %v4006_v56  ;;  %v4008_v40 = vadd.f32 %v3536_v31, %v3240_v1  ;;  %v10745_v1 = vld [vmem:[%s7795_s8 + $0x318] sm:$0xff] }
 0x3ce   : > { %v4644_v28 = vmax.f32 %v4132_v17, %v4388_v47  ;;  %v4645_v41 = vmax.f32 %v4133_v19, %v4389_v39  ;;  %v4009_v22 = vadd.f32 %v3536_v31, %v3241_v61  ;;  %v2211_v62 = vadd.f32 %v1955_v59, %v14174_v38 }
 0x3cf   : > { %v2078_v4 = vmul.f32 %v9274_v14, %v14175_v55  ;;  %v2079_v21 = vmul.f32 %v14108_v57, %v14175_v55  ;;  %v2986_v42 = vmul.f32 %v9278_v32, %v14176_v8  ;;  %v4264_v50 = vmul.f32 0.01, %v4008_v40 }
 0x3d0   : > { %v4265_v33 = vmul.f32 0.01, %v4009_v22  ;;  %v4819_v54 = vpack.c.bf16 %v4645_v41, %v4643_v10  ;;  %v4818_v29 = vpack.c.bf16 %v4644_v28, %v4642_v20  ;;  %v2987_v17 = vmul.f32 %v9280_v16, %v14176_v8  ;;  %v10748_v61 = vpop.permute.xlu1 %2763  ;;  %v10753_v20 = vld [vmem:[%s12994_s2] sm:$0xff]  ;;  %v14177_v10 = vld [vmem:[#allocation191_spill] sm:$0xff]  ;;  %v10772_v38 = vpop.permute.xlu0 %2783 }
 0x3d1   : > { %v3110_v19 = vmul.f32 %v9278_v32, %v10668_v2  ;;  %7473 = vset.pattern.permute.xlu1 %v13775_v52  ;;  %v4519_v35 = vmax.f32 %v4007_v18, %v4263_v30  ;;  %v4518_v59 = vmax.f32 %v4006_v56, %v4262_v53  ;;  %v3111_v15 = vmul.f32 %v9280_v16, %v10668_v2  ;;  %v10758_v56 = vld [vmem:[%s12994_s2 + $0x20] sm:$0xff] }
 0x3d2   : > { %v4520_v47 = vmax.f32 %v4008_v40, %v4264_v50  ;;  %v4521_v39 = vmax.f32 %v4009_v22, %v4265_v33  ;;  %2823 = vperm.xlu1 %7473, %v10745_v1   ;;  %6228 = vmatprep.subr.bf16.mxu0 %v4819_v54  ;;  %v2334_v2 = vadd.f32 %v2078_v4, %v1302_v23 }
 0x3d3   : > { %v2335_v18 = vadd.f32 %v2079_v21, %v1303_v48  ;;  %v2080_v49 = vmul.f32 %v9274_v14, %v14177_v10  ;;  %v2081_v31 = vmul.f32 %v14108_v57, %v14177_v10  ;;  %6229 = vmatpush1.bf16.msra.mxu0 %v4818_v29  ;;  %v7018_v41 = vcombine.high %v10753_v20, %v10758_v56  ;;  %v14185_v10 = vld [vmem:[#allocation118_spill] sm:$0xff] }
 0x3d4   : > { %v4757_v30 = vpack.c.bf16 %v4521_v39, %v4519_v35  ;;  %v4756_v53 = vpack.c.bf16 %v4520_v47, %v4518_v59  ;;  %v1305_v23 = vmul.f32 %v14106_v0, %v14166_v27  ;;  %v3242_v48 = vadd.f32 %v2986_v42, %v2210_v11  ;;  %v14179_v27 = vld [vmem:[#allocation27_spill] sm:$0xff]  ;;  %v14183_v35 = vld [vmem:[#allocation257_spill] sm:$0xff] }
 0x3d5   : > { %v3243_v40 = vadd.f32 %v2987_v17, %v2211_v62  ;;  %v3112_v22 = vmul.f32 %v9278_v32, %v10684_v43  ;;  %v3113_v55 = vmul.f32 %v9280_v16, %v10684_v43  ;;  %v3366_v4 = vadd.f32 %v3110_v19, %v2334_v2  ;;  %v7656_v42 = vld [vmem:[%s7795_s8 + $0x308] sm:$0xff]  ;;  %v3788_v50 = vpop.permute.xlu1 %3787  ;;  %5858 = vmatprep.mubr.bf16.mxu1 %v7018_v41  ;;  %v14180_v17 = vld [vmem:[#allocation117_spill] sm:$0xff] }
 0x3d6   : > { %7474 = vset.pattern.permute.xlu1 %v13808_v36  ;;  %5844 = vmatprep.subr.bf16.mxu1 %v4757_v30  ;;  %v3367_v21 = vadd.f32 %v3111_v15, %v2335_v18  ;;  %v10779_v8 = vmul.f32 %v14106_v0, %v14164_v34  ;;  %v1956_v11 = vmul.f32 %v9274_v14, %v14179_v27 }
 0x3d7   : > { %v1957_v62 = vmul.f32 %v14108_v57, %v14179_v27  ;;  %3847 = vperm.xlu1 %7474, %v7656_v42   ;;  %5845 = vmatpush1.bf16.msra.mxu1 %v4756_v53  ;;  %v2336_v43 = vadd.f32 %v2080_v49, %v10704_v51  ;;  %v2337_v33 = vadd.f32 %v2081_v31, %v1305_v23  ;;  %v14184_v51 = vld [vmem:[#allocation256_spill] sm:$0xff]  ;;  %v10813_v53 = vpop.permute.xlu0 %2791  ;;  %v14189_v27 = vld [vmem:[#allocation303_spill] sm:$0xff] }
 0x3d8   : > { %14178 = vst [vmem:[#allocation335_spill] sm:$0xff] %v10779_v8  ;;  %v4134_v54 = vadd.f32 %v3788_v50, %v3366_v4  ;;  %v4135_v29 = vadd.f32 %v3788_v50, %v3367_v21  ;;  %v10789_v34 = vmul.f32 %v14105_v44, %v14180_v17  ;;  %v10793_v19 = vmul.f32 %v14106_v0, %v14180_v17  ;;  %v14187_v31 = vld [vmem:[#allocation144_spill] sm:$0xff]  ;;  %v14188_v4 = vld [vmem:[#allocation53_spill] sm:$0xff] }
 0x3d9   : > { %v10796_v59 = vadd.f32 %v14183_v35, %v3242_v48  ;;  %v10799_v15 = vadd.f32 %v14183_v35, %v3243_v40  ;;  %v2988_v47 = vmul.f32 %v9278_v32, %v14184_v51  ;;  %v2989_v39 = vmul.f32 %v9280_v16, %v14184_v51  ;;  %v7657_v48 = vld [vmem:[%s7795_s8 + $0x110] sm:$0xff]  ;;  %v3792_v40 = vpop.permute.xlu1 %3791  ;;  %v14190_v50 = vld [vmem:[#allocation145_spill] sm:$0xff] }
 0x3da   : > { %14181 = vst [vmem:[#allocation336_spill] sm:$0xff] %v10789_v34  ;;  %14182 = vst [vmem:[#allocation243_spill] sm:$0xff] %v10793_v19  ;;  %v3368_v2 = vadd.f32 %v3112_v22, %v2336_v43  ;;  %v3369_v18 = vadd.f32 %v3113_v55, %v2337_v33  ;;  %v10807_v49 = vmul.f32 %v14105_v44, %v14185_v10  ;;  %v4390_v41 = vmul.f32 0.01, %v4134_v54  ;;  %v14191_v34 = vld [vmem:[#allocation32_spill] sm:$0xff] }
 0x3db   : > { %v10811_v30 = vmul.f32 %v14105_v44, %v14187_v31  ;;  %v4391_v23 = vmul.f32 0.01, %v4135_v29  ;;  %3595 = vperm.xlu1 %7474, %v7657_v48   ;;  %v2212_v21 = vadd.f32 %v1956_v11, %v14188_v4  ;;  %v2213_v22 = vadd.f32 %v1957_v62, %v14189_v27  ;;  %v10827_v11 = vld [vmem:[%s12994_s2 + $0x10] sm:$0xff]  ;;  %v10840_v27 = vld [vmem:[%s7795_s8 + $0x320] sm:$0xff] }
 0x3dc   : > { %14186 = vst [vmem:[#allocation340_spill] sm:$0xff] %v10807_v49  ;;  %v4136_v55 = vadd.f32 %v3792_v40, %v3368_v2  ;;  %v4137_v42 = vadd.f32 %v3792_v40, %v3369_v18  ;;  %v1306_v43 = vmul.f32 %v14105_v44, %v14190_v50  ;;  %v1307_v33 = vmul.f32 %v14106_v0, %v14190_v50  ;;  %v10832_v62 = vld [vmem:[%s12994_s2 + $0x30] sm:$0xff] }
 0x3dd   : > { %v4267_v17 = vmul.f32 0.01, %v10799_v15  ;;  %v4266_v35 = vmul.f32 0.01, %v10796_v59  ;;  %v3244_v28 = vadd.f32 %v2988_v47, %v2212_v21  ;;  %v3245_v19 = vadd.f32 %v2989_v39, %v2213_v22  ;;  %v3544_v40 = vpop.permute.xlu1 %3543 }
 0x3de   : > { %v4392_v51 = vmul.f32 0.01, %v4136_v55  ;;  %v4393_v48 = vmul.f32 0.01, %v4137_v42  ;;  %v4646_v2 = vmax.f32 %v4134_v54, %v4390_v41  ;;  %v4647_v18 = vmax.f32 %v4135_v29, %v4391_v23  ;;  %v14192_v41 = vld [vmem:[#allocation192_spill] sm:$0xff] }
 0x3df   : > { %7475 = vset.pattern.permute.xlu1 %v13775_v52  ;;  %v7022_v47 = vcombine.high %v10827_v11, %v10832_v62  ;;  %v4012_v22 = vadd.f32 %v3544_v40, %v3244_v28  ;;  %v4013_v50 = vadd.f32 %v3544_v40, %v3245_v19  ;;  %v1958_v54 = vmul.f32 %v9274_v14, %v14191_v34 }
 0x3e0   : > { %v4648_v39 = vmax.f32 %v4136_v55, %v4392_v51  ;;  %v4649_v21 = vmax.f32 %v4137_v42, %v4393_v48  ;;  %2827 = vperm.xlu1 %7475, %v10840_v27   ;;  %v1959_v29 = vmul.f32 %v14108_v57, %v14191_v34  ;;  %v2082_v23 = vmul.f32 %v9274_v14, %v14192_v41  ;;  %v10851_v55 = vpop.permute.xlu0 %2799  ;;  %v14193_v48 = vld [vmem:[#allocation193_spill] sm:$0xff] }
 0x3e1   : > { %v2083_v4 = vmul.f32 %v14108_v57, %v14192_v41  ;;  %6244 = vmatprep.mubr.bf16.mxu0 %v7022_v47  ;;  %v4268_v42 = vmul.f32 0.01, %v4012_v22  ;;  %v4269_v51 = vmul.f32 0.01, %v4013_v50  ;;  %v2084_v40 = vmul.f32 %v9274_v14, %v14193_v48 }
 0x3e2   : > { %v4821_v28 = vpack.c.bf16 %v4649_v21, %v4647_v18  ;;  %v4820_v19 = vpack.c.bf16 %v4648_v39, %v4646_v2  ;;  %v3114_v34 = vmul.f32 %v9278_v32, %v10748_v61  ;;  %v4523_v49 = vmax.f32 %v10799_v15, %v4267_v17  ;;  %v10862_v13 = vpop.permute.xlu1 %2771  ;;  %v14194_v18 = vld [vmem:[#allocation294_spill] sm:$0xff] }
 0x3e3   : > { %v4522_v10 = vmax.f32 %v10796_v59, %v4266_v35  ;;  %v3115_v41 = vmul.f32 %v9280_v16, %v10748_v61  ;;  %v4524_v24 = vmax.f32 %v4012_v22, %v4268_v42  ;;  %v4525_v47 = vmax.f32 %v4013_v50, %v4269_v51  ;;  %v7659_v59 = vld [vmem:[%s7795_s8 + $0x310] sm:$0xff]  ;;  %v14195_v50 = vld [vmem:[#allocation58_spill] sm:$0xff]  ;;  %v14196_v51 = vld [vmem:[#allocation307_spill] sm:$0xff] }
 0x3e4   : > { %7476 = vset.pattern.permute.xlu1 %v13808_v36  ;;  %6230 = vmatprep.subr.bf16.mxu0 %v4821_v28  ;;  %v2085_v2 = vmul.f32 %v14108_v57, %v14193_v48  ;;  %v2990_v39 = vmul.f32 %v9278_v32, %v14194_v18  ;;  %v2991_v15 = vmul.f32 %v9280_v16, %v14194_v18  ;;  %v14197_v48 = vld [vmem:[#allocation31_spill] sm:$0xff]  ;;  %v10877_v25 = vpop.permute.xlu0 %2807 }
 0x3e5   : > { %3851 = vperm.xlu1 %7476, %v7659_v59   ;;  %6231 = vmatpush1.bf16.msra.mxu0 %v4820_v19  ;;  %v2338_v61 = vadd.f32 %v2082_v23, %v1306_v43  ;;  %v2339_v17 = vadd.f32 %v2083_v4, %v1307_v33  ;;  %v4759_v35 = vpack.c.bf16 %v4525_v47, %v4523_v49  ;;  %v14198_v47 = vld [vmem:[#allocation146_spill] sm:$0xff] }
 0x3e6   : > { %v4758_v21 = vpack.c.bf16 %v4524_v24, %v4522_v10  ;;  %v1309_v22 = vmul.f32 %v14106_v0, %v14187_v31  ;;  %v2214_v42 = vadd.f32 %v1958_v54, %v14195_v50  ;;  %v2215_v28 = vadd.f32 %v1959_v29, %v14196_v51 }
 0x3e7   : > { %v1960_v8 = vmul.f32 %v9274_v14, %v14197_v48  ;;  %v3116_v18 = vmul.f32 %v9278_v32, %v10715_v37  ;;  %v3117_v43 = vmul.f32 %v9280_v16, %v10715_v37  ;;  %5846 = vmatprep.subr.bf16.mxu1 %v4759_v35  ;;  %v3370_v24 = vadd.f32 %v3114_v34, %v2338_v61  ;;  %v14201_v61 = vld [vmem:[#allocation259_spill] sm:$0xff] }
 0x3e8   : > { %v3371_v10 = vadd.f32 %v3115_v41, %v2339_v17  ;;  %v1961_v49 = vmul.f32 %v14108_v57, %v14197_v48  ;;  %v3246_v31 = vadd.f32 %v2990_v39, %v2214_v42  ;;  %v3247_v33 = vadd.f32 %v2991_v15, %v2215_v28  ;;  %v3796_v4 = vpop.permute.xlu1 %3795  ;;  %5847 = vmatpush1.bf16.msra.mxu1 %v4758_v21  ;;  %v14199_v41 = vld [vmem:[#allocation147_spill] sm:$0xff]  ;;  %v14200_v15 = vld [vmem:[#allocation258_spill] sm:$0xff]  ;;  %v10905_v21 = vpop.permute.xlu0 %2815  ;;  %v14202_v28 = vld [vmem:[#allocation57_spill] sm:$0xff] }
 0x3e9   : > { %3855 = vperm.xlu1 %7476, %v10745_v1   ;;  %v2340_v54 = vadd.f32 %v2084_v40, %v10811_v30  ;;  %v2341_v29 = vadd.f32 %v2085_v2, %v1309_v22  ;;  %v4138_v23 = vadd.f32 %v3796_v4, %v3370_v24  ;;  %v10889_v37 = vmul.f32 %v14105_v44, %v14198_v47  ;;  %v7660_v42 = vld [vmem:[%s7795_s8 + $0x128] sm:$0xff]  ;;  %v14203_v24 = vld [vmem:[#allocation306_spill] sm:$0xff] }
 0x3ea   : > { %v4139_v19 = vadd.f32 %v3796_v4, %v3371_v10  ;;  %v10893_v34 = vmul.f32 %v14106_v0, %v14198_v47  ;;  %v1310_v39 = vmul.f32 %v14105_v44, %v14199_v41  ;;  %v1311_v1 = vmul.f32 %v14106_v0, %v14199_v41  ;;  %v14204_v41 = vld [vmem:[#allocation148_spill] sm:$0xff] }
 0x3eb   : > { %v2992_v30 = vmul.f32 %v9278_v32, %v14200_v15  ;;  %v2993_v40 = vmul.f32 %v9280_v16, %v14200_v15  ;;  %v3372_v2 = vadd.f32 %v3116_v18, %v2340_v54  ;;  %v3373_v59 = vadd.f32 %v3117_v43, %v2341_v29 }
 0x3ec   : > { %v4014_v17 = vadd.f32 %v14201_v61, %v3246_v31  ;;  %v4015_v35 = vadd.f32 %v14201_v61, %v3247_v33  ;;  %v4394_v22 = vmul.f32 0.01, %v4138_v23  ;;  %v4395_v50 = vmul.f32 0.01, %v4139_v19  ;;  %v3800_v51 = vpop.permute.xlu1 %3799  ;;  %v14205_v31 = vld [vmem:[#allocation149_spill] sm:$0xff] }
 0x3ed   : > { %3607 = vperm.xlu1 %7476, %v7660_v42   ;;  %v2216_v48 = vadd.f32 %v1960_v8, %v14202_v28  ;;  %v2217_v10 = vadd.f32 %v1961_v49, %v14203_v24  ;;  %v4140_v4 = vadd.f32 %v3800_v51, %v3372_v2  ;;  %v4141_v47 = vadd.f32 %v3800_v51, %v3373_v59 }
 0x3ee   : > { %v10912_v18 = vmul.f32 %v14105_v44, %v14204_v41  ;;  %v10916_v43 = vmul.f32 %v14106_v0, %v14204_v41  ;;  %v10920_v33 = vmul.f32 %v14105_v44, %v14205_v31  ;;  %v10924_v8 = vmul.f32 %v14106_v0, %v14205_v31  ;;  %v10928_v41 = vld [vmem:[%s7795_s8 + $0x330] sm:$0xff] }
 0x3ef   : > { %v4396_v49 = vmul.f32 0.01, %v4140_v4  ;;  %v4397_v54 = vmul.f32 0.01, %v4141_v47  ;;  %v3248_v29 = vadd.f32 %v2992_v30, %v2216_v48  ;;  %v3249_v15 = vadd.f32 %v2993_v40, %v2217_v10  ;;  %v14207_v30 = vld [vmem:[#allocation36_spill] sm:$0xff] }
 0x3f0   : > { %v4650_v2 = vmax.f32 %v4138_v23, %v4394_v22  ;;  %v4651_v59 = vmax.f32 %v4139_v19, %v4395_v50  ;;  %v3552_v61 = vpop.permute.xlu1 %3551  ;;  %v4271_v42 = vmul.f32 0.01, %v4015_v35  ;;  %v4270_v51 = vmul.f32 0.01, %v4014_v17  ;;  %v14208_v19 = vld [vmem:[#allocation195_spill] sm:$0xff]  ;;  %v10941_v50 = vpop.permute.xlu0 %2819 }
 0x3f1   : > { %7477 = vset.pattern.permute.xlu1 %v13775_v52  ;;  %v4652_v28 = vmax.f32 %v4140_v4, %v4396_v49  ;;  %v4653_v24 = vmax.f32 %v4141_v47, %v4397_v54  ;;  %v4016_v26 = vadd.f32 %v3552_v61, %v3248_v29  ;;  %v4017_v31 = vadd.f32 %v3552_v61, %v3249_v15 }
 0x3f2   : > { %2835 = vperm.xlu1 %7477, %v10928_v41   ;;  %v10933_v6 = vmul.f32 %v14105_v44, %v14206_v9  ;;  %v1962_v23 = vmul.f32 %v9274_v14, %v14207_v30  ;;  %v2086_v40 = vmul.f32 %v9274_v14, %v14208_v19  ;;  %v2087_v22 = vmul.f32 %v14108_v57, %v14208_v19 }
 0x3f3   : > { %14209 = vst [vmem:[#allocation128_spill] sm:$0xff] %v10941_v50  ;;  %v4272_v48 = vmul.f32 0.01, %v4016_v26  ;;  %v4273_v10 = vmul.f32 0.01, %v4017_v31  ;;  %v4823_v4 = vpack.c.bf16 %v4653_v24, %v4651_v59  ;;  %v4822_v47 = vpack.c.bf16 %v4652_v28, %v4650_v2  ;;  %v14210_v59 = vld [vmem:[#allocation151_spill] sm:$0xff] }
 0x3f4   : > { %v1963_v49 = vmul.f32 %v14108_v57, %v14207_v30  ;;  %v3118_v54 = vmul.f32 %v9278_v32, %v10862_v13  ;;  %v4527_v29 = vmax.f32 %v4015_v35, %v4271_v42  ;;  %v4526_v15 = vmax.f32 %v4014_v17, %v4270_v51 }
 0x3f5   : > { %v3119_v61 = vmul.f32 %v9280_v16, %v10862_v13  ;;  %v4528_v45 = vmax.f32 %v4016_v26, %v4272_v48  ;;  %v4529_v7 = vmax.f32 %v4017_v31, %v4273_v10  ;;  %v10950_v19 = vpop.permute.xlu1 %2779  ;;  %6232 = vmatprep.subr.bf16.mxu0 %v4823_v4  ;;  %v10954_v2 = vmul.f32 %v14106_v0, %v14206_v9  ;;  %v14211_v13 = vld [vmem:[#allocation305_spill] sm:$0xff]  ;;  %v14212_v31 = vld [vmem:[#allocation152_spill] sm:$0xff] }
 0x3f6   : > { %7478 = vset.pattern.permute.xlu1 %v13808_v36  ;;  %v10958_v28 = vmul.f32 %v14105_v44, %v14210_v59  ;;  %v2342_v35 = vadd.f32 %v2086_v40, %v1310_v39  ;;  %v2343_v17 = vadd.f32 %v2087_v22, %v1311_v1  ;;  %v2994_v26 = vmul.f32 %v9278_v32, %v14211_v13  ;;  %v14213_v1 = vld [vmem:[#allocation196_spill] sm:$0xff]  ;;  %v10977_v40 = vpop.permute.xlu0 %2831  ;;  %v14215_v22 = vld [vmem:[#allocation62_spill] sm:$0xff] }
 0x3f7   : > { %3859 = vperm.xlu1 %7478, %v10840_v27   ;;  %v2995_v42 = vmul.f32 %v9280_v16, %v14211_v13  ;;  %6233 = vmatpush1.bf16.msra.mxu0 %v4822_v47  ;;  %v4761_v51 = vpack.c.bf16 %v4529_v7, %v4527_v29  ;;  %v4760_v24 = vpack.c.bf16 %v4528_v45, %v4526_v15  ;;  %v14216_v7 = vld [vmem:[#allocation309_spill] sm:$0xff] }
 0x3f8   : > { %v10967_v9 = vmul.f32 %v14106_v0, %v14210_v59  ;;  %v10971_v39 = vmul.f32 %v14105_v44, %v14212_v31  ;;  %v2088_v27 = vmul.f32 %v9274_v14, %v14213_v1  ;;  %v2089_v30 = vmul.f32 %v14108_v57, %v14213_v1  ;;  %14214 = vst [vmem:[#allocation127_spill] sm:$0xff] %v10977_v40  ;;  %v7662_v59 = vld [vmem:[%s7795_s8 + $0x328] sm:$0xff] }
 0x3f9   : > { %v2218_v48 = vadd.f32 %v1962_v23, %v14215_v22  ;;  %v2219_v45 = vadd.f32 %v1963_v49, %v14216_v7  ;;  %5848 = vmatprep.subr.bf16.mxu1 %v4761_v51  ;;  %v3374_v10 = vadd.f32 %v3118_v54, %v2342_v35  ;;  %v3375_v4 = vadd.f32 %v3119_v61, %v2343_v17  ;;  %v14217_v61 = vld [vmem:[#allocation35_spill] sm:$0xff]  ;;  %v14220_v7 = vld [vmem:[#allocation260_spill] sm:$0xff] }
 0x3fa   : > { %v10983_v47 = vmul.f32 %v14106_v0, %v14212_v31  ;;  %v3120_v29 = vmul.f32 %v9278_v32, %v10735_v63  ;;  %v3121_v15 = vmul.f32 %v9280_v16, %v10735_v63  ;;  %v3804_v13 = vpop.permute.xlu1 %3803  ;;  %5849 = vmatpush1.bf16.msra.mxu1 %v4760_v24  ;;  %v1964_v35 = vmul.f32 %v9274_v14, %v14217_v61  ;;  %v14218_v63 = vld [vmem:[#allocation153_spill] sm:$0xff] }
 0x3fb   : > { %3863 = vperm.xlu1 %7478, %v7662_v59   ;;  %v3250_v23 = vadd.f32 %v2994_v26, %v2218_v48  ;;  %v3251_v49 = vadd.f32 %v2995_v42, %v2219_v45  ;;  %v4142_v51 = vadd.f32 %v3804_v13, %v3374_v10  ;;  %v4143_v54 = vadd.f32 %v3804_v13, %v3375_v4  ;;  %v14219_v42 = vld [vmem:[#allocation154_spill] sm:$0xff]  ;;  %v14222_v59 = vld [vmem:[#allocation261_spill] sm:$0xff] }
 0x3fc   : > { %v1965_v17 = vmul.f32 %v14108_v57, %v14217_v61  ;;  %v2344_v31 = vadd.f32 %v2088_v27, %v10889_v37  ;;  %v2345_v1 = vadd.f32 %v2089_v30, %v10893_v34  ;;  %v10998_v22 = vmul.f32 %v14105_v44, %v14218_v63  ;;  %v11016_v27 = vpop.permute.xlu0 %2839  ;;  %v7663_v30 = vld [vmem:[%s7795_s8 + $0x138] sm:$0xff] }
 0x3fd   : > { %v11002_v26 = vmul.f32 %v14106_v0, %v14218_v63  ;;  %v11006_v24 = vmul.f32 %v14105_v44, %v14219_v42  ;;  %v11010_v48 = vmul.f32 %v14106_v0, %v14219_v42  ;;  %v2996_v37 = vmul.f32 %v9278_v32, %v14220_v7  ;;  %14221 = vst [vmem:[#allocation338_spill] sm:$0xff] %v11016_v27 }
 0x3fe   : > { %v2997_v34 = vmul.f32 %v9280_v16, %v14220_v7  ;;  %v3808_v45 = vpop.permute.xlu1 %3807  ;;  %v3376_v10 = vadd.f32 %v3120_v29, %v2344_v31  ;;  %v3377_v4 = vadd.f32 %v3121_v15, %v2345_v1  ;;  %v4018_v13 = vadd.f32 %v14222_v59, %v3250_v23  ;;  %v14226_v15 = vld [vmem:[#allocation156_spill] sm:$0xff] }
 0x3ff   : > { %3615 = vperm.xlu1 %7478, %v7663_v30   ;;  %v4019_v61 = vadd.f32 %v14222_v59, %v3251_v49  ;;  %v4398_v63 = vmul.f32 0.01, %v4142_v51  ;;  %v4399_v42 = vmul.f32 0.01, %v4143_v54  ;;  %v2220_v5 = vadd.f32 %v1964_v35, %v14223_v3  ;;  %v11041_v30 = vld [vmem:[%s7795_s8 + $0x340] sm:$0xff] }
 0x400   : > { %v2221_v12 = vadd.f32 %v1965_v17, %v14224_v46  ;;  %v4144_v58 = vadd.f32 %v3808_v45, %v3376_v10  ;;  %v4145_v7 = vadd.f32 %v3808_v45, %v3377_v4  ;;  %v11025_v27 = vmul.f32 %v14105_v44, %v14225_v60  ;;  %v11044_v4 = vpop.permute.xlu0 %2847 }
 0x401   : > { %v11029_v29 = vmul.f32 %v14106_v0, %v14225_v60  ;;  %v11033_v23 = vmul.f32 %v14105_v44, %v14226_v15  ;;  %v11037_v49 = vmul.f32 %v14106_v0, %v14226_v15  ;;  %v3252_v35 = vadd.f32 %v2996_v37, %v2220_v5  ;;  %14229 = vst [vmem:[#allocation131_spill] sm:$0xff] %v11044_v4  ;;  %v14231_v5 = vld [vmem:[#allocation40_spill] sm:$0xff] }
 0x402   : > { %v4400_v3 = vmul.f32 0.01, %v4144_v58  ;;  %v4401_v46 = vmul.f32 0.01, %v4145_v7  ;;  %v3253_v17 = vadd.f32 %v2997_v34, %v2221_v12  ;;  %v4654_v31 = vmax.f32 %v4142_v51, %v4398_v63  ;;  %v3560_v60 = vpop.permute.xlu1 %3559  ;;  %v14232_v51 = vld [vmem:[#allocation197_spill] sm:$0xff] }
 0x403   : > { %14227 = vst [vmem:[#allocation276_spill] sm:$0xff] %v11033_v23  ;;  %14228 = vst [vmem:[#allocation339_spill] sm:$0xff] %v11037_v49  ;;  %7479 = vset.pattern.permute.xlu1 %v13775_v52  ;;  %v4655_v1 = vmax.f32 %v4143_v54, %v4399_v42  ;;  %v4275_v45 = vmul.f32 0.01, %v4019_v61  ;;  %v4274_v10 = vmul.f32 0.01, %v4018_v13  ;;  %v4020_v40 = vadd.f32 %v3560_v60, %v3252_v35 }
 0x404   : > { %2843 = vperm.xlu1 %7479, %v11041_v30   ;;  %v4656_v59 = vmax.f32 %v4144_v58, %v4400_v3  ;;  %v4657_v15 = vmax.f32 %v4145_v7, %v4401_v46  ;;  %v4021_v50 = vadd.f32 %v3560_v60, %v3253_v17  ;;  %v14230_v49 = vld [vmem:[#allocation157_spill] sm:$0xff]  ;;  %v1966_v12 = vmul.f32 %v9274_v14, %v14231_v5 }
 0x405   : > { %v11048_v23 = vmul.f32 %v14105_v44, %v14230_v49  ;;  %v2090_v54 = vmul.f32 %v9274_v14, %v14232_v51  ;;  %v2091_v37 = vmul.f32 %v14108_v57, %v14232_v51  ;;  %v4276_v34 = vmul.f32 0.01, %v4020_v40 }
 0x406   : > { %v4277_v63 = vmul.f32 0.01, %v4021_v50  ;;  %v4825_v42 = vpack.c.bf16 %v4657_v15, %v4655_v1  ;;  %v4824_v58 = vpack.c.bf16 %v4656_v59, %v4654_v31  ;;  %v1967_v7 = vmul.f32 %v14108_v57, %v14231_v5  ;;  %v14233_v31 = vld [vmem:[#allocation198_spill] sm:$0xff]  ;;  %v14234_v15 = vld [vmem:[#allocation316_spill] sm:$0xff] }
 0x407   : > { %v3122_v3 = vmul.f32 %v9278_v32, %v10950_v19  ;;  %v4531_v46 = vmax.f32 %v4019_v61, %v4275_v45  ;;  %v4530_v35 = vmax.f32 %v4018_v13, %v4274_v10  ;;  %v3123_v17 = vmul.f32 %v9280_v16, %v10950_v19  ;;  %v14236_v5 = vld [vmem:[#allocation66_spill] sm:$0xff] }
 0x408   : > { %7480 = vset.pattern.permute.xlu1 %v13808_v36  ;;  %v4532_v60 = vmax.f32 %v4020_v40, %v4276_v34  ;;  %v4533_v4 = vmax.f32 %v4021_v50, %v4277_v63  ;;  %v11064_v51 = vpop.permute.xlu1 %2787  ;;  %6234 = vmatprep.subr.bf16.mxu0 %v4825_v42  ;;  %v2092_v1 = vmul.f32 %v9274_v14, %v14233_v31  ;;  %v11076_v40 = vpop.permute.xlu0 %2855  ;;  %v14237_v63 = vld [vmem:[#allocation313_spill] sm:$0xff] }
 0x409   : > { %3867 = vperm.xlu1 %7480, %v10928_v41   ;;  %v2093_v59 = vmul.f32 %v14108_v57, %v14233_v31  ;;  %v2998_v13 = vmul.f32 %v9278_v32, %v14234_v15  ;;  %v2999_v19 = vmul.f32 %v9280_v16, %v14234_v15  ;;  %6235 = vmatpush1.bf16.msra.mxu0 %v4824_v58 }
 0x40a   : > { %v2346_v50 = vadd.f32 %v2090_v54, %v10920_v33  ;;  %v2347_v41 = vadd.f32 %v2091_v37, %v10924_v8  ;;  %14235 = vst [vmem:[#allocation344_spill] sm:$0xff] %v11076_v40  ;;  %v4763_v61 = vpack.c.bf16 %v4533_v4, %v4531_v46  ;;  %v4762_v45 = vpack.c.bf16 %v4532_v60, %v4530_v35  ;;  %v7665_v54 = vld [vmem:[%s7795_s8 + $0x338] sm:$0xff]  ;;  %v14238_v37 = vld [vmem:[#allocation39_spill] sm:$0xff] }
 0x40b   : > { %v11080_v10 = vmul.f32 %v14106_v0, %v14230_v49  ;;  %v2222_v34 = vadd.f32 %v1966_v12, %v14236_v5  ;;  %v2223_v42 = vadd.f32 %v1967_v7, %v14237_v63  ;;  %v3124_v31 = vmul.f32 %v9278_v32, %v10772_v38 }
 0x40c   : > { %v3125_v33 = vmul.f32 %v9280_v16, %v10772_v38  ;;  %5850 = vmatprep.subr.bf16.mxu1 %v4763_v61  ;;  %v3378_v8 = vadd.f32 %v3122_v3, %v2346_v50  ;;  %v3379_v4 = vadd.f32 %v3123_v17, %v2347_v41  ;;  %v1968_v58 = vmul.f32 %v9274_v14, %v14238_v37  ;;  %v14239_v61 = vld [vmem:[#allocation158_spill] sm:$0xff]  ;;  %v14241_v50 = vld [vmem:[#allocation159_spill] sm:$0xff] }
 0x40d   : > { %3871 = vperm.xlu1 %7480, %v7665_v54   ;;  %v1969_v49 = vmul.f32 %v14108_v57, %v14238_v37  ;;  %v3254_v12 = vadd.f32 %v2998_v13, %v2222_v34  ;;  %v3255_v7 = vadd.f32 %v2999_v19, %v2223_v42  ;;  %v3812_v46 = vpop.permute.xlu1 %3811  ;;  %5851 = vmatpush1.bf16.msra.mxu1 %v4762_v45  ;;  %v7666_v41 = vld [vmem:[%s7795_s8 + $0x148] sm:$0xff]  ;;  %v14245_v37 = vld [vmem:[#allocation65_spill] sm:$0xff] }
 0x40e   : > { %v2348_v35 = vadd.f32 %v2092_v1, %v10912_v18  ;;  %v2349_v38 = vadd.f32 %v2093_v59, %v10916_v43  ;;  %v4146_v60 = vadd.f32 %v3812_v46, %v3378_v8  ;;  %v4147_v15 = vadd.f32 %v3812_v46, %v3379_v4  ;;  %v14242_v18 = vld [vmem:[#allocation262_spill] sm:$0xff]  ;;  %v11115_v59 = vpop.permute.xlu0 %2863  ;;  %v14244_v34 = vld [vmem:[#allocation263_spill] sm:$0xff] }
 0x40f   : > { %v11097_v3 = vmul.f32 %v14105_v44, %v14239_v61  ;;  %v11101_v17 = vmul.f32 %v14106_v0, %v14239_v61  ;;  %v11105_v13 = vmul.f32 %v14105_v44, %v14241_v50  ;;  %v11109_v19 = vmul.f32 %v14106_v0, %v14241_v50  ;;  %14243 = vst [vmem:[#allocation343_spill] sm:$0xff] %v11115_v59  ;;  %v14246_v61 = vld [vmem:[#allocation312_spill] sm:$0xff] }
 0x410   : > { %v3000_v43 = vmul.f32 %v9278_v32, %v14242_v18  ;;  %v3001_v1 = vmul.f32 %v9280_v16, %v14242_v18  ;;  %v3380_v45 = vadd.f32 %v3124_v31, %v2348_v35  ;;  %v3381_v5 = vadd.f32 %v3125_v33, %v2349_v38  ;;  %v14250_v33 = vld [vmem:[#allocation161_spill] sm:$0xff] }
 0x411   : > { %14240 = vst [vmem:[#allocation342_spill] sm:$0xff] %v11101_v17  ;;  %3623 = vperm.xlu1 %7480, %v7666_v41   ;;  %v4022_v63 = vadd.f32 %v14244_v34, %v3254_v12  ;;  %v4023_v42 = vadd.f32 %v14244_v34, %v3255_v7  ;;  %v4402_v54 = vmul.f32 0.01, %v4146_v60  ;;  %v4403_v8 = vmul.f32 0.01, %v4147_v15  ;;  %v3816_v4 = vpop.permute.xlu1 %3815  ;;  %v14247_v17 = vld [vmem:[#allocation160_spill] sm:$0xff] }
 0x412   : > { %v2224_v46 = vadd.f32 %v1968_v58, %v14245_v37  ;;  %v2225_v50 = vadd.f32 %v1969_v49, %v14246_v61  ;;  %v4148_v40 = vadd.f32 %v3816_v4, %v3380_v45  ;;  %v4149_v18 = vadd.f32 %v3816_v4, %v3381_v5  ;;  %v11140_v5 = vld [vmem:[%s7795_s8 + $0x350] sm:$0xff]  ;;  %v11143_v37 = vpop.permute.xlu0 %2871 }
 0x413   : > { %v11124_v59 = vmul.f32 %v14105_v44, %v14247_v17  ;;  %v11128_v31 = vmul.f32 %v14106_v0, %v14247_v17  ;;  %v11132_v12 = vmul.f32 %v14105_v44, %v14250_v33  ;;  %v11136_v7 = vmul.f32 %v14106_v0, %v14250_v33  ;;  %14253 = vst [vmem:[#allocation244_spill] sm:$0xff] %v11143_v37 }
 0x414   : > { %v4404_v58 = vmul.f32 0.01, %v4148_v40  ;;  %v4405_v49 = vmul.f32 0.01, %v4149_v18  ;;  %v3256_v35 = vadd.f32 %v3000_v43, %v2224_v46  ;;  %v3257_v38 = vadd.f32 %v3001_v1, %v2225_v50  ;;  %v14256_v43 = vld [vmem:[#allocation44_spill] sm:$0xff] }
 0x415   : > { %14248 = vst [vmem:[#allocation181_spill] sm:$0xff] %v11124_v59  ;;  %14249 = vst [vmem:[#allocation182_spill] sm:$0xff] %v11128_v31  ;;  %7481 = vset.pattern.permute.xlu1 %v13775_v52  ;;  %v4658_v41 = vmax.f32 %v4146_v60, %v4402_v54  ;;  %v4659_v45 = vmax.f32 %v4147_v15, %v4403_v8  ;;  %v3568_v17 = vpop.permute.xlu1 %3567  ;;  %v4279_v34 = vmul.f32 0.01, %v4023_v42  ;;  %v4278_v4 = vmul.f32 0.01, %v4022_v63 }
 0x416   : > { %14251 = vst [vmem:[#allocation278_spill] sm:$0xff] %v11132_v12  ;;  %14252 = vst [vmem:[#allocation183_spill] sm:$0xff] %v11136_v7  ;;  %2851 = vperm.xlu1 %7481, %v11140_v5   ;;  %v4660_v61 = vmax.f32 %v4148_v40, %v4404_v58  ;;  %v4661_v33 = vmax.f32 %v4149_v18, %v4405_v49  ;;  %v4024_v31 = vadd.f32 %v3568_v17, %v3256_v35  ;;  %v14254_v7 = vld [vmem:[#allocation162_spill] sm:$0xff]  ;;  %v14257_v15 = vld [vmem:[#allocation199_spill] sm:$0xff] }
 0x417   : > { %v4025_v59 = vadd.f32 %v3568_v17, %v3257_v38  ;;  %v11147_v12 = vmul.f32 %v14105_v44, %v14254_v7  ;;  %v1970_v60 = vmul.f32 %v9274_v14, %v14256_v43  ;;  %v2094_v1 = vmul.f32 %v9274_v14, %v14257_v15 }
 0x418   : > { %v2095_v54 = vmul.f32 %v14108_v57, %v14257_v15  ;;  %v4280_v8 = vmul.f32 0.01, %v4024_v31  ;;  %v4827_v50 = vpack.c.bf16 %v4661_v33, %v4659_v45  ;;  %v4826_v40 = vpack.c.bf16 %v4660_v61, %v4658_v41  ;;  %v14258_v41 = vld [vmem:[#allocation200_spill] sm:$0xff]  ;;  %v14259_v33 = vld [vmem:[#allocation326_spill] sm:$0xff] }
 0x419   : > { %14255 = vst [vmem:[#allocation245_spill] sm:$0xff] %v11147_v12  ;;  %v4281_v46 = vmul.f32 0.01, %v4025_v59  ;;  %v1971_v18 = vmul.f32 %v14108_v57, %v14256_v43  ;;  %v3126_v58 = vmul.f32 %v9278_v32, %v11064_v51  ;;  %v4535_v49 = vmax.f32 %v4023_v42, %v4279_v34  ;;  %v11175_v42 = vpop.permute.xlu0 %2879  ;;  %v14262_v43 = vld [vmem:[#allocation70_spill] sm:$0xff] }
 0x41a   : > { %7482 = vset.pattern.permute.xlu1 %v13808_v36  ;;  %v4534_v35 = vmax.f32 %v4022_v63, %v4278_v4  ;;  %v3127_v38 = vmul.f32 %v9280_v16, %v11064_v51  ;;  %v4536_v17 = vmax.f32 %v4024_v31, %v4280_v8  ;;  %v11163_v15 = vpop.permute.xlu1 %2795  ;;  %6236 = vmatprep.subr.bf16.mxu0 %v4827_v50  ;;  %v14274_v12 = vld [vmem:[#allocation318_spill] sm:$0xff] }
 0x41b   : > { %v4537_v37 = vmax.f32 %v4025_v59, %v4281_v46  ;;  %3875 = vperm.xlu1 %7482, %v11041_v30   ;;  %v2096_v45 = vmul.f32 %v9274_v14, %v14258_v41  ;;  %v2097_v61 = vmul.f32 %v14108_v57, %v14258_v41  ;;  %v3002_v63 = vmul.f32 %v9278_v32, %v14259_v33  ;;  %v14263_v46 = vld [vmem:[#allocation315_spill] sm:$0xff] }
 0x41c   : > { %v3003_v51 = vmul.f32 %v9280_v16, %v14259_v33  ;;  %6237 = vmatpush1.bf16.msra.mxu0 %v4826_v40  ;;  %v2350_v59 = vadd.f32 %v2094_v1, %v10958_v28  ;;  %v2351_v30 = vadd.f32 %v2095_v54, %v10967_v9  ;;  %14260 = vst [vmem:[#allocation246_spill] sm:$0xff] %v11175_v42  ;;  %v7668_v1 = vld [vmem:[%s7795_s8 + $0x348] sm:$0xff] }
 0x41d   : > { %v4765_v31 = vpack.c.bf16 %v4537_v37, %v4535_v49  ;;  %v4764_v34 = vpack.c.bf16 %v4536_v17, %v4534_v35  ;;  %v11179_v4 = vmul.f32 %v14106_v0, %v14254_v7  ;;  %v2226_v8 = vadd.f32 %v1970_v60, %v14262_v43  ;;  %v14264_v54 = vld [vmem:[#allocation43_spill] sm:$0xff] }
 0x41e   : > { %v2227_v50 = vadd.f32 %v1971_v18, %v14263_v46  ;;  %v3128_v41 = vmul.f32 %v9278_v32, %v10813_v53  ;;  %v3129_v28 = vmul.f32 %v9280_v16, %v10813_v53  ;;  %v3382_v9 = vadd.f32 %v3126_v58, %v2350_v59  ;;  %v14267_v59 = vld [vmem:[#allocation48_spill] sm:$0xff] }
 0x41f   : > { %14261 = vst [vmem:[#allocation346_spill] sm:$0xff] %v11179_v4  ;;  %3879 = vperm.xlu1 %7482, %v7668_v1   ;;  %5852 = vmatprep.subr.bf16.mxu1 %v4765_v31  ;;  %v3383_v37 = vadd.f32 %v3127_v38, %v2351_v30  ;;  %v1972_v40 = vmul.f32 %v9274_v14, %v14264_v54  ;;  %v3820_v49 = vpop.permute.xlu1 %3819  ;;  %v14265_v31 = vld [vmem:[#allocation163_spill] sm:$0xff]  ;;  %v14268_v30 = vld [vmem:[#allocation264_spill] sm:$0xff]  ;;  %v14273_v4 = vld [vmem:[#allocation74_spill] sm:$0xff] }
 0x420   : > { %v1973_v7 = vmul.f32 %v14108_v57, %v14264_v54  ;;  %v3258_v60 = vadd.f32 %v3002_v63, %v2226_v8  ;;  %v3259_v18 = vadd.f32 %v3003_v51, %v2227_v50  ;;  %5853 = vmatpush1.bf16.msra.mxu1 %v4764_v34  ;;  %v2352_v35 = vadd.f32 %v2096_v45, %v10933_v6  ;;  %v11210_v45 = vpop.permute.xlu0 %2887  ;;  %v14270_v8 = vld [vmem:[#allocation265_spill] sm:$0xff] }
 0x421   : > { %v2353_v53 = vadd.f32 %v2097_v61, %v10954_v2  ;;  %v4150_v17 = vadd.f32 %v3820_v49, %v3382_v9  ;;  %v4151_v33 = vadd.f32 %v3820_v49, %v3383_v37  ;;  %v11196_v58 = vmul.f32 %v14105_v44, %v14265_v31  ;;  %14269 = vst [vmem:[#allocation337_spill] sm:$0xff] %v11210_v45  ;;  %v7669_v61 = vld [vmem:[%s7795_s8 + $0x158] sm:$0xff] }
 0x422   : > { %v11200_v38 = vmul.f32 %v14106_v0, %v14265_v31  ;;  %v1974_v63 = vmul.f32 %v9274_v14, %v14267_v59  ;;  %v1975_v51 = vmul.f32 %v14108_v57, %v14267_v59  ;;  %v3004_v6 = vmul.f32 %v9278_v32, %v14268_v30  ;;  %v14271_v54 = vld [vmem:[#allocation69_spill] sm:$0xff]  ;;  %v14272_v31 = vld [vmem:[#allocation314_spill] sm:$0xff] }
 0x423   : > { %v3005_v2 = vmul.f32 %v9280_v16, %v14268_v30  ;;  %3631 = vperm.xlu1 %7482, %v7669_v61   ;;  %v3384_v34 = vadd.f32 %v3128_v41, %v2352_v35  ;;  %v3385_v43 = vadd.f32 %v3129_v28, %v2353_v53  ;;  %v4026_v46 = vadd.f32 %v14270_v8, %v3258_v60  ;;  %v3824_v37 = vpop.permute.xlu1 %3823  ;;  %v14275_v41 = vld [vmem:[#allocation47_spill] sm:$0xff] }
 0x424   : > { %14266 = vst [vmem:[#allocation348_spill] sm:$0xff] %v11200_v38  ;;  %v4027_v50 = vadd.f32 %v14270_v8, %v3259_v18  ;;  %v4406_v1 = vmul.f32 0.01, %v4150_v17  ;;  %v4407_v9 = vmul.f32 0.01, %v4151_v33  ;;  %v2228_v49 = vadd.f32 %v1972_v40, %v14271_v54 }
 0x425   : > { %v2229_v59 = vadd.f32 %v1973_v7, %v14272_v31  ;;  %v4152_v42 = vadd.f32 %v3824_v37, %v3384_v34  ;;  %v4153_v30 = vadd.f32 %v3824_v37, %v3385_v43  ;;  %v2230_v45 = vadd.f32 %v1974_v63, %v14273_v4  ;;  %v11225_v34 = vld [vmem:[%s7795_s8 + $0x360] sm:$0xff] }
 0x426   : > { %v2231_v61 = vadd.f32 %v1975_v51, %v14274_v12  ;;  %v1976_v28 = vmul.f32 %v9274_v14, %v14275_v41  ;;  %v1977_v60 = vmul.f32 %v14108_v57, %v14275_v41  ;;  %v3260_v53 = vadd.f32 %v3004_v6, %v2228_v49  ;;  %v11228_v51 = vpop.permute.xlu0 %2895  ;;  %v14277_v41 = vld [vmem:[#allocation73_spill] sm:$0xff] }
 0x427   : > { %v4408_v18 = vmul.f32 0.01, %v4152_v42  ;;  %v4409_v35 = vmul.f32 0.01, %v4153_v30  ;;  %7483 = vset.pattern.permute.xlu1 %v13775_v52  ;;  %v3261_v40 = vadd.f32 %v3005_v2, %v2229_v59  ;;  %v4662_v8 = vmax.f32 %v4150_v17, %v4406_v1  ;;  %v3576_v4 = vpop.permute.xlu1 %3575  ;;  %14276 = vst [vmem:[#allocation280_spill] sm:$0xff] %v11228_v51  ;;  %v14278_v6 = vld [vmem:[#allocation201_spill] sm:$0xff] }
 0x428   : > { %v4663_v7 = vmax.f32 %v4151_v33, %v4407_v9  ;;  %2859 = vperm.xlu1 %7483, %v11225_v34   ;;  %v4283_v12 = vmul.f32 0.01, %v4027_v50  ;;  %v4282_v63 = vmul.f32 0.01, %v4026_v46  ;;  %v4028_v54 = vadd.f32 %v3576_v4, %v3260_v53  ;;  %v14279_v2 = vld [vmem:[#allocation136_spill] sm:$0xff] }
 0x429   : > { %v4664_v43 = vmax.f32 %v4152_v42, %v4408_v18  ;;  %v4665_v37 = vmax.f32 %v4153_v30, %v4409_v35  ;;  %v4029_v31 = vadd.f32 %v3576_v4, %v3261_v40  ;;  %v11231_v38 = vadd.f32 %v1976_v28, %v14277_v41 }
 0x42a   : > { %v2098_v17 = vmul.f32 %v9274_v14, %v14278_v6  ;;  %v2099_v33 = vmul.f32 %v14108_v57, %v14278_v6  ;;  %v3006_v1 = vmul.f32 %v9278_v32, %v14279_v2  ;;  %v4284_v9 = vmul.f32 0.01, %v4028_v54 }
 0x42b   : > { %v4285_v49 = vmul.f32 0.01, %v4029_v31  ;;  %v4829_v59 = vpack.c.bf16 %v4665_v37, %v4663_v7  ;;  %v4828_v51 = vpack.c.bf16 %v4664_v43, %v4662_v8  ;;  %v3007_v42 = vmul.f32 %v9280_v16, %v14279_v2  ;;  %v14280_v8 = vld [vmem:[#allocation317_spill] sm:$0xff]  ;;  %v14281_v37 = vld [vmem:[#allocation202_spill] sm:$0xff] }
 0x42c   : > { %v3130_v30 = vmul.f32 %v9278_v32, %v11163_v15  ;;  %7484 = vset.pattern.permute.xlu1 %v13808_v36  ;;  %v4539_v28 = vmax.f32 %v4027_v50, %v4283_v12  ;;  %v4538_v18 = vmax.f32 %v4026_v46, %v4282_v63  ;;  %v3131_v35 = vmul.f32 %v9280_v16, %v11163_v15  ;;  %v2804_v4 = vpop.permute.xlu1 %2803  ;;  %v14282_v50 = vld [vmem:[#allocation204_spill] sm:$0xff] }
 0x42d   : > { %v4540_v53 = vmax.f32 %v4028_v54, %v4284_v9  ;;  %v4541_v40 = vmax.f32 %v4029_v31, %v4285_v49  ;;  %3883 = vperm.xlu1 %7484, %v11140_v5   ;;  %6238 = vmatprep.subr.bf16.mxu0 %v4829_v59  ;;  %v2233_v7 = vadd.f32 %v1977_v60, %v14280_v8  ;;  %v11256_v5 = vpop.permute.xlu0 %2903  ;;  %v14284_v49 = vld [vmem:[#allocation203_spill] sm:$0xff] }
 0x42e   : > { %v2354_v43 = vadd.f32 %v2098_v17, %v10998_v22  ;;  %v2100_v41 = vmul.f32 %v9274_v14, %v14281_v37  ;;  %v2101_v46 = vmul.f32 %v14108_v57, %v14281_v37  ;;  %6239 = vmatpush1.bf16.msra.mxu0 %v4828_v51  ;;  %v2355_v15 = vadd.f32 %v2099_v33, %v11002_v26  ;;  %v7671_v17 = vld [vmem:[%s7795_s8 + $0x358] sm:$0xff] }
 0x42f   : > { %v2104_v12 = vmul.f32 %v9274_v14, %v14282_v50  ;;  %14283 = vst [vmem:[#allocation345_spill] sm:$0xff] %v11256_v5  ;;  %v4767_v63 = vpack.c.bf16 %v4541_v40, %v4539_v28  ;;  %v4766_v54 = vpack.c.bf16 %v4540_v53, %v4538_v18  ;;  %v2105_v60 = vmul.f32 %v14108_v57, %v14282_v50  ;;  %v14285_v28 = vld [vmem:[#allocation266_spill] sm:$0xff] }
 0x430   : > { %v3262_v22 = vadd.f32 %v3006_v1, %v2230_v45  ;;  %v3263_v31 = vadd.f32 %v3007_v42, %v2231_v61  ;;  %v3132_v6 = vmul.f32 %v9278_v32, %v10851_v55  ;;  %v3133_v51 = vmul.f32 %v9280_v16, %v10851_v55 }
 0x431   : > { %3887 = vperm.xlu1 %7484, %v7671_v17   ;;  %5854 = vmatprep.subr.bf16.mxu1 %v4767_v63  ;;  %v3386_v26 = vadd.f32 %v3130_v30, %v2354_v43  ;;  %v3387_v33 = vadd.f32 %v3131_v35, %v2355_v15  ;;  %v2356_v2 = vadd.f32 %v2100_v41, %v10971_v39  ;;  %v3828_v1 = vpop.permute.xlu1 %3827  ;;  %v14286_v35 = vld [vmem:[#allocation267_spill] sm:$0xff]  ;;  %v11287_v8 = vpop.permute.xlu0 %2911 }
 0x432   : > { %v2357_v9 = vadd.f32 %v2101_v46, %v10983_v47  ;;  %v3136_v45 = vmul.f32 %v9278_v32, %v10877_v25  ;;  %v3137_v61 = vmul.f32 %v9280_v16, %v10877_v25  ;;  %5855 = vmatpush1.bf16.msra.mxu1 %v4766_v54  ;;  %v2102_v55 = vmul.f32 %v9274_v14, %v14284_v49  ;;  %v7672_v43 = vld [vmem:[%s7795_s8 + $0x168] sm:$0xff] }
 0x433   : > { %v2103_v59 = vmul.f32 %v14108_v57, %v14284_v49  ;;  %v4154_v42 = vadd.f32 %v3828_v1, %v3386_v26  ;;  %v4155_v30 = vadd.f32 %v3828_v1, %v3387_v33  ;;  %v2360_v39 = vadd.f32 %v2104_v12, %v11006_v24  ;;  %14287 = vst [vmem:[#allocation299_spill] sm:$0xff] %v11287_v8  ;;  %v11301_v1 = vld [vmem:[%s7795_s8 + $0x370] sm:$0xff] }
 0x434   : > { %v2361_v47 = vadd.f32 %v2105_v60, %v11010_v48  ;;  %v3008_v18 = vmul.f32 %v9278_v32, %v14285_v28  ;;  %v11280_v53 = vadd.f32 %v14286_v35, %v3263_v31  ;;  %v3009_v25 = vmul.f32 %v9280_v16, %v14285_v28 }
 0x435   : > { %v11285_v40 = vadd.f32 %v14286_v35, %v3262_v22  ;;  %3639 = vperm.xlu1 %7484, %v7672_v43   ;;  %v3388_v37 = vadd.f32 %v3132_v6, %v2356_v2  ;;  %v3389_v24 = vadd.f32 %v3133_v51, %v2357_v9  ;;  %v3392_v41 = vadd.f32 %v3136_v45, %v2360_v39  ;;  %v14288_v2 = vld [vmem:[#allocation269_spill] sm:$0xff] }
 0x436   : > { %v3393_v48 = vadd.f32 %v3137_v61, %v2361_v47  ;;  %v4410_v46 = vmul.f32 0.01, %v4154_v42  ;;  %v4411_v15 = vmul.f32 0.01, %v4155_v30  ;;  %v3832_v50 = vpop.permute.xlu1 %3831  ;;  %v2358_v12 = vadd.f32 %v2102_v55, %v11025_v27 }
 0x437   : > { %v2359_v63 = vadd.f32 %v2103_v59, %v11029_v29  ;;  %v4156_v54 = vadd.f32 %v3832_v50, %v3388_v37  ;;  %v4157_v60 = vadd.f32 %v3832_v50, %v3389_v24  ;;  %v3134_v22 = vmul.f32 %v9278_v32, %v2804_v4 }
 0x438   : > { %v3135_v31 = vmul.f32 %v9280_v16, %v2804_v4  ;;  %v3264_v17 = vadd.f32 %v3008_v18, %v11231_v38  ;;  %v4287_v6 = vmul.f32 0.01, %v11280_v53  ;;  %v3265_v33 = vadd.f32 %v3009_v25, %v2233_v7  ;;  %v11304_v4 = vpop.permute.xlu0 %2919  ;;  %v14290_v7 = vld [vmem:[#allocation164_spill] sm:$0xff] }
 0x439   : > { %v4412_v51 = vmul.f32 0.01, %v4156_v54  ;;  %v4413_v26 = vmul.f32 0.01, %v4157_v60  ;;  %7485 = vset.pattern.permute.xlu1 %v13775_v52  ;;  %v4286_v27 = vmul.f32 0.01, %v11285_v40  ;;  %v4160_v29 = vadd.f32 %v14288_v2, %v3392_v41 }
 0x43a   : > { %v4161_v9 = vadd.f32 %v14288_v2, %v3393_v48  ;;  %v4666_v45 = vmax.f32 %v4154_v42, %v4410_v46  ;;  %v4667_v61 = vmax.f32 %v4155_v30, %v4411_v15  ;;  %2867 = vperm.xlu1 %7485, %v11301_v1   ;;  %v3584_v38 = vpop.permute.xlu1 %3583  ;;  %14289 = vst [vmem:[#allocation247_spill] sm:$0xff] %v11304_v4  ;;  %v14295_v2 = vld [vmem:[#allocation341_spill] sm:$0xff]  ;;  %v14317_v4 = vld [vmem:[#allocation276_spill] sm:$0xff] }
 0x43b   : > { %v4668_v49 = vmax.f32 %v4156_v54, %v4412_v51  ;;  %v4669_v55 = vmax.f32 %v4157_v60, %v4413_v26  ;;  %v4032_v59 = vadd.f32 %v3584_v38, %v3264_v17  ;;  %v4033_v39 = vadd.f32 %v3584_v38, %v3265_v33  ;;  %v14294_v33 = vld [vmem:[#allocation166_spill] sm:$0xff] }
 0x43c   : > { %v11308_v47 = vmul.f32 %v14105_v44, %v14290_v7  ;;  %v11312_v28 = vmul.f32 %v14106_v0, %v14290_v7  ;;  %v3390_v42 = vadd.f32 %v3134_v22, %v2358_v12  ;;  %v3391_v30 = vadd.f32 %v3135_v31, %v2359_v63  ;;  %v14291_v12 = vld [vmem:[#allocation165_spill] sm:$0xff]  ;;  %v14292_v31 = vld [vmem:[#allocation52_spill] sm:$0xff]  ;;  %v11330_v17 = vpop.permute.xlu0 %2927 }
 0x43d   : > { %v4288_v18 = vmul.f32 0.01, %v4032_v59  ;;  %v4289_v35 = vmul.f32 0.01, %v4033_v39  ;;  %v4831_v25 = vpack.c.bf16 %v4669_v55, %v4667_v61  ;;  %v4830_v43 = vpack.c.bf16 %v4668_v49, %v4666_v45  ;;  %14293 = vst [vmem:[#allocation349_spill] sm:$0xff] %v11330_v17 }
 0x43e   : > { %7486 = vset.pattern.permute.xlu1 %v13808_v36  ;;  %v3836_v37 = vpop.permute.xlu1 %3835  ;;  %v4543_v24 = vmax.f32 %v11280_v53, %v4287_v6  ;;  %v4542_v41 = vmax.f32 %v11285_v40, %v4286_v27  ;;  %v4417_v48 = vmul.f32 0.01, %v4161_v9  ;;  %v4416_v46 = vmul.f32 0.01, %v4160_v29 }
 0x43f   : > { %v4544_v15 = vmax.f32 %v4032_v59, %v4288_v18  ;;  %v4545_v50 = vmax.f32 %v4033_v39, %v4289_v35  ;;  %v4158_v54 = vadd.f32 %v3836_v37, %v3390_v42  ;;  %v4159_v60 = vadd.f32 %v3836_v37, %v3391_v30  ;;  %3891 = vperm.xlu1 %7486, %v11225_v34   ;;  %v7674_v59 = vld [vmem:[%s7795_s8 + $0x368] sm:$0xff] }
 0x440   : > { %v11320_v63 = vmul.f32 %v14105_v44, %v14291_v12  ;;  %v11324_v22 = vmul.f32 %v14106_v0, %v14291_v12  ;;  %v1978_v53 = vmul.f32 %v9274_v14, %v14292_v31  ;;  %v1979_v40 = vmul.f32 %v14108_v57, %v14292_v31  ;;  %6240 = vmatprep.subr.bf16.mxu0 %v4831_v25  ;;  %v14296_v30 = vld [vmem:[#allocation167_spill] sm:$0xff] }
 0x441   : > { %v4414_v6 = vmul.f32 0.01, %v4158_v54  ;;  %v4415_v34 = vmul.f32 0.01, %v4159_v60  ;;  %6241 = vmatpush1.bf16.msra.mxu0 %v4830_v43  ;;  %v4769_v51 = vpack.c.bf16 %v4545_v50, %v4543_v24  ;;  %v4768_v26 = vpack.c.bf16 %v4544_v15, %v4542_v41  ;;  %v14297_v35 = vld [vmem:[#allocation51_spill] sm:$0xff]  ;;  %v14298_v43 = vld [vmem:[#allocation78_spill] sm:$0xff] }
 0x442   : > { %v11334_v27 = vmul.f32 %v14105_v44, %v14294_v33  ;;  %v3010_v45 = vmul.f32 %v9278_v32, %v14295_v2  ;;  %v3011_v61 = vmul.f32 %v9280_v16, %v14295_v2  ;;  %v4673_v38 = vmax.f32 %v4161_v9, %v4417_v48  ;;  %v14299_v24 = vld [vmem:[#allocation320_spill] sm:$0xff] }
 0x443   : > { %v4670_v49 = vmax.f32 %v4158_v54, %v4414_v6  ;;  %v4671_v55 = vmax.f32 %v4159_v60, %v4415_v34  ;;  %3895 = vperm.xlu1 %7486, %v7674_v59   ;;  %v2812_v39 = vpop.permute.xlu1 %2811  ;;  %5856 = vmatprep.subr.bf16.mxu1 %v4769_v51  ;;  %v4672_v7 = vmax.f32 %v4160_v29, %v4416_v46  ;;  %v14300_v15 = vld [vmem:[#allocation168_spill] sm:$0xff]  ;;  %v14303_v51 = vld [vmem:[#allocation169_spill] sm:$0xff] }
 0x444   : > { %v11343_v42 = vmul.f32 %v14106_v0, %v14294_v33  ;;  %v11347_v18 = vmul.f32 %v14105_v44, %v14296_v30  ;;  %v1980_v25 = vmul.f32 %v9274_v14, %v14297_v35  ;;  %v1981_v9 = vmul.f32 %v14108_v57, %v14297_v35  ;;  %5857 = vmatpush1.bf16.msra.mxu1 %v4768_v26  ;;  %v14301_v60 = vld [vmem:[#allocation268_spill] sm:$0xff]  ;;  %v14304_v33 = vld [vmem:[#allocation205_spill] sm:$0xff] }
 0x445   : > { %v2234_v37 = vadd.f32 %v1978_v53, %v14298_v43  ;;  %v2235_v29 = vadd.f32 %v1979_v40, %v14299_v24  ;;  %v4833_v41 = vpack.c.bf16 %v4673_v38, %v4671_v55  ;;  %v4832_v48 = vpack.c.bf16 %v4672_v7, %v4670_v49  ;;  %v11371_v53 = vpop.permute.xlu0 %2935  ;;  %v7675_v40 = vld [vmem:[%s7795_s8 + $0x178] sm:$0xff] }
 0x446   : > { %v11357_v46 = vmul.f32 %v14106_v0, %v14296_v30  ;;  %v11361_v50 = vmul.f32 %v14105_v44, %v14300_v15  ;;  %v11365_v54 = vmul.f32 %v14106_v0, %v14300_v15  ;;  %v3012_v12 = vmul.f32 %v9278_v32, %v14301_v60  ;;  %14302 = vst [vmem:[#allocation248_spill] sm:$0xff] %v11371_v53  ;;  %v14306_v59 = vld [vmem:[#allocation77_spill] sm:$0xff] }
 0x447   : > { %v3013_v31 = vmul.f32 %v9280_v16, %v14301_v60  ;;  %3647 = vperm.xlu1 %7486, %v7675_v40   ;;  %6242 = vmatprep.subr.bf16.mxu0 %v4833_v41  ;;  %v3266_v6 = vadd.f32 %v3010_v45, %v2234_v37  ;;  %v3267_v34 = vadd.f32 %v3011_v61, %v2235_v29  ;;  %v14307_v45 = vld [vmem:[#allocation319_spill] sm:$0xff]  ;;  %v14308_v37 = vld [vmem:[#allocation170_spill] sm:$0xff] }
 0x448   : > { %v11376_v26 = vmul.f32 %v14105_v44, %v14303_v51  ;;  %v2106_v2 = vmul.f32 %v9274_v14, %v14304_v33  ;;  %v2107_v38 = vmul.f32 %v14108_v57, %v14304_v33  ;;  %v3588_v49 = vpop.permute.xlu1 %3587  ;;  %6243 = vmatpush1.bf16.msra.mxu0 %v4832_v48  ;;  %v14305_v55 = vcombine.low %v10753_v20, %v10758_v56  ;;  %v14311_v48 = vld [vmem:[#allocation56_spill] sm:$0xff]  ;;  %v14312_v33 = vld [vmem:[#allocation55_spill] sm:$0xff] }
 0x449   : > { %v2236_v7 = vadd.f32 %v1980_v25, %v14306_v59  ;;  %v2237_v61 = vadd.f32 %v1981_v9, %v14307_v45  ;;  %v4034_v30 = vadd.f32 %v3588_v49, %v3266_v6  ;;  %v4035_v35 = vadd.f32 %v3588_v49, %v3267_v34  ;;  %v11412_v6 = vld [vmem:[%s7795_s8 + $0x380] sm:$0xff] }
 0x44a   : > { %5859 = vmatmul.mubr.bf16.vlgmr.msra.gmra.mrb[0].mxu1 %v14305_v55  ;;  %v11389_v43 = vmul.f32 %v14106_v0, %v14303_v51  ;;  %v11393_v24 = vmul.f32 %v14105_v44, %v14308_v37  ;;  %v3138_v29 = vmul.f32 %v9278_v32, %v2812_v39  ;;  %v3139_v20 = vmul.f32 %v9280_v16, %v2812_v39 }
 0x44b   : > { %v11399_v56 = vmul.f32 %v14106_v0, %v14308_v37  ;;  %7487 = vset.pattern.permute.xlu1 %v13775_v52  ;;  %v3268_v25 = vadd.f32 %v3012_v12, %v2236_v7  ;;  %v3269_v9 = vadd.f32 %v3013_v31, %v2237_v61  ;;  %v14310_v41 = vcombine.low %v10827_v11, %v10832_v62  ;;  %v3844_v31 = vpop.permute.xlu0 %3843  ;;  %v14314_v61 = vld [vmem:[#allocation270_spill] sm:$0xff] }
 0x44c   : > { %v1982_v15 = vmul.f32 %v9274_v14, %v14311_v48  ;;  %v1983_v60 = vmul.f32 %v14108_v57, %v14311_v48  ;;  %v2362_v39 = vadd.f32 %v2106_v2, %v11048_v23  ;;  %v2363_v40 = vadd.f32 %v2107_v38, %v11080_v10  ;;  %2875 = vperm.xlu1 %7487, %v11412_v6   ;;  %v3592_v12 = vpop.permute.xlu1 %3591  ;;  %v14313_v2 = vld [vmem:[#allocation206_spill] sm:$0xff] }
 0x44d   : > { %14309 = vst [vmem:[#allocation238_spill] sm:$0xff] %v11399_v56  ;;  %6245 = vmatmul.mubr.bf16.vlgmr.msra.gmra.mrb[0].mxu0 %v14310_v41  ;;  %v4290_v34 = vmul.f32 0.01, %v4034_v30  ;;  %v4291_v51 = vmul.f32 0.01, %v4035_v35  ;;  %v4036_v11 = vadd.f32 %v3592_v12, %v3268_v25  ;;  %v4037_v62 = vadd.f32 %v3592_v12, %v3269_v9  ;;  %v14315_v12 = vld [vmem:[#allocation81_spill] sm:$0xff] }
 0x44e   : > { %v1984_v49 = vmul.f32 %v9274_v14, %v14312_v33  ;;  %v1985_v55 = vmul.f32 %v14108_v57, %v14312_v33  ;;  %v3394_v59 = vadd.f32 %v3138_v29, %v2362_v39  ;;  %v3395_v23 = vadd.f32 %v3139_v20, %v2363_v40 }
 0x44f   : > { %v2108_v10 = vmul.f32 %v9274_v14, %v14313_v2  ;;  %v2109_v38 = vmul.f32 %v14108_v57, %v14313_v2  ;;  %v4292_v7 = vmul.f32 0.01, %v4036_v11  ;;  %v4293_v45 = vmul.f32 0.01, %v4037_v62  ;;  %v14316_v2 = vld [vmem:[#allocation322_spill] sm:$0xff]  ;;  %v3600_v56 = vpop.permute.xlu0 %3599 }
 0x450   : > { %v3016_v37 = vmul.f32 %v9278_v32, %v14314_v61  ;;  %v3017_v25 = vmul.f32 %v9280_v16, %v14314_v61  ;;  %v3140_v9 = vmul.f32 %v9278_v32, %v10905_v21  ;;  %v3141_v29 = vmul.f32 %v9280_v16, %v10905_v21  ;;  %7488 = vset.pattern.permute.xlu1 %v13808_v36  ;;  %v14318_v21 = vld [vmem:[#allocation339_spill] sm:$0xff] }
 0x451   : > { %v4546_v20 = vmax.f32 %v4034_v30, %v4290_v34  ;;  %v4547_v41 = vmax.f32 %v4035_v35, %v4291_v51  ;;  %v4548_v48 = vmax.f32 %v4036_v11, %v4292_v7  ;;  %v4549_v39 = vmax.f32 %v4037_v62, %v4293_v45  ;;  %3899 = vperm.xlu1 %7488, %v11301_v1   ;;  %v11433_v40 = vpop.permute.xlu1 %2823  ;;  %v14319_v34 = vld [vmem:[#allocation171_spill] sm:$0xff] }
 0x452   : > { %v2240_v33 = vadd.f32 %v1984_v49, %v14315_v12  ;;  %v2241_v61 = vadd.f32 %v1985_v55, %v14316_v2  ;;  %v4162_v53 = vadd.f32 %v3844_v31, %v3394_v59  ;;  %v4163_v17 = vadd.f32 %v3844_v31, %v3395_v23  ;;  %v14320_v1 = vld [vmem:[#allocation347_spill] sm:$0xff] }
 0x453   : > { %v2364_v8 = vadd.f32 %v2108_v10, %v14317_v4  ;;  %v2365_v5 = vadd.f32 %v2109_v38, %v14318_v21  ;;  %v4771_v30 = vpack.c.bf16 %v4549_v39, %v4547_v41  ;;  %v4770_v35 = vpack.c.bf16 %v4548_v48, %v4546_v20  ;;  %v7677_v4 = vld [vmem:[%s7795_s8 + $0x378] sm:$0xff]  ;;  %v14321_v20 = vld [vmem:[#allocation82_spill] sm:$0xff]  ;;  %v14322_v48 = vld [vmem:[#allocation323_spill] sm:$0xff] }
 0x454   : > { %v11441_v51 = vmul.f32 %v14105_v44, %v14319_v34  ;;  %v3014_v11 = vmul.f32 %v9278_v32, %v14320_v1  ;;  %v3272_v62 = vadd.f32 %v3016_v37, %v2240_v33  ;;  %v3273_v49 = vadd.f32 %v3017_v25, %v2241_v61  ;;  %v7678_v33 = vld [vmem:[%s7795_s8 + $0x188] sm:$0xff] }
 0x455   : > { %v3015_v55 = vmul.f32 %v9280_v16, %v14320_v1  ;;  %v3396_v31 = vadd.f32 %v3140_v9, %v2364_v8  ;;  %v3397_v59 = vadd.f32 %v3141_v29, %v2365_v5  ;;  %3903 = vperm.xlu1 %7488, %v7677_v4   ;;  %6019 = vmatprep.subr.bf16.mxu1 %v4771_v30  ;;  %v4418_v38 = vmul.f32 0.01, %v4162_v53  ;;  %v14323_v5 = vld [vmem:[#allocation172_spill] sm:$0xff]  ;;  %v14324_v29 = vld [vmem:[#allocation173_spill] sm:$0xff] }
 0x456   : > { %v4040_v23 = vadd.f32 %v3600_v56, %v3272_v62  ;;  %v4041_v10 = vadd.f32 %v3600_v56, %v3273_v49  ;;  %v3848_v7 = vpop.permute.xlu1 %3847  ;;  %6020 = vmatpush1.bf16.msra.mxu1 %v4770_v35  ;;  %v4419_v45 = vmul.f32 0.01, %v4163_v17  ;;  %v2238_v41 = vadd.f32 %v1982_v15, %v14321_v20 }
 0x457   : > { %v2239_v37 = vadd.f32 %v1983_v60, %v14322_v48  ;;  %v4164_v25 = vadd.f32 %v3848_v7, %v3396_v31  ;;  %v4165_v39 = vadd.f32 %v3848_v7, %v3397_v59  ;;  %v11452_v8 = vmul.f32 %v14106_v0, %v14319_v34  ;;  %v14325_v7 = vld [vmem:[#allocation60_spill] sm:$0xff]  ;;  %v14326_v48 = vld [vmem:[#allocation207_spill] sm:$0xff] }
 0x458   : > { %v11456_v9 = vmul.f32 %v14105_v44, %v14323_v5  ;;  %v11460_v56 = vmul.f32 %v14106_v0, %v14323_v5  ;;  %v11464_v12 = vmul.f32 %v14105_v44, %v14324_v29  ;;  %v3270_v2 = vadd.f32 %v3014_v11, %v2238_v41 }
 0x459   : > { %v4420_v15 = vmul.f32 0.01, %v4164_v25  ;;  %v4421_v60 = vmul.f32 0.01, %v4165_v39  ;;  %3655 = vperm.xlu1 %7488, %v7678_v33   ;;  %v3271_v61 = vadd.f32 %v3015_v55, %v2239_v37  ;;  %v4296_v21 = vmul.f32 0.01, %v4040_v23 }
 0x45a   : > { %v4297_v30 = vmul.f32 0.01, %v4041_v10  ;;  %v3596_v35 = vpop.permute.xlu1 %3595  ;;  %v4675_v34 = vmax.f32 %v4163_v17, %v4419_v45  ;;  %v4674_v1 = vmax.f32 %v4162_v53, %v4418_v38  ;;  %v11469_v4 = vmul.f32 %v14106_v0, %v14324_v29  ;;  %v14327_v37 = vld [vmem:[#allocation59_spill] sm:$0xff] }
 0x45b   : > { %v4676_v62 = vmax.f32 %v4164_v25, %v4420_v15  ;;  %v4677_v49 = vmax.f32 %v4165_v39, %v4421_v60  ;;  %v4038_v31 = vadd.f32 %v3596_v35, %v3270_v2  ;;  %v4039_v59 = vadd.f32 %v3596_v35, %v3271_v61  ;;  %v14328_v39 = vld [vmem:[#allocation128_spill] sm:$0xff] }
 0x45c   : > { %v1986_v20 = vmul.f32 %v9274_v14, %v14325_v7  ;;  %v2110_v11 = vmul.f32 %v9274_v14, %v14326_v48  ;;  %v2111_v55 = vmul.f32 %v14108_v57, %v14326_v48  ;;  %v1987_v41 = vmul.f32 %v14108_v57, %v14325_v7  ;;  %v11487_v15 = vld [vmem:[%s7795_s8 + $0x390] sm:$0xff] }
 0x45d   : > { %v4294_v17 = vmul.f32 0.01, %v4038_v31  ;;  %v4295_v53 = vmul.f32 0.01, %v4039_v59  ;;  %7489 = vset.pattern.permute.xlu1 %v13775_v52  ;;  %v4835_v38 = vpack.c.bf16 %v4677_v49, %v4675_v34  ;;  %v4834_v45 = vpack.c.bf16 %v4676_v62, %v4674_v1  ;;  %v14329_v34 = vld [vmem:[#allocation86_spill] sm:$0xff]  ;;  %v14330_v7 = vld [vmem:[#allocation208_spill] sm:$0xff] }
 0x45e   : > { %v1988_v25 = vmul.f32 %v9274_v14, %v14327_v37  ;;  %v3142_v5 = vmul.f32 %v9278_v32, %v14328_v39  ;;  %v3143_v29 = vmul.f32 %v9280_v16, %v14328_v39  ;;  %2883 = vperm.xlu1 %7489, %v11487_v15   ;;  %v4552_v60 = vmax.f32 %v4040_v23, %v4296_v21 }
 0x45f   : > { %v4553_v33 = vmax.f32 %v4041_v10, %v4297_v30  ;;  %v4550_v2 = vmax.f32 %v4038_v31, %v4294_v17  ;;  %v4551_v61 = vmax.f32 %v4039_v59, %v4295_v53  ;;  %v11490_v35 = vpop.permute.xlu1 %2827  ;;  %6405 = vmatprep.subr.bf16.mxu0 %v4835_v38  ;;  %v2242_v1 = vadd.f32 %v1986_v20, %v14329_v34  ;;  %v14331_v30 = vld [vmem:[#allocation325_spill] sm:$0xff]  ;;  %v14332_v59 = vld [vmem:[#allocation352_spill] sm:$0xff] }
 0x460   : > { %v1989_v62 = vmul.f32 %v14108_v57, %v14327_v37  ;;  %v2366_v49 = vadd.f32 %v2110_v11, %v11105_v13  ;;  %v2112_v48 = vmul.f32 %v9274_v14, %v14330_v7  ;;  %6406 = vmatpush1.bf16.msra.mxu0 %v4834_v45  ;;  %v2367_v39 = vadd.f32 %v2111_v55, %v11109_v19  ;;  %v14333_v53 = vld [vmem:[#allocation85_spill] sm:$0xff]  ;;  %v14334_v45 = vld [vmem:[#allocation64_spill] sm:$0xff] }
 0x461   : > { %v2113_v23 = vmul.f32 %v14108_v57, %v14330_v7  ;;  %v4773_v10 = vpack.c.bf16 %v4553_v33, %v4551_v61  ;;  %v4772_v21 = vpack.c.bf16 %v4552_v60, %v4550_v2  ;;  %v2243_v31 = vadd.f32 %v1987_v41, %v14331_v30  ;;  %v14338_v30 = vld [vmem:[#allocation324_spill] sm:$0xff] }
 0x462   : > { %v3018_v20 = vmul.f32 %v9278_v32, %v14332_v59  ;;  %v3019_v17 = vmul.f32 %v9280_v16, %v14332_v59  ;;  %v3398_v13 = vadd.f32 %v3142_v5, %v2366_v49  ;;  %7490 = vset.pattern.permute.xlu1 %v13808_v36  ;;  %v3399_v11 = vadd.f32 %v3143_v29, %v2367_v39  ;;  %v14335_v5 = vld [vmem:[#allocation63_spill] sm:$0xff] }
 0x463   : > { %v3144_v19 = vmul.f32 %v9278_v32, %v11433_v40  ;;  %v3145_v55 = vmul.f32 %v9280_v16, %v11433_v40  ;;  %3907 = vperm.xlu1 %7490, %v11412_v6   ;;  %6021 = vmatprep.subr.bf16.mxu1 %v4773_v10  ;;  %v2244_v38 = vadd.f32 %v1988_v25, %v14333_v53  ;;  %v14336_v40 = vld [vmem:[#allocation342_spill] sm:$0xff]  ;;  %v3604_v6 = vpop.permute.xlu0 %3603  ;;  %v14337_v49 = vld [vmem:[#allocation271_spill] sm:$0xff] }
 0x464   : > { %v1990_v41 = vmul.f32 %v9274_v14, %v14334_v45  ;;  %v1991_v37 = vmul.f32 %v14108_v57, %v14334_v45  ;;  %v1992_v29 = vmul.f32 %v9274_v14, %v14335_v5  ;;  %v3852_v60 = vpop.permute.xlu1 %3851  ;;  %6022 = vmatpush1.bf16.msra.mxu1 %v4772_v21  ;;  %v2368_v33 = vadd.f32 %v2112_v48, %v11097_v3  ;;  %v7680_v53 = vld [vmem:[%s7795_s8 + $0x388] sm:$0xff] }
 0x465   : > { %v2369_v2 = vadd.f32 %v2113_v23, %v14336_v40  ;;  %v4166_v61 = vadd.f32 %v3852_v60, %v3398_v13  ;;  %v4167_v34 = vadd.f32 %v3852_v60, %v3399_v11  ;;  %v1993_v25 = vmul.f32 %v14108_v57, %v14335_v5  ;;  %v14339_v60 = vld [vmem:[#allocation90_spill] sm:$0xff] }
 0x466   : > { %v3020_v7 = vmul.f32 %v9278_v32, %v14337_v49  ;;  %v3274_v39 = vadd.f32 %v3018_v20, %v2242_v1  ;;  %v3275_v10 = vadd.f32 %v3019_v17, %v2243_v31  ;;  %v2245_v59 = vadd.f32 %v1989_v62, %v14338_v30  ;;  %v14340_v31 = vld [vmem:[#allocation328_spill] sm:$0xff] }
 0x467   : > { %v3021_v21 = vmul.f32 %v9280_v16, %v14337_v49  ;;  %3911 = vperm.xlu1 %7490, %v7680_v53   ;;  %v3400_v3 = vadd.f32 %v3144_v19, %v2368_v33  ;;  %v3401_v48 = vadd.f32 %v3145_v55, %v2369_v2  ;;  %v4422_v11 = vmul.f32 0.01, %v4166_v61  ;;  %v4874_v19 = vld [vmem:[%s12994_s2 + $0x40] sm:$0xff]  ;;  %v14341_v33 = vld [vmem:[#allocation89_spill] sm:$0xff]  ;;  %v14342_v2 = vld [vmem:[#allocation327_spill] sm:$0xff] }
 0x468   : > { %v11529_v23 = vadd.f32 %v3604_v6, %v3274_v39  ;;  %v11531_v13 = vadd.f32 %v3604_v6, %v3275_v10  ;;  %v4423_v45 = vmul.f32 0.01, %v4167_v34  ;;  %v3856_v5 = vpop.permute.xlu1 %3855  ;;  %v11534_v1 = vadd.f32 %v1990_v41, %v14339_v60  ;;  %v4878_v55 = vld [vmem:[%s12994_s2 + $0x60] sm:$0xff]  ;;  %v7681_v10 = vld [vmem:[%s7795_s8 + $0x198] sm:$0xff] }
 0x469   : > { %v11537_v62 = vadd.f32 %v1991_v37, %v14340_v31  ;;  %v4168_v20 = vadd.f32 %v3856_v5, %v3400_v3  ;;  %v4169_v17 = vadd.f32 %v3856_v5, %v3401_v48  ;;  %v11546_v40 = vadd.f32 %v1992_v29, %v14341_v33 }
 0x46a   : > { %v11549_v6 = vadd.f32 %v1993_v25, %v14342_v2  ;;  %v3276_v41 = vadd.f32 %v3020_v7, %v2244_v38  ;;  %v7026_v49 = vcombine.high %v4874_v19, %v4878_v55  ;;  %v3277_v30 = vadd.f32 %v3021_v21, %v2245_v59  ;;  %v4876_v7 = vld [vmem:[%s12994_s2 + $0x50] sm:$0xff]  ;;  %v14343_v21 = vld [vmem:[#allocation209_spill] sm:$0xff] }
 0x46b   : > { %v4424_v37 = vmul.f32 0.01, %v4168_v20  ;;  %v4425_v39 = vmul.f32 0.01, %v4169_v17  ;;  %3663 = vperm.xlu1 %7490, %v7681_v10   ;;  %v7025_v53 = vcombine.low %v4874_v19, %v4878_v55  ;;  %v4298_v3 = vmul.f32 0.01, %v11529_v23 }
 0x46c   : > { %v4299_v48 = vmul.f32 0.01, %v11531_v13  ;;  %v4678_v5 = vmax.f32 %v4166_v61, %v4422_v11  ;;  %v4679_v60 = vmax.f32 %v4167_v34, %v4423_v45  ;;  %v3608_v31 = vpop.permute.xlu1 %3607  ;;  %5868 = vmatprep.mubr.bf16.mxu1 %v7026_v49  ;;  %v4880_v59 = vld [vmem:[%s12994_s2 + $0x70] sm:$0xff]  ;;  %v2114_v61 = vmul.f32 %v9274_v14, %v14343_v21  ;;  %v14344_v11 = vld [vmem:[#allocation210_spill] sm:$0xff] }
 0x46d   : > { %v4680_v29 = vmax.f32 %v4168_v20, %v4424_v37  ;;  %v4681_v33 = vmax.f32 %v4169_v17, %v4425_v39  ;;  %v4044_v25 = vadd.f32 %v3608_v31, %v3276_v41  ;;  %v4045_v38 = vadd.f32 %v3608_v31, %v3277_v30  ;;  %5869 = vmatmul.mubr.bf16.gmra.mrb[4].mxu1 %v7025_v53  ;;  %v11570_v37 = vld [vmem:[%s7795_s8 + $0x3a0] sm:$0xff] }
 0x46e   : > { %v2115_v34 = vmul.f32 %v14108_v57, %v14343_v21  ;;  %v2116_v45 = vmul.f32 %v9274_v14, %v14344_v11  ;;  %v7030_v20 = vcombine.high %v4876_v7, %v4880_v59  ;;  %v4554_v41 = vmax.f32 %v11529_v23, %v4298_v3  ;;  %v4882_v23 = vld [vmem:[%s12994_s2 + $0x80] sm:$0xff] }
 0x46f   : > { %v4300_v17 = vmul.f32 0.01, %v4044_v25  ;;  %v4301_v19 = vmul.f32 0.01, %v4045_v38  ;;  %7491 = vset.pattern.permute.xlu1 %v13775_v52  ;;  %v4837_v55 = vpack.c.bf16 %v4681_v33, %v4679_v60  ;;  %v4836_v2 = vpack.c.bf16 %v4680_v29, %v4678_v5  ;;  %v14345_v3 = vld [vmem:[#allocation278_spill] sm:$0xff]  ;;  %v14346_v29 = vld [vmem:[#allocation353_spill] sm:$0xff] }
 0x470   : > { %v4555_v49 = vmax.f32 %v11531_v13, %v4299_v48  ;;  %2891 = vperm.xlu1 %7491, %v11570_v37   ;;  %6254 = vmatprep.mubr.bf16.mxu0 %v7030_v20  ;;  %v7029_v39 = vcombine.low %v4876_v7, %v4880_v59  ;;  %v3146_v10 = vmul.f32 %v9278_v32, %v11490_v35  ;;  %v4886_v13 = vld [vmem:[%s12994_s2 + $0xa0] sm:$0xff]  ;;  %v14348_v20 = vld [vmem:[#allocation68_spill] sm:$0xff] }
 0x471   : > { %v3147_v30 = vmul.f32 %v9280_v16, %v11490_v35  ;;  %v4556_v53 = vmax.f32 %v4044_v25, %v4300_v17  ;;  %v4557_v31 = vmax.f32 %v4045_v38, %v4301_v19  ;;  %v11577_v60 = vpop.permute.xlu1 %2835  ;;  %6407 = vmatprep.subr.bf16.mxu0 %v4837_v55  ;;  %v2370_v48 = vadd.f32 %v2114_v61, %v14345_v3  ;;  %v14347_v25 = vld [vmem:[#allocation183_spill] sm:$0xff] }
 0x472   : > { %v2117_v5 = vmul.f32 %v14108_v57, %v14344_v11  ;;  %v3022_v35 = vmul.f32 %v9278_v32, %v14346_v29  ;;  %6408 = vmatpush1.bf16.msra.mxu0 %v4836_v2  ;;  %v7034_v33 = vcombine.high %v4882_v23, %v4886_v13  ;;  %v2371_v38 = vadd.f32 %v2115_v34, %v14347_v25  ;;  %v14349_v19 = vld [vmem:[#allocation127_spill] sm:$0xff]  ;;  %v3612_v34 = vpop.permute.xlu0 %3611 }
 0x473   : > { %v4775_v7 = vpack.c.bf16 %v4557_v31, %v4555_v49  ;;  %v4774_v59 = vpack.c.bf16 %v4556_v53, %v4554_v41  ;;  %6255 = vmatmul.mubr.bf16.gmra.mrb[4].mxu0 %v7029_v39  ;;  %v7033_v21 = vcombine.low %v4882_v23, %v4886_v13  ;;  %v1994_v17 = vmul.f32 %v9274_v14, %v14348_v20  ;;  %v4884_v49 = vld [vmem:[%s12994_s2 + $0x90] sm:$0xff]  ;;  %v14350_v31 = vld [vmem:[#allocation181_spill] sm:$0xff]  ;;  %v14352_v25 = vld [vmem:[#allocation67_spill] sm:$0xff] }
 0x474   : > { %v3023_v61 = vmul.f32 %v9280_v16, %v14346_v29  ;;  %v3148_v11 = vmul.f32 %v9278_v32, %v14349_v19  ;;  %7492 = vset.pattern.permute.xlu1 %v13808_v36  ;;  %5878 = vmatprep.mubr.bf16.mxu1 %v7034_v33  ;;  %v3149_v55 = vmul.f32 %v9280_v16, %v14349_v19  ;;  %v4888_v39 = vld [vmem:[%s12994_s2 + $0xb0] sm:$0xff]  ;;  %v7683_v19 = vld [vmem:[%s7795_s8 + $0x398] sm:$0xff] }
 0x475   : > { %3915 = vperm.xlu1 %7492, %v11487_v15   ;;  %6023 = vmatprep.subr.bf16.mxu1 %v4775_v7  ;;  %v3402_v2 = vadd.f32 %v3146_v10, %v2370_v48  ;;  %v3403_v41 = vadd.f32 %v3147_v30, %v2371_v38  ;;  %v1995_v53 = vmul.f32 %v14108_v57, %v14348_v20  ;;  %v14351_v10 = vld [vmem:[#allocation182_spill] sm:$0xff] }
 0x476   : > { %v2372_v23 = vadd.f32 %v2116_v45, %v14350_v31  ;;  %v3278_v13 = vadd.f32 %v3022_v35, %v11534_v1  ;;  %v3860_v3 = vpop.permute.xlu1 %3859  ;;  %6024 = vmatpush1.bf16.msra.mxu1 %v4774_v59  ;;  %v7038_v15 = vcombine.high %v4884_v49, %v4888_v39  ;;  %v2373_v30 = vadd.f32 %v2117_v5, %v14351_v10  ;;  %v14353_v1 = vld [vmem:[#allocation273_spill] sm:$0xff] }
 0x477   : > { %v4170_v48 = vadd.f32 %v3860_v3, %v3402_v2  ;;  %v4171_v29 = vadd.f32 %v3860_v3, %v3403_v41  ;;  %5879 = vmatmul.mubr.bf16.gmra.mrb[8].mxu1 %v7033_v21  ;;  %v7037_v33 = vcombine.low %v4884_v49, %v4888_v39  ;;  %v1996_v38 = vmul.f32 %v9274_v14, %v14352_v25  ;;  %v4890_v2 = vld [vmem:[%s12994_s2 + $0xc0] sm:$0xff]  ;;  %v14356_v10 = vld [vmem:[#allocation93_spill] sm:$0xff] }
 0x478   : > { %v1997_v7 = vmul.f32 %v14108_v57, %v14352_v25  ;;  %v3279_v45 = vadd.f32 %v3023_v61, %v11537_v62  ;;  %v11617_v20 = vadd.f32 %v3612_v34, %v3278_v13  ;;  %6264 = vmatprep.mubr.bf16.mxu0 %v7038_v15  ;;  %v3024_v35 = vmul.f32 %v9278_v32, %v14353_v1  ;;  %v4894_v62 = vld [vmem:[%s12994_s2 + $0xe0] sm:$0xff]  ;;  %v14357_v25 = vld [vmem:[#allocation329_spill] sm:$0xff] }
 0x479   : > { %v3025_v5 = vmul.f32 %v9280_v16, %v14353_v1  ;;  %v3404_v59 = vadd.f32 %v3148_v11, %v2372_v23  ;;  %v3405_v21 = vadd.f32 %v3149_v55, %v2373_v30  ;;  %3919 = vperm.xlu1 %7492, %v7683_v19   ;;  %v4426_v41 = vmul.f32 0.01, %v4170_v48  ;;  %v14354_v13 = vld [vmem:[#allocation94_spill] sm:$0xff]  ;;  %v14355_v55 = vld [vmem:[#allocation331_spill] sm:$0xff] }
 0x47a   : > { %v11630_v61 = vadd.f32 %v3612_v34, %v3279_v45  ;;  %v4427_v49 = vmul.f32 0.01, %v4171_v29  ;;  %v3864_v39 = vpop.permute.xlu1 %3863  ;;  %v7042_v31 = vcombine.high %v4890_v2, %v4894_v62  ;;  %v11633_v11 = vadd.f32 %v1994_v17, %v14354_v13  ;;  %v7684_v17 = vld [vmem:[%s7795_s8 + $0x1a8] sm:$0xff] }
 0x47b   : > { %v11636_v23 = vadd.f32 %v1995_v53, %v14355_v55  ;;  %v4172_v3 = vadd.f32 %v3864_v39, %v3404_v59  ;;  %v4173_v15 = vadd.f32 %v3864_v39, %v3405_v21  ;;  %6265 = vmatmul.mubr.bf16.gmra.mrb[8].mxu0 %v7037_v33  ;;  %v11639_v30 = vadd.f32 %v1996_v38, %v14356_v10  ;;  %v4892_v33 = vld [vmem:[%s12994_s2 + $0xd0] sm:$0xff] }
 0x47c   : > { %v11642_v34 = vadd.f32 %v1997_v7, %v14357_v25  ;;  %v4302_v45 = vmul.f32 0.01, %v11617_v20  ;;  %5888 = vmatprep.mubr.bf16.mxu1 %v7042_v31  ;;  %v7041_v1 = vcombine.low %v4890_v2, %v4894_v62  ;;  %v3280_v53 = vadd.f32 %v3024_v35, %v11546_v40  ;;  %v4896_v38 = vld [vmem:[%s12994_s2 + $0xf0] sm:$0xff] }
 0x47d   : > { %v4428_v19 = vmul.f32 0.01, %v4172_v3  ;;  %v4429_v44 = vmul.f32 0.01, %v4173_v15  ;;  %3671 = vperm.xlu1 %7492, %v7684_v17   ;;  %v3281_v59 = vadd.f32 %v3025_v5, %v11549_v6  ;;  %v4303_v7 = vmul.f32 0.01, %v11630_v61 }
 0x47e   : > { %v4682_v21 = vmax.f32 %v4170_v48, %v4426_v41  ;;  %v4683_v2 = vmax.f32 %v4171_v29, %v4427_v49  ;;  %v3616_v62 = vpop.permute.xlu1 %3615  ;;  %v7046_v39 = vcombine.high %v4892_v33, %v4896_v38  ;;  %v14358_v6 = vld [vmem:[#allocation211_spill] sm:$0xff]  ;;  %v14359_v10 = vld [vmem:[#allocation212_spill] sm:$0xff]  ;;  %v7045_v48 = vcombine.low %v4892_v33, %v4896_v38 }
 0x47f   : > { %v4684_v31 = vmax.f32 %v4172_v3, %v4428_v19  ;;  %v4685_v13 = vmax.f32 %v4173_v15, %v4429_v44  ;;  %v4048_v55 = vadd.f32 %v3616_v62, %v3280_v53  ;;  %v4049_v40 = vadd.f32 %v3616_v62, %v3281_v59  ;;  %5889 = vmatmul.mubr.bf16.gmra.mrb[12].mxu1 %v7041_v1  ;;  %v4898_v3 = vld [vmem:[%s12994_s2 + $0x100] sm:$0xff]  ;;  %v11673_v53 = vld [vmem:[%s7795_s8 + $0x3b0] sm:$0xff]  ;;  %v14361_v62 = vld [vmem:[#allocation355_spill] sm:$0xff] }
 0x480   : > { %v2118_v35 = vmul.f32 %v9274_v14, %v14358_v6  ;;  %v2119_v5 = vmul.f32 %v14108_v57, %v14358_v6  ;;  %v2120_v25 = vmul.f32 %v9274_v14, %v14359_v10  ;;  %6274 = vmatprep.mubr.bf16.mxu0 %v7046_v39  ;;  %v4902_v15 = vld [vmem:[%s12994_s2 + $0x120] sm:$0xff]  ;;  %v4558_v1 = vmax.f32 %v11617_v20, %v4302_v45 }
 0x481   : > { %v4304_v29 = vmul.f32 0.01, %v4048_v55  ;;  %v4305_v41 = vmul.f32 0.01, %v4049_v40  ;;  %7493 = vset.pattern.permute.xlu1 %v13775_v52  ;;  %v4839_v44 = vpack.c.bf16 %v4685_v13, %v4683_v2  ;;  %v4838_v49 = vpack.c.bf16 %v4684_v31, %v4682_v21  ;;  %v14362_v6 = vld [vmem:[#allocation338_spill] sm:$0xff] }
 0x482   : > { %v4559_v19 = vmax.f32 %v11630_v61, %v4303_v7  ;;  %v3150_v17 = vmul.f32 %v9278_v32, %v11577_v60  ;;  %2899 = vperm.xlu1 %7493, %v11673_v53   ;;  %v7050_v59 = vcombine.high %v4898_v3, %v4902_v15  ;;  %v3151_v33 = vmul.f32 %v9280_v16, %v11577_v60  ;;  %v14360_v61 = vld [vmem:[#allocation348_spill] sm:$0xff] }
 0x483   : > { %v4560_v38 = vmax.f32 %v4048_v55, %v4304_v29  ;;  %v4561_v21 = vmax.f32 %v4049_v40, %v4305_v41  ;;  %v11678_v2 = vpop.permute.xlu1 %2843  ;;  %6409 = vmatprep.subr.bf16.mxu0 %v4839_v44  ;;  %6275 = vmatmul.mubr.bf16.gmra.mrb[12].mxu0 %v7045_v48  ;;  %v2374_v20 = vadd.f32 %v2118_v35, %v11196_v58  ;;  %v4900_v55 = vld [vmem:[%s12994_s2 + $0x110] sm:$0xff] }
 0x484   : > { %v2375_v45 = vadd.f32 %v2119_v5, %v14360_v61  ;;  %v2121_v7 = vmul.f32 %v14108_v57, %v14359_v10  ;;  %6410 = vmatpush1.bf16.msra.mxu0 %v4838_v49  ;;  %5898 = vmatprep.mubr.bf16.mxu1 %v7050_v59  ;;  %v3026_v39 = vmul.f32 %v9278_v32, %v14361_v62  ;;  %v4904_v58 = vld [vmem:[%s12994_s2 + $0x130] sm:$0xff]  ;;  %v14365_v59 = vld [vmem:[#allocation245_spill] sm:$0xff]  ;;  %v4906_v61 = vld [vmem:[%s12994_s2 + $0x140] sm:$0xff] }
 0x485   : > { %v4777_v31 = vpack.c.bf16 %v4561_v21, %v4559_v19  ;;  %v4776_v60 = vpack.c.bf16 %v4560_v38, %v4558_v1  ;;  %v7049_v13 = vcombine.low %v4898_v3, %v4902_v15  ;;  %v3027_v40 = vmul.f32 %v9280_v16, %v14361_v62  ;;  %v14363_v44 = vld [vmem:[#allocation72_spill] sm:$0xff]  ;;  %v14364_v15 = vld [vmem:[#allocation71_spill] sm:$0xff]  ;;  %v14366_v38 = vld [vmem:[#allocation346_spill] sm:$0xff] }
 0x486   : > { %v3152_v35 = vmul.f32 %v9278_v32, %v14362_v6  ;;  %v3153_v5 = vmul.f32 %v9280_v16, %v14362_v6  ;;  %7494 = vset.pattern.permute.xlu1 %v13808_v36  ;;  %v7054_v10 = vcombine.high %v4900_v55, %v4904_v58  ;;  %v3406_v48 = vadd.f32 %v3150_v17, %v2374_v20  ;;  %v14367_v62 = vld [vmem:[#allocation275_spill] sm:$0xff] }
 0x487   : > { %3923 = vperm.xlu1 %7494, %v11570_v37   ;;  %6025 = vmatprep.subr.bf16.mxu1 %v4777_v31  ;;  %v3407_v29 = vadd.f32 %v3151_v33, %v2375_v45  ;;  %v7053_v41 = vcombine.low %v4900_v55, %v4904_v58  ;;  %v1998_v49 = vmul.f32 %v9274_v14, %v14363_v44  ;;  %v3620_v33 = vpop.permute.xlu0 %3619  ;;  %v4910_v45 = vld [vmem:[%s12994_s2 + $0x160] sm:$0xff]  ;;  %v7686_v6 = vld [vmem:[%s7795_s8 + $0x3a8] sm:$0xff] }
 0x488   : > { %v1999_v3 = vmul.f32 %v14108_v57, %v14363_v44  ;;  %v11706_v1 = vmul.f32 %v9274_v14, %v14364_v15  ;;  %v3868_v19 = vpop.permute.xlu1 %3867  ;;  %6026 = vmatpush1.bf16.msra.mxu1 %v4776_v60  ;;  %6284 = vmatprep.mubr.bf16.mxu0 %v7054_v10  ;;  %v2376_v37 = vadd.f32 %v2120_v25, %v14365_v59 }
 0x489   : > { %v2377_v17 = vadd.f32 %v2121_v7, %v14366_v38  ;;  %v4174_v21 = vadd.f32 %v3868_v19, %v3406_v48  ;;  %v4175_v20 = vadd.f32 %v3868_v19, %v3407_v29  ;;  %5899 = vmatmul.mubr.bf16.gmra.mrb[16].mxu1 %v7049_v13  ;;  %v3028_v31 = vmul.f32 %v9278_v32, %v14367_v62 }
 0x48a   : > { %v3282_v60 = vadd.f32 %v3026_v39, %v11633_v11  ;;  %v3283_v25 = vadd.f32 %v3027_v40, %v11636_v23  ;;  %v7058_v7 = vcombine.high %v4906_v61, %v4910_v45  ;;  %v3029_v55 = vmul.f32 %v9280_v16, %v14367_v62 }
 0x48b   : > { %v3408_v13 = vadd.f32 %v3152_v35, %v2376_v37  ;;  %v3409_v58 = vadd.f32 %v3153_v5, %v2377_v17  ;;  %3927 = vperm.xlu1 %7494, %v7686_v6   ;;  %6285 = vmatmul.mubr.bf16.gmra.mrb[16].mxu0 %v7053_v41  ;;  %v4430_v29 = vmul.f32 0.01, %v4174_v21  ;;  %v4431_v44 = vmul.f32 0.01, %v4175_v20  ;;  %v4908_v35 = vld [vmem:[%s12994_s2 + $0x150] sm:$0xff]  ;;  %v14368_v41 = vld [vmem:[#allocation98_spill] sm:$0xff] }
 0x48c   : > { %v11723_v10 = vadd.f32 %v3620_v33, %v3282_v60  ;;  %v11725_v48 = vadd.f32 %v3620_v33, %v3283_v25  ;;  %v3872_v19 = vpop.permute.xlu1 %3871  ;;  %5908 = vmatprep.mubr.bf16.mxu1 %v7058_v7  ;;  %v11729_v11 = vmul.f32 %v14108_v57, %v14364_v15  ;;  %v7057_v40 = vcombine.low %v4906_v61, %v4910_v45  ;;  %v4912_v5 = vld [vmem:[%s12994_s2 + $0x170] sm:$0xff]  ;;  %v14369_v37 = vld [vmem:[#allocation333_spill] sm:$0xff] }
 0x48d   : > { %v4176_v23 = vadd.f32 %v3872_v19, %v3408_v13  ;;  %v4177_v39 = vadd.f32 %v3872_v19, %v3409_v58  ;;  %v11738_v59 = vadd.f32 %v1998_v49, %v14368_v41  ;;  %v11741_v38 = vadd.f32 %v1999_v3, %v14369_v37  ;;  %v7687_v61 = vld [vmem:[%s7795_s8 + $0x1b8] sm:$0xff] }
 0x48e   : > { %v3284_v15 = vadd.f32 %v3028_v31, %v11639_v30  ;;  %v7062_v17 = vcombine.high %v4908_v35, %v4912_v5  ;;  %v3285_v45 = vadd.f32 %v3029_v55, %v11642_v34  ;;  %v7061_v60 = vcombine.low %v4908_v35, %v4912_v5  ;;  %v4914_v31 = vld [vmem:[%s12994_s2 + $0x180] sm:$0xff]  ;;  %v14370_v55 = vld [vmem:[#allocation213_spill] sm:$0xff] }
 0x48f   : > { %v4432_v33 = vmul.f32 0.01, %v4176_v23  ;;  %v4433_v62 = vmul.f32 0.01, %v4177_v39  ;;  %3679 = vperm.xlu1 %7494, %v7687_v61   ;;  %v4306_v25 = vmul.f32 0.01, %v11723_v10  ;;  %v4686_v13 = vmax.f32 %v4174_v21, %v4430_v29 }
 0x490   : > { %v4307_v7 = vmul.f32 0.01, %v11725_v48  ;;  %v4687_v49 = vmax.f32 %v4175_v20, %v4431_v44  ;;  %v3624_v58 = vpop.permute.xlu1 %3623  ;;  %6294 = vmatprep.mubr.bf16.mxu0 %v7062_v17  ;;  %v4918_v34 = vld [vmem:[%s12994_s2 + $0x1a0] sm:$0xff]  ;;  %v2122_v21 = vmul.f32 %v9274_v14, %v14370_v55  ;;  %v2123_v20 = vmul.f32 %v14108_v57, %v14370_v55 }
 0x491   : > { %v4688_v3 = vmax.f32 %v4176_v23, %v4432_v33  ;;  %v4689_v6 = vmax.f32 %v4177_v39, %v4433_v62  ;;  %v4052_v19 = vadd.f32 %v3624_v58, %v3284_v15  ;;  %v4053_v30 = vadd.f32 %v3624_v58, %v3285_v45  ;;  %5909 = vmatmul.mubr.bf16.gmra.mrb[20].mxu1 %v7057_v40  ;;  %v14371_v29 = vld [vmem:[#allocation214_spill] sm:$0xff] }
 0x492   : > { %v2124_v44 = vmul.f32 %v9274_v14, %v14371_v29  ;;  %v7066_v23 = vcombine.high %v4914_v31, %v4918_v34  ;;  %v2125_v41 = vmul.f32 %v14108_v57, %v14371_v29  ;;  %v4562_v37 = vmax.f32 %v11723_v10, %v4306_v25  ;;  %v11766_v17 = vld [vmem:[%s7795_s8 + $0x3c0] sm:$0xff]  ;;  %v4916_v10 = vld [vmem:[%s12994_s2 + $0x190] sm:$0xff] }
 0x493   : > { %v4308_v39 = vmul.f32 0.01, %v4052_v19  ;;  %v4309_v40 = vmul.f32 0.01, %v4053_v30  ;;  %7495 = vset.pattern.permute.xlu1 %v13775_v52  ;;  %v4841_v35 = vpack.c.bf16 %v4689_v6, %v4687_v49  ;;  %v4840_v5 = vpack.c.bf16 %v4688_v3, %v4686_v13  ;;  %6295 = vmatmul.mubr.bf16.gmra.mrb[20].mxu0 %v7061_v60  ;;  %v14372_v13 = vld [vmem:[#allocation10_spill] sm:$0xff] }
 0x494   : > { %v4563_v15 = vmax.f32 %v11725_v48, %v4307_v7  ;;  %2907 = vperm.xlu1 %7495, %v11766_v17   ;;  %5918 = vmatprep.mubr.bf16.mxu1 %v7066_v23  ;;  %v3154_v33 = vmul.f32 %v9278_v32, %v11678_v2  ;;  %v3155_v62 = vmul.f32 %v9280_v16, %v11678_v2  ;;  %v4920_v48 = vld [vmem:[%s12994_s2 + $0x1b0] sm:$0xff]  ;;  %v14374_v23 = vld [vmem:[#allocation131_spill] sm:$0xff] }
 0x495   : > { %v4564_v61 = vmax.f32 %v4052_v19, %v4308_v39  ;;  %v4565_v45 = vmax.f32 %v4053_v30, %v4309_v40  ;;  %v11773_v60 = vpop.permute.xlu1 %2851  ;;  %6411 = vmatprep.subr.bf16.mxu0 %v4841_v35  ;;  %v2378_v25 = vadd.f32 %v2122_v21, %v11320_v63  ;;  %v2379_v7 = vadd.f32 %v2123_v20, %v11324_v22  ;;  %v14373_v30 = vld [vmem:[#allocation97_spill] sm:$0xff]  ;;  %v3628_v21 = vpop.permute.xlu0 %3627  ;;  %v4926_v20 = vld [vmem:[%s12994_s2 + $0x1e0] sm:$0xff]  ;;  %v14375_v39 = vld [vmem:[#allocation332_spill] sm:$0xff] }
 0x496   : > { %v3030_v2 = vmul.f32 %v9278_v32, %v14372_v13  ;;  %6412 = vmatpush1.bf16.msra.mxu0 %v4840_v5  ;;  %v7070_v49 = vcombine.high %v4916_v10, %v4920_v48  ;;  %v7065_v6 = vcombine.low %v4914_v31, %v4918_v34  ;;  %v7069_v19 = vcombine.low %v4916_v10, %v4920_v48 }
 0x497   : > { %v4779_v58 = vpack.c.bf16 %v4565_v45, %v4563_v15  ;;  %v4778_v3 = vpack.c.bf16 %v4564_v61, %v4562_v37  ;;  %v2256_v55 = vadd.f32 %v11706_v1, %v14373_v30  ;;  %v3031_v29 = vmul.f32 %v9280_v16, %v14372_v13  ;;  %v4922_v1 = vld [vmem:[%s12994_s2 + $0x1c0] sm:$0xff]  ;;  %v14376_v61 = vld [vmem:[#allocation76_spill] sm:$0xff] }
 0x498   : > { %v3156_v63 = vmul.f32 %v9278_v32, %v14374_v23  ;;  %7496 = vset.pattern.permute.xlu1 %v13808_v36  ;;  %6304 = vmatprep.mubr.bf16.mxu0 %v7070_v49  ;;  %v3157_v22 = vmul.f32 %v9280_v16, %v14374_v23  ;;  %v3410_v31 = vadd.f32 %v3154_v33, %v2378_v25  ;;  %v7689_v25 = vld [vmem:[%s7795_s8 + $0x3b8] sm:$0xff] }
 0x499   : > { %3931 = vperm.xlu1 %7496, %v11673_v53   ;;  %6027 = vmatprep.subr.bf16.mxu1 %v4779_v58  ;;  %v3411_v34 = vadd.f32 %v3155_v62, %v2379_v7  ;;  %v2257_v40 = vadd.f32 %v11729_v11, %v14375_v39  ;;  %v2380_v35 = vadd.f32 %v2124_v44, %v11308_v47  ;;  %v14377_v44 = vld [vmem:[#allocation277_spill] sm:$0xff]  ;;  %v4924_v7 = vld [vmem:[%s12994_s2 + $0x1d0] sm:$0xff] }
 0x49a   : > { %v3286_v5 = vadd.f32 %v3030_v2, %v11738_v59  ;;  %v3876_v37 = vpop.permute.xlu1 %3875  ;;  %6028 = vmatpush1.bf16.msra.mxu1 %v4778_v3  ;;  %v7074_v53 = vcombine.high %v4922_v1, %v4926_v20  ;;  %v2381_v15 = vadd.f32 %v2125_v41, %v11312_v28  ;;  %v2002_v45 = vmul.f32 %v9274_v14, %v14376_v61 }
 0x49b   : > { %v4178_v33 = vadd.f32 %v3876_v37, %v3410_v31  ;;  %v4179_v62 = vadd.f32 %v3876_v37, %v3411_v34  ;;  %5919 = vmatmul.mubr.bf16.gmra.mrb[24].mxu1 %v7065_v6  ;;  %6305 = vmatmul.mubr.bf16.gmra.mrb[24].mxu0 %v7069_v19  ;;  %v11810_v11 = vmul.f32 %v14108_v57, %v14376_v61  ;;  %v14378_v6 = vld [vmem:[#allocation75_spill] sm:$0xff] }
 0x49c   : > { %v3287_v47 = vadd.f32 %v3031_v29, %v11741_v38  ;;  %v11813_v59 = vadd.f32 %v3628_v21, %v3286_v5  ;;  %5928 = vmatprep.mubr.bf16.mxu1 %v7074_v53  ;;  %v3032_v10 = vmul.f32 %v9278_v32, %v14377_v44  ;;  %v3033_v28 = vmul.f32 %v9280_v16, %v14377_v44  ;;  %v4928_v38 = vld [vmem:[%s12994_s2 + $0x1f0] sm:$0xff]  ;;  %v7690_v5 = vld [vmem:[%s7795_s8 + $0x1c8] sm:$0xff] }
 0x49d   : > { %v3412_v41 = vadd.f32 %v3156_v63, %v2380_v35  ;;  %v3413_v48 = vadd.f32 %v3157_v22, %v2381_v15  ;;  %3935 = vperm.xlu1 %7496, %v7689_v25   ;;  %v4434_v2 = vmul.f32 0.01, %v4178_v33  ;;  %v4435_v49 = vmul.f32 0.01, %v4179_v62  ;;  %v14379_v63 = vld [vmem:[#allocation11_spill] sm:$0xff] }
 0x49e   : > { %v11826_v13 = vadd.f32 %v3628_v21, %v3287_v47  ;;  %v3880_v58 = vpop.permute.xlu1 %3879  ;;  %v7078_v3 = vcombine.high %v4924_v7, %v4928_v38  ;;  %v11830_v19 = vmul.f32 %v9274_v14, %v14378_v6  ;;  %v7073_v23 = vcombine.low %v4922_v1, %v4926_v20  ;;  %v11844_v1 = vld [vmem:[%s12994_s2 + $0x200] sm:$0xff] }
 0x49f   : > { %v4180_v30 = vadd.f32 %v3880_v58, %v3412_v41  ;;  %v4181_v29 = vadd.f32 %v3880_v58, %v3413_v48  ;;  %v11833_v22 = vadd.f32 %v2002_v45, %v14379_v63  ;;  %v11837_v31 = vmul.f32 %v14108_v57, %v14378_v6  ;;  %v11849_v20 = vld [vmem:[%s12994_s2 + $0x220] sm:$0xff]  ;;  %v14380_v41 = vld [vmem:[#allocation215_spill] sm:$0xff]  ;;  %v4932_v58 = vld [vmem:[%s12994_s2 + $0x210] sm:$0xff] }
 0x4a0   : > { %v4310_v21 = vmul.f32 0.01, %v11813_v59  ;;  %6314 = vmatprep.mubr.bf16.mxu0 %v7078_v3  ;;  %v7077_v34 = vcombine.low %v4924_v7, %v4928_v38  ;;  %v3288_v37 = vadd.f32 %v3032_v10, %v2256_v55  ;;  %v3289_v53 = vadd.f32 %v3033_v28, %v2257_v40  ;;  %v14381_v7 = vld [vmem:[#allocation216_spill] sm:$0xff] }
 0x4a1   : > { %v4436_v39 = vmul.f32 0.01, %v4180_v30  ;;  %v4437_v35 = vmul.f32 0.01, %v4181_v29  ;;  %3687 = vperm.xlu1 %7496, %v7690_v5   ;;  %v4311_v15 = vmul.f32 0.01, %v11826_v13  ;;  %v4690_v61 = vmax.f32 %v4178_v33, %v4434_v2 }
 0x4a2   : > { %v4691_v45 = vmax.f32 %v4179_v62, %v4435_v49  ;;  %v3632_v47 = vpop.permute.xlu1 %3631  ;;  %v7082_v44 = vcombine.high %v11844_v1, %v11849_v20  ;;  %v2126_v48 = vmul.f32 %v9274_v14, %v14380_v41  ;;  %v2127_v25 = vmul.f32 %v14108_v57, %v14380_v41  ;;  %v4936_v3 = vld [vmem:[%s12994_s2 + $0x230] sm:$0xff] }
 0x4a3   : > { %v4692_v55 = vmax.f32 %v4180_v30, %v4436_v39  ;;  %v4693_v40 = vmax.f32 %v4181_v29, %v4437_v35  ;;  %v4056_v10 = vadd.f32 %v3632_v47, %v3288_v37  ;;  %v4057_v28 = vadd.f32 %v3632_v47, %v3289_v53  ;;  %5929 = vmatmul.mubr.bf16.gmra.mrb[28].mxu1 %v7073_v23  ;;  %v11872_v23 = vld [vmem:[%s7795_s8 + $0x3d0] sm:$0xff]  ;;  %v14382_v53 = vld [vmem:[#allocation237_spill] sm:$0xff]  ;;  %v11890_v47 = vld [vmem:[%s12994_s2 + $0x240] sm:$0xff] }
 0x4a4   : > { %v2128_v33 = vmul.f32 %v9274_v14, %v14381_v7  ;;  %6315 = vmatmul.mubr.bf16.gmra.mrb[28].mxu0 %v7077_v34  ;;  %5938 = vmatprep.mubr.bf16.mxu1 %v7082_v44  ;;  %v2129_v6 = vmul.f32 %v14108_v57, %v14381_v7  ;;  %v4566_v30 = vmax.f32 %v11813_v59, %v4310_v21 }
 0x4a5   : > { %v4312_v62 = vmul.f32 0.01, %v4056_v10  ;;  %v4313_v38 = vmul.f32 0.01, %v4057_v28  ;;  %7497 = vset.pattern.permute.xlu1 %v13775_v52  ;;  %v4843_v2 = vpack.c.bf16 %v4693_v40, %v4691_v45  ;;  %v4842_v49 = vpack.c.bf16 %v4692_v55, %v4690_v61  ;;  %v14384_v40 = vld [vmem:[#allocation344_spill] sm:$0xff] }
 0x4a6   : > { %v4567_v29 = vmax.f32 %v11826_v13, %v4311_v15  ;;  %2915 = vperm.xlu1 %7497, %v11872_v23   ;;  %v7086_v63 = vcombine.high %v4932_v58, %v4936_v3  ;;  %v3158_v34 = vmul.f32 %v9278_v32, %v11773_v60  ;;  %v3159_v39 = vmul.f32 %v9280_v16, %v11773_v60 }
 0x4a7   : > { %v4568_v35 = vmax.f32 %v4056_v10, %v4312_v62  ;;  %v4569_v5 = vmax.f32 %v4057_v28, %v4313_v38  ;;  %v11879_v37 = vpop.permute.xlu1 %2859  ;;  %6413 = vmatprep.subr.bf16.mxu0 %v4843_v2  ;;  %v2382_v59 = vadd.f32 %v2126_v48, %v11347_v18  ;;  %v2383_v13 = vadd.f32 %v2127_v25, %v11357_v46  ;;  %v11895_v18 = vld [vmem:[%s12994_s2 + $0x260] sm:$0xff]  ;;  %v14383_v46 = vld [vmem:[#allocation241_spill] sm:$0xff]  ;;  %v3636_v38 = vpop.permute.xlu0 %3635 }
 0x4a8   : > { %6414 = vmatpush1.bf16.msra.mxu0 %v4842_v49  ;;  %6324 = vmatprep.mubr.bf16.mxu0 %v7086_v63  ;;  %v7085_v21 = vcombine.low %v4932_v58, %v4936_v3  ;;  %v3034_v15 = vmul.f32 %v9278_v32, %v14382_v53  ;;  %v7081_v60 = vcombine.low %v11844_v1, %v11849_v20  ;;  %v14386_v25 = vld [vmem:[#allocation334_spill] sm:$0xff] }
 0x4a9   : > { %v4781_v61 = vpack.c.bf16 %v4569_v5, %v4567_v29  ;;  %v4780_v45 = vpack.c.bf16 %v4568_v35, %v4566_v30  ;;  %v2259_v44 = vadd.f32 %v11810_v11, %v14383_v46  ;;  %v3035_v55 = vmul.f32 %v9280_v16, %v14382_v53  ;;  %v14385_v11 = vld [vmem:[#allocation101_spill] sm:$0xff]  ;;  %v14388_v30 = vld [vmem:[#allocation279_spill] sm:$0xff]  ;;  %v11940_v46 = vld [vmem:[%s12994_s2 + $0x280] sm:$0xff] }
 0x4aa   : > { %v3160_v10 = vmul.f32 %v9278_v32, %v14384_v40  ;;  %7498 = vset.pattern.permute.xlu1 %v13808_v36  ;;  %v7090_v1 = vcombine.high %v11890_v47, %v11895_v18  ;;  %v3161_v20 = vmul.f32 %v9280_v16, %v14384_v40  ;;  %v3414_v28 = vadd.f32 %v3158_v34, %v2382_v59  ;;  %v7692_v35 = vld [vmem:[%s7795_s8 + $0x3c8] sm:$0xff] }
 0x4ab   : > { %3939 = vperm.xlu1 %7498, %v11766_v17   ;;  %6029 = vmatprep.subr.bf16.mxu1 %v4781_v61  ;;  %v3415_v41 = vadd.f32 %v3159_v39, %v2383_v13  ;;  %v2260_v48 = vadd.f32 %v11830_v19, %v14385_v11  ;;  %v2261_v7 = vadd.f32 %v11837_v31, %v14386_v25  ;;  %v4940_v19 = vld [vmem:[%s12994_s2 + $0x250] sm:$0xff] }
 0x4ac   : > { %v2384_v62 = vadd.f32 %v2128_v33, %v11334_v27  ;;  %v3884_v2 = vpop.permute.xlu1 %3883  ;;  %6030 = vmatpush1.bf16.msra.mxu1 %v4780_v45  ;;  %6325 = vmatmul.mubr.bf16.gmra.mrb[32].mxu0 %v7085_v21  ;;  %v2385_v49 = vadd.f32 %v2129_v6, %v11343_v42  ;;  %v3290_v17 = vadd.f32 %v3034_v15, %v11833_v22  ;;  %v4944_v27 = vld [vmem:[%s12994_s2 + $0x270] sm:$0xff] }
 0x4ad   : > { %v4182_v58 = vadd.f32 %v3884_v2, %v3414_v28  ;;  %v4183_v3 = vadd.f32 %v3884_v2, %v3415_v41  ;;  %5939 = vmatmul.mubr.bf16.gmra.mrb[32].mxu1 %v7081_v60  ;;  %v14387_v31 = vld [vmem:[#allocation80_spill] sm:$0xff]  ;;  %v3036_v42 = vmul.f32 %v9278_v32, %v14388_v30  ;;  %v3291_v6 = vadd.f32 %v3035_v55, %v2259_v44  ;;  %v11945_v44 = vld [vmem:[%s12994_s2 + $0x2a0] sm:$0xff]  ;;  %v14389_v55 = vld [vmem:[#allocation37_spill] sm:$0xff] }
 0x4ae   : > { %v2006_v33 = vmul.f32 %v9274_v14, %v14387_v31  ;;  %5948 = vmatprep.mubr.bf16.mxu1 %v7090_v1  ;;  %v7094_v22 = vcombine.high %v4940_v19, %v4944_v27  ;;  %v3037_v29 = vmul.f32 %v9280_v16, %v14388_v30  ;;  %v3416_v63 = vadd.f32 %v3160_v10, %v2384_v62  ;;  %v14390_v10 = vld [vmem:[#allocation79_spill] sm:$0xff]  ;;  %v7693_v41 = vld [vmem:[%s7795_s8 + $0x1d8] sm:$0xff]  ;;  %v4948_v30 = vld [vmem:[%s12994_s2 + $0x290] sm:$0xff] }
 0x4af   : > { %v3417_v34 = vadd.f32 %v3161_v20, %v2385_v49  ;;  %v11928_v39 = vadd.f32 %v3636_v38, %v3290_v17  ;;  %3943 = vperm.xlu1 %7498, %v7692_v35   ;;  %v11931_v5 = vadd.f32 %v3636_v38, %v3291_v6  ;;  %v4438_v59 = vmul.f32 0.01, %v4182_v58 }
 0x4b0   : > { %v4439_v13 = vmul.f32 0.01, %v4183_v3  ;;  %v3888_v21 = vpop.permute.xlu1 %3887  ;;  %6334 = vmatprep.mubr.bf16.mxu0 %v7094_v22  ;;  %v7093_v53 = vcombine.low %v4940_v19, %v4944_v27  ;;  %v2007_v15 = vmul.f32 %v14108_v57, %v14387_v31  ;;  %v7089_v60 = vcombine.low %v11890_v47, %v11895_v18 }
 0x4b1   : > { %v4184_v61 = vadd.f32 %v3888_v21, %v3416_v63  ;;  %v4185_v45 = vadd.f32 %v3888_v21, %v3417_v34  ;;  %v11948_v40 = vadd.f32 %v2006_v33, %v14389_v55  ;;  %v11952_v1 = vmul.f32 %v9274_v14, %v14390_v10  ;;  %v11978_v21 = vld [vmem:[%s7795_s8 + $0x3e0] sm:$0xff] }
 0x4b2   : > { %v11956_v47 = vmul.f32 %v14108_v57, %v14390_v10  ;;  %v7098_v18 = vcombine.high %v11940_v46, %v11945_v44  ;;  %v3292_v11 = vadd.f32 %v3036_v42, %v2260_v48  ;;  %v3293_v25 = vadd.f32 %v3037_v29, %v2261_v7  ;;  %v4952_v48 = vld [vmem:[%s12994_s2 + $0x2b0] sm:$0xff]  ;;  %v14391_v7 = vld [vmem:[#allocation274_spill] sm:$0xff] }
 0x4b3   : > { %v4440_v20 = vmul.f32 0.01, %v4184_v61  ;;  %v4441_v28 = vmul.f32 0.01, %v4185_v45  ;;  %3695 = vperm.xlu1 %7498, %v7693_v41   ;;  %v4314_v62 = vmul.f32 0.01, %v11928_v39  ;;  %v4694_v2 = vmax.f32 %v4182_v58, %v4438_v59 }
 0x4b4   : > { %v4315_v38 = vmul.f32 0.01, %v11931_v5  ;;  %v4695_v49 = vmax.f32 %v4183_v3, %v4439_v13  ;;  %v3640_v17 = vpop.permute.xlu1 %3639  ;;  %6335 = vmatmul.mubr.bf16.gmra.mrb[36].mxu0 %v7093_v53  ;;  %v2263_v42 = vadd.f32 %v2007_v15, %v14391_v7  ;;  %v14392_v58 = vld [vmem:[#allocation217_spill] sm:$0xff]  ;;  %v7102_v22 = vcombine.high %v4948_v30, %v4952_v48 }
 0x4b5   : > { %v4696_v19 = vmax.f32 %v4184_v61, %v4440_v20  ;;  %v4697_v27 = vmax.f32 %v4185_v45, %v4441_v28  ;;  %v4060_v31 = vadd.f32 %v3640_v17, %v3292_v11  ;;  %v4061_v33 = vadd.f32 %v3640_v17, %v3293_v25  ;;  %5949 = vmatmul.mubr.bf16.gmra.mrb[36].mxu1 %v7089_v60  ;;  %v14394_v28 = vld [vmem:[#allocation17_spill] sm:$0xff] }
 0x4b6   : > { %v2130_v3 = vmul.f32 %v9274_v14, %v14392_v58  ;;  %v2131_v6 = vmul.f32 %v14108_v57, %v14392_v58  ;;  %5958 = vmatprep.mubr.bf16.mxu1 %v7098_v18  ;;  %v4570_v59 = vmax.f32 %v11928_v39, %v4314_v62  ;;  %v4571_v13 = vmax.f32 %v11931_v5, %v4315_v38  ;;  %v11990_v39 = vld [vmem:[%s12994_s2 + $0x2c0] sm:$0xff] }
 0x4b7   : > { %v4316_v29 = vmul.f32 0.01, %v4060_v31  ;;  %v4317_v63 = vmul.f32 0.01, %v4061_v33  ;;  %7499 = vset.pattern.permute.xlu1 %v13775_v52  ;;  %v4845_v34 = vpack.c.bf16 %v4697_v27, %v4695_v49  ;;  %v4844_v35 = vpack.c.bf16 %v4696_v19, %v4694_v2  ;;  %6344 = vmatprep.mubr.bf16.mxu0 %v7102_v22  ;;  %v11995_v5 = vld [vmem:[%s12994_s2 + $0x2e0] sm:$0xff]  ;;  %v14395_v2 = vld [vmem:[#allocation343_spill] sm:$0xff]  ;;  %v3644_v19 = vpop.permute.xlu0 %3643 }
 0x4b8   : > { %2923 = vperm.xlu1 %7499, %v11978_v21   ;;  %v7101_v53 = vcombine.low %v4948_v30, %v4952_v48  ;;  %v3162_v15 = vmul.f32 %v9278_v32, %v11879_v37  ;;  %v3163_v61 = vmul.f32 %v9280_v16, %v11879_v37  ;;  %v2386_v10 = vadd.f32 %v2130_v3, %v11376_v26  ;;  %v14393_v18 = vld [vmem:[#allocation218_spill] sm:$0xff]  ;;  %v4956_v27 = vld [vmem:[%s12994_s2 + $0x2d0] sm:$0xff] }
 0x4b9   : > { %v4572_v45 = vmax.f32 %v4060_v31, %v4316_v29  ;;  %v4573_v60 = vmax.f32 %v4061_v33, %v4317_v63  ;;  %v11985_v55 = vpop.permute.xlu1 %2867  ;;  %6415 = vmatprep.subr.bf16.mxu0 %v4845_v34  ;;  %v2132_v37 = vmul.f32 %v9274_v14, %v14393_v18  ;;  %v2133_v20 = vmul.f32 %v14108_v57, %v14393_v18  ;;  %v4960_v31 = vld [vmem:[%s12994_s2 + $0x2f0] sm:$0xff]  ;;  %v14397_v48 = vld [vmem:[#allocation38_spill] sm:$0xff] }
 0x4ba   : > { %v3038_v41 = vmul.f32 %v9278_v32, %v14394_v28  ;;  %6416 = vmatpush1.bf16.msra.mxu0 %v4844_v35  ;;  %v2387_v11 = vadd.f32 %v2131_v6, %v11389_v43  ;;  %v7097_v38 = vcombine.low %v11940_v46, %v11945_v44  ;;  %v3039_v26 = vmul.f32 %v9280_v16, %v14394_v28  ;;  %v14396_v33 = vld [vmem:[#allocation116_spill] sm:$0xff] }
 0x4bb   : > { %v4783_v25 = vpack.c.bf16 %v4573_v60, %v4571_v13  ;;  %v4782_v62 = vpack.c.bf16 %v4572_v45, %v4570_v59  ;;  %v3164_v49 = vmul.f32 %v9278_v32, %v14395_v2  ;;  %v7106_v17 = vcombine.high %v11990_v39, %v11995_v5 }
 0x4bc   : > { %7500 = vset.pattern.permute.xlu1 %v13808_v36  ;;  %6345 = vmatmul.mubr.bf16.gmra.mrb[40].mxu0 %v7101_v53  ;;  %v3165_v43 = vmul.f32 %v9280_v16, %v14395_v2  ;;  %v3418_v46 = vadd.f32 %v3162_v15, %v2386_v10  ;;  %v3419_v44 = vadd.f32 %v3163_v61, %v2387_v11  ;;  %v14399_v15 = vld [vmem:[#allocation84_spill] sm:$0xff]  ;;  %v14400_v11 = vld [vmem:[#allocation83_spill] sm:$0xff] }
 0x4bd   : > { %3947 = vperm.xlu1 %7500, %v11872_v23   ;;  %6031 = vmatprep.subr.bf16.mxu1 %v4783_v25  ;;  %v2264_v30 = vadd.f32 %v11952_v1, %v14396_v33  ;;  %v2265_v7 = vadd.f32 %v11956_v47, %v14397_v48  ;;  %v3294_v58 = vadd.f32 %v3038_v41, %v11948_v40  ;;  %v14398_v47 = vld [vmem:[#allocation282_spill] sm:$0xff] }
 0x4be   : > { %v3892_v23 = vpop.permute.xlu1 %3891  ;;  %6032 = vmatpush1.bf16.msra.mxu1 %v4782_v62  ;;  %v7110_v3 = vcombine.high %v4956_v27, %v4960_v31  ;;  %v2388_v6 = vadd.f32 %v2132_v37, %v11361_v50  ;;  %v2389_v22 = vadd.f32 %v2133_v20, %v11365_v54  ;;  %v3295_v34 = vadd.f32 %v3039_v26, %v2263_v42  ;;  %v7695_v50 = vld [vmem:[%s7795_s8 + $0x3d8] sm:$0xff]  ;;  %v12040_v54 = vld [vmem:[%s12994_s2 + $0x300] sm:$0xff] }
 0x4bf   : > { %v4186_v29 = vadd.f32 %v3892_v23, %v3418_v46  ;;  %v4187_v63 = vadd.f32 %v3892_v23, %v3419_v44  ;;  %5959 = vmatmul.mubr.bf16.gmra.mrb[40].mxu1 %v7097_v38  ;;  %v12030_v35 = vadd.f32 %v3644_v19, %v3294_v58  ;;  %v7109_v1 = vcombine.low %v4956_v27, %v4960_v31  ;;  %v12045_v42 = vld [vmem:[%s12994_s2 + $0x320] sm:$0xff] }
 0x4c0   : > { %5968 = vmatprep.mubr.bf16.mxu1 %v7106_v17  ;;  %6354 = vmatprep.mubr.bf16.mxu0 %v7110_v3  ;;  %v3040_v40 = vmul.f32 %v9278_v32, %v14398_v47  ;;  %v3041_v59 = vmul.f32 %v9280_v16, %v14398_v47  ;;  %v3420_v13 = vadd.f32 %v3164_v49, %v2388_v6  ;;  %v7696_v17 = vld [vmem:[%s7795_s8 + $0x1e8] sm:$0xff] }
 0x4c1   : > { %v3421_v53 = vadd.f32 %v3165_v43, %v2389_v22  ;;  %3951 = vperm.xlu1 %7500, %v7695_v50   ;;  %v2010_v61 = vmul.f32 %v9274_v14, %v14399_v15  ;;  %v4063_v45 = vadd.f32 %v3644_v19, %v3295_v34  ;;  %v4442_v60 = vmul.f32 0.01, %v4186_v29  ;;  %v4968_v19 = vld [vmem:[%s12994_s2 + $0x330] sm:$0xff]  ;;  %v14402_v47 = vld [vmem:[#allocation119_spill] sm:$0xff] }
 0x4c2   : > { %v4443_v10 = vmul.f32 0.01, %v4187_v63  ;;  %v3896_v18 = vpop.permute.xlu1 %3895  ;;  %v2011_v37 = vmul.f32 %v14108_v57, %v14399_v15  ;;  %v7105_v41 = vcombine.low %v11990_v39, %v11995_v5  ;;  %v12055_v25 = vmul.f32 %v9274_v14, %v14400_v11  ;;  %v4964_v5 = vld [vmem:[%s12994_s2 + $0x310] sm:$0xff] }
 0x4c3   : > { %v4188_v20 = vadd.f32 %v3896_v18, %v3420_v13  ;;  %v4189_v28 = vadd.f32 %v3896_v18, %v3421_v53  ;;  %v12059_v62 = vmul.f32 %v14108_v57, %v14400_v11  ;;  %v4318_v38 = vmul.f32 0.01, %v12030_v35  ;;  %v12080_v15 = vld [vmem:[%s7795_s8 + $0x3f0] sm:$0xff]  ;;  %v14405_v11 = vld [vmem:[#allocation26_spill] sm:$0xff] }
 0x4c4   : > { %6355 = vmatmul.mubr.bf16.gmra.mrb[44].mxu0 %v7109_v1  ;;  %v7114_v26 = vcombine.high %v12040_v54, %v12045_v42  ;;  %v3296_v43 = vadd.f32 %v3040_v40, %v2264_v30  ;;  %v3297_v39 = vadd.f32 %v3041_v59, %v2265_v7  ;;  %v4319_v46 = vmul.f32 0.01, %v4063_v45  ;;  %v14401_v30 = vld [vmem:[#allocation219_spill] sm:$0xff]  ;;  %v14403_v59 = vld [vmem:[#allocation124_spill] sm:$0xff] }
 0x4c5   : > { %v4444_v2 = vmul.f32 0.01, %v4188_v20  ;;  %v4445_v49 = vmul.f32 0.01, %v4189_v28  ;;  %3703 = vperm.xlu1 %7500, %v7696_v17   ;;  %v4698_v44 = vmax.f32 %v4186_v29, %v4442_v60  ;;  %v4699_v27 = vmax.f32 %v4187_v63, %v4443_v10 }
 0x4c6   : > { %v3648_v31 = vpop.permute.xlu1 %3647  ;;  %v7118_v33 = vcombine.high %v4964_v5, %v4968_v19  ;;  %v2134_v7 = vmul.f32 %v9274_v14, %v14401_v30  ;;  %v2135_v6 = vmul.f32 %v14108_v57, %v14401_v30  ;;  %v7117_v22 = vcombine.low %v4964_v5, %v4968_v19 }
 0x4c7   : > { %v4700_v48 = vmax.f32 %v4188_v20, %v4444_v2  ;;  %v4701_v58 = vmax.f32 %v4189_v28, %v4445_v49  ;;  %v4064_v23 = vadd.f32 %v3648_v31, %v3296_v43  ;;  %v4065_v3 = vadd.f32 %v3648_v31, %v3297_v39  ;;  %5969 = vmatmul.mubr.bf16.gmra.mrb[44].mxu1 %v7105_v41  ;;  %v14406_v43 = vld [vmem:[#allocation244_spill] sm:$0xff] }
 0x4c8   : > { %5978 = vmatprep.mubr.bf16.mxu1 %v7114_v26  ;;  %6364 = vmatprep.mubr.bf16.mxu0 %v7118_v33  ;;  %v2266_v40 = vadd.f32 %v2010_v61, %v14402_v47  ;;  %v2267_v13 = vadd.f32 %v2011_v37, %v14403_v59  ;;  %v4574_v53 = vmax.f32 %v12030_v35, %v4318_v38  ;;  %v12092_v35 = vld [vmem:[%s12994_s2 + $0x340] sm:$0xff]  ;;  %v7698_v47 = vld [vmem:[%s7795_s8 + $0x3e8] sm:$0xff] }
 0x4c9   : > { %v4320_v34 = vmul.f32 0.01, %v4064_v23  ;;  %v4321_v29 = vmul.f32 0.01, %v4065_v3  ;;  %7501 = vset.pattern.permute.xlu1 %v13775_v52  ;;  %v4847_v63 = vpack.c.bf16 %v4701_v58, %v4699_v27  ;;  %v4846_v1 = vpack.c.bf16 %v4700_v48, %v4698_v44  ;;  %v12097_v61 = vld [vmem:[%s12994_s2 + $0x360] sm:$0xff]  ;;  %v14407_v44 = vld [vmem:[#allocation115_spill] sm:$0xff] }
 0x4ca   : > { %v4575_v50 = vmax.f32 %v4063_v45, %v4319_v46  ;;  %2931 = vperm.xlu1 %7501, %v12080_v15   ;;  %v3166_v60 = vmul.f32 %v9278_v32, %v11985_v55  ;;  %v3167_v10 = vmul.f32 %v9280_v16, %v11985_v55  ;;  %v2390_v45 = vadd.f32 %v2134_v7, %v11441_v51  ;;  %v14404_v55 = vld [vmem:[#allocation220_spill] sm:$0xff]  ;;  %v14408_v33 = vld [vmem:[#allocation238_spill] sm:$0xff] }
 0x4cb   : > { %v4576_v52 = vmax.f32 %v4064_v23, %v4320_v34  ;;  %v4577_v18 = vmax.f32 %v4065_v3, %v4321_v29  ;;  %v12087_v20 = vpop.permute.xlu1 %2875  ;;  %6417 = vmatprep.subr.bf16.mxu0 %v4847_v63  ;;  %v2391_v37 = vadd.f32 %v2135_v6, %v11452_v8  ;;  %v2136_v28 = vmul.f32 %v9274_v14, %v14404_v55  ;;  %v4972_v51 = vld [vmem:[%s12994_s2 + $0x350] sm:$0xff] }
 0x4cc   : > { %v2137_v41 = vmul.f32 %v14108_v57, %v14404_v55  ;;  %6418 = vmatpush1.bf16.msra.mxu0 %v4846_v1  ;;  %v3042_v38 = vmul.f32 %v9278_v32, %v14405_v11  ;;  %v7113_v49 = vcombine.low %v12040_v54, %v12045_v42  ;;  %v4976_v8 = vld [vmem:[%s12994_s2 + $0x370] sm:$0xff]  ;;  %v3043_v17 = vmul.f32 %v9280_v16, %v14405_v11 }
 0x4cd   : > { %v4785_v26 = vpack.c.bf16 %v4577_v18, %v4575_v50  ;;  %v4784_v2 = vpack.c.bf16 %v4576_v52, %v4574_v53  ;;  %6365 = vmatmul.mubr.bf16.gmra.mrb[48].mxu0 %v7117_v22  ;;  %v3168_v39 = vmul.f32 %v9278_v32, %v14406_v43  ;;  %v7122_v54 = vcombine.high %v12092_v35, %v12097_v61  ;;  %v14409_v7 = vld [vmem:[#allocation120_spill] sm:$0xff]  ;;  %v12148_v53 = vld [vmem:[%s12994_s2 + $0x3a0] sm:$0xff]  ;;  %v14412_v18 = vld [vmem:[#allocation87_spill] sm:$0xff] }
 0x4ce   : > { %7503 = vset.pattern.permute.xlu1 %v13808_v36  ;;  %v7126_v42 = vcombine.high %v4972_v51, %v4976_v8  ;;  %v3169_v5 = vmul.f32 %v9280_v16, %v14406_v43  ;;  %v3422_v19 = vadd.f32 %v3166_v60, %v2390_v45  ;;  %v3423_v46 = vadd.f32 %v3167_v10, %v2391_v37  ;;  %v3652_v36 = vpop.permute.xlu0 %3651  ;;  %v14410_v22 = vld [vmem:[#allocation88_spill] sm:$0xff] }
 0x4cf   : > { %3955 = vperm.xlu1 %7503, %v11978_v21   ;;  %6033 = vmatprep.subr.bf16.mxu1 %v4785_v26  ;;  %v2268_v27 = vadd.f32 %v12055_v25, %v14407_v44  ;;  %v2392_v31 = vadd.f32 %v2136_v28, %v11393_v24  ;;  %v2393_v48 = vadd.f32 %v2137_v41, %v14408_v33  ;;  %v14411_v34 = vld [vmem:[#allocation284_spill] sm:$0xff] }
 0x4d0   : > { %v3900_v58 = vpop.permute.xlu1 %3899  ;;  %6034 = vmatpush1.bf16.msra.mxu1 %v4784_v2  ;;  %6374 = vmatprep.mubr.bf16.mxu0 %v7126_v42  ;;  %v3298_v23 = vadd.f32 %v3042_v38, %v2266_v40  ;;  %v7125_v21 = vcombine.low %v4972_v51, %v4976_v8  ;;  %v2269_v6 = vadd.f32 %v12059_v62, %v14409_v7  ;;  %v12143_v62 = vld [vmem:[%s12994_s2 + $0x380] sm:$0xff]  ;;  %v4980_v41 = vld [vmem:[%s12994_s2 + $0x390] sm:$0xff]  ;;  %v7699_v8 = vld [vmem:[%s7795_s8 + $0x1f8] sm:$0xff] }
 0x4d1   : > { %v4190_v3 = vadd.f32 %v3900_v58, %v3422_v19  ;;  %v4191_v30 = vadd.f32 %v3900_v58, %v3423_v46  ;;  %5979 = vmatmul.mubr.bf16.gmra.mrb[48].mxu1 %v7113_v49  ;;  %v2014_v25 = vmul.f32 %v9274_v14, %v14410_v22  ;;  %v3044_v24 = vmul.f32 %v9278_v32, %v14411_v34  ;;  %v4984_v11 = vld [vmem:[%s12994_s2 + $0x3b0] sm:$0xff] }
 0x4d2   : > { %v3299_v29 = vadd.f32 %v3043_v17, %v2267_v13  ;;  %5988 = vmatprep.mubr.bf16.mxu1 %v7122_v54  ;;  %v3045_v63 = vmul.f32 %v9280_v16, %v14411_v34  ;;  %v12137_v1 = vadd.f32 %v3652_v36, %v3298_v23  ;;  %v3424_v40 = vadd.f32 %v3168_v39, %v2392_v31  ;;  %v14413_v31 = vld [vmem:[#allocation18_spill] sm:$0xff] }
 0x4d3   : > { %3959 = vperm.xlu1 %7503, %v7698_v47   ;;  %v3425_v59 = vadd.f32 %v3169_v5, %v2393_v48  ;;  %v12152_v13 = vmul.f32 %v14108_v57, %v14410_v22  ;;  %v4446_v60 = vmul.f32 0.01, %v4190_v3  ;;  %v4447_v10 = vmul.f32 0.01, %v4191_v30  ;;  %v14414_v48 = vld [vmem:[#allocation221_spill] sm:$0xff]  ;;  %v14415_v23 = vld [vmem:[#allocation222_spill] sm:$0xff] }
 0x4d4   : > { %v12154_v50 = vadd.f32 %v3652_v36, %v3299_v29  ;;  %v3904_v52 = vpop.permute.xlu1 %3903  ;;  %v12158_v45 = vmul.f32 %v9274_v14, %v14412_v18  ;;  %v7121_v28 = vcombine.low %v12092_v35, %v12097_v61  ;;  %v12170_v38 = vmul.f32 %v14108_v57, %v14412_v18  ;;  %v12188_v22 = vld [vmem:[%s12994_s2 + $0x3c0] sm:$0xff] }
 0x4d5   : > { %v4192_v37 = vadd.f32 %v3904_v52, %v3424_v40  ;;  %v4193_v55 = vadd.f32 %v3904_v52, %v3425_v59  ;;  %6375 = vmatmul.mubr.bf16.gmra.mrb[52].mxu0 %v7125_v21  ;;  %v3300_v26 = vadd.f32 %v3044_v24, %v2268_v27  ;;  %v7130_v2 = vcombine.high %v12143_v62, %v12148_v53 }
 0x4d6   : > { %v7134_v49 = vcombine.high %v4980_v41, %v4984_v11  ;;  %v4322_v35 = vmul.f32 0.01, %v12137_v1  ;;  %v3301_v17 = vadd.f32 %v3045_v63, %v2269_v6  ;;  %v4323_v43 = vmul.f32 0.01, %v12154_v50 }
 0x4d7   : > { %v4448_v61 = vmul.f32 0.01, %v4192_v37  ;;  %v4449_v51 = vmul.f32 0.01, %v4193_v55  ;;  %3711 = vperm.xlu1 %7503, %v7699_v8   ;;  %v4702_v39 = vmax.f32 %v4190_v3, %v4446_v60  ;;  %v4703_v54 = vmax.f32 %v4191_v30, %v4447_v10 }
 0x4d8   : > { %v3656_v42 = vpop.permute.xlu1 %3655  ;;  %6384 = vmatprep.mubr.bf16.mxu0 %v7134_v49  ;;  %v7133_v5 = vcombine.low %v4980_v41, %v4984_v11  ;;  %v2270_v33 = vadd.f32 %v2014_v25, %v14413_v31  ;;  %v2138_v36 = vmul.f32 %v9274_v14, %v14414_v48  ;;  %v2139_v58 = vmul.f32 %v14108_v57, %v14414_v48  ;;  %v12193_v25 = vld [vmem:[%s12994_s2 + $0x3e0] sm:$0xff]  ;;  %v14418_v41 = vld [vmem:[#allocation335_spill] sm:$0xff] }
 0x4d9   : > { %v4704_v19 = vmax.f32 %v4192_v37, %v4448_v61  ;;  %v4705_v46 = vmax.f32 %v4193_v55, %v4449_v51  ;;  %v4068_v44 = vadd.f32 %v3656_v42, %v3300_v26  ;;  %v4069_v27 = vadd.f32 %v3656_v42, %v3301_v17  ;;  %5989 = vmatmul.mubr.bf16.gmra.mrb[52].mxu1 %v7121_v28  ;;  %v14419_v26 = vld [vmem:[#allocation246_spill] sm:$0xff]  ;;  %v12231_v51 = vld [vmem:[%s12994_s2 + $0x8] sm:$0xff]  ;;  %v14420_v42 = vld [vmem:[#allocation288_spill] sm:$0xff] }
 0x4da   : > { %v2140_v3 = vmul.f32 %v9274_v14, %v14415_v23  ;;  %5998 = vmatprep.mubr.bf16.mxu1 %v7130_v2  ;;  %v4578_v34 = vmax.f32 %v12137_v1, %v4322_v35  ;;  %v4579_v24 = vmax.f32 %v12154_v50, %v4323_v43  ;;  %v3170_v29 = vmul.f32 %v9278_v32, %v12087_v20  ;;  %v4988_v1 = vld [vmem:[%s12994_s2 + $0x3d0] sm:$0xff]  ;;  %v3660_v43 = vpop.permute.xlu0 %3659 }
 0x4db   : > { %v4848_v30 = vpack.c.bf16 %v4704_v19, %v4702_v39  ;;  %v4324_v21 = vmul.f32 0.01, %v4068_v44  ;;  %v4325_v7 = vmul.f32 0.01, %v4069_v27  ;;  %3963 = vperm.xlu1 %7503, %v12080_v15   ;;  %v4849_v6 = vpack.c.bf16 %v4705_v46, %v4703_v54  ;;  %v4992_v50 = vld [vmem:[%s12994_s2 + $0x3f0] sm:$0xff] }
 0x4dc   : > { %v3171_v15 = vmul.f32 %v9280_v16, %v12087_v20  ;;  %v7129_v59 = vcombine.low %v12143_v62, %v12148_v53  ;;  %v2394_v60 = vadd.f32 %v2138_v36, %v11464_v12  ;;  %v2141_v20 = vmul.f32 %v14108_v57, %v14415_v23  ;;  %v14416_v53 = vld [vmem:[#allocation291_spill] sm:$0xff]  ;;  %v12254_v36 = vld [vmem:[%s12994_s2 + $0x38] sm:$0xff] }
 0x4dd   : > { %v4580_v63 = vmax.f32 %v4068_v44, %v4324_v21  ;;  %v4581_v47 = vmax.f32 %v4069_v27, %v4325_v7  ;;  %v12201_v40 = vpop.permute.xlu1 %2883  ;;  %6419 = vmatprep.subr.bf16.mxu0 %v4849_v6  ;;  %6385 = vmatmul.mubr.bf16.gmra.mrb[56].mxu0 %v7133_v5  ;;  %v7138_v10 = vcombine.high %v12188_v22, %v12193_v25  ;;  %v14417_v28 = vmov 0  }
 0x4de   : > { %6420 = vmatpush1.bf16.msra.mxu0 %v4848_v30  ;;  %v7142_v52 = vcombine.high %v4988_v1, %v4992_v50  ;;  %v2395_v62 = vadd.f32 %v2139_v58, %v11469_v4  ;;  %v3046_v18 = vmul.f32 %v9278_v32, %v14416_v53  ;;  %v2271_v12 = vadd.f32 %v12152_v13, %v14418_v41  ;;  %v12236_v13 = vld [vmem:[%s12994_s2 + $0x28] sm:$0xff] }
 0x4df   : > { %v4786_v37 = vpack.c.bf16 %v4580_v63, %v4578_v34  ;;  %v4787_v55 = vpack.c.bf16 %v4581_v47, %v4579_v24  ;;  %7504 = vset.pattern.permute.xlu1 %v14417_v28  ;;  %v3047_v11 = vmul.f32 %v9280_v16, %v14416_v53  ;;  %v3172_v2 = vmul.f32 %v9278_v32, %v14419_v26  ;;  %v14421_v24 = vld [vmem:[#allocation242_spill] sm:$0xff] }
 0x4e0   : > { %v3173_v49 = vmul.f32 %v9280_v16, %v14419_v26  ;;  %6394 = vmatprep.mubr.bf16.mxu0 %v7142_v52  ;;  %v3426_v4 = vadd.f32 %v3170_v29, %v2394_v60  ;;  %v3427_v35 = vadd.f32 %v3171_v15, %v2395_v62  ;;  %v7141_v61 = vcombine.low %v4988_v1, %v4992_v50  ;;  %v14422_v15 = vld [vmem:[#allocation123_spill] sm:$0xff]  ;;  %v14423_v47 = vld [vmem:[#allocation118_spill] sm:$0xff]  ;;  %v14424_v1 = vld [vmem:[#allocation121_spill] sm:$0xff] }
 0x4e1   : > { %6035 = vmatprep.subr.bf16.mxu1 %v4787_v55  ;;  %5999 = vmatmul.mubr.bf16.gmra.mrb[56].mxu1 %v7129_v59  ;;  %v2396_v8 = vadd.f32 %v2140_v3, %v11456_v9  ;;  %v2397_v17 = vadd.f32 %v2141_v20, %v11460_v56  ;;  %v7019_v54 = vcombine.low %v12231_v51, %v12236_v13  ;;  %v12249_v56 = vld [vmem:[%s12994_s2 + $0x18] sm:$0xff]  ;;  %v14425_v50 = vld [vmem:[#allocation286_spill] sm:$0xff] }
 0x4e2   : > { %v3908_v39 = vpop.permute.xlu1 %3907  ;;  %6036 = vmatpush1.bf16.msra.mxu1 %v4786_v37  ;;  %6008 = vmatprep.mubr.bf16.mxu1 %v7138_v10  ;;  %v3048_v5 = vmul.f32 %v9278_v32, %v14420_v42  ;;  %v3302_v19 = vadd.f32 %v3046_v18, %v2270_v33  ;;  %v3049_v27 = vmul.f32 %v9280_v16, %v14420_v42  ;;  %v14426_v10 = vld [vmem:[#allocation122_spill] sm:$0xff] }
 0x4e3   : > { %v4194_v46 = vadd.f32 %v3908_v39, %v3426_v4  ;;  %v4195_v44 = vadd.f32 %v3908_v39, %v3427_v35  ;;  %v3303_v31 = vadd.f32 %v3047_v11, %v2271_v12  ;;  %v3428_v9 = vadd.f32 %v3172_v2, %v2396_v8  ;;  %v14427_v4 = vld [vmem:[#allocation125_spill] sm:$0xff] }
 0x4e4   : > { %v3429_v48 = vadd.f32 %v3173_v49, %v2397_v17  ;;  %v4070_v58 = vadd.f32 %v3660_v43, %v3302_v19  ;;  %v7137_v33 = vcombine.low %v12188_v22, %v12193_v25  ;;  %v7023_v23 = vcombine.low %v12249_v56, %v12254_v36  ;;  %v14429_v19 = vld [vmem:[#allocation175_spill] sm:$0xff] }
 0x4e5   : > { %6395 = vmatmul.mubr.bf16.gmra.mrb[60].mxu0 %v7141_v61  ;;  %v7024_v3 = vcombine.high %v12249_v56, %v12254_v36  ;;  %v4071_v30 = vadd.f32 %v3660_v43, %v3303_v31  ;;  %v4450_v21 = vmul.f32 0.01, %v4194_v46  ;;  %v4451_v7 = vmul.f32 0.01, %v4195_v44  ;;  %v14428_v61 = vld [vmem:[#allocation223_spill] sm:$0xff] }
 0x4e6   : > { %v3912_v6 = vpop.permute.xlu1 %3911  ;;  %v7020_v34 = vcombine.high %v12231_v51, %v12236_v13  ;;  %v2272_v29 = vadd.f32 %v12158_v45, %v14421_v24  ;;  %v2273_v22 = vadd.f32 %v12170_v38, %v14422_v15  ;;  %v1243_v59 = vmul.f32 %v14106_v0, %v14423_v47  ;;  %v14431_v24 = vld [vmem:[#allocation224_spill] sm:$0xff]  ;;  %v4885_v13 = vld [vmem:[%s12994_s2 + $0x98] sm:$0xff]  ;;  %v4891_v56 = vld [vmem:[%s12994_s2 + $0xc8] sm:$0xff] }
 0x4e7   : > { %v4196_v25 = vadd.f32 %v3912_v6, %v3428_v9  ;;  %v4197_v63 = vadd.f32 %v3912_v6, %v3429_v48  ;;  %6437 = vmatprep.mubr.bf16.mxu0 %v7024_v3  ;;  %v12272_v60 = vmul.f32 %v14425_v50, %v14424_v1  ;;  %v12276_v20 = vmul.f32 %v14106_v0, %v14424_v1  ;;  %v14433_v1 = vld [vmem:[#allocation21_spill] sm:$0xff]  ;;  %v4895_v36 = vld [vmem:[%s12994_s2 + $0xe8] sm:$0xff] }
 0x4e8   : > { %v12280_v45 = vmul.f32 %v14425_v50, %v14426_v10  ;;  %v3304_v62 = vadd.f32 %v3048_v5, %v2272_v29  ;;  %v3305_v53 = vadd.f32 %v3049_v27, %v2273_v22  ;;  %v4326_v18 = vmul.f32 0.01, %v4070_v58 }
 0x4e9   : > { %v4452_v52 = vmul.f32 0.01, %v4196_v25  ;;  %v4453_v38 = vmul.f32 0.01, %v4197_v63  ;;  %6009 = vmatmul.mubr.bf16.gmra.mrb[60].mxu1 %v7137_v33  ;;  %v4327_v37 = vmul.f32 0.01, %v4071_v30  ;;  %v4706_v55 = vmax.f32 %v4194_v46, %v4450_v21 }
 0x4ea   : > { %v4707_v28 = vmax.f32 %v4195_v44, %v4451_v7  ;;  %v3664_v41 = vpop.permute.xlu1 %3663  ;;  %6051 = vmatprep.mubr.bf16.mxu1 %v7020_v34  ;;  %v12284_v49 = vmul.f32 %v14106_v0, %v14426_v10  ;;  %v12288_v35 = vmul.f32 %v14425_v50, %v14427_v4  ;;  %v2142_v8 = vmul.f32 %v9274_v14, %v14428_v61  ;;  %v14430_v7 = vld [vmem:[#allocation92_spill] sm:$0xff] }
 0x4eb   : > { %v4708_v12 = vmax.f32 %v4196_v25, %v4452_v52  ;;  %v4709_v11 = vmax.f32 %v4197_v63, %v4453_v38  ;;  %v4072_v26 = vadd.f32 %v3664_v41, %v3304_v62  ;;  %v4073_v2 = vadd.f32 %v3664_v41, %v3305_v53  ;;  %v14432_v25 = vld [vmem:[#allocation174_spill] sm:$0xff]  ;;  %v14434_v38 = vld [vmem:[#allocation337_spill] sm:$0xff] }
 0x4ec   : > { %v2143_v17 = vmul.f32 %v14108_v57, %v14428_v61  ;;  %v1366_v46 = vmul.f32 %v14425_v50, %v14429_v19  ;;  %v1367_v44 = vmul.f32 %v14106_v0, %v14429_v19  ;;  %v4582_v27 = vmax.f32 %v4070_v58, %v4326_v18 }
 0x4ed   : > { %v4850_v43 = vpack.c.bf16 %v4708_v12, %v4706_v55  ;;  %v4328_v39 = vmul.f32 0.01, %v4072_v26  ;;  %v4329_v42 = vmul.f32 0.01, %v4073_v2  ;;  %v4851_v5 = vpack.c.bf16 %v4709_v11, %v4707_v28  ;;  %v14435_v55 = vld [vmem:[#allocation340_spill] sm:$0xff]  ;;  %v14436_v12 = vld [vmem:[#allocation91_spill] sm:$0xff] }
 0x4ee   : > { %v4583_v31 = vmax.f32 %v4071_v30, %v4327_v37  ;;  %v3174_v9 = vmul.f32 %v9278_v32, %v12201_v40  ;;  %v3175_v48 = vmul.f32 %v9280_v16, %v12201_v40  ;;  %v2018_v6 = vmul.f32 %v9274_v14, %v14430_v7 }
 0x4ef   : > { %v4584_v33 = vmax.f32 %v4072_v26, %v4328_v39  ;;  %v4585_v3 = vmax.f32 %v4073_v2, %v4329_v42  ;;  %v12302_v21 = vpop.permute.xlu1 %2891  ;;  %6421 = vmatprep.subr.bf16.mxu0 %v4851_v5  ;;  %v2019_v34 = vmul.f32 %v14108_v57, %v14430_v7  ;;  %v2144_v58 = vmul.f32 %v9274_v14, %v14431_v24  ;;  %v14437_v5 = vld [vmem:[#allocation126_spill] sm:$0xff] }
 0x4f0   : > { %v2145_v30 = vmul.f32 %v14108_v57, %v14431_v24  ;;  %6422 = vmatpush1.bf16.msra.mxu0 %v4850_v43  ;;  %v2398_v29 = vadd.f32 %v2142_v8, %v1366_v46  ;;  %v2399_v40 = vadd.f32 %v2143_v17, %v1367_v44  ;;  %v1368_v63 = vmul.f32 %v14425_v50, %v14432_v25  ;;  %v3668_v17 = vpop.permute.xlu0 %3667  ;;  %v14438_v44 = vld [vmem:[#allocation13_spill] sm:$0xff] }
 0x4f1   : > { %v4788_v15 = vpack.c.bf16 %v4584_v33, %v4582_v27  ;;  %v4789_v22 = vpack.c.bf16 %v4585_v3, %v4583_v31  ;;  %v1369_v47 = vmul.f32 %v14106_v0, %v14432_v25  ;;  %v3050_v10 = vmul.f32 %v9278_v32, %v14433_v1 }
 0x4f2   : > { %v3051_v52 = vmul.f32 %v9280_v16, %v14433_v1  ;;  %v3176_v62 = vmul.f32 %v9278_v32, %v14434_v38  ;;  %v3177_v53 = vmul.f32 %v9280_v16, %v14434_v38  ;;  %v3430_v18 = vadd.f32 %v3174_v9, %v2398_v29 }
 0x4f3   : > { %6037 = vmatprep.subr.bf16.mxu1 %v4789_v22  ;;  %v3431_v37 = vadd.f32 %v3175_v48, %v2399_v40  ;;  %v2274_v28 = vadd.f32 %v2018_v6, %v14435_v55  ;;  %v2275_v41 = vadd.f32 %v2019_v34, %v1243_v59  ;;  %v2020_v11 = vmul.f32 %v9274_v14, %v14436_v12  ;;  %v14439_v34 = vld [vmem:[#allocation336_spill] sm:$0xff]  ;;  %v14441_v22 = vld [vmem:[#allocation129_spill] sm:$0xff] }
 0x4f4   : > { %v2021_v26 = vmul.f32 %v14108_v57, %v14436_v12  ;;  %v3916_v2 = vpop.permute.xlu1 %3915  ;;  %6038 = vmatpush1.bf16.msra.mxu1 %v4788_v15  ;;  %v2400_v61 = vadd.f32 %v2144_v58, %v1368_v63  ;;  %v2401_v8 = vadd.f32 %v2145_v30, %v1369_v47  ;;  %v12331_v42 = vmul.f32 %v14106_v0, %v14427_v4  ;;  %v14440_v58 = vld [vmem:[#allocation243_spill] sm:$0xff]  ;;  %v14442_v47 = vld [vmem:[#allocation130_spill] sm:$0xff] }
 0x4f5   : > { %v4198_v43 = vadd.f32 %v3916_v2, %v3430_v18  ;;  %v4199_v39 = vadd.f32 %v3916_v2, %v3431_v37  ;;  %v12335_v59 = vmul.f32 %v14425_v50, %v14437_v5  ;;  %v3306_v19 = vadd.f32 %v3050_v10, %v2274_v28 }
 0x4f6   : > { %v3307_v46 = vadd.f32 %v3051_v52, %v2275_v41  ;;  %v3052_v27 = vmul.f32 %v9278_v32, %v14438_v44  ;;  %v3053_v31 = vmul.f32 %v9280_v16, %v14438_v44  ;;  %v3432_v9 = vadd.f32 %v3176_v62, %v2400_v61  ;;  %v14443_v61 = vld [vmem:[#allocation176_spill] sm:$0xff] }
 0x4f7   : > { %v3433_v48 = vadd.f32 %v3177_v53, %v2401_v8  ;;  %v4074_v33 = vadd.f32 %v3668_v17, %v3306_v19  ;;  %v4454_v7 = vmul.f32 0.01, %v4198_v43  ;;  %v4455_v6 = vmul.f32 0.01, %v4199_v39  ;;  %v4994_v53 = vld [vmem:[%s12995_s3] sm:$0xff]  ;;  %v14445_v19 = vld [vmem:[#allocation225_spill] sm:$0xff] }
 0x4f8   : > { %v4075_v3 = vadd.f32 %v3668_v17, %v3307_v46  ;;  %v3920_v4 = vpop.permute.xlu1 %3919  ;;  %v2276_v24 = vadd.f32 %v2020_v11, %v14439_v34  ;;  %v2277_v30 = vadd.f32 %v2021_v26, %v14440_v58  ;;  %v12345_v15 = vmul.f32 %v14106_v0, %v14437_v5  ;;  %5028 = vperm.xlu1 %7504, %v4994_v53   ;;  %v14444_v17 = vld [vmem:[#allocation177_spill] sm:$0xff] }
 0x4f9   : > { %v4200_v29 = vadd.f32 %v3920_v4, %v3432_v9  ;;  %v4201_v40 = vadd.f32 %v3920_v4, %v3433_v48  ;;  %v12349_v25 = vmul.f32 %v14425_v50, %v14441_v22  ;;  %v12353_v63 = vmul.f32 %v14106_v0, %v14441_v22  ;;  %v4996_v9 = vld [vmem:[%s12995_s3 + $0x10] sm:$0xff]  ;;  %v4995_v48 = vld [vmem:[%s12995_s3 + $0x8] sm:$0xff] }
 0x4fa   : > { %v12357_v1 = vmul.f32 %v14425_v50, %v14442_v47  ;;  %v3308_v38 = vadd.f32 %v3052_v27, %v2276_v24  ;;  %v3309_v62 = vadd.f32 %v3053_v31, %v2277_v30  ;;  %v4330_v18 = vmul.f32 0.01, %v4074_v33  ;;  %5033 = vperm.xlu0 %7505, %v4995_v48  }
 0x4fb   : > { %v4456_v10 = vmul.f32 0.01, %v4200_v29  ;;  %v4457_v52 = vmul.f32 0.01, %v4201_v40  ;;  %v4331_v37 = vmul.f32 0.01, %v4075_v3  ;;  %v4710_v55 = vmax.f32 %v4198_v43, %v4454_v7 }
 0x4fc   : > { %v4711_v28 = vmax.f32 %v4199_v39, %v4455_v6  ;;  %v3672_v41 = vpop.permute.xlu1 %3671  ;;  %v1372_v8 = vmul.f32 %v14425_v50, %v14443_v61  ;;  %v1370_v5 = vmul.f32 %v14425_v50, %v14444_v17  ;;  %v2146_v46 = vmul.f32 %v9274_v14, %v14445_v19  ;;  %5038 = vperm.xlu1 %7504, %v4996_v9   ;;  %v3676_v9 = vpop.permute.xlu0 %3675 }
 0x4fd   : > { %v4712_v12 = vmax.f32 %v4200_v29, %v4456_v10  ;;  %v4713_v11 = vmax.f32 %v4201_v40, %v4457_v52  ;;  %v4076_v26 = vadd.f32 %v3672_v41, %v3308_v38  ;;  %v4077_v2 = vadd.f32 %v3672_v41, %v3309_v62  ;;  %v14446_v40 = vld [vmem:[#allocation96_spill] sm:$0xff] }
 0x4fe   : > { %v2147_v44 = vmul.f32 %v14108_v57, %v14445_v19  ;;  %v1371_v7 = vmul.f32 %v14106_v0, %v14444_v17  ;;  %v4586_v6 = vmax.f32 %v4074_v33, %v4330_v18  ;;  %v4587_v4 = vmax.f32 %v4075_v3, %v4331_v37  ;;  %v14447_v3 = vld [vmem:[#allocation226_spill] sm:$0xff]  ;;  %v4997_v18 = vld [vmem:[%s12995_s3 + $0x18] sm:$0xff] }
 0x4ff   : > { %v4852_v43 = vpack.c.bf16 %v4712_v12, %v4710_v55  ;;  %v4332_v39 = vmul.f32 0.01, %v4076_v26  ;;  %v4333_v27 = vmul.f32 0.01, %v4077_v2  ;;  %v4853_v31 = vpack.c.bf16 %v4713_v11, %v4711_v28  ;;  %v4998_v37 = vld [vmem:[%s12995_s3 + $0x20] sm:$0xff]  ;;  %v14449_v11 = vld [vmem:[#allocation280_spill] sm:$0xff] }
 0x500   : > { %v3178_v34 = vmul.f32 %v9278_v32, %v12302_v21  ;;  %v3179_v24 = vmul.f32 %v9280_v16, %v12302_v21  ;;  %v2022_v22 = vmul.f32 %v9274_v14, %v14446_v40  ;;  %v2023_v33 = vmul.f32 %v14108_v57, %v14446_v40  ;;  %v14448_v28 = vld [vmem:[#allocation22_spill] sm:$0xff]  ;;  %5043 = vperm.xlu1 %7504, %v4997_v18  }
 0x501   : > { %v4588_v58 = vmax.f32 %v4076_v26, %v4332_v39  ;;  %v4589_v30 = vmax.f32 %v4077_v2, %v4333_v27  ;;  %v12382_v29 = vpop.permute.xlu1 %2899  ;;  %6423 = vmatprep.subr.bf16.mxu0 %v4853_v31  ;;  %v2148_v10 = vmul.f32 %v9274_v14, %v14447_v3  ;;  %v2149_v52 = vmul.f32 %v14108_v57, %v14447_v3  ;;  %v5002_v18 = vld [vmem:[%s12995_s3 + $0x40] sm:$0xff] }
 0x502   : > { %6424 = vmatpush1.bf16.msra.mxu0 %v4852_v43  ;;  %v2402_v38 = vadd.f32 %v2146_v46, %v1370_v5  ;;  %v2403_v21 = vadd.f32 %v2147_v44, %v1371_v7  ;;  %v1373_v55 = vmul.f32 %v14106_v0, %v14443_v61  ;;  %v3054_v41 = vmul.f32 %v9278_v32, %v14448_v28  ;;  %v14450_v46 = vld [vmem:[#allocation95_spill] sm:$0xff] }
 0x503   : > { %v4790_v62 = vpack.c.bf16 %v4588_v58, %v4586_v6  ;;  %v4791_v53 = vpack.c.bf16 %v4589_v30, %v4587_v4  ;;  %v3055_v12 = vmul.f32 %v9280_v16, %v14448_v28  ;;  %5048 = vperm.xlu0 %7505, %v4998_v37   ;;  %v3180_v26 = vmul.f32 %v9278_v32, %v14449_v11  ;;  %v4999_v6 = vld [vmem:[%s12995_s3 + $0x28] sm:$0xff]  ;;  %v14452_v37 = vld [vmem:[#allocation132_spill] sm:$0xff] }
 0x504   : > { %v3181_v2 = vmul.f32 %v9280_v16, %v14449_v11  ;;  %v3434_v17 = vadd.f32 %v3178_v34, %v2402_v38  ;;  %v3435_v5 = vadd.f32 %v3179_v24, %v2403_v21  ;;  %v2278_v19 = vadd.f32 %v2022_v22, %v12280_v45  ;;  %v5000_v45 = vld [vmem:[%s12995_s3 + $0x30] sm:$0xff]  ;;  %5053 = vperm.xlu1 %7504, %v4999_v6  }
 0x505   : > { %6039 = vmatprep.subr.bf16.mxu1 %v4791_v53  ;;  %v2279_v61 = vadd.f32 %v2023_v33, %v12284_v49  ;;  %v2024_v44 = vmul.f32 %v9274_v14, %v14450_v46  ;;  %v2025_v43 = vmul.f32 %v14108_v57, %v14450_v46  ;;  %v2404_v27 = vadd.f32 %v2148_v10, %v1372_v8  ;;  %v14451_v8 = vld [vmem:[#allocation29_spill] sm:$0xff] }
 0x506   : > { %v3924_v39 = vpop.permute.xlu1 %3923  ;;  %6040 = vmatpush1.bf16.msra.mxu1 %v4790_v62  ;;  %v2405_v31 = vadd.f32 %v2149_v52, %v1373_v55  ;;  %v12422_v49 = vmul.f32 %v14106_v0, %v14442_v47  ;;  %v3310_v4 = vadd.f32 %v3054_v41, %v2278_v19  ;;  %v3056_v24 = vmul.f32 %v9278_v32, %v14451_v8  ;;  %v5001_v53 = vld [vmem:[%s12995_s3 + $0x38] sm:$0xff] }
 0x507   : > { %v4202_v48 = vadd.f32 %v3924_v39, %v3434_v17  ;;  %v4203_v7 = vadd.f32 %v3924_v39, %v3435_v5  ;;  %v3311_v34 = vadd.f32 %v3055_v12, %v2279_v61  ;;  %5058 = vperm.xlu0 %7505, %v5000_v45   ;;  %v3057_v58 = vmul.f32 %v9280_v16, %v14451_v8  ;;  %v14455_v45 = vld [vmem:[#allocation227_spill] sm:$0xff] }
 0x508   : > { %v3436_v30 = vadd.f32 %v3180_v26, %v2404_v27  ;;  %v3437_v40 = vadd.f32 %v3181_v2, %v2405_v31  ;;  %v4078_v22 = vadd.f32 %v3676_v9, %v3310_v4  ;;  %v2280_v47 = vadd.f32 %v2024_v44, %v12272_v60  ;;  %v14453_v60 = vld [vmem:[#allocation178_spill] sm:$0xff]  ;;  %5063 = vperm.xlu1 %7504, %v5001_v53   ;;  %v5003_v27 = vld [vmem:[%s12995_s3 + $0x48] sm:$0xff]  ;;  %v5004_v31 = vld [vmem:[%s12995_s3 + $0x50] sm:$0xff] }
 0x509   : > { %v4079_v33 = vadd.f32 %v3676_v9, %v3311_v34  ;;  %v4458_v3 = vmul.f32 0.01, %v4202_v48  ;;  %v4459_v10 = vmul.f32 0.01, %v4203_v7  ;;  %v2281_v38 = vadd.f32 %v2025_v43, %v12276_v20  ;;  %v14454_v9 = vld [vmem:[#allocation179_spill] sm:$0xff]  ;;  %v5005_v53 = vld [vmem:[%s12995_s3 + $0x58] sm:$0xff] }
 0x50a   : > { %v3928_v52 = vpop.permute.xlu1 %3927  ;;  %v12438_v55 = vmul.f32 %v14425_v50, %v14452_v37  ;;  %v12442_v28 = vmul.f32 %v14106_v0, %v14452_v37  ;;  %v12446_v20 = vmul.f32 %v14425_v50, %v14453_v60  ;;  %v3312_v11 = vadd.f32 %v3056_v24, %v2280_v47 }
 0x50b   : > { %v4204_v21 = vadd.f32 %v3928_v52, %v3436_v30  ;;  %v4205_v62 = vadd.f32 %v3928_v52, %v3437_v40  ;;  %5068 = vperm.xlu0 %7505, %v5002_v18   ;;  %v3313_v26 = vadd.f32 %v3057_v58, %v2281_v38  ;;  %v4334_v2 = vmul.f32 0.01, %v4078_v22  ;;  %v14456_v30 = vld [vmem:[#allocation100_spill] sm:$0xff] }
 0x50c   : > { %v4335_v17 = vmul.f32 0.01, %v4079_v33  ;;  %v4714_v5 = vmax.f32 %v4202_v48, %v4458_v3  ;;  %v4715_v19 = vmax.f32 %v4203_v7, %v4459_v10  ;;  %v1374_v6 = vmul.f32 %v14425_v50, %v14454_v9  ;;  %5073 = vperm.xlu1 %7504, %v5003_v27   ;;  %v14457_v18 = vld [vmem:[#allocation228_spill] sm:$0xff] }
 0x50d   : > { %v4460_v41 = vmul.f32 0.01, %v4204_v21  ;;  %v4461_v12 = vmul.f32 0.01, %v4205_v62  ;;  %v2150_v48 = vmul.f32 %v9274_v14, %v14455_v45  ;;  %v2151_v7 = vmul.f32 %v14108_v57, %v14455_v45 }
 0x50e   : > { %v3680_v61 = vpop.permute.xlu1 %3679  ;;  %v1375_v58 = vmul.f32 %v14106_v0, %v14454_v9  ;;  %v2026_v40 = vmul.f32 %v9274_v14, %v14456_v30  ;;  %v4590_v3 = vmax.f32 %v4078_v22, %v4334_v2  ;;  %v4591_v10 = vmax.f32 %v4079_v33, %v4335_v17  ;;  %v5006_v22 = vld [vmem:[%s12995_s3 + $0x60] sm:$0xff]  ;;  %v14458_v17 = vld [vmem:[#allocation99_spill] sm:$0xff]  ;;  %v5008_v9 = vld [vmem:[%s12995_s3 + $0x70] sm:$0xff] }
 0x50f   : > { %v4716_v46 = vmax.f32 %v4204_v21, %v4460_v41  ;;  %v4717_v44 = vmax.f32 %v4205_v62, %v4461_v12  ;;  %v4080_v43 = vadd.f32 %v3680_v61, %v3312_v11  ;;  %v4081_v39 = vadd.f32 %v3680_v61, %v3313_v26  ;;  %5078 = vperm.xlu0 %7505, %v5004_v31  }
 0x510   : > { %v3182_v52 = vmul.f32 %v9278_v32, %v12382_v29  ;;  %v3183_v47 = vmul.f32 %v9280_v16, %v12382_v29  ;;  %v2027_v33 = vmul.f32 %v14108_v57, %v14456_v30  ;;  %v2152_v37 = vmul.f32 %v9274_v14, %v14457_v18  ;;  %5083 = vperm.xlu1 %7504, %v5005_v53   ;;  %v14461_v30 = vld [vmem:[#allocation133_spill] sm:$0xff]  ;;  %v5010_v53 = vld [vmem:[%s12995_s3 + $0x80] sm:$0xff] }
 0x511   : > { %v4854_v4 = vpack.c.bf16 %v4716_v46, %v4714_v5  ;;  %v4336_v34 = vmul.f32 0.01, %v4080_v43  ;;  %v4337_v8 = vmul.f32 0.01, %v4081_v39  ;;  %v4855_v24 = vpack.c.bf16 %v4717_v44, %v4715_v19  ;;  %v14459_v19 = vld [vmem:[#allocation292_spill] sm:$0xff]  ;;  %v14460_v44 = vld [vmem:[#allocation345_spill] sm:$0xff] }
 0x512   : > { %v2153_v29 = vmul.f32 %v14108_v57, %v14457_v18  ;;  %v2406_v41 = vadd.f32 %v2150_v48, %v1374_v6  ;;  %v2407_v12 = vadd.f32 %v2151_v7, %v1375_v58  ;;  %v1377_v2 = vmul.f32 %v14106_v0, %v14453_v60  ;;  %v5007_v60 = vld [vmem:[%s12995_s3 + $0x68] sm:$0xff] }
 0x513   : > { %v4592_v38 = vmax.f32 %v4080_v43, %v4336_v34  ;;  %v4593_v21 = vmax.f32 %v4081_v39, %v4337_v8  ;;  %v12468_v62 = vpop.permute.xlu1 %2907  ;;  %6425 = vmatprep.subr.bf16.mxu0 %v4855_v24  ;;  %5088 = vperm.xlu0 %7505, %v5006_v22   ;;  %v2028_v5 = vmul.f32 %v9274_v14, %v14458_v17  ;;  %v3684_v8 = vpop.permute.xlu0 %3683 }
 0x514   : > { %6426 = vmatpush1.bf16.msra.mxu0 %v4854_v4  ;;  %v3058_v61 = vmul.f32 %v9278_v32, %v14459_v19  ;;  %v3059_v46 = vmul.f32 %v9280_v16, %v14459_v19  ;;  %v3184_v43 = vmul.f32 %v9278_v32, %v14460_v44  ;;  %v3185_v39 = vmul.f32 %v9280_v16, %v14460_v44 }
 0x515   : > { %v4792_v11 = vpack.c.bf16 %v4592_v38, %v4590_v3  ;;  %v4793_v26 = vpack.c.bf16 %v4593_v21, %v4591_v10  ;;  %v3438_v27 = vadd.f32 %v3182_v52, %v2406_v41  ;;  %v3439_v31 = vadd.f32 %v3183_v47, %v2407_v12  ;;  %5093 = vperm.xlu1 %7504, %v5007_v60   ;;  %v14462_v10 = vld [vmem:[#allocation300_spill] sm:$0xff]  ;;  %v5009_v21 = vld [vmem:[%s12995_s3 + $0x78] sm:$0xff] }
 0x516   : > { %v2282_v6 = vadd.f32 %v2026_v40, %v12335_v59  ;;  %v2283_v45 = vadd.f32 %v2027_v33, %v12345_v15  ;;  %v2029_v48 = vmul.f32 %v14108_v57, %v14458_v17  ;;  %v2408_v4 = vadd.f32 %v2152_v37, %v12446_v20 }
 0x517   : > { %6041 = vmatprep.subr.bf16.mxu1 %v4793_v26  ;;  %v2409_v34 = vadd.f32 %v2153_v29, %v1377_v2  ;;  %5098 = vperm.xlu0 %7505, %v5008_v9   ;;  %v12507_v3 = vmul.f32 %v14425_v50, %v14461_v30  ;;  %v12511_v59 = vmul.f32 %v14106_v0, %v14461_v30  ;;  %v14463_v2 = vld [vmem:[#allocation134_spill] sm:$0xff] }
 0x518   : > { %v3932_v7 = vpop.permute.xlu1 %3931  ;;  %6042 = vmatpush1.bf16.msra.mxu1 %v4792_v11  ;;  %v3314_v15 = vadd.f32 %v3058_v61, %v2282_v6  ;;  %v3315_v40 = vadd.f32 %v3059_v46, %v2283_v45  ;;  %v3060_v52 = vmul.f32 %v9278_v32, %v14462_v10  ;;  %v3061_v20 = vmul.f32 %v9280_v16, %v14462_v10  ;;  %v14464_v61 = vld [vmem:[#allocation135_spill] sm:$0xff]  ;;  %v14467_v10 = vld [vmem:[#allocation229_spill] sm:$0xff] }
 0x519   : > { %v4206_v24 = vadd.f32 %v3932_v7, %v3438_v27  ;;  %v4207_v58 = vadd.f32 %v3932_v7, %v3439_v31  ;;  %v3440_v47 = vadd.f32 %v3184_v43, %v2408_v4  ;;  %v3441_v38 = vadd.f32 %v3185_v39, %v2409_v34  ;;  %5103 = vperm.xlu1 %7504, %v5009_v21   ;;  %v5011_v39 = vld [vmem:[%s12995_s3 + $0x88] sm:$0xff]  ;;  %v5012_v27 = vld [vmem:[%s12995_s3 + $0x90] sm:$0xff]  ;;  %v5013_v21 = vld [vmem:[%s12995_s3 + $0x98] sm:$0xff] }
 0x51a   : > { %v4082_v22 = vadd.f32 %v3684_v8, %v3314_v15  ;;  %v4083_v33 = vadd.f32 %v3684_v8, %v3315_v40  ;;  %v2284_v41 = vadd.f32 %v2028_v5, %v12288_v35  ;;  %v2285_v12 = vadd.f32 %v2029_v48, %v12331_v42  ;;  %v14465_v8 = vld [vmem:[#allocation2_spill] sm:$0xff]  ;;  %v14466_v15 = vld [vmem:[#allocation180_spill] sm:$0xff] }
 0x51b   : > { %v4462_v18 = vmul.f32 0.01, %v4206_v24  ;;  %v4463_v37 = vmul.f32 0.01, %v4207_v58  ;;  %5108 = vperm.xlu0 %7505, %v5010_v53   ;;  %v12527_v17 = vmul.f32 %v14425_v50, %v14463_v2  ;;  %v12531_v19 = vmul.f32 %v14106_v0, %v14463_v2  ;;  %v5014_v53 = vld [vmem:[%s12995_s3 + $0xa0] sm:$0xff] }
 0x51c   : > { %v3936_v29 = vpop.permute.xlu1 %3935  ;;  %v12535_v46 = vmul.f32 %v14425_v50, %v14464_v61  ;;  %v12539_v35 = vmul.f32 %v14106_v0, %v14464_v61  ;;  %v3316_v44 = vadd.f32 %v3060_v52, %v2284_v41  ;;  %v3317_v43 = vadd.f32 %v3061_v20, %v2285_v12  ;;  %v14468_v61 = vld [vmem:[#allocation104_spill] sm:$0xff] }
 0x51d   : > { %v4208_v11 = vadd.f32 %v3936_v29, %v3440_v47  ;;  %v4209_v26 = vadd.f32 %v3936_v29, %v3441_v38  ;;  %v4338_v31 = vmul.f32 0.01, %v4082_v22  ;;  %v4339_v60 = vmul.f32 0.01, %v4083_v33  ;;  %5113 = vperm.xlu1 %7504, %v5011_v39  }
 0x51e   : > { %v4718_v9 = vmax.f32 %v4206_v24, %v4462_v18  ;;  %v4719_v6 = vmax.f32 %v4207_v58, %v4463_v37  ;;  %v1380_v30 = vmul.f32 %v14425_v50, %v14465_v8  ;;  %v1378_v40 = vmul.f32 %v14425_v50, %v14466_v15 }
 0x51f   : > { %v4464_v42 = vmul.f32 0.01, %v4208_v11  ;;  %v4465_v5 = vmul.f32 0.01, %v4209_v26  ;;  %5118 = vperm.xlu0 %7505, %v5012_v27   ;;  %v2154_v52 = vmul.f32 %v9274_v14, %v14467_v10  ;;  %v2155_v24 = vmul.f32 %v14108_v57, %v14467_v10 }
 0x520   : > { %v3688_v45 = vpop.permute.xlu1 %3687  ;;  %v1379_v18 = vmul.f32 %v14106_v0, %v14466_v15  ;;  %v4594_v37 = vmax.f32 %v4082_v22, %v4338_v31  ;;  %v4595_v29 = vmax.f32 %v4083_v33, %v4339_v60  ;;  %v3186_v41 = vmul.f32 %v9278_v32, %v12468_v62  ;;  %v14469_v33 = vld [vmem:[#allocation230_spill] sm:$0xff]  ;;  %v5015_v31 = vld [vmem:[%s12995_s3 + $0xa8] sm:$0xff]  ;;  %v5016_v60 = vld [vmem:[%s12995_s3 + $0xb0] sm:$0xff] }
 0x521   : > { %v4720_v48 = vmax.f32 %v4208_v11, %v4464_v42  ;;  %v4721_v7 = vmax.f32 %v4209_v26, %v4465_v5  ;;  %v4084_v4 = vadd.f32 %v3688_v45, %v3316_v44  ;;  %v4085_v34 = vadd.f32 %v3688_v45, %v3317_v43  ;;  %5123 = vperm.xlu1 %7504, %v5013_v21   ;;  %v3692_v21 = vpop.permute.xlu0 %3691 }
 0x522   : > { %v3187_v12 = vmul.f32 %v9280_v16, %v12468_v62  ;;  %v2030_v42 = vmul.f32 %v9274_v14, %v14468_v61  ;;  %v2031_v22 = vmul.f32 %v14108_v57, %v14468_v61  ;;  %v2156_v5 = vmul.f32 %v9274_v14, %v14469_v33 }
 0x523   : > { %v4856_v58 = vpack.c.bf16 %v4720_v48, %v4718_v9  ;;  %v4340_v20 = vmul.f32 0.01, %v4084_v4  ;;  %v4341_v47 = vmul.f32 0.01, %v4085_v34  ;;  %v4857_v38 = vpack.c.bf16 %v4721_v7, %v4719_v6  ;;  %5128 = vperm.xlu0 %7505, %v5014_v53   ;;  %v14470_v6 = vld [vmem:[#allocation30_spill] sm:$0xff]  ;;  %v14471_v7 = vld [vmem:[#allocation299_spill] sm:$0xff] }
 0x524   : > { %v2157_v44 = vmul.f32 %v14108_v57, %v14469_v33  ;;  %v2410_v62 = vadd.f32 %v2154_v52, %v1378_v40  ;;  %v2411_v43 = vadd.f32 %v2155_v24, %v1379_v18  ;;  %v1381_v9 = vmul.f32 %v14106_v0, %v14465_v8  ;;  %v14472_v52 = vld [vmem:[#allocation103_spill] sm:$0xff] }
 0x525   : > { %v4596_v11 = vmax.f32 %v4084_v4, %v4340_v20  ;;  %v4597_v26 = vmax.f32 %v4085_v34, %v4341_v47  ;;  %v12567_v2 = vpop.permute.xlu1 %2915  ;;  %6427 = vmatprep.subr.bf16.mxu0 %v4857_v38  ;;  %v3062_v45 = vmul.f32 %v9278_v32, %v14470_v6  ;;  %v3063_v48 = vmul.f32 %v9280_v16, %v14470_v6  ;;  %v5020_v6 = vld [vmem:[%s12995_s3 + $0xd0] sm:$0xff] }
 0x526   : > { %6428 = vmatpush1.bf16.msra.mxu0 %v4856_v58  ;;  %v3188_v4 = vmul.f32 %v9278_v32, %v14471_v7  ;;  %5133 = vperm.xlu1 %7504, %v5015_v31   ;;  %v3189_v34 = vmul.f32 %v9280_v16, %v14471_v7  ;;  %v3442_v15 = vadd.f32 %v3186_v41, %v2410_v62 }
 0x527   : > { %v4794_v39 = vpack.c.bf16 %v4596_v11, %v4594_v37  ;;  %v4795_v27 = vpack.c.bf16 %v4597_v26, %v4595_v29  ;;  %v3443_v40 = vadd.f32 %v3187_v12, %v2411_v43  ;;  %5138 = vperm.xlu0 %7505, %v5016_v60   ;;  %v2286_v10 = vadd.f32 %v2030_v42, %v12357_v1  ;;  %v5017_v37 = vld [vmem:[%s12995_s3 + $0xb8] sm:$0xff]  ;;  %v5018_v1 = vld [vmem:[%s12995_s3 + $0xc0] sm:$0xff]  ;;  %v14474_v11 = vld [vmem:[#allocation311_spill] sm:$0xff] }
 0x528   : > { %v2287_v8 = vadd.f32 %v2031_v22, %v12422_v49  ;;  %v2032_v24 = vmul.f32 %v9274_v14, %v14472_v52  ;;  %v2033_v58 = vmul.f32 %v14108_v57, %v14472_v52  ;;  %v2412_v47 = vadd.f32 %v2156_v5, %v1380_v30  ;;  %v14473_v49 = vld [vmem:[#allocation4_spill] sm:$0xff] }
 0x529   : > { %6043 = vmatprep.subr.bf16.mxu1 %v4795_v27  ;;  %v2413_v38 = vadd.f32 %v2157_v44, %v1381_v9  ;;  %v12607_v29 = vmul.f32 %v14425_v50, %v14473_v49  ;;  %v12611_v41 = vmul.f32 %v14106_v0, %v14473_v49  ;;  %v3318_v30 = vadd.f32 %v3062_v45, %v2286_v10  ;;  %v5019_v9 = vld [vmem:[%s12995_s3 + $0xc8] sm:$0xff]  ;;  %v5022_v49 = vld [vmem:[%s12995_s3 + $0xe0] sm:$0xff] }
 0x52a   : > { %v3940_v20 = vpop.permute.xlu1 %3939  ;;  %6044 = vmatpush1.bf16.msra.mxu1 %v4794_v39  ;;  %v3319_v12 = vadd.f32 %v3063_v48, %v2287_v8  ;;  %5143 = vperm.xlu1 %7504, %v5017_v37   ;;  %v3064_v26 = vmul.f32 %v9278_v32, %v14474_v11  ;;  %v3065_v61 = vmul.f32 %v9280_v16, %v14474_v11  ;;  %v14475_v45 = vld [vmem:[#allocation3_spill] sm:$0xff] }
 0x52b   : > { %v4210_v53 = vadd.f32 %v3940_v20, %v3442_v15  ;;  %v4211_v18 = vadd.f32 %v3940_v20, %v3443_v40  ;;  %v3444_v42 = vadd.f32 %v3188_v4, %v2412_v47  ;;  %v3445_v22 = vadd.f32 %v3189_v34, %v2413_v38  ;;  %5148 = vperm.xlu0 %7505, %v5018_v1   ;;  %v14476_v4 = vld [vmem:[#allocation6_spill] sm:$0xff]  ;;  %v5021_v1 = vld [vmem:[%s12995_s3 + $0xd8] sm:$0xff] }
 0x52c   : > { %v4086_v33 = vadd.f32 %v3692_v21, %v3318_v30  ;;  %v4087_v5 = vadd.f32 %v3692_v21, %v3319_v12  ;;  %v2288_v39 = vadd.f32 %v2032_v24, %v12349_v25  ;;  %v2289_v27 = vadd.f32 %v2033_v58, %v12353_v63  ;;  %v14477_v30 = vld [vmem:[#allocation5_spill] sm:$0xff] }
 0x52d   : > { %v4466_v44 = vmul.f32 0.01, %v4210_v53  ;;  %v4467_v62 = vmul.f32 0.01, %v4211_v18  ;;  %v1382_v48 = vmul.f32 %v14425_v50, %v14475_v45  ;;  %v1383_v7 = vmul.f32 %v14106_v0, %v14475_v45 }
 0x52e   : > { %v3944_v43 = vpop.permute.xlu1 %3943  ;;  %v12631_v25 = vmul.f32 %v14425_v50, %v14476_v4  ;;  %v12635_v63 = vmul.f32 %v14106_v0, %v14476_v4  ;;  %5153 = vperm.xlu1 %7504, %v5019_v9   ;;  %v3320_v40 = vadd.f32 %v3064_v26, %v2288_v39  ;;  %v3321_v10 = vadd.f32 %v3065_v61, %v2289_v27  ;;  %v14480_v39 = vld [vmem:[#allocation108_spill] sm:$0xff] }
 0x52f   : > { %v4212_v31 = vadd.f32 %v3944_v43, %v3444_v42  ;;  %v4213_v60 = vadd.f32 %v3944_v43, %v3445_v22  ;;  %5158 = vperm.xlu0 %7505, %v5020_v6   ;;  %v4342_v8 = vmul.f32 0.01, %v4086_v33  ;;  %v4343_v52 = vmul.f32 0.01, %v4087_v5 }
 0x530   : > { %v4722_v24 = vmax.f32 %v4210_v53, %v4466_v44  ;;  %v4723_v58 = vmax.f32 %v4211_v18, %v4467_v62  ;;  %v12645_v12 = vmul.f32 %v14425_v50, %v14477_v30  ;;  %v12649_v53 = vmul.f32 %v14106_v0, %v14477_v30  ;;  %v14478_v18 = vld [vmem:[#allocation231_spill] sm:$0xff]  ;;  %v14479_v62 = vld [vmem:[#allocation8_spill] sm:$0xff] }
 0x531   : > { %v4468_v34 = vmul.f32 0.01, %v4212_v31  ;;  %v4469_v15 = vmul.f32 0.01, %v4213_v60  ;;  %v2158_v11 = vmul.f32 %v9274_v14, %v14478_v18  ;;  %v2159_v26 = vmul.f32 %v14108_v57, %v14478_v18 }
 0x532   : > { %v3696_v20 = vpop.permute.xlu1 %3695  ;;  %5163 = vperm.xlu1 %7504, %v5021_v1   ;;  %v12657_v43 = vmul.f32 %v14425_v50, %v14479_v62  ;;  %v2034_v27 = vmul.f32 %v9274_v14, %v14480_v39  ;;  %v3190_v9 = vmul.f32 %v9278_v32, %v12567_v2  ;;  %v3191_v6 = vmul.f32 %v9280_v16, %v12567_v2 }
 0x533   : > { %v4724_v47 = vmax.f32 %v4212_v31, %v4468_v34  ;;  %v4725_v38 = vmax.f32 %v4213_v60, %v4469_v15  ;;  %v4088_v21 = vadd.f32 %v3696_v20, %v3320_v40  ;;  %v4089_v37 = vadd.f32 %v3696_v20, %v3321_v10  ;;  %5168 = vperm.xlu0 %7505, %v5022_v49   ;;  %v5023_v15 = vld [vmem:[%s12995_s3 + $0xe8] sm:$0xff]  ;;  %v14481_v40 = vld [vmem:[#allocation232_spill] sm:$0xff] }
 0x534   : > { %v4598_v31 = vmax.f32 %v4086_v33, %v4342_v8  ;;  %v4599_v60 = vmax.f32 %v4087_v5, %v4343_v52  ;;  %v5024_v33 = vld [vmem:[%s12995_s3 + $0xf0] sm:$0xff]  ;;  %v2035_v5 = vmul.f32 %v14108_v57, %v14480_v39  ;;  %v2160_v10 = vmul.f32 %v9274_v14, %v14481_v40  ;;  %v14484_v49 = vld [vmem:[#allocation247_spill] sm:$0xff] }
 0x535   : > { %v4858_v61 = vpack.c.bf16 %v4724_v47, %v4722_v24  ;;  %v4344_v42 = vmul.f32 0.01, %v4088_v21  ;;  %v4345_v22 = vmul.f32 0.01, %v4089_v37  ;;  %v4859_v44 = vpack.c.bf16 %v4725_v38, %v4723_v58  ;;  %v14482_v47 = vld [vmem:[#allocation107_spill] sm:$0xff] }
 0x536   : > { %v2161_v2 = vmul.f32 %v14108_v57, %v14481_v40  ;;  %5173 = vperm.xlu1 %7504, %v5023_v15   ;;  %v2414_v8 = vadd.f32 %v2158_v11, %v1382_v48  ;;  %v2415_v52 = vadd.f32 %v2159_v26, %v1383_v7  ;;  %v12681_v20 = vmul.f32 %v14106_v0, %v14479_v62  ;;  %v5025_v11 = vld [vmem:[%s12995_s3 + $0xf8] sm:$0xff]  ;;  %v6759_v26 = vld [vmem:[%s12997_s5] sm:$0xff] }
 0x537   : > { %v4600_v45 = vmax.f32 %v4088_v21, %v4344_v42  ;;  %v4601_v4 = vmax.f32 %v4089_v37, %v4345_v22  ;;  %v12665_v34 = vpop.permute.xlu1 %2923  ;;  %6429 = vmatprep.subr.bf16.mxu0 %v4859_v44  ;;  %5178 = vperm.xlu0 %7505, %v5024_v33   ;;  %v2036_v38 = vmul.f32 %v9274_v14, %v14482_v47  ;;  %v14483_v21 = vld [vmem:[#allocation12_spill] sm:$0xff] }
 0x538   : > { %6430 = vmatpush1.bf16.msra.mxu0 %v4858_v61  ;;  %v3066_v37 = vmul.f32 %v9278_v32, %v14483_v21  ;;  %v3067_v1 = vmul.f32 %v9280_v16, %v14483_v21  ;;  %v3192_v48 = vmul.f32 %v9278_v32, %v14484_v49  ;;  %v3193_v7 = vmul.f32 %v9280_v16, %v14484_v49 }
 0x539   : > { %v4796_v24 = vpack.c.bf16 %v4600_v45, %v4598_v31  ;;  %v4797_v58 = vpack.c.bf16 %v4601_v4, %v4599_v60  ;;  %v3446_v30 = vadd.f32 %v3190_v9, %v2414_v8  ;;  %v3447_v18 = vadd.f32 %v3191_v6, %v2415_v52  ;;  %v3700_v31 = vpop.permute.xlu0 %3699  ;;  %v14485_v6 = vld [vmem:[#allocation7_spill] sm:$0xff]  ;;  %v14486_v4 = vld [vmem:[#allocation321_spill] sm:$0xff] }
 0x53a   : > { %v2290_v61 = vadd.f32 %v2034_v27, %v12507_v3  ;;  %v2291_v42 = vadd.f32 %v2035_v5, %v12511_v59  ;;  %v2037_v22 = vmul.f32 %v14108_v57, %v14482_v47  ;;  %5183 = vperm.xlu1 %7504, %v5025_v11   ;;  %v2416_v62 = vadd.f32 %v2160_v10, %v12607_v29 }
 0x53b   : > { %6045 = vmatprep.subr.bf16.mxu1 %v4797_v58  ;;  %v2417_v39 = vadd.f32 %v2161_v2, %v12611_v41  ;;  %6762 = vperm.xlu0 %7505, %v6759_v26   ;;  %v12707_v45 = vmul.f32 %v14425_v50, %v14485_v6  ;;  %v12711_v3 = vmul.f32 %v14106_v0, %v14485_v6  ;;  %v14487_v58 = vld [vmem:[#allocation112_spill] sm:$0xff] }
 0x53c   : > { %v3948_v44 = vpop.permute.xlu1 %3947  ;;  %6046 = vmatpush1.bf16.msra.mxu1 %v4796_v24  ;;  %v3322_v59 = vadd.f32 %v3066_v37, %v2290_v61  ;;  %v3323_v27 = vadd.f32 %v3067_v1, %v2291_v42  ;;  %v3068_v15 = vmul.f32 %v9278_v32, %v14486_v4  ;;  %v3069_v29 = vmul.f32 %v9280_v16, %v14486_v4  ;;  %v14488_v37 = vld [vmem:[#allocation111_spill] sm:$0xff] }
 0x53d   : > { %v4214_v60 = vadd.f32 %v3948_v44, %v3446_v30  ;;  %v4215_v9 = vadd.f32 %v3948_v44, %v3447_v18  ;;  %v3448_v41 = vadd.f32 %v3192_v48, %v2416_v62  ;;  %v3449_v33 = vadd.f32 %v3193_v7, %v2417_v39 }
 0x53e   : > { %v4090_v5 = vadd.f32 %v3700_v31, %v3322_v59  ;;  %v4091_v40 = vadd.f32 %v3700_v31, %v3323_v27  ;;  %v2292_v8 = vadd.f32 %v2036_v38, %v12438_v55  ;;  %v2293_v0 = vadd.f32 %v2037_v22, %v12442_v28  ;;  %v14489_v31 = vld [vmem:[#allocation233_spill] sm:$0xff] }
 0x53f   : > { %v4470_v10 = vmul.f32 0.01, %v4214_v60  ;;  %v4471_v2 = vmul.f32 0.01, %v4215_v9  ;;  %v2038_v47 = vmul.f32 %v9274_v14, %v14487_v58  ;;  %v2039_v21 = vmul.f32 %v14108_v57, %v14487_v58  ;;  %v14491_v58 = vld [vmem:[#allocation240_spill] sm:$0xff] }
 0x540   : > { %v3952_v50 = vpop.permute.xlu1 %3951  ;;  %v2040_v1 = vmul.f32 %v9274_v14, %v14488_v37  ;;  %v2041_v49 = vmul.f32 %v14108_v57, %v14488_v37  ;;  %v3324_v30 = vadd.f32 %v3068_v15, %v2292_v8  ;;  %v3325_v55 = vadd.f32 %v3069_v29, %v2293_v0 }
 0x541   : > { %v4216_v52 = vadd.f32 %v3952_v50, %v3448_v41  ;;  %v4217_v24 = vadd.f32 %v3952_v50, %v3449_v33  ;;  %v4346_v38 = vmul.f32 0.01, %v4090_v5  ;;  %v4347_v28 = vmul.f32 0.01, %v4091_v40 }
 0x542   : > { %v4726_v18 = vmax.f32 %v4214_v60, %v4470_v10  ;;  %v4727_v11 = vmax.f32 %v4215_v9, %v4471_v2  ;;  %v2294_v62 = vadd.f32 %v2038_v47, %v12535_v46  ;;  %v2295_v39 = vadd.f32 %v2039_v21, %v12539_v35  ;;  %v14490_v9 = vld [vmem:[#allocation234_spill] sm:$0xff] }
 0x543   : > { %v4472_v48 = vmul.f32 0.01, %v4216_v52  ;;  %v4473_v7 = vmul.f32 0.01, %v4217_v24  ;;  %v2162_v6 = vmul.f32 %v9274_v14, %v14489_v31  ;;  %v2163_v59 = vmul.f32 %v14108_v57, %v14489_v31 }
 0x544   : > { %v3704_v26 = vpop.permute.xlu1 %3703  ;;  %v2164_v29 = vmul.f32 %v9274_v14, %v14490_v9  ;;  %v2165_v41 = vmul.f32 %v14108_v57, %v14490_v9  ;;  %v4602_v33 = vmax.f32 %v4090_v5, %v4346_v38  ;;  %v4603_v46 = vmax.f32 %v4091_v40, %v4347_v28  ;;  %v14495_v28 = vld [vmem:[#allocation330_spill] sm:$0xff] }
 0x545   : > { %v4728_v61 = vmax.f32 %v4216_v52, %v4472_v48  ;;  %v4729_v42 = vmax.f32 %v4217_v24, %v4473_v7  ;;  %v4092_v22 = vadd.f32 %v3704_v26, %v3324_v30  ;;  %v4093_v44 = vadd.f32 %v3704_v26, %v3325_v55  ;;  %v3708_v30 = vpop.permute.xlu0 %3707  ;;  %v14496_v26 = vld [vmem:[#allocation248_spill] sm:$0xff] }
 0x546   : > { %v3194_v35 = vmul.f32 %v9278_v32, %v12665_v34  ;;  %v3195_v10 = vmul.f32 %v9280_v16, %v12665_v34  ;;  %v2296_v0 = vadd.f32 %v2040_v1, %v12527_v17  ;;  %v2297_v52 = vadd.f32 %v2041_v49, %v12531_v19  ;;  %v14492_v17 = vld [vmem:[#allocation235_spill] sm:$0xff]  ;;  %v14493_v1 = vld [vmem:[#allocation236_spill] sm:$0xff]  ;;  %v14494_v49 = vld [vmem:[#allocation349_spill] sm:$0xff] }
 0x547   : > { %v4860_v27 = vpack.c.bf16 %v4728_v61, %v4726_v18  ;;  %v4348_v4 = vmul.f32 0.01, %v4092_v22  ;;  %v4349_v15 = vmul.f32 0.01, %v4093_v44  ;;  %v4861_v60 = vpack.c.bf16 %v4729_v42, %v4727_v11 }
 0x548   : > { %v2418_v24 = vadd.f32 %v2162_v6, %v12645_v12  ;;  %v3070_v5 = vmul.f32 %v9278_v32, %v14491_v58  ;;  %v2419_v40 = vadd.f32 %v2163_v59, %v12649_v53  ;;  %v3071_v47 = vmul.f32 %v9280_v16, %v14491_v58 }
 0x549   : > { %v4604_v2 = vmax.f32 %v4092_v22, %v4348_v4  ;;  %v4605_v50 = vmax.f32 %v4093_v44, %v4349_v15  ;;  %v2932_v8 = vpop.permute.xlu1 %2931  ;;  %6431 = vmatprep.subr.bf16.mxu0 %v4861_v60  ;;  %v2420_v37 = vadd.f32 %v2164_v29, %v12631_v25  ;;  %v2421_v48 = vadd.f32 %v2165_v41, %v12635_v63 }
 0x54a   : > { %6432 = vmatpush1.bf16.msra.mxu0 %v4860_v27  ;;  %v2166_v19 = vmul.f32 %v9274_v14, %v14492_v17  ;;  %v2168_v12 = vmul.f32 %v9274_v14, %v14493_v1  ;;  %v3196_v7 = vmul.f32 %v9278_v32, %v14494_v49  ;;  %v3197_v53 = vmul.f32 %v9280_v16, %v14494_v49 }
 0x54b   : > { %v4798_v34 = vpack.c.bf16 %v4604_v2, %v4602_v33  ;;  %v4799_v21 = vpack.c.bf16 %v4605_v50, %v4603_v46  ;;  %v3450_v55 = vadd.f32 %v3194_v35, %v2418_v24  ;;  %v3451_v38 = vadd.f32 %v3195_v10, %v2419_v40 }
 0x54c   : > { %v2167_v25 = vmul.f32 %v14108_v57, %v14492_v17  ;;  %v2169_v63 = vmul.f32 %v14108_v57, %v14493_v1  ;;  %v3072_v18 = vmul.f32 %v9278_v32, %v14495_v28  ;;  %v3326_v14 = vadd.f32 %v3070_v5, %v2294_v62 }
 0x54d   : > { %6047 = vmatprep.subr.bf16.mxu1 %v4799_v21  ;;  %v3200_v61 = vmul.f32 %v9278_v32, %v14496_v26  ;;  %v3327_v42 = vadd.f32 %v3071_v47, %v2295_v39  ;;  %v2422_v31 = vadd.f32 %v2166_v19, %v12707_v45  ;;  %v2424_v6 = vadd.f32 %v2168_v12, %v12657_v43  ;;  %v3968_v45 = vpop.permute.xlu0 %3967 }
 0x54e   : > { %v3956_v11 = vpop.permute.xlu1 %3955  ;;  %6048 = vmatpush1.bf16.msra.mxu1 %v4798_v34  ;;  %v3201_v59 = vmul.f32 %v9280_v16, %v14496_v26  ;;  %v4094_v57 = vadd.f32 %v3708_v30, %v3326_v14  ;;  %v3073_v27 = vmul.f32 %v9280_v16, %v14495_v28  ;;  %v3452_v4 = vadd.f32 %v3196_v7, %v2420_v37 }
 0x54f   : > { %v4218_v22 = vadd.f32 %v3956_v11, %v3450_v55  ;;  %v4219_v44 = vadd.f32 %v3956_v11, %v3451_v38  ;;  %v4095_v62 = vadd.f32 %v3708_v30, %v3327_v42  ;;  %v3453_v15 = vadd.f32 %v3197_v53, %v2421_v48  ;;  %v4879_v42 = vld [vmem:[%s12994_s2 + $0x68] sm:$0xff] }
 0x550   : > { %v2423_v60 = vadd.f32 %v2167_v25, %v12711_v3  ;;  %v2425_v39 = vadd.f32 %v2169_v63, %v12681_v20  ;;  %v3456_v33 = vadd.f32 %v3200_v61, %v2424_v6  ;;  %v3328_v35 = vadd.f32 %v3072_v18, %v2296_v0  ;;  %v4875_v61 = vld [vmem:[%s12994_s2 + $0x48] sm:$0xff] }
 0x551   : > { %v4474_v9 = vmul.f32 0.01, %v4218_v22  ;;  %v4475_v29 = vmul.f32 0.01, %v4219_v44  ;;  %v4350_v10 = vmul.f32 0.01, %v4094_v57  ;;  %v3198_v50 = vmul.f32 %v9278_v32, %v2932_v8 }
 0x552   : > { %v3960_v41 = vpop.permute.xlu1 %3959  ;;  %v3457_v2 = vadd.f32 %v3201_v59, %v2425_v39  ;;  %v3199_v24 = vmul.f32 %v9280_v16, %v2932_v8  ;;  %v4351_v58 = vmul.f32 0.01, %v4095_v62  ;;  %v3329_v3 = vadd.f32 %v3073_v27, %v2297_v52  ;;  %v4887_v39 = vld [vmem:[%s12994_s2 + $0xa8] sm:$0xff] }
 0x553   : > { %v4220_v43 = vadd.f32 %v3960_v41, %v3452_v4  ;;  %v4221_v46 = vadd.f32 %v3960_v41, %v3453_v15  ;;  %v4224_v47 = vadd.f32 %v3968_v45, %v3456_v33  ;;  %v4730_v34 = vmax.f32 %v4218_v22, %v4474_v9  ;;  %v4881_v4 = vld [vmem:[%s12994_s2 + $0x78] sm:$0xff] }
 0x554   : > { %v4225_v20 = vadd.f32 %v3968_v45, %v3457_v2  ;;  %v4731_v21 = vmax.f32 %v4219_v44, %v4475_v29  ;;  %v3454_v0 = vadd.f32 %v3198_v50, %v2422_v31  ;;  %v3455_v12 = vadd.f32 %v3199_v24, %v2423_v60  ;;  %v4883_v60 = vld [vmem:[%s12994_s2 + $0x88] sm:$0xff]  ;;  %v4893_v33 = vld [vmem:[%s12994_s2 + $0xd8] sm:$0xff] }
 0x555   : > { %v4476_v5 = vmul.f32 0.01, %v4220_v43  ;;  %v4477_v40 = vmul.f32 0.01, %v4221_v46  ;;  %v4606_v16 = vmax.f32 %v4094_v57, %v4350_v10  ;;  %v4607_v8 = vmax.f32 %v4095_v62, %v4351_v58  ;;  %v4877_v62 = vld [vmem:[%s12994_s2 + $0x58] sm:$0xff]  ;;  %v4899_v10 = vld [vmem:[%s12994_s2 + $0x108] sm:$0xff] }
 0x556   : > { %v3712_v37 = vpop.permute.xlu1 %3711  ;;  %v4480_v30 = vmul.f32 0.01, %v4224_v47  ;;  %v4481_v55 = vmul.f32 0.01, %v4225_v20  ;;  %v7028_v59 = vcombine.high %v4875_v61, %v4879_v42  ;;  %v7032_v15 = vcombine.high %v4877_v62, %v4881_v4  ;;  %v4903_v2 = vld [vmem:[%s12994_s2 + $0x128] sm:$0xff]  ;;  %v4901_v58 = vld [vmem:[%s12994_s2 + $0x118] sm:$0xff] }
 0x557   : > { %v4732_v48 = vmax.f32 %v4220_v43, %v4476_v5  ;;  %v4733_v17 = vmax.f32 %v4221_v46, %v4477_v40  ;;  %v4096_v19 = vadd.f32 %v3712_v37, %v3328_v35  ;;  %v4097_v1 = vadd.f32 %v3712_v37, %v3329_v3  ;;  %v4897_v43 = vld [vmem:[%s12994_s2 + $0xf8] sm:$0xff] }
 0x558   : > { %v4736_v22 = vmax.f32 %v4224_v47, %v4480_v30  ;;  %v4737_v44 = vmax.f32 %v4225_v20, %v4481_v55  ;;  %v7027_v9 = vcombine.low %v4875_v61, %v4879_v42  ;;  %v7036_v51 = vcombine.high %v4883_v60, %v4887_v39  ;;  %v4905_v5 = vld [vmem:[%s12994_s2 + $0x138] sm:$0xff]  ;;  %v4907_v47 = vld [vmem:[%s12994_s2 + $0x148] sm:$0xff] }
 0x559   : > { %v4862_v49 = vpack.c.bf16 %v4732_v48, %v4730_v34  ;;  %v4352_v7 = vmul.f32 0.01, %v4096_v19  ;;  %v4353_v32 = vmul.f32 0.01, %v4097_v1  ;;  %v4863_v53 = vpack.c.bf16 %v4733_v17, %v4731_v21  ;;  %v4911_v20 = vld [vmem:[%s12994_s2 + $0x168] sm:$0xff]  ;;  %v4909_v37 = vld [vmem:[%s12994_s2 + $0x158] sm:$0xff] }
 0x55a   : > { %v3964_v52 = vpop.permute.xlu1 %3963  ;;  %v7031_v29 = vcombine.low %v4877_v62, %v4881_v4  ;;  %v7044_v45 = vcombine.high %v4891_v56, %v4895_v36  ;;  %v7048_v35 = vcombine.high %v4893_v33, %v4897_v43  ;;  %v7043_v50 = vcombine.low %v4891_v56, %v4895_v36  ;;  %v4913_v48 = vld [vmem:[%s12994_s2 + $0x178] sm:$0xff]  ;;  %v4927_v30 = vld [vmem:[%s12994_s2 + $0x1e8] sm:$0xff] }
 0x55b   : > { %v4608_v38 = vmax.f32 %v4096_v19, %v4352_v7  ;;  %v4609_v25 = vmax.f32 %v4097_v1, %v4353_v32  ;;  %v4222_v63 = vadd.f32 %v3964_v52, %v3454_v0  ;;  %v4223_v28 = vadd.f32 %v3964_v52, %v3455_v12  ;;  %6433 = vmatprep.subr.bf16.mxu0 %v4863_v53  ;;  %v4915_v1 = vld [vmem:[%s12994_s2 + $0x188] sm:$0xff]  ;;  %v4917_v7 = vld [vmem:[%s12994_s2 + $0x198] sm:$0xff] }
 0x55c   : > { %6434 = vmatpush1.bf16.msra.mxu0 %v4862_v49  ;;  %v7052_v24 = vcombine.high %v4899_v10, %v4903_v2  ;;  %v7047_v40 = vcombine.low %v4893_v33, %v4897_v43  ;;  %v7056_v3 = vcombine.high %v4901_v58, %v4905_v5  ;;  %v7051_v34 = vcombine.low %v4899_v10, %v4903_v2  ;;  %v4919_v0 = vld [vmem:[%s12994_s2 + $0x1a8] sm:$0xff]  ;;  %v4921_v32 = vld [vmem:[%s12994_s2 + $0x1b8] sm:$0xff] }
 0x55d   : > { %v4800_v18 = vpack.c.bf16 %v4608_v38, %v4606_v16  ;;  %v4478_v14 = vmul.f32 0.01, %v4222_v63  ;;  %v4479_v11 = vmul.f32 0.01, %v4223_v28  ;;  %v4801_v26 = vpack.c.bf16 %v4609_v25, %v4607_v8  ;;  %v4923_v8 = vld [vmem:[%s12994_s2 + $0x1c8] sm:$0xff]  ;;  %v4925_v38 = vld [vmem:[%s12994_s2 + $0x1d8] sm:$0xff] }
 0x55e   : > { %v7060_v21 = vcombine.high %v4907_v47, %v4911_v20  ;;  %v7055_v17 = vcombine.low %v4901_v58, %v4905_v5  ;;  %v7064_v19 = vcombine.high %v4909_v37, %v4913_v48  ;;  %v7059_v12 = vcombine.low %v4907_v47, %v4911_v20  ;;  %v4929_v25 = vld [vmem:[%s12994_s2 + $0x1f8] sm:$0xff]  ;;  %v4955_v56 = vld [vmem:[%s12994_s2 + $0x2c8] sm:$0xff] }
 0x55f   : > { %v4734_v31 = vmax.f32 %v4222_v63, %v4478_v14  ;;  %v4735_v6 = vmax.f32 %v4223_v28, %v4479_v11  ;;  %6049 = vmatprep.subr.bf16.mxu1 %v4801_v26  ;;  %v7068_v49 = vcombine.high %v4915_v1, %v4919_v0  ;;  %v7063_v53 = vcombine.low %v4909_v37, %v4913_v48  ;;  %v4935_v14 = vld [vmem:[%s12994_s2 + $0x228] sm:$0xff]  ;;  %v4933_v61 = vld [vmem:[%s12994_s2 + $0x218] sm:$0xff] }
 0x560   : > { %6050 = vmatpush1.bf16.msra.mxu1 %v4800_v18  ;;  %v7072_v16 = vcombine.high %v4917_v7, %v4921_v32  ;;  %v7067_v55 = vcombine.low %v4915_v1, %v4919_v0  ;;  %v7076_v52 = vcombine.high %v4923_v8, %v4927_v30  ;;  %v7071_v63 = vcombine.low %v4917_v7, %v4921_v32  ;;  %v4931_v18 = vld [vmem:[%s12994_s2 + $0x208] sm:$0xff]  ;;  %v4937_v42 = vld [vmem:[%s12994_s2 + $0x238] sm:$0xff] }
 0x561   : > { %v4864_v57 = vpack.c.bf16 %v4736_v22, %v4734_v31  ;;  %v4865_v27 = vpack.c.bf16 %v4737_v44, %v4735_v6  ;;  %v7080_v28 = vcombine.high %v4925_v38, %v4929_v25  ;;  %v7075_v11 = vcombine.low %v4923_v8, %v4927_v30  ;;  %v4939_v31 = vld [vmem:[%s12994_s2 + $0x248] sm:$0xff]  ;;  %v4945_v62 = vld [vmem:[%s12994_s2 + $0x278] sm:$0xff] }
 0x562   : > { %v7084_v26 = vcombine.high %v4931_v18, %v4935_v14  ;;  %v7079_v22 = vcombine.low %v4925_v38, %v4929_v25  ;;  %v7088_v44 = vcombine.high %v4933_v61, %v4937_v42  ;;  %v4943_v6 = vld [vmem:[%s12994_s2 + $0x268] sm:$0xff]  ;;  %v7087_v4 = vcombine.low %v4933_v61, %v4937_v42  ;;  %v4957_v33 = vld [vmem:[%s12994_s2 + $0x2d8] sm:$0xff] }
 0x563   : > { %6052 = vmatmul.mubr.bf16.vlgmr.msra.gmra.mrb[0].mxu1 %v7019_v54  ;;  %6435 = vmatprep.subr.bf16.mxu0 %v4865_v27  ;;  %v4889_v54 = vld [vmem:[%s12994_s2 + $0xb8] sm:$0xff]  ;;  %v4959_v36 = vld [vmem:[%s12994_s2 + $0x2e8] sm:$0xff] }
 0x564   : > { %6436 = vmatpush1.bf16.msra.mxu0 %v4864_v57  ;;  %6061 = vmatprep.mubr.bf16.mxu1 %v7028_v59  ;;  %v7040_v41 = vcombine.high %v4885_v13, %v4889_v54  ;;  %v7039_v46 = vcombine.low %v4885_v13, %v4889_v54  ;;  %v7083_v59 = vcombine.low %v4931_v18, %v4935_v14  ;;  %v4941_v27 = vld [vmem:[%s12994_s2 + $0x258] sm:$0xff]  ;;  %v4963_v10 = vld [vmem:[%s12994_s2 + $0x308] sm:$0xff] }
 0x565   : > { %v7092_v57 = vcombine.high %v4939_v31, %v4943_v6  ;;  %v4949_v13 = vld [vmem:[%s12994_s2 + $0x298] sm:$0xff]  ;;  %v4967_v2 = vld [vmem:[%s12994_s2 + $0x328] sm:$0xff] }
 0x566   : > { %v4953_v54 = vld [vmem:[%s12994_s2 + $0x2b8] sm:$0xff]  ;;  %v4971_v47 = vld [vmem:[%s12994_s2 + $0x348] sm:$0xff] }
 0x567   : > { %6438 = vmatmul.mubr.bf16.vlgmr.msra.gmra.mrb[0].mxu0 %v7023_v23  ;;  %v7035_v23 = vcombine.low %v4883_v60, %v4887_v39  ;;  %v4947_v60 = vld [vmem:[%s12994_s2 + $0x288] sm:$0xff]  ;;  %v4961_v43 = vld [vmem:[%s12994_s2 + $0x2f8] sm:$0xff] }
 0x568   : > { %6447 = vmatprep.mubr.bf16.mxu0 %v7032_v15  ;;  %v7096_v15 = vcombine.high %v4941_v27, %v4945_v62  ;;  %v4951_v39 = vld [vmem:[%s12994_s2 + $0x2a8] sm:$0xff]  ;;  %v4965_v58 = vld [vmem:[%s12994_s2 + $0x318] sm:$0xff] }
 0x569   : > { %v4969_v5 = vld [vmem:[%s12994_s2 + $0x338] sm:$0xff]  ;;  %v4975_v20 = vld [vmem:[%s12994_s2 + $0x368] sm:$0xff] }
 0x56a   : > { %v4973_v37 = vld [vmem:[%s12994_s2 + $0x358] sm:$0xff]  ;;  %v4979_v1 = vld [vmem:[%s12994_s2 + $0x388] sm:$0xff] }
 0x56b   : > { %6062 = vmatmul.mubr.bf16.gmra.mrb[4].mxu1 %v7027_v9  ;;  %v7091_v9 = vcombine.low %v4939_v31, %v4943_v6  ;;  %v4977_v48 = vld [vmem:[%s12994_s2 + $0x378] sm:$0xff]  ;;  %v4983_v0 = vld [vmem:[%s12994_s2 + $0x3a8] sm:$0xff] }
 0x56c   : > { %6071 = vmatprep.mubr.bf16.mxu1 %v7036_v51  ;;  %v7100_v51 = vcombine.high %v4947_v60, %v4951_v39  ;;  %v4981_v7 = vld [vmem:[%s12994_s2 + $0x398] sm:$0xff]  ;;  %v4987_v8 = vld [vmem:[%s12994_s2 + $0x3c8] sm:$0xff] }
 0x56d   : > { %v4985_v32 = vld [vmem:[%s12994_s2 + $0x3b8] sm:$0xff]  ;;  %v4991_v30 = vld [vmem:[%s12994_s2 + $0x3e8] sm:$0xff] }
 0x56e   : > { %v4989_v38 = vld [vmem:[%s12994_s2 + $0x3d8] sm:$0xff]  ;;  %v7139_v18 = vcombine.low %v4987_v8, %v4991_v30 }
 0x56f   : > { %6448 = vmatmul.mubr.bf16.gmra.mrb[4].mxu0 %v7031_v29  ;;  %v7095_v29 = vcombine.low %v4941_v27, %v4945_v62  ;;  %v4993_v25 = vld [vmem:[%s12994_s2 + $0x3f8] sm:$0xff] }
 0x570   : > { %6457 = vmatprep.mubr.bf16.mxu0 %v7040_v41  ;;  %v7104_v41 = vcombine.high %v4949_v13, %v4953_v54  ;;  %v7143_v14 = vcombine.low %v4989_v38, %v4993_v25 }
 0x573   : > { %6072 = vmatmul.mubr.bf16.gmra.mrb[8].mxu1 %v7035_v23  ;;  %v7099_v23 = vcombine.low %v4947_v60, %v4951_v39 }
 0x574   : > { %6081 = vmatprep.mubr.bf16.mxu1 %v7044_v45  ;;  %v7108_v45 = vcombine.high %v4955_v56, %v4959_v36 }
 0x577   : > { %6458 = vmatmul.mubr.bf16.gmra.mrb[8].mxu0 %v7039_v46  ;;  %v7103_v46 = vcombine.low %v4949_v13, %v4953_v54 }
 0x578   : > { %6467 = vmatprep.mubr.bf16.mxu0 %v7048_v35  ;;  %v7112_v35 = vcombine.high %v4957_v33, %v4961_v43 }
 0x579   : > { %v5034_v42 = vpop.permute.xlu0 %5033 }
 0x57b   : > { %6082 = vmatmul.mubr.bf16.gmra.mrb[12].mxu1 %v7043_v50  ;;  %v7107_v50 = vcombine.low %v4955_v56, %v4959_v36 }
 0x57c   : > { %6091 = vmatprep.mubr.bf16.mxu1 %v7052_v24  ;;  %v7116_v24 = vcombine.high %v4963_v10, %v4967_v2 }
 0x57f   : > { %6468 = vmatmul.mubr.bf16.gmra.mrb[12].mxu0 %v7047_v40  ;;  %v7111_v40 = vcombine.low %v4957_v33, %v4961_v43 }
 0x580   : > { %6477 = vmatprep.mubr.bf16.mxu0 %v7056_v3  ;;  %v7120_v3 = vcombine.high %v4965_v58, %v4969_v5 }
 0x583   : > { %6092 = vmatmul.mubr.bf16.gmra.mrb[16].mxu1 %v7051_v34  ;;  %v7115_v34 = vcombine.low %v4963_v10, %v4967_v2 }
 0x584   : > { %6101 = vmatprep.mubr.bf16.mxu1 %v7060_v21  ;;  %v7124_v21 = vcombine.high %v4971_v47, %v4975_v20 }
 0x587   : > { %6478 = vmatmul.mubr.bf16.gmra.mrb[16].mxu0 %v7055_v17  ;;  %v7119_v17 = vcombine.low %v4965_v58, %v4969_v5 }
 0x588   : > { %6487 = vmatprep.mubr.bf16.mxu0 %v7064_v19  ;;  %v7128_v19 = vcombine.high %v4973_v37, %v4977_v48 }
 0x58b   : > { %6102 = vmatmul.mubr.bf16.gmra.mrb[20].mxu1 %v7059_v12  ;;  %v7123_v12 = vcombine.low %v4971_v47, %v4975_v20 }
 0x58c   : > { %6111 = vmatprep.mubr.bf16.mxu1 %v7068_v49  ;;  %v7132_v49 = vcombine.high %v4979_v1, %v4983_v0 }
 0x58f   : > { %6488 = vmatmul.mubr.bf16.gmra.mrb[20].mxu0 %v7063_v53  ;;  %v7127_v53 = vcombine.low %v4973_v37, %v4977_v48 }
 0x590   : > { %6497 = vmatprep.mubr.bf16.mxu0 %v7072_v16  ;;  %v7136_v16 = vcombine.high %v4981_v7, %v4985_v32 }
 0x593   : > { %6112 = vmatmul.mubr.bf16.gmra.mrb[24].mxu1 %v7067_v55  ;;  %v7131_v55 = vcombine.low %v4979_v1, %v4983_v0 }
 0x594   : > { %6121 = vmatprep.mubr.bf16.mxu1 %v7076_v52  ;;  %v7140_v52 = vcombine.high %v4987_v8, %v4991_v30 }
 0x597   : > { %6498 = vmatmul.mubr.bf16.gmra.mrb[24].mxu0 %v7071_v63  ;;  %v7135_v63 = vcombine.low %v4981_v7, %v4985_v32 }
 0x598   : > { %6507 = vmatprep.mubr.bf16.mxu0 %v7080_v28  ;;  %v7144_v28 = vcombine.high %v4989_v38, %v4993_v25 }
 0x59b   : > { %6122 = vmatmul.mubr.bf16.gmra.mrb[28].mxu1 %v7075_v11  ;;  %v5029_v11 = vpop.permute.xlu1 %5028 }
 0x59c   : > { %6131 = vmatprep.mubr.bf16.mxu1 %v7084_v26 }
 0x59f   : > { %6508 = vmatmul.mubr.bf16.gmra.mrb[28].mxu0 %v7079_v22 }
 0x5a0   : > { %6517 = vmatprep.mubr.bf16.mxu0 %v7088_v44 }
 0x5a3   : > { %6132 = vmatmul.mubr.bf16.gmra.mrb[32].mxu1 %v7083_v59 }
 0x5a4   : > { %6141 = vmatprep.mubr.bf16.mxu1 %v7092_v57 }
 0x5a7   : > { %6518 = vmatmul.mubr.bf16.gmra.mrb[32].mxu0 %v7087_v4  ;;  %v5039_v4 = vpop.permute.xlu1 %5038 }
 0x5a8   : > { %6527 = vmatprep.mubr.bf16.mxu0 %v7096_v15 }
 0x5ab   : > { %6142 = vmatmul.mubr.bf16.gmra.mrb[36].mxu1 %v7091_v9 }
 0x5ac   : > { %6151 = vmatprep.mubr.bf16.mxu1 %v7100_v51 }
 0x5af   : > { %6528 = vmatmul.mubr.bf16.gmra.mrb[36].mxu0 %v7095_v29 }
 0x5b0   : > { %6537 = vmatprep.mubr.bf16.mxu0 %v7104_v41 }
 0x5b3   : > { %6152 = vmatmul.mubr.bf16.gmra.mrb[40].mxu1 %v7099_v23  ;;  %v12966_v23 = vld [vmem:[%s12996_s4] sm:$0xff] }
 0x5b4   : > { %6161 = vmatprep.mubr.bf16.mxu1 %v7108_v45  ;;  %v7146_v2 = vcombine.high %v12966_v23, %v12966_v23 }
 0x5b7   : > { %6538 = vmatmul.mubr.bf16.gmra.mrb[40].mxu0 %v7103_v46 }
 0x5b8   : > { %6547 = vmatprep.mubr.bf16.mxu0 %v7112_v35 }
 0x5bb   : > { %6162 = vmatmul.mubr.bf16.gmra.mrb[44].mxu1 %v7107_v50  ;;  %v5044_v50 = vpop.permute.xlu1 %5043 }
 0x5bc   : > { %6171 = vmatprep.mubr.bf16.mxu1 %v7116_v24 }
 0x5bf   : > { %6548 = vmatmul.mubr.bf16.gmra.mrb[44].mxu0 %v7111_v40 }
 0x5c0   : > { %6557 = vmatprep.mubr.bf16.mxu0 %v7120_v3 }
 0x5c3   : > { %6172 = vmatmul.mubr.bf16.gmra.mrb[48].mxu1 %v7115_v34 }
 0x5c4   : > { %6181 = vmatprep.mubr.bf16.mxu1 %v7124_v21 }
 0x5c7   : > { %6558 = vmatmul.mubr.bf16.gmra.mrb[48].mxu0 %v7119_v17 }
 0x5c8   : > { %6567 = vmatprep.mubr.bf16.mxu0 %v7128_v19 }
 0x5cb   : > { %6182 = vmatmul.mubr.bf16.gmra.mrb[52].mxu1 %v7123_v12 }
 0x5cc   : > { %6191 = vmatprep.mubr.bf16.mxu1 %v7132_v49 }
 0x5cf   : > { %6568 = vmatmul.mubr.bf16.gmra.mrb[52].mxu0 %v7127_v53 }
 0x5d0   : > { %6577 = vmatprep.mubr.bf16.mxu0 %v7136_v16  ;;  %v5049_v16 = vpop.permute.xlu0 %5048 }
 0x5d3   : > { %6192 = vmatmul.mubr.bf16.gmra.mrb[56].mxu1 %v7131_v55 }
 0x5d4   : > { %6201 = vmatprep.mubr.bf16.mxu1 %v7140_v52 }
 0x5d7   : > { %6578 = vmatmul.mubr.bf16.gmra.mrb[56].mxu0 %v7135_v63  ;;  %v5054_v63 = vpop.permute.xlu1 %5053 }
 0x5d8   : > { %6587 = vmatprep.mubr.bf16.mxu0 %v7144_v28 }
 0x5db   : > { %6202 = vmatmul.mubr.bf16.gmra.mrb[60].mxu1 %v7139_v18 }
 0x5dc   : > { %6804 = vmatprep.mubr.bf16.mxu1 %v7146_v2 }
 0x5df   : > { %6588 = vmatmul.mubr.bf16.gmra.mrb[60].mxu0 %v7143_v14 }
 0x636   : > { %v6053_v26 = vpop.f32.mrb[0].mxu1 }
 0x637   : > { %v6055_v61 = vpop.f32.mrb[1].mxu1  ;;  %v7154_v44 = vadd.f32 %v6053_v26, %v5029_v11 }
 0x638   : > { %v6057_v22 = vpop.f32.mrb[2].mxu1  ;;  %v7156_v6 = vadd.f32 %v6055_v61, %v5029_v11 }
 0x639   : > { %v6059_v31 = vpop.f32.mrb[3].mxu1  ;;  %v7158_v57 = vadd.f32 %v6057_v22, %v5034_v42 }
 0x63a   : > { %v6439_v59 = vpop.f32.mrb[0].mxu0  ;;  %v7160_v15 = vadd.f32 %v6059_v31, %v5034_v42 }
 0x63b   : > { %v7155_v27 = vadd.f32 %v7154_v44, %v6439_v59  ;;  %v6441_v62 = vpop.f32.mrb[1].mxu0 }
 0x63c   : > { %v7157_v60 = vadd.f32 %v7156_v6, %v6441_v62  ;;  %v6443_v39 = vpop.f32.mrb[2].mxu0 }
 0x63d   : > { %v6598_v9 = vmul.f32 0.01, %v7155_v27  ;;  %v7159_v51 = vadd.f32 %v7158_v57, %v6443_v39  ;;  %v6445_v13 = vpop.f32.mrb[3].mxu0 }
 0x63e   : > { %v6599_v54 = vmul.f32 0.01, %v7157_v60  ;;  %v7161_v29 = vadd.f32 %v7160_v15, %v6445_v13  ;;  %v6063_v41 = vpop.f32.mrb[4].mxu1 }
 0x63f   : > { %v6600_v56 = vmul.f32 0.01, %v7159_v51  ;;  %v6065_v36 = vpop.f32.mrb[5].mxu1  ;;  %v6662_v43 = vmax.f32 %v7155_v27, %v6598_v9  ;;  %v7162_v35 = vadd.f32 %v6063_v41, %v5039_v4 }
 0x640   : > { %v6601_v45 = vmul.f32 0.01, %v7161_v29  ;;  %v6067_v33 = vpop.f32.mrb[6].mxu1  ;;  %v6663_v24 = vmax.f32 %v7157_v60, %v6599_v54  ;;  %v7164_v5 = vadd.f32 %v6065_v36, %v5039_v4 }
 0x641   : > { %v6664_v46 = vmax.f32 %v7159_v51, %v6600_v56  ;;  %v6069_v10 = vpop.f32.mrb[7].mxu1  ;;  %v7166_v47 = vadd.f32 %v6067_v33, %v5044_v50  ;;  %v5059_v51 = vpop.permute.xlu0 %5058 }
 0x642   : > { %v6665_v58 = vmax.f32 %v7161_v29, %v6601_v45  ;;  %v6449_v40 = vpop.f32.mrb[4].mxu0  ;;  %v7168_v21 = vadd.f32 %v6069_v10, %v5044_v50  ;;  %v5064_v45 = vpop.permute.xlu1 %5063 }
 0x643   : > { %v6726_v3 = vpack.c.bf16 %v6664_v46, %v6662_v43  ;;  %v7163_v20 = vadd.f32 %v7162_v35, %v6449_v40  ;;  %v6451_v34 = vpop.f32.mrb[5].mxu0 }
 0x644   : > { %v7165_v37 = vadd.f32 %v7164_v5, %v6451_v34  ;;  %v6453_v48 = vpop.f32.mrb[6].mxu0  ;;  %v6727_v17 = vpack.c.bf16 %v6665_v58, %v6663_v24 }
 0x645   : > { %v6602_v19 = vmul.f32 0.01, %v7163_v20  ;;  %v7167_v1 = vadd.f32 %v7166_v47, %v6453_v48  ;;  %v6455_v0 = vpop.f32.mrb[7].mxu0 }
 0x646   : > { %v6603_v12 = vmul.f32 0.01, %v7165_v37  ;;  %v7169_v49 = vadd.f32 %v7168_v21, %v6455_v0  ;;  %v6073_v7 = vpop.f32.mrb[8].mxu1  ;;  %6772 = vmatprep.subr.bf16.mxu1 %v6727_v17 }
 0x647   : > { %v6604_v32 = vmul.f32 0.01, %v7167_v1  ;;  %v6075_v53 = vpop.f32.mrb[9].mxu1  ;;  %6773 = vmatpush1.bf16.msra.mxu1 %v6726_v3  ;;  %v6666_v55 = vmax.f32 %v7163_v20, %v6602_v19  ;;  %v7170_v38 = vadd.f32 %v6073_v7, %v5049_v16 }
 0x648   : > { %v6605_v8 = vmul.f32 0.01, %v7169_v49  ;;  %v6077_v30 = vpop.f32.mrb[10].mxu1  ;;  %v6667_v28 = vmax.f32 %v7165_v37, %v6603_v12  ;;  %v7172_v14 = vadd.f32 %v6075_v53, %v5049_v16  ;;  %v5074_v16 = vpop.permute.xlu1 %5073 }
 0x649   : > { %v6668_v52 = vmax.f32 %v7167_v1, %v6604_v32  ;;  %v6079_v25 = vpop.f32.mrb[11].mxu1  ;;  %v7174_v61 = vadd.f32 %v6077_v30, %v5054_v63  ;;  %v5069_v1 = vpop.permute.xlu0 %5068 }
 0x64a   : > { %v6669_v18 = vmax.f32 %v7169_v49, %v6605_v8  ;;  %v6459_v11 = vpop.f32.mrb[8].mxu0  ;;  %v7176_v44 = vadd.f32 %v6079_v25, %v5054_v63 }
 0x64b   : > { %v6728_v26 = vpack.c.bf16 %v6668_v52, %v6666_v55  ;;  %v7171_v42 = vadd.f32 %v7170_v38, %v6459_v11  ;;  %v6461_v22 = vpop.f32.mrb[9].mxu0 }
 0x64c   : > { %v7173_v31 = vadd.f32 %v7172_v14, %v6461_v22  ;;  %v6463_v6 = vpop.f32.mrb[10].mxu0  ;;  %v6729_v59 = vpack.c.bf16 %v6669_v18, %v6667_v28 }
 0x64d   : > { %v6606_v57 = vmul.f32 0.01, %v7171_v42  ;;  %v7175_v27 = vadd.f32 %v7174_v61, %v6463_v6  ;;  %v6465_v62 = vpop.f32.mrb[11].mxu0 }
 0x64e   : > { %v6607_v4 = vmul.f32 0.01, %v7173_v31  ;;  %v7177_v15 = vadd.f32 %v7176_v44, %v6465_v62  ;;  %v6083_v60 = vpop.f32.mrb[12].mxu1  ;;  %6774 = vmatprep.subr.bf16.mxu1 %v6729_v59 }
 0x64f   : > { %v6608_v39 = vmul.f32 0.01, %v7175_v27  ;;  %v6085_v9 = vpop.f32.mrb[13].mxu1  ;;  %6775 = vmatpush1.bf16.msra.mxu1 %v6728_v26  ;;  %v6670_v29 = vmax.f32 %v7171_v42, %v6606_v57  ;;  %v7178_v56 = vadd.f32 %v6083_v60, %v5059_v51 }
 0x650   : > { %v6609_v13 = vmul.f32 0.01, %v7177_v15  ;;  %v6087_v54 = vpop.f32.mrb[14].mxu1  ;;  %v6671_v33 = vmax.f32 %v7173_v31, %v6607_v4  ;;  %v7180_v46 = vadd.f32 %v6085_v9, %v5059_v51  ;;  %v5084_v51 = vpop.permute.xlu1 %5083 }
 0x651   : > { %v6672_v41 = vmax.f32 %v7175_v27, %v6608_v39  ;;  %v6089_v36 = vpop.f32.mrb[15].mxu1  ;;  %v7182_v2 = vadd.f32 %v6087_v54, %v5064_v45  ;;  %v5079_v27 = vpop.permute.xlu0 %5078 }
 0x652   : > { %v6673_v43 = vmax.f32 %v7177_v15, %v6609_v13  ;;  %v6469_v35 = vpop.f32.mrb[12].mxu0  ;;  %v7184_v58 = vadd.f32 %v6089_v36, %v5064_v45 }
 0x653   : > { %v6730_v10 = vpack.c.bf16 %v6672_v41, %v6670_v29  ;;  %v7179_v50 = vadd.f32 %v7178_v56, %v6469_v35  ;;  %v6471_v24 = vpop.f32.mrb[13].mxu0 }
 0x654   : > { %v7181_v5 = vadd.f32 %v7180_v46, %v6471_v24  ;;  %v6473_v40 = vpop.f32.mrb[14].mxu0  ;;  %v6731_v3 = vpack.c.bf16 %v6673_v43, %v6671_v33 }
 0x655   : > { %v6610_v47 = vmul.f32 0.01, %v7179_v50  ;;  %v7183_v20 = vadd.f32 %v7182_v2, %v6473_v40  ;;  %v6475_v34 = vpop.f32.mrb[15].mxu0 }
 0x656   : > { %v6611_v21 = vmul.f32 0.01, %v7181_v5  ;;  %v7185_v37 = vadd.f32 %v7184_v58, %v6475_v34  ;;  %v6093_v48 = vpop.f32.mrb[16].mxu1  ;;  %6776 = vmatprep.subr.bf16.mxu1 %v6731_v3 }
 0x657   : > { %v6612_v17 = vmul.f32 0.01, %v7183_v20  ;;  %v6095_v19 = vpop.f32.mrb[17].mxu1  ;;  %6777 = vmatpush1.bf16.msra.mxu1 %v6730_v10  ;;  %v6674_v49 = vmax.f32 %v7179_v50, %v6610_v47  ;;  %v7186_v32 = vadd.f32 %v6093_v48, %v5069_v1 }
 0x658   : > { %v6613_v0 = vmul.f32 0.01, %v7185_v37  ;;  %v6097_v12 = vpop.f32.mrb[18].mxu1  ;;  %v6675_v8 = vmax.f32 %v7181_v5, %v6611_v21  ;;  %v7188_v55 = vadd.f32 %v6095_v19, %v5069_v1  ;;  %v5094_v1 = vpop.permute.xlu1 %5093 }
 0x659   : > { %v6676_v7 = vmax.f32 %v7183_v20, %v6612_v17  ;;  %v6099_v53 = vpop.f32.mrb[19].mxu1  ;;  %v7190_v25 = vadd.f32 %v6097_v12, %v5074_v16  ;;  %v5089_v20 = vpop.permute.xlu0 %5088 }
 0x65a   : > { %v6677_v30 = vmax.f32 %v7185_v37, %v6613_v0  ;;  %v6479_v52 = vpop.f32.mrb[16].mxu0  ;;  %v7192_v18 = vadd.f32 %v6099_v53, %v5074_v16 }
 0x65b   : > { %v6732_v38 = vpack.c.bf16 %v6676_v7, %v6674_v49  ;;  %v7187_v63 = vadd.f32 %v7186_v32, %v6479_v52  ;;  %v6481_v28 = vpop.f32.mrb[17].mxu0 }
 0x65c   : > { %v7189_v14 = vadd.f32 %v7188_v55, %v6481_v28  ;;  %v6483_v11 = vpop.f32.mrb[18].mxu0  ;;  %v6733_v26 = vpack.c.bf16 %v6677_v30, %v6675_v8 }
 0x65d   : > { %v6614_v61 = vmul.f32 0.01, %v7187_v63  ;;  %v7191_v42 = vadd.f32 %v7190_v25, %v6483_v11  ;;  %v6485_v22 = vpop.f32.mrb[19].mxu0 }
 0x65e   : > { %v6615_v44 = vmul.f32 0.01, %v7189_v14  ;;  %v7193_v31 = vadd.f32 %v7192_v18, %v6485_v22  ;;  %v6103_v6 = vpop.f32.mrb[20].mxu1  ;;  %6778 = vmatprep.subr.bf16.mxu1 %v6733_v26 }
 0x65f   : > { %v6616_v59 = vmul.f32 0.01, %v7191_v42  ;;  %v6105_v57 = vpop.f32.mrb[21].mxu1  ;;  %6779 = vmatpush1.bf16.msra.mxu1 %v6732_v38  ;;  %v6678_v15 = vmax.f32 %v7187_v63, %v6614_v61  ;;  %v7194_v39 = vadd.f32 %v6103_v6, %v5079_v27 }
 0x660   : > { %v6617_v62 = vmul.f32 0.01, %v7193_v31  ;;  %v6107_v4 = vpop.f32.mrb[22].mxu1  ;;  %v6679_v13 = vmax.f32 %v7189_v14, %v6615_v44  ;;  %v7196_v29 = vadd.f32 %v6105_v57, %v5079_v27  ;;  %v5104_v27 = vpop.permute.xlu1 %5103 }
 0x661   : > { %v6680_v60 = vmax.f32 %v7191_v42, %v6616_v59  ;;  %v6109_v9 = vpop.f32.mrb[23].mxu1  ;;  %v7198_v36 = vadd.f32 %v6107_v4, %v5084_v51  ;;  %v5099_v42 = vpop.permute.xlu0 %5098 }
 0x662   : > { %v6681_v54 = vmax.f32 %v7193_v31, %v6617_v62  ;;  %v6489_v41 = vpop.f32.mrb[20].mxu0  ;;  %v7200_v43 = vadd.f32 %v6109_v9, %v5084_v51 }
 0x663   : > { %v6734_v56 = vpack.c.bf16 %v6680_v60, %v6678_v15  ;;  %v7195_v45 = vadd.f32 %v7194_v39, %v6489_v41  ;;  %v6491_v33 = vpop.f32.mrb[21].mxu0 }
 0x664   : > { %v7197_v46 = vadd.f32 %v7196_v29, %v6491_v33  ;;  %v6493_v35 = vpop.f32.mrb[22].mxu0  ;;  %v6735_v10 = vpack.c.bf16 %v6681_v54, %v6679_v13 }
 0x665   : > { %v6618_v2 = vmul.f32 0.01, %v7195_v45  ;;  %v7199_v50 = vadd.f32 %v7198_v36, %v6493_v35  ;;  %v6495_v24 = vpop.f32.mrb[23].mxu0 }
 0x666   : > { %v6619_v58 = vmul.f32 0.01, %v7197_v46  ;;  %v7201_v5 = vadd.f32 %v7200_v43, %v6495_v24  ;;  %v6113_v40 = vpop.f32.mrb[24].mxu1  ;;  %6780 = vmatprep.subr.bf16.mxu1 %v6735_v10 }
 0x667   : > { %v6620_v3 = vmul.f32 0.01, %v7199_v50  ;;  %v6115_v47 = vpop.f32.mrb[25].mxu1  ;;  %6781 = vmatpush1.bf16.msra.mxu1 %v6734_v56  ;;  %v6682_v37 = vmax.f32 %v7195_v45, %v6618_v2  ;;  %v7202_v17 = vadd.f32 %v6113_v40, %v5089_v20 }
 0x668   : > { %v6621_v34 = vmul.f32 0.01, %v7201_v5  ;;  %v6117_v21 = vpop.f32.mrb[26].mxu1  ;;  %v6683_v0 = vmax.f32 %v7197_v46, %v6619_v58  ;;  %v7204_v49 = vadd.f32 %v6115_v47, %v5089_v20  ;;  %v5114_v20 = vpop.permute.xlu1 %5113 }
 0x669   : > { %v6684_v48 = vmax.f32 %v7199_v50, %v6620_v3  ;;  %v6119_v19 = vpop.f32.mrb[27].mxu1  ;;  %v7206_v53 = vadd.f32 %v6117_v21, %v5094_v1  ;;  %v5109_v50 = vpop.permute.xlu0 %5108 }
 0x66a   : > { %v6685_v12 = vmax.f32 %v7201_v5, %v6621_v34  ;;  %v6499_v7 = vpop.f32.mrb[24].mxu0  ;;  %v7208_v30 = vadd.f32 %v6119_v19, %v5094_v1 }
 0x66b   : > { %v6736_v32 = vpack.c.bf16 %v6684_v48, %v6682_v37  ;;  %v7203_v16 = vadd.f32 %v7202_v17, %v6499_v7  ;;  %v6501_v8 = vpop.f32.mrb[25].mxu0 }
 0x66c   : > { %v7205_v55 = vadd.f32 %v7204_v49, %v6501_v8  ;;  %v6503_v52 = vpop.f32.mrb[26].mxu0  ;;  %v6737_v38 = vpack.c.bf16 %v6685_v12, %v6683_v0 }
 0x66d   : > { %v6622_v25 = vmul.f32 0.01, %v7203_v16  ;;  %v7207_v63 = vadd.f32 %v7206_v53, %v6503_v52  ;;  %v6505_v28 = vpop.f32.mrb[27].mxu0 }
 0x66e   : > { %v6623_v18 = vmul.f32 0.01, %v7205_v55  ;;  %v7209_v14 = vadd.f32 %v7208_v30, %v6505_v28  ;;  %v6123_v11 = vpop.f32.mrb[28].mxu1  ;;  %6782 = vmatprep.subr.bf16.mxu1 %v6737_v38 }
 0x66f   : > { %v6624_v26 = vmul.f32 0.01, %v7207_v63  ;;  %v6125_v61 = vpop.f32.mrb[29].mxu1  ;;  %6783 = vmatpush1.bf16.msra.mxu1 %v6736_v32  ;;  %v6686_v31 = vmax.f32 %v7203_v16, %v6622_v25  ;;  %v7210_v59 = vadd.f32 %v6123_v11, %v5099_v42 }
 0x670   : > { %v6625_v22 = vmul.f32 0.01, %v7209_v14  ;;  %v6127_v44 = vpop.f32.mrb[30].mxu1  ;;  %v6687_v62 = vmax.f32 %v7205_v55, %v6623_v18  ;;  %v7212_v15 = vadd.f32 %v6125_v61, %v5099_v42  ;;  %v5124_v42 = vpop.permute.xlu1 %5123 }
 0x671   : > { %v6688_v6 = vmax.f32 %v7207_v63, %v6624_v26  ;;  %v6129_v57 = vpop.f32.mrb[31].mxu1  ;;  %v7214_v9 = vadd.f32 %v6127_v44, %v5104_v27  ;;  %v5119_v63 = vpop.permute.xlu0 %5118 }
 0x672   : > { %v6689_v4 = vmax.f32 %v7209_v14, %v6625_v22  ;;  %v6509_v60 = vpop.f32.mrb[28].mxu0  ;;  %v7216_v54 = vadd.f32 %v6129_v57, %v5104_v27 }
 0x673   : > { %v6738_v39 = vpack.c.bf16 %v6688_v6, %v6686_v31  ;;  %v7211_v51 = vadd.f32 %v7210_v59, %v6509_v60  ;;  %v6511_v13 = vpop.f32.mrb[29].mxu0 }
 0x674   : > { %v7213_v29 = vadd.f32 %v7212_v15, %v6511_v13  ;;  %v6513_v41 = vpop.f32.mrb[30].mxu0  ;;  %v6739_v56 = vpack.c.bf16 %v6689_v4, %v6687_v62 }
 0x675   : > { %v6626_v36 = vmul.f32 0.01, %v7211_v51  ;;  %v7215_v45 = vadd.f32 %v7214_v9, %v6513_v41  ;;  %v6515_v33 = vpop.f32.mrb[31].mxu0 }
 0x676   : > { %v6627_v43 = vmul.f32 0.01, %v7213_v29  ;;  %v7217_v46 = vadd.f32 %v7216_v54, %v6515_v33  ;;  %v6133_v35 = vpop.f32.mrb[32].mxu1  ;;  %6784 = vmatprep.subr.bf16.mxu1 %v6739_v56 }
 0x677   : > { %v6628_v10 = vmul.f32 0.01, %v7215_v45  ;;  %v6135_v2 = vpop.f32.mrb[33].mxu1  ;;  %6785 = vmatpush1.bf16.msra.mxu1 %v6738_v39  ;;  %v6690_v5 = vmax.f32 %v7211_v51, %v6626_v36  ;;  %v7218_v3 = vadd.f32 %v6133_v35, %v5109_v50 }
 0x678   : > { %v6629_v24 = vmul.f32 0.01, %v7217_v46  ;;  %v6137_v58 = vpop.f32.mrb[34].mxu1  ;;  %v6691_v34 = vmax.f32 %v7213_v29, %v6627_v43  ;;  %v7220_v37 = vadd.f32 %v6135_v2, %v5109_v50  ;;  %v5134_v50 = vpop.permute.xlu1 %5133 }
 0x679   : > { %v6692_v40 = vmax.f32 %v7215_v45, %v6628_v10  ;;  %v6139_v47 = vpop.f32.mrb[35].mxu1  ;;  %v7222_v19 = vadd.f32 %v6137_v58, %v5114_v20  ;;  %v5129_v45 = vpop.permute.xlu0 %5128 }
 0x67a   : > { %v6693_v21 = vmax.f32 %v7217_v46, %v6629_v24  ;;  %v6519_v48 = vpop.f32.mrb[32].mxu0  ;;  %v7224_v12 = vadd.f32 %v6139_v47, %v5114_v20 }
 0x67b   : > { %v6740_v17 = vpack.c.bf16 %v6692_v40, %v6690_v5  ;;  %v7219_v1 = vadd.f32 %v7218_v3, %v6519_v48  ;;  %v6521_v0 = vpop.f32.mrb[33].mxu0 }
 0x67c   : > { %v7221_v49 = vadd.f32 %v7220_v37, %v6521_v0  ;;  %v6523_v7 = vpop.f32.mrb[34].mxu0  ;;  %v6741_v32 = vpack.c.bf16 %v6693_v21, %v6691_v34 }
 0x67d   : > { %v6630_v53 = vmul.f32 0.01, %v7219_v1  ;;  %v7223_v16 = vadd.f32 %v7222_v19, %v6523_v7  ;;  %v6525_v8 = vpop.f32.mrb[35].mxu0 }
 0x67e   : > { %v6631_v30 = vmul.f32 0.01, %v7221_v49  ;;  %v7225_v55 = vadd.f32 %v7224_v12, %v6525_v8  ;;  %v6143_v52 = vpop.f32.mrb[36].mxu1  ;;  %6786 = vmatprep.subr.bf16.mxu1 %v6741_v32 }
 0x67f   : > { %v6632_v38 = vmul.f32 0.01, %v7223_v16  ;;  %v6145_v25 = vpop.f32.mrb[37].mxu1  ;;  %6787 = vmatpush1.bf16.msra.mxu1 %v6740_v17  ;;  %v6694_v14 = vmax.f32 %v7219_v1, %v6630_v53  ;;  %v7226_v26 = vadd.f32 %v6143_v52, %v5119_v63 }
 0x680   : > { %v6633_v28 = vmul.f32 0.01, %v7225_v55  ;;  %v6147_v18 = vpop.f32.mrb[38].mxu1  ;;  %v6695_v22 = vmax.f32 %v7221_v49, %v6631_v30  ;;  %v7228_v31 = vadd.f32 %v6145_v25, %v5119_v63  ;;  %v5144_v63 = vpop.permute.xlu1 %5143 }
 0x681   : > { %v6696_v11 = vmax.f32 %v7223_v16, %v6632_v38  ;;  %v6149_v61 = vpop.f32.mrb[39].mxu1  ;;  %v7230_v57 = vadd.f32 %v6147_v18, %v5124_v42  ;;  %v5139_v16 = vpop.permute.xlu0 %5138 }
 0x682   : > { %v6697_v44 = vmax.f32 %v7225_v55, %v6633_v28  ;;  %v6529_v6 = vpop.f32.mrb[36].mxu0  ;;  %v7232_v4 = vadd.f32 %v6149_v61, %v5124_v42 }
 0x683   : > { %v6742_v59 = vpack.c.bf16 %v6696_v11, %v6694_v14  ;;  %v7227_v27 = vadd.f32 %v7226_v26, %v6529_v6  ;;  %v6531_v62 = vpop.f32.mrb[37].mxu0 }
 0x684   : > { %v7229_v15 = vadd.f32 %v7228_v31, %v6531_v62  ;;  %v6533_v60 = vpop.f32.mrb[38].mxu0  ;;  %v6743_v39 = vpack.c.bf16 %v6697_v44, %v6695_v22 }
 0x685   : > { %v6634_v9 = vmul.f32 0.01, %v7227_v27  ;;  %v7231_v51 = vadd.f32 %v7230_v57, %v6533_v60  ;;  %v6535_v13 = vpop.f32.mrb[39].mxu0 }
 0x686   : > { %v6635_v54 = vmul.f32 0.01, %v7229_v15  ;;  %v7233_v29 = vadd.f32 %v7232_v4, %v6535_v13  ;;  %v6153_v41 = vpop.f32.mrb[40].mxu1  ;;  %6788 = vmatprep.subr.bf16.mxu1 %v6743_v39 }
 0x687   : > { %v6636_v56 = vmul.f32 0.01, %v7231_v51  ;;  %v6155_v36 = vpop.f32.mrb[41].mxu1  ;;  %6789 = vmatpush1.bf16.msra.mxu1 %v6742_v59  ;;  %v6698_v46 = vmax.f32 %v7227_v27, %v6634_v9  ;;  %v7234_v10 = vadd.f32 %v6153_v41, %v5129_v45 }
 0x688   : > { %v6637_v33 = vmul.f32 0.01, %v7233_v29  ;;  %v6157_v43 = vpop.f32.mrb[42].mxu1  ;;  %v6699_v24 = vmax.f32 %v7229_v15, %v6635_v54  ;;  %v7236_v5 = vadd.f32 %v6155_v36, %v5129_v45  ;;  %v5154_v45 = vpop.permute.xlu1 %5153 }
 0x689   : > { %v6700_v35 = vmax.f32 %v7231_v51, %v6636_v56  ;;  %v6159_v2 = vpop.f32.mrb[43].mxu1  ;;  %v7238_v47 = vadd.f32 %v6157_v43, %v5134_v50  ;;  %v5149_v51 = vpop.permute.xlu0 %5148 }
 0x68a   : > { %v6701_v58 = vmax.f32 %v7233_v29, %v6637_v33  ;;  %v6539_v40 = vpop.f32.mrb[40].mxu0  ;;  %v7240_v21 = vadd.f32 %v6159_v2, %v5134_v50 }
 0x68b   : > { %v6744_v3 = vpack.c.bf16 %v6700_v35, %v6698_v46  ;;  %v7235_v20 = vadd.f32 %v7234_v10, %v6539_v40  ;;  %v6541_v34 = vpop.f32.mrb[41].mxu0 }
 0x68c   : > { %v7237_v37 = vadd.f32 %v7236_v5, %v6541_v34  ;;  %v6543_v48 = vpop.f32.mrb[42].mxu0  ;;  %v6745_v17 = vpack.c.bf16 %v6701_v58, %v6699_v24 }
 0x68d   : > { %v6638_v19 = vmul.f32 0.01, %v7235_v20  ;;  %v7239_v1 = vadd.f32 %v7238_v47, %v6543_v48  ;;  %v6545_v0 = vpop.f32.mrb[43].mxu0 }
 0x68e   : > { %v6639_v12 = vmul.f32 0.01, %v7237_v37  ;;  %v7241_v49 = vadd.f32 %v7240_v21, %v6545_v0  ;;  %v6163_v7 = vpop.f32.mrb[44].mxu1  ;;  %6790 = vmatprep.subr.bf16.mxu1 %v6745_v17 }
 0x68f   : > { %v6640_v32 = vmul.f32 0.01, %v7239_v1  ;;  %v6165_v53 = vpop.f32.mrb[45].mxu1  ;;  %6791 = vmatpush1.bf16.msra.mxu1 %v6744_v3  ;;  %v6702_v55 = vmax.f32 %v7235_v20, %v6638_v19  ;;  %v7242_v38 = vadd.f32 %v6163_v7, %v5139_v16 }
 0x690   : > { %v6641_v8 = vmul.f32 0.01, %v7241_v49  ;;  %v6167_v30 = vpop.f32.mrb[46].mxu1  ;;  %v6703_v28 = vmax.f32 %v7237_v37, %v6639_v12  ;;  %v7244_v14 = vadd.f32 %v6165_v53, %v5139_v16  ;;  %v5164_v16 = vpop.permute.xlu1 %5163 }
 0x691   : > { %v6704_v52 = vmax.f32 %v7239_v1, %v6640_v32  ;;  %v6169_v25 = vpop.f32.mrb[47].mxu1  ;;  %v7246_v61 = vadd.f32 %v6167_v30, %v5144_v63  ;;  %v5159_v1 = vpop.permute.xlu0 %5158 }
 0x692   : > { %v6705_v18 = vmax.f32 %v7241_v49, %v6641_v8  ;;  %v6549_v11 = vpop.f32.mrb[44].mxu0  ;;  %v7248_v44 = vadd.f32 %v6169_v25, %v5144_v63 }
 0x693   : > { %v6746_v26 = vpack.c.bf16 %v6704_v52, %v6702_v55  ;;  %v7243_v42 = vadd.f32 %v7242_v38, %v6549_v11  ;;  %v6551_v22 = vpop.f32.mrb[45].mxu0 }
 0x694   : > { %v7245_v31 = vadd.f32 %v7244_v14, %v6551_v22  ;;  %v6553_v6 = vpop.f32.mrb[46].mxu0  ;;  %v6747_v59 = vpack.c.bf16 %v6705_v18, %v6703_v28 }
 0x695   : > { %v6642_v57 = vmul.f32 0.01, %v7243_v42  ;;  %v7247_v27 = vadd.f32 %v7246_v61, %v6553_v6  ;;  %v6555_v62 = vpop.f32.mrb[47].mxu0 }
 0x696   : > { %v6643_v4 = vmul.f32 0.01, %v7245_v31  ;;  %v7249_v15 = vadd.f32 %v7248_v44, %v6555_v62  ;;  %v6173_v60 = vpop.f32.mrb[48].mxu1  ;;  %6792 = vmatprep.subr.bf16.mxu1 %v6747_v59 }
 0x697   : > { %v6644_v39 = vmul.f32 0.01, %v7247_v27  ;;  %v6175_v9 = vpop.f32.mrb[49].mxu1  ;;  %6793 = vmatpush1.bf16.msra.mxu1 %v6746_v26  ;;  %v6706_v29 = vmax.f32 %v7243_v42, %v6642_v57  ;;  %v7250_v56 = vadd.f32 %v6173_v60, %v5149_v51 }
 0x698   : > { %v6645_v13 = vmul.f32 0.01, %v7249_v15  ;;  %v6177_v54 = vpop.f32.mrb[50].mxu1  ;;  %v6707_v33 = vmax.f32 %v7245_v31, %v6643_v4  ;;  %v7252_v46 = vadd.f32 %v6175_v9, %v5149_v51  ;;  %v5174_v51 = vpop.permute.xlu1 %5173 }
 0x699   : > { %v6708_v41 = vmax.f32 %v7247_v27, %v6644_v39  ;;  %v6179_v36 = vpop.f32.mrb[51].mxu1  ;;  %v7254_v2 = vadd.f32 %v6177_v54, %v5154_v45  ;;  %v5169_v27 = vpop.permute.xlu0 %5168 }
 0x69a   : > { %v6709_v43 = vmax.f32 %v7249_v15, %v6645_v13  ;;  %v6559_v35 = vpop.f32.mrb[48].mxu0  ;;  %v7256_v58 = vadd.f32 %v6179_v36, %v5154_v45 }
 0x69b   : > { %v6748_v10 = vpack.c.bf16 %v6708_v41, %v6706_v29  ;;  %v7251_v50 = vadd.f32 %v7250_v56, %v6559_v35  ;;  %v6561_v24 = vpop.f32.mrb[49].mxu0 }
 0x69c   : > { %v7253_v5 = vadd.f32 %v7252_v46, %v6561_v24  ;;  %v6563_v40 = vpop.f32.mrb[50].mxu0  ;;  %v6749_v3 = vpack.c.bf16 %v6709_v43, %v6707_v33 }
 0x69d   : > { %v6646_v47 = vmul.f32 0.01, %v7251_v50  ;;  %v7255_v20 = vadd.f32 %v7254_v2, %v6563_v40  ;;  %v6565_v34 = vpop.f32.mrb[51].mxu0 }
 0x69e   : > { %v6647_v21 = vmul.f32 0.01, %v7253_v5  ;;  %v7257_v37 = vadd.f32 %v7256_v58, %v6565_v34  ;;  %v6183_v48 = vpop.f32.mrb[52].mxu1  ;;  %6794 = vmatprep.subr.bf16.mxu1 %v6749_v3 }
 0x69f   : > { %v6648_v17 = vmul.f32 0.01, %v7255_v20  ;;  %v6185_v19 = vpop.f32.mrb[53].mxu1  ;;  %6795 = vmatpush1.bf16.msra.mxu1 %v6748_v10  ;;  %v6710_v49 = vmax.f32 %v7251_v50, %v6646_v47  ;;  %v7258_v32 = vadd.f32 %v6183_v48, %v5159_v1 }
 0x6a0   : > { %v6649_v0 = vmul.f32 0.01, %v7257_v37  ;;  %v6187_v12 = vpop.f32.mrb[54].mxu1  ;;  %v6711_v8 = vmax.f32 %v7253_v5, %v6647_v21  ;;  %v7260_v55 = vadd.f32 %v6185_v19, %v5159_v1  ;;  %v5184_v1 = vpop.permute.xlu1 %5183 }
 0x6a1   : > { %v6712_v7 = vmax.f32 %v7255_v20, %v6648_v17  ;;  %v6189_v53 = vpop.f32.mrb[55].mxu1  ;;  %v7262_v25 = vadd.f32 %v6187_v12, %v5164_v16  ;;  %v5179_v20 = vpop.permute.xlu0 %5178 }
 0x6a2   : > { %v6713_v30 = vmax.f32 %v7257_v37, %v6649_v0  ;;  %v6569_v52 = vpop.f32.mrb[52].mxu0  ;;  %v7264_v18 = vadd.f32 %v6189_v53, %v5164_v16 }
 0x6a3   : > { %v6750_v38 = vpack.c.bf16 %v6712_v7, %v6710_v49  ;;  %v7259_v63 = vadd.f32 %v7258_v32, %v6569_v52  ;;  %v6571_v28 = vpop.f32.mrb[53].mxu0 }
 0x6a4   : > { %v7261_v14 = vadd.f32 %v7260_v55, %v6571_v28  ;;  %v6573_v11 = vpop.f32.mrb[54].mxu0  ;;  %v6751_v26 = vpack.c.bf16 %v6713_v30, %v6711_v8 }
 0x6a5   : > { %v6650_v61 = vmul.f32 0.01, %v7259_v63  ;;  %v7263_v42 = vadd.f32 %v7262_v25, %v6573_v11  ;;  %v6575_v22 = vpop.f32.mrb[55].mxu0 }
 0x6a6   : > { %v6651_v44 = vmul.f32 0.01, %v7261_v14  ;;  %v7265_v31 = vadd.f32 %v7264_v18, %v6575_v22  ;;  %v6193_v6 = vpop.f32.mrb[56].mxu1  ;;  %6796 = vmatprep.subr.bf16.mxu1 %v6751_v26 }
 0x6a7   : > { %v6652_v59 = vmul.f32 0.01, %v7263_v42  ;;  %v6195_v57 = vpop.f32.mrb[57].mxu1  ;;  %6797 = vmatpush1.bf16.msra.mxu1 %v6750_v38  ;;  %v6714_v15 = vmax.f32 %v7259_v63, %v6650_v61  ;;  %v7266_v39 = vadd.f32 %v6193_v6, %v5169_v27 }
 0x6a8   : > { %v6653_v62 = vmul.f32 0.01, %v7265_v31  ;;  %v6197_v4 = vpop.f32.mrb[58].mxu1  ;;  %v6715_v13 = vmax.f32 %v7261_v14, %v6651_v44  ;;  %v7268_v29 = vadd.f32 %v6195_v57, %v5169_v27  ;;  %v6763_v57 = vpop.permute.xlu0 %6762 }
 0x6a9   : > { %v6716_v60 = vmax.f32 %v7263_v42, %v6652_v59  ;;  %v6199_v9 = vpop.f32.mrb[59].mxu1  ;;  %v7270_v36 = vadd.f32 %v6197_v4, %v5174_v51  ;;  %v7145_v59 = vcombine.low %v12966_v23, %v12966_v23 }
 0x6aa   : > { %v6717_v54 = vmax.f32 %v7265_v31, %v6653_v62  ;;  %v6579_v41 = vpop.f32.mrb[56].mxu0  ;;  %v7272_v43 = vadd.f32 %v6199_v9, %v5174_v51 }
 0x6ab   : > { %v6752_v56 = vpack.c.bf16 %v6716_v60, %v6714_v15  ;;  %v7267_v45 = vadd.f32 %v7266_v39, %v6579_v41  ;;  %v6581_v33 = vpop.f32.mrb[57].mxu0 }
 0x6ac   : > { %v7269_v46 = vadd.f32 %v7268_v29, %v6581_v33  ;;  %v6583_v35 = vpop.f32.mrb[58].mxu0  ;;  %v6753_v10 = vpack.c.bf16 %v6717_v54, %v6715_v13 }
 0x6ad   : > { %v6654_v2 = vmul.f32 0.01, %v7267_v45  ;;  %v7271_v50 = vadd.f32 %v7270_v36, %v6583_v35  ;;  %v6585_v24 = vpop.f32.mrb[59].mxu0 }
 0x6ae   : > { %v6655_v58 = vmul.f32 0.01, %v7269_v46  ;;  %v7273_v5 = vadd.f32 %v7272_v43, %v6585_v24  ;;  %v6203_v40 = vpop.f32.mrb[60].mxu1  ;;  %6798 = vmatprep.subr.bf16.mxu1 %v6753_v10 }
 0x6af   : > { %v6656_v3 = vmul.f32 0.01, %v7271_v50  ;;  %v6205_v47 = vpop.f32.mrb[61].mxu1  ;;  %6799 = vmatpush1.bf16.msra.mxu1 %v6752_v56  ;;  %v6718_v37 = vmax.f32 %v7267_v45, %v6654_v2  ;;  %v7274_v17 = vadd.f32 %v6203_v40, %v5179_v20 }
 0x6b0   : > { %v6657_v34 = vmul.f32 0.01, %v7273_v5  ;;  %v6207_v21 = vpop.f32.mrb[62].mxu1  ;;  %v6719_v0 = vmax.f32 %v7269_v46, %v6655_v58  ;;  %v7276_v49 = vadd.f32 %v6205_v47, %v5179_v20  ;;  %v7728_v46 = vmov 1966171168   ;;  %v14497_v20 = vld [vmem:[#allocation281_spill] sm:$0xff] }
 0x6b1   : > { %v6720_v48 = vmax.f32 %v7271_v50, %v6656_v3  ;;  %v6209_v19 = vpop.f32.mrb[63].mxu1  ;;  %v7278_v53 = vadd.f32 %v6207_v21, %v5184_v1  ;;  %v6843_v35 = vunpack.c.l.s4 %v7728_v46 }
 0x6b2   : > { %v6721_v12 = vmax.f32 %v7273_v5, %v6657_v34  ;;  %v6589_v7 = vpop.f32.mrb[60].mxu0  ;;  %v7280_v30 = vadd.f32 %v6209_v19, %v5184_v1 }
 0x6b3   : > { %v6754_v32 = vpack.c.bf16 %v6720_v48, %v6718_v37  ;;  %v7275_v16 = vadd.f32 %v7274_v17, %v6589_v7  ;;  %v6591_v8 = vpop.f32.mrb[61].mxu0  ;;  %v6844_v58 = vunpack.c.0.s8 %v6843_v35  ;;  %v14498_v48 = vlaneseq }
 0x6b4   : > { %v7277_v55 = vadd.f32 %v7276_v49, %v6591_v8  ;;  %v6593_v52 = vpop.f32.mrb[62].mxu0  ;;  %v6755_v38 = vpack.c.bf16 %v6721_v12, %v6719_v0 }
 0x6b5   : > { %v6658_v25 = vmul.f32 0.01, %v7275_v16  ;;  %v7279_v63 = vadd.f32 %v7278_v53, %v6593_v52  ;;  %v6595_v28 = vpop.f32.mrb[63].mxu0  ;;  %v6847_v34 = vsub.s32 %v6844_v58, %v14497_v20  ;;  %vm6859_vm0 = vcmp.lt.s32.totalorder %v14498_v48, 256 }
 0x6b6   : > { %v6659_v18 = vmul.f32 0.01, %v7277_v55  ;;  %v7281_v14 = vadd.f32 %v7280_v30, %v6595_v28  ;;  %6800 = vmatprep.subr.bf16.mxu1 %v6755_v38 }
 0x6b7   : > { %v6660_v11 = vmul.f32 0.01, %v7279_v63  ;;  %6801 = vmatpush1.bf16.msra.mxu1 %v6754_v32  ;;  %v6722_v61 = vmax.f32 %v7275_v16, %v6658_v25 }
 0x6b8   : > { %v6661_v26 = vmul.f32 0.01, %v7281_v14  ;;  %v6723_v22 = vmax.f32 %v7277_v55, %v6659_v18 }
 0x6b9   : > { %v6724_v42 = vmax.f32 %v7279_v63, %v6660_v11 }
 0x6ba   : > { %v6725_v44 = vmax.f32 %v7281_v14, %v6661_v26 }
 0x6bb   : > { %v6756_v31 = vpack.c.bf16 %v6724_v42, %v6722_v61 }
 0x6bc   : > { %v6757_v6 = vpack.c.bf16 %v6725_v44, %v6723_v22 }
 0x6be   : > { %6802 = vmatprep.subr.bf16.mxu1 %v6757_v6 }
 0x6bf   : > { %6803 = vmatpush1.bf16.msra.mxu1 %v6756_v31 }
 0x6c2   : > { %6805 = vmatmul.mubr.bf16.vlgmr.msra.gmra.mrb[64].mxu1 %v7145_v59 }
 0x795   : > { %v6806_v27 = vpop.f32.mrb[64].mxu1 }
 0x796   : > { %v6807_v62 = vadd.f32 %v6806_v27, %v6763_v57  ;;  %v6808_v4 = vpop.f32.mrb[65].mxu1 }
 0x797   : > { %v6809_v15 = vadd.f32 %v6808_v4, %v6763_v57  ;;  %v6810_v60 = vpop.f32.mrb[66].mxu1 }
 0x798   : > { %v7147_v39 = vmul.f32 -1.442695, %v6807_v62  ;;  %v6811_v9 = vpop.f32.mrb[67].mxu1 }
 0x799   : > { %v7148_v51 = vmul.f32 -1.442695, %v6809_v15 }
 0x79a   : > { %7508 = vpow2.f32 %v7147_v39 }
 0x79b   : > { %7510 = vpow2.f32 %v7148_v51 }
 0x7a4   : > { %v7509_v13 = vpop.eup %7508 }
 0x7a5   : > { %v7511_v54 = vpop.eup %7510  ;;  %v6819_v29 = vadd.f32 1.0, %v7509_v13 }
 0x7a6   : > { %v6820_v41 = vadd.f32 1.0, %v7511_v54 }
 0x7a7   : > { %7512 = vrcp.f32 %v6819_v29 }
 0x7a8   : > { %7514 = vrcp.f32 %v6820_v41 }
 0x7b1   : > { %v7513_v23 = vpop.eup %7512 }
 0x7b2   : > { %v7515_v56 = vpop.eup %7514  ;;  %6825 = vst [vmem:[%s349_s21] sm:$0xff] %v7513_v23  ;;  %v6827_v36 = vrot.slane %v7513_v23, 4 }
 0x7b3   : > { %6826 = vst [vmem:[%s349_s21 + $0x8] sm:$0xff] %v7515_v56  ;;  %v6833_v45 = vrot.slane %v7515_v56, 4 }
 0x7b4   : > { %v6828_v33 = vmax.f32 %v7513_v23, %v6827_v36 }
 0x7b5   : > { %v6834_v43 = vmax.f32 %v7515_v56, %v6833_v45 }
 0x7b6   : > { %v6829_v10 = vrot.slane %v6828_v33, 2 }
 0x7b7   : > { %v6835_v2 = vrot.slane %v6834_v43, 2 }
 0x7b8   : > { %v6830_v50 = vmax.f32 %v6828_v33, %v6829_v10 }
 0x7b9   : > { %v6836_v24 = vmax.f32 %v6834_v43, %v6835_v2 }
 0x7ba   : > { %v6831_v5 = vrot.slane %v6830_v50, 1 }
 0x7bb   : > { %v6837_v40 = vrot.slane %v6836_v24, 1 }
 0x7bc   : > { %v6832_v3 = vmax.f32 %v6830_v50, %v6831_v5 }
 0x7bd   : > { %v6838_v47 = vmax.f32 %v6836_v24, %v6837_v40 }
 0x7bf   : > { %v6841_v21 = vcombine.low %v6832_v3, %v6838_v47 }
 0x7c1   : > { %v6848_v37 = vrot.slane %v6841_v21, %v6847_v34 }
 0x7c3   : > { %v6855_v17 = vrot.slane %v6848_v37, %v6847_v34 }
 0x7c5   : > { %6861 = vst.msk [vmem:[%s358_s28] sm:$0x3] %vm6859_vm0, %v6855_v17 }
 0x7c6 PF: > { %s18_s26 = sadd.s32 1, %s7722_s26   ;;  %s14499_s24 = smov %s7718_s25 }
 0x7c7   : > { %p15_p5 = scmp.ge.s32.totalorder %s18_s26, 4   ;;  %s14500_s25 = smov %s14502_s27 }
 0x7c9   :  { %17 = sbr.rel (!%p15_p5) target bundleno = 2 (0x2), region = 89 }

</bundles_post_ra>
